<compile_context>
chip_gen: v7x
topology: tpu7x:2x2x1
jax: 0.10.0
libtpu: 0.0.40
codegen_flags: <defaults>
</compile_context>

<pallas_src>
import jax
import jax.numpy as jnp
from jax.experimental import pallas as pl
from jax.experimental.pallas import tpu as pltpu


_COMPILER_PARAMS = pltpu.CompilerParams(
    dimension_semantics=("parallel",),
    vmem_limit_bytes=32 * 1024 * 1024,
)


# ----------------------------------------------------------------------------
# Kernels
# ----------------------------------------------------------------------------
def _enc_conv_kernel(x_ref, w0_ref, w1_ref, b_ref, o_ref):
    """Conv2d(k=2, s=2) + ReLU for one output row.

    x_ref : (1, 2, Wo, 2*Cin) bf16  -- [even-H row | odd-H row], lanes = (b, c)
    w*_ref: (2*Cin, Cout)     bf16  -- taps for a=0 / a=1
    b_ref : (1, Cout)         f32
    o_ref : (1, Wo, Cout)     bf16
    """
    acc = jnp.dot(x_ref[0, 0], w0_ref[...], preferred_element_type=jnp.float32)
    acc = acc + jnp.dot(x_ref[0, 1], w1_ref[...],
                        preferred_element_type=jnp.float32)
    acc = jnp.maximum(acc + b_ref[...], 0.0)
    o_ref[0] = acc.astype(o_ref.dtype)


def _dec_convt_kernel(x_ref, w0_ref, w1_ref, b_ref, o_ref):
    """ConvTranspose2d(k=2, s=2) + ReLU for one input row.

    x_ref : (1, Wi, Cin)        bf16
    w*_ref: (Cin, 2*Cout)       bf16  -- lanes packed as (b, cout), a = 0 / 1
    b_ref : (1, 2*Cout)         f32
    o_ref : (1, 2, Wi, 2*Cout)  bf16  -- axis 1 = output sub-row a
    """
    x = x_ref[0]
    y0 = jnp.dot(x, w0_ref[...], preferred_element_type=jnp.float32)
    y1 = jnp.dot(x, w1_ref[...], preferred_element_type=jnp.float32)
    o_ref[0, 0] = jnp.maximum(y0 + b_ref[...], 0.0).astype(o_ref.dtype)
    o_ref[0, 1] = jnp.maximum(y1 + b_ref[...], 0.0).astype(o_ref.dtype)


def _tail_kernel(x_ref, kf_ref, bt_ref, ry_ref, kx_ref, o_ref):
    """Fused 1x1 conv + sigmoid + bilinear resize for one image.

    x_ref : (1, Hi, Wi*Cl)     bf16   -- decoder output, row layout
    kf_ref: (Wi*Cl, Wi*3)      bf16   -- kron(I_Wi, Wf): block-diag 1x1 conv
    bt_ref: (1, Wi*3)          f32
    ry_ref: (Ho, Hi)           f32    -- H-direction bilinear matrix
    kx_ref: (Wi*3, Wo*3)       f32    -- kron(RX^T, I_3): W-direction bilinear
    o_ref : (1, Ho, Wo*3)      f32
    """
    acc = jnp.dot(x_ref[0], kf_ref[...], preferred_element_type=jnp.float32)
    s = jax.nn.sigmoid(acc + bt_ref[...])                       # f32 (Hi, Wi*3)
    t = jnp.dot(ry_ref[...], s, preferred_element_type=jnp.float32)   # (Ho, Wi*3)
    o = jnp.dot(t, kx_ref[...], preferred_element_type=jnp.float32)   # (Ho, Wo*3)
    o_ref[0] = o.astype(o_ref.dtype)


# ----------------------------------------------------------------------------
# Layer wrappers (only bitcast-free reshapes outside the kernels)
# ----------------------------------------------------------------------------
def conv2x2_s2_relu(x, w0, w1, b):
    n, h, wd, c = x.shape
    ho, wo = h // 2, wd // 2
    x = x[:, : 2 * ho, : 2 * wo, :]                   # torch drops odd tail
    xr = x.reshape(n * ho, 2, wo, 2 * c)              # free bitcast reshape
    cout = w0.shape[1]
    out = pl.pallas_call(
        _enc_conv_kernel,
        out_shape=jax.ShapeDtypeStruct((n * ho, wo, cout), jnp.bfloat16),
        grid_spec=pltpu.PrefetchScalarGridSpec(
            num_scalar_prefetch=0,
            grid=(n * ho,),
            in_specs=[
                pl.BlockSpec((1, 2, wo, 2 * c), lambda r: (r, 0, 0, 0)),
                pl.BlockSpec((2 * c, cout), lambda r: (0, 0)),
                pl.BlockSpec((2 * c, cout), lambda r: (0, 0)),
                pl.BlockSpec((1, cout), lambda r: (0, 0)),
            ],
            out_specs=pl.BlockSpec((1, wo, cout), lambda r: (r, 0, 0)),
        ),
        compiler_params=_COMPILER_PARAMS,
    )(xr, w0, w1, b)
    return out.reshape(n, ho, wo, cout)               # free bitcast reshape


def convtranspose2x2_s2_relu(x, w0, w1, b2):
    n, hi, wi, cin = x.shape
    cout2 = w0.shape[1]
    cout = cout2 // 2
    xr = x.reshape(n * hi, wi, cin)                   # free bitcast reshape
    out = pl.pallas_call(
        _dec_convt_kernel,
        out_shape=jax.ShapeDtypeStruct((n * hi, 2, wi, cout2), jnp.bfloat16),
        grid_spec=pltpu.PrefetchScalarGridSpec(
            num_scalar_prefetch=0,
            grid=(n * hi,),
            in_specs=[
                pl.BlockSpec((1, wi, cin), lambda r: (r, 0, 0)),
                pl.BlockSpec((cin, cout2), lambda r: (0, 0)),
                pl.BlockSpec((cin, cout2), lambda r: (0, 0)),
                pl.BlockSpec((1, cout2), lambda r: (0, 0)),
            ],
            out_specs=pl.BlockSpec((1, 2, wi, cout2), lambda r: (r, 0, 0, 0)),
        ),
        compiler_params=_COMPILER_PARAMS,
    )(xr, w0, w1, b2)
    # (N*Hi, 2, Wi, 2*Cout) is exactly (N, 2Hi, 2Wi, Cout) in flat order.
    return out.reshape(n, 2 * hi, 2 * wi, cout)       # free bitcast reshape


def conv1x1_sigmoid_resize(x, kf, bt, ry, kx):
    n, hi, wi, cl = x.shape
    ho = ry.shape[0]
    wo3 = kx.shape[1]
    xr = x.reshape(n, hi, wi * cl)                    # free bitcast reshape
    out = pl.pallas_call(
        _tail_kernel,
        out_shape=jax.ShapeDtypeStruct((n, ho, wo3), jnp.float32),
        grid_spec=pltpu.PrefetchScalarGridSpec(
            num_scalar_prefetch=0,
            grid=(n,),
            in_specs=[
                pl.BlockSpec((1, hi, wi * cl), lambda r: (r, 0, 0)),
                pl.BlockSpec((wi * cl, wi * 3), lambda r: (0, 0)),
                pl.BlockSpec((1, wi * 3), lambda r: (0, 0)),
                pl.BlockSpec((ho, hi), lambda r: (0, 0)),
                pl.BlockSpec((wi * 3, wo3), lambda r: (0, 0)),
            ],
            out_specs=pl.BlockSpec((1, ho, wo3), lambda r: (r, 0, 0)),
        ),
        compiler_params=_COMPILER_PARAMS,
    )(xr, kf, bt, ry, kx)
    return out.reshape(n, ho, wo3 // 3, 3)            # free bitcast reshape


def _resize_matrix(out_size, in_size):
    """Bilinear interpolation matrix (align_corners=False, PyTorch semantics)."""
    scale = in_size / out_size
    dst = jnp.arange(out_size, dtype=jnp.float32)
    src = jnp.maximum((dst + 0.5) * scale - 0.5, 0.0)
    i0 = jnp.clip(jnp.floor(src).astype(jnp.int32), 0, in_size - 1)
    i1 = jnp.minimum(i0 + 1, in_size - 1)
    lam = src - i0.astype(jnp.float32)
    m = ((1.0 - lam)[:, None] * jax.nn.one_hot(i0, in_size, dtype=jnp.float32)
         + lam[:, None] * jax.nn.one_hot(i1, in_size, dtype=jnp.float32))
    return m  # (out_size, in_size)


# ----------------------------------------------------------------------------
# Forward (jitted once) and Network container
# ----------------------------------------------------------------------------
def _forward(params, x_nchw):
    enc, dec, kf, bt, ry, kx = params
    x = jnp.transpose(x_nchw, (0, 2, 3, 1)).astype(jnp.bfloat16)  # NCHW->NHWC
    for w0, w1, b in enc:
        x = conv2x2_s2_relu(x, w0, w1, b)
    for w0, w1, b2 in dec:
        x = convtranspose2x2_s2_relu(x, w0, w1, b2)
    x = conv1x1_sigmoid_resize(x, kf, bt, ry, kx)                 # (N,Ho,Wo,3) f32
    return jnp.transpose(x, (0, 3, 1, 2))                         # NHWC->NCHW


_forward_jit = jax.jit(_forward)


class Network:
    def __init__(self, key, input_size=(36, 36)):
        # TODO(synk): real encoder is a torchvision backbone chosen by
        # args.usenet; external classes, so a compact 4x strided-conv encoder
        # with the same 512-channel feature output is used as stand-in.
        enc_chans = [3, 64, 128, 256, 512]
        keys = jax.random.split(key, 20)
        ki = 0
        h, w = input_size

        self.enc = []
        for cin, cout in zip(enc_chans[:-1], enc_chans[1:]):
            w_pt = jax.random.normal(keys[ki], (cout, cin, 2, 2), jnp.float32) * 0.05
            b_pt = jax.random.normal(keys[ki + 1], (cout,), jnp.float32) * 0.05
            ki += 2
            # kernel layout W_a[b*Cin + c, co] = w_pt[co, c, a, b]  (bf16, hoisted)
            w0 = jnp.transpose(w_pt[:, :, 0, :], (2, 1, 0)).reshape(2 * cin, cout)
            w1 = jnp.transpose(w_pt[:, :, 1, :], (2, 1, 0)).reshape(2 * cin, cout)
            self.enc.append((w0.astype(jnp.bfloat16), w1.astype(jnp.bfloat16),
                             b_pt.reshape(1, cout)))
            h //= 2
            w //= 2
        encoded_channels = enc_chans[-1]

        # Decoder: 4 x (ConvTranspose2d(k=2, s=2) + ReLU)
        dec_chans = [(encoded_channels, 512), (512, 256), (256, 128), (128, 64)]
        self.dec = []
        for cin, cout in dec_chans:
            w_pt = jax.random.normal(keys[ki], (cin, cout, 2, 2), jnp.float32) * 0.05
            b_pt = jax.random.normal(keys[ki + 1], (cout,), jnp.float32) * 0.05
            ki += 2
            # kernel layout W_a[c, b*Cout + co] = w_pt[c, co, a, b]  (bf16, hoisted)
            w0 = jnp.transpose(w_pt[:, :, 0, :], (0, 2, 1)).reshape(cin, 2 * cout)
            w1 = jnp.transpose(w_pt[:, :, 1, :], (0, 2, 1)).reshape(cin, 2 * cout)
            b2 = jnp.tile(b_pt, 2).reshape(1, 2 * cout)
            self.dec.append((w0.astype(jnp.bfloat16), w1.astype(jnp.bfloat16), b2))
            h *= 2
            w *= 2
        dec_h, dec_w = h, w

        # Final ConvTranspose2d(64, 3, k=1) + Sigmoid + bilinear resize, fused.
        wf_pt = jax.random.normal(keys[ki], (64, 3, 1, 1), jnp.float32) * 0.05
        bf_pt = jax.random.normal(keys[ki + 1], (3,), jnp.float32) * 0.05
        wf = wf_pt[:, :, 0, 0]                                      # (64, 3)
        # 1x1 conv as block-diagonal matmul on the (Hi, Wi*64) row layout.
        self.kf = jnp.kron(jnp.eye(dec_w, dtype=jnp.float32),
                           wf).astype(jnp.bfloat16)                 # (Wi*64, Wi*3)
        self.bt = jnp.tile(bf_pt, dec_w).reshape(1, dec_w * 3)      # (1, Wi*3)
        out_h, out_w = input_size
        self.ry = _resize_matrix(out_h, dec_h)                      # (Ho, Hi)
        self.kx = jnp.kron(_resize_matrix(out_w, dec_w).T,
                           jnp.eye(3, dtype=jnp.float32))           # (Wi*3, Wo*3)
        self.input_size = tuple(input_size)

    def __call__(self, x_nchw):
        assert tuple(x_nchw.shape[2:]) == self.input_size, x_nchw.shape
        params = (tuple(self.enc), tuple(self.dec),
                  self.kf, self.bt, self.ry, self.kx)
        return _forward_jit(params, x_nchw)


if __name__ == "__main__":
    key = jax.random.PRNGKey(0)
    pkey, xkey = jax.random.split(key)
    net = Network(pkey, input_size=(36, 36))
    # small shapes: batch=2, RGB, crop_size=36 (exercises odd-size cropping and
    # the 32 -> 36 bilinear resize)
    x = jax.random.normal(xkey, (2, 3, 36, 36), dtype=jnp.float32)
    y = net(x)
    jax.block_until_ready(y)
    assert y.shape == (2, 3, 36, 36), y.shape
    assert bool(jnp.all(jnp.isfinite(y)))
    print("KERNEL_OK")
</pallas_src>

<mosaic_0001>
module attributes {stable_mosaic.version = 11 : i64} {
  func.func @_enc_conv_kernel(%arg0: i32, %arg1: memref<1x2x18x6xbf16, #tpu.memory_space<vmem>>, %arg2: memref<6x64xbf16, #tpu.memory_space<vmem>>, %arg3: memref<6x64xbf16, #tpu.memory_space<vmem>>, %arg4: memref<1x64xf32, #tpu.memory_space<vmem>>, %arg5: memref<1x18x64xbf16, #tpu.memory_space<vmem>>) attributes {dimension_semantics = [#tpu.dimension_semantics<parallel>], iteration_bounds = array<i64: 36>, scalar_prefetch = 0 : i64, scratch_operands = 0 : i64, tpu.core_type = #tpu.core_type<tc>, window_params = [{transform_indices = @transform_0, window_bounds = array<i64: 1, 2, 18, 6>}, {pipeline_mode = #tpu.pipeline_mode<synchronous>, transform_indices = @transform_1, window_bounds = array<i64: 6, 64>}, {pipeline_mode = #tpu.pipeline_mode<synchronous>, transform_indices = @transform_2, window_bounds = array<i64: 6, 64>}, {pipeline_mode = #tpu.pipeline_mode<synchronous>, transform_indices = @transform_3, window_bounds = array<i64: 1, 64>}, {transform_indices = @transform_4, window_bounds = array<i64: 1, 18, 64>}]} {
    %c0 = arith.constant 0 : index
    %c0_0 = arith.constant 0 : index
    %c0_1 = arith.constant 0 : index
    %c0_2 = arith.constant 0 : index
    %0 = vector.load %arg1[%c0, %c0_0, %c0_1, %c0_2] : memref<1x2x18x6xbf16, #tpu.memory_space<vmem>>, vector<1x1x18x6xbf16>
    %1 = vector.shape_cast %0 : vector<1x1x18x6xbf16> to vector<18x6xbf16>
    %c0_3 = arith.constant 0 : index
    %c0_4 = arith.constant 0 : index
    %2 = vector.load %arg2[%c0_3, %c0_4] : memref<6x64xbf16, #tpu.memory_space<vmem>>, vector<6x64xbf16>
    %cst = arith.constant dense<0.000000e+00> : vector<18x64xf32>
    %3 = tpu.matmul %1, %2, %cst {dimension_numbers = #tpu.dot_dimension_numbers<[1], [0], [0], [1], [0, 0, 1, 1], [], []>} : vector<18x6xbf16>, vector<6x64xbf16>, vector<18x64xf32> -> vector<18x64xf32>
    %c0_5 = arith.constant 0 : index
    %c1 = arith.constant 1 : index
    %c0_6 = arith.constant 0 : index
    %c0_7 = arith.constant 0 : index
    %4 = vector.load %arg1[%c0_5, %c1, %c0_6, %c0_7] : memref<1x2x18x6xbf16, #tpu.memory_space<vmem>>, vector<1x1x18x6xbf16>
    %5 = vector.shape_cast %4 : vector<1x1x18x6xbf16> to vector<18x6xbf16>
    %c0_8 = arith.constant 0 : index
    %c0_9 = arith.constant 0 : index
    %6 = vector.load %arg3[%c0_8, %c0_9] : memref<6x64xbf16, #tpu.memory_space<vmem>>, vector<6x64xbf16>
    %cst_10 = arith.constant dense<0.000000e+00> : vector<18x64xf32>
    %7 = tpu.matmul %5, %6, %cst_10 {dimension_numbers = #tpu.dot_dimension_numbers<[1], [0], [0], [1], [0, 0, 1, 1], [], []>} : vector<18x6xbf16>, vector<6x64xbf16>, vector<18x64xf32> -> vector<18x64xf32>
    %8 = arith.addf %3, %7 : vector<18x64xf32>
    %c0_11 = arith.constant 0 : index
    %c0_12 = arith.constant 0 : index
    %9 = vector.load %arg4[%c0_11, %c0_12] : memref<1x64xf32, #tpu.memory_space<vmem>>, vector<1x64xf32>
    %10 = vector.broadcast %9 : vector<1x64xf32> to vector<18x64xf32>
    %11 = arith.addf %8, %10 : vector<18x64xf32>
    %cst_13 = arith.constant 0.000000e+00 : f32
    %12 = vector.broadcast %cst_13 : f32 to vector<18x64xf32>
    %13 = arith.maximumf %11, %12 : vector<18x64xf32>
    %14 = arith.truncf %13 : vector<18x64xf32> to vector<18x64xbf16>
    %c0_14 = arith.constant 0 : index
    %c0_15 = arith.constant 0 : index
    %c0_16 = arith.constant 0 : index
    %15 = vector.load %arg5[%c0_14, %c0_15, %c0_16] : memref<1x18x64xbf16, #tpu.memory_space<vmem>>, vector<1x18x64xbf16>
    %16 = vector.shape_cast %15 : vector<1x18x64xbf16> to vector<18x64xbf16>
    %17 = vector.shape_cast %14 : vector<18x64xbf16> to vector<1x18x64xbf16>
    tpu.vector_store %arg5[%c0_14, %c0_15, %c0_16], %17 {strides = array<i32>} : memref<1x18x64xbf16, #tpu.memory_space<vmem>>, vector<1x18x64xbf16>,
    return
  }
  func.func @transform_0(%arg0: i32) -> (i32, i32, i32, i32) {
    %c0_i32 = arith.constant 0 : i32
    %c0_i32_0 = arith.constant 0 : i32
    %c0_i32_1 = arith.constant 0 : i32
    %c0_i32_2 = arith.constant 0 : i32
    return %arg0, %c0_i32, %c0_i32_0, %c0_i32_1 : i32, i32, i32, i32
  }
  func.func @transform_1(%arg0: i32) -> (i32, i32) {
    %c0_i32 = arith.constant 0 : i32
    %c0_i32_0 = arith.constant 0 : i32
    %c0_i32_1 = arith.constant 0 : i32
    return %c0_i32, %c0_i32_0 : i32, i32
  }
  func.func @transform_2(%arg0: i32) -> (i32, i32) {
    %c0_i32 = arith.constant 0 : i32
    %c0_i32_0 = arith.constant 0 : i32
    %c0_i32_1 = arith.constant 0 : i32
    return %c0_i32, %c0_i32_0 : i32, i32
  }
  func.func @transform_3(%arg0: i32) -> (i32, i32) {
    %c0_i32 = arith.constant 0 : i32
    %c0_i32_0 = arith.constant 0 : i32
    %c0_i32_1 = arith.constant 0 : i32
    return %c0_i32, %c0_i32_0 : i32, i32
  }
  func.func @transform_4(%arg0: i32) -> (i32, i32, i32) {
    %c0_i32 = arith.constant 0 : i32
    %c0_i32_0 = arith.constant 0 : i32
    %c0_i32_1 = arith.constant 0 : i32
    return %arg0, %c0_i32, %c0_i32_0 : i32, i32, i32
  }
}

module attributes {stable_mosaic.version = 11 : i64} {
  func.func @_enc_conv_kernel(%arg0: i32, %arg1: memref<1x2x9x128xbf16, #tpu.memory_space<vmem>>, %arg2: memref<128x128xbf16, #tpu.memory_space<vmem>>, %arg3: memref<128x128xbf16, #tpu.memory_space<vmem>>, %arg4: memref<1x128xf32, #tpu.memory_space<vmem>>, %arg5: memref<1x9x128xbf16, #tpu.memory_space<vmem>>) attributes {dimension_semantics = [#tpu.dimension_semantics<parallel>], iteration_bounds = array<i64: 18>, scalar_prefetch = 0 : i64, scratch_operands = 0 : i64, tpu.core_type = #tpu.core_type<tc>, window_params = [{transform_indices = @transform_0, window_bounds = array<i64: 1, 2, 9, 128>}, {pipeline_mode = #tpu.pipeline_mode<synchronous>, transform_indices = @transform_1, window_bounds = array<i64: 128, 128>}, {pipeline_mode = #tpu.pipeline_mode<synchronous>, transform_indices = @transform_2, window_bounds = array<i64: 128, 128>}, {pipeline_mode = #tpu.pipeline_mode<synchronous>, transform_indices = @transform_3, window_bounds = array<i64: 1, 128>}, {transform_indices = @transform_4, window_bounds = array<i64: 1, 9, 128>}]} {
    %c0 = arith.constant 0 : index
    %c0_0 = arith.constant 0 : index
    %c0_1 = arith.constant 0 : index
    %c0_2 = arith.constant 0 : index
    %0 = vector.load %arg1[%c0, %c0_0, %c0_1, %c0_2] : memref<1x2x9x128xbf16, #tpu.memory_space<vmem>>, vector<1x1x9x128xbf16>
    %1 = vector.shape_cast %0 : vector<1x1x9x128xbf16> to vector<9x128xbf16>
    %c0_3 = arith.constant 0 : index
    %c0_4 = arith.constant 0 : index
    %2 = vector.load %arg2[%c0_3, %c0_4] : memref<128x128xbf16, #tpu.memory_space<vmem>>, vector<128x128xbf16>
    %cst = arith.constant dense<0.000000e+00> : vector<9x128xf32>
    %3 = tpu.matmul %1, %2, %cst {dimension_numbers = #tpu.dot_dimension_numbers<[1], [0], [0], [1], [0, 0, 1, 1], [], []>} : vector<9x128xbf16>, vector<128x128xbf16>, vector<9x128xf32> -> vector<9x128xf32>
    %c0_5 = arith.constant 0 : index
    %c1 = arith.constant 1 : index
    %c0_6 = arith.constant 0 : index
    %c0_7 = arith.constant 0 : index
    %4 = vector.load %arg1[%c0_5, %c1, %c0_6, %c0_7] : memref<1x2x9x128xbf16, #tpu.memory_space<vmem>>, vector<1x1x9x128xbf16>
    %5 = vector.shape_cast %4 : vector<1x1x9x128xbf16> to vector<9x128xbf16>
    %c0_8 = arith.constant 0 : index
    %c0_9 = arith.constant 0 : index
    %6 = vector.load %arg3[%c0_8, %c0_9] : memref<128x128xbf16, #tpu.memory_space<vmem>>, vector<128x128xbf16>
    %cst_10 = arith.constant dense<0.000000e+00> : vector<9x128xf32>
    %7 = tpu.matmul %5, %6, %cst_10 {dimension_numbers = #tpu.dot_dimension_numbers<[1], [0], [0], [1], [0, 0, 1, 1], [], []>} : vector<9x128xbf16>, vector<128x128xbf16>, vector<9x128xf32> -> vector<9x128xf32>
    %8 = arith.addf %3, %7 : vector<9x128xf32>
    %c0_11 = arith.constant 0 : index
    %c0_12 = arith.constant 0 : index
    %9 = vector.load %arg4[%c0_11, %c0_12] : memref<1x128xf32, #tpu.memory_space<vmem>>, vector<1x128xf32>
    %10 = vector.broadcast %9 : vector<1x128xf32> to vector<9x128xf32>
    %11 = arith.addf %8, %10 : vector<9x128xf32>
    %cst_13 = arith.constant 0.000000e+00 : f32
    %12 = vector.broadcast %cst_13 : f32 to vector<9x128xf32>
    %13 = arith.maximumf %11, %12 : vector<9x128xf32>
    %14 = arith.truncf %13 : vector<9x128xf32> to vector<9x128xbf16>
    %c0_14 = arith.constant 0 : index
    %c0_15 = arith.constant 0 : index
    %c0_16 = arith.constant 0 : index
    %15 = vector.load %arg5[%c0_14, %c0_15, %c0_16] : memref<1x9x128xbf16, #tpu.memory_space<vmem>>, vector<1x9x128xbf16>
    %16 = vector.shape_cast %15 : vector<1x9x128xbf16> to vector<9x128xbf16>
    %17 = vector.shape_cast %14 : vector<9x128xbf16> to vector<1x9x128xbf16>
    tpu.vector_store %arg5[%c0_14, %c0_15, %c0_16], %17 {strides = array<i32>} : memref<1x9x128xbf16, #tpu.memory_space<vmem>>, vector<1x9x128xbf16>,
    return
  }
  func.func @transform_0(%arg0: i32) -> (i32, i32, i32, i32) {
    %c0_i32 = arith.constant 0 : i32
    %c0_i32_0 = arith.constant 0 : i32
    %c0_i32_1 = arith.constant 0 : i32
    %c0_i32_2 = arith.constant 0 : i32
    return %arg0, %c0_i32, %c0_i32_0, %c0_i32_1 : i32, i32, i32, i32
  }
  func.func @transform_1(%arg0: i32) -> (i32, i32) {
    %c0_i32 = arith.constant 0 : i32
    %c0_i32_0 = arith.constant 0 : i32
    %c0_i32_1 = arith.constant 0 : i32
    return %c0_i32, %c0_i32_0 : i32, i32
  }
  func.func @transform_2(%arg0: i32) -> (i32, i32) {
    %c0_i32 = arith.constant 0 : i32
    %c0_i32_0 = arith.constant 0 : i32
    %c0_i32_1 = arith.constant 0 : i32
    return %c0_i32, %c0_i32_0 : i32, i32
  }
  func.func @transform_3(%arg0: i32) -> (i32, i32) {
    %c0_i32 = arith.constant 0 : i32
    %c0_i32_0 = arith.constant 0 : i32
    %c0_i32_1 = arith.constant 0 : i32
    return %c0_i32, %c0_i32_0 : i32, i32
  }
  func.func @transform_4(%arg0: i32) -> (i32, i32, i32) {
    %c0_i32 = arith.constant 0 : i32
    %c0_i32_0 = arith.constant 0 : i32
    %c0_i32_1 = arith.constant 0 : i32
    return %arg0, %c0_i32, %c0_i32_0 : i32, i32, i32
  }
}

module attributes {stable_mosaic.version = 11 : i64} {
  func.func @_enc_conv_kernel(%arg0: i32, %arg1: memref<1x2x2x512xbf16, #tpu.memory_space<vmem>>, %arg2: memref<512x512xbf16, #tpu.memory_space<vmem>>, %arg3: memref<512x512xbf16, #tpu.memory_space<vmem>>, %arg4: memref<1x512xf32, #tpu.memory_space<vmem>>, %arg5: memref<1x2x512xbf16, #tpu.memory_space<vmem>>) attributes {dimension_semantics = [#tpu.dimension_semantics<parallel>], iteration_bounds = array<i64: 4>, scalar_prefetch = 0 : i64, scratch_operands = 0 : i64, tpu.core_type = #tpu.core_type<tc>, window_params = [{transform_indices = @transform_0, window_bounds = array<i64: 1, 2, 2, 512>}, {pipeline_mode = #tpu.pipeline_mode<synchronous>, transform_indices = @transform_1, window_bounds = array<i64: 512, 512>}, {pipeline_mode = #tpu.pipeline_mode<synchronous>, transform_indices = @transform_2, window_bounds = array<i64: 512, 512>}, {pipeline_mode = #tpu.pipeline_mode<synchronous>, transform_indices = @transform_3, window_bounds = array<i64: 1, 512>}, {transform_indices = @transform_4, window_bounds = array<i64: 1, 2, 512>}]} {
    %c0 = arith.constant 0 : index
    %c0_0 = arith.constant 0 : index
    %c0_1 = arith.constant 0 : index
    %c0_2 = arith.constant 0 : index
    %0 = vector.load %arg1[%c0, %c0_0, %c0_1, %c0_2] : memref<1x2x2x512xbf16, #tpu.memory_space<vmem>>, vector<1x1x2x512xbf16>
    %1 = vector.shape_cast %0 : vector<1x1x2x512xbf16> to vector<2x512xbf16>
    %c0_3 = arith.constant 0 : index
    %c0_4 = arith.constant 0 : index
    %2 = vector.load %arg2[%c0_3, %c0_4] : memref<512x512xbf16, #tpu.memory_space<vmem>>, vector<512x512xbf16>
    %cst = arith.constant dense<0.000000e+00> : vector<2x512xf32>
    %3 = tpu.matmul %1, %2, %cst {dimension_numbers = #tpu.dot_dimension_numbers<[1], [0], [0], [1], [0, 0, 1, 1], [], []>} : vector<2x512xbf16>, vector<512x512xbf16>, vector<2x512xf32> -> vector<2x512xf32>
    %c0_5 = arith.constant 0 : index
    %c1 = arith.constant 1 : index
    %c0_6 = arith.constant 0 : index
    %c0_7 = arith.constant 0 : index
    %4 = vector.load %arg1[%c0_5, %c1, %c0_6, %c0_7] : memref<1x2x2x512xbf16, #tpu.memory_space<vmem>>, vector<1x1x2x512xbf16>
    %5 = vector.shape_cast %4 : vector<1x1x2x512xbf16> to vector<2x512xbf16>
    %c0_8 = arith.constant 0 : index
    %c0_9 = arith.constant 0 : index
    %6 = vector.load %arg3[%c0_8, %c0_9] : memref<512x512xbf16, #tpu.memory_space<vmem>>, vector<512x512xbf16>
    %cst_10 = arith.constant dense<0.000000e+00> : vector<2x512xf32>
    %7 = tpu.matmul %5, %6, %cst_10 {dimension_numbers = #tpu.dot_dimension_numbers<[1], [0], [0], [1], [0, 0, 1, 1], [], []>} : vector<2x512xbf16>, vector<512x512xbf16>, vector<2x512xf32> -> vector<2x512xf32>
    %8 = arith.addf %3, %7 : vector<2x512xf32>
    %c0_11 = arith.constant 0 : index
    %c0_12 = arith.constant 0 : index
    %9 = vector.load %arg4[%c0_11, %c0_12] : memref<1x512xf32, #tpu.memory_space<vmem>>, vector<1x512xf32>
    %10 = vector.broadcast %9 : vector<1x512xf32> to vector<2x512xf32>
    %11 = arith.addf %8, %10 : vector<2x512xf32>
    %cst_13 = arith.constant 0.000000e+00 : f32
    %12 = vector.broadcast %cst_13 : f32 to vector<2x512xf32>
    %13 = arith.maximumf %11, %12 : vector<2x512xf32>
    %14 = arith.truncf %13 : vector<2x512xf32> to vector<2x512xbf16>
    %c0_14 = arith.constant 0 : index
    %c0_15 = arith.constant 0 : index
    %c0_16 = arith.constant 0 : index
    %15 = vector.load %arg5[%c0_14, %c0_15, %c0_16] : memref<1x2x512xbf16, #tpu.memory_space<vmem>>, vector<1x2x512xbf16>
    %16 = vector.shape_cast %15 : vector<1x2x512xbf16> to vector<2x512xbf16>
    %17 = vector.shape_cast %14 : vector<2x512xbf16> to vector<1x2x512xbf16>
    tpu.vector_store %arg5[%c0_14, %c0_15, %c0_16], %17 {strides = array<i32>} : memref<1x2x512xbf16, #tpu.memory_space<vmem>>, vector<1x2x512xbf16>,
    return
  }
  func.func @transform_0(%arg0: i32) -> (i32, i32, i32, i32) {
    %c0_i32 = arith.constant 0 : i32
    %c0_i32_0 = arith.constant 0 : i32
    %c0_i32_1 = arith.constant 0 : i32
    %c0_i32_2 = arith.constant 0 : i32
    return %arg0, %c0_i32, %c0_i32_0, %c0_i32_1 : i32, i32, i32, i32
  }
  func.func @transform_1(%arg0: i32) -> (i32, i32) {
    %c0_i32 = arith.constant 0 : i32
    %c0_i32_0 = arith.constant 0 : i32
    %c0_i32_1 = arith.constant 0 : i32
    return %c0_i32, %c0_i32_0 : i32, i32
  }
  func.func @transform_2(%arg0: i32) -> (i32, i32) {
    %c0_i32 = arith.constant 0 : i32
    %c0_i32_0 = arith.constant 0 : i32
    %c0_i32_1 = arith.constant 0 : i32
    return %c0_i32, %c0_i32_0 : i32, i32
  }
  func.func @transform_3(%arg0: i32) -> (i32, i32) {
    %c0_i32 = arith.constant 0 : i32
    %c0_i32_0 = arith.constant 0 : i32
    %c0_i32_1 = arith.constant 0 : i32
    return %c0_i32, %c0_i32_0 : i32, i32
  }
  func.func @transform_4(%arg0: i32) -> (i32, i32, i32) {
    %c0_i32 = arith.constant 0 : i32
    %c0_i32_0 = arith.constant 0 : i32
    %c0_i32_1 = arith.constant 0 : i32
    return %arg0, %c0_i32, %c0_i32_0 : i32, i32, i32
  }
}

module attributes {stable_mosaic.version = 11 : i64} {
  func.func @_enc_conv_kernel(%arg0: i32, %arg1: memref<1x2x4x256xbf16, #tpu.memory_space<vmem>>, %arg2: memref<256x256xbf16, #tpu.memory_space<vmem>>, %arg3: memref<256x256xbf16, #tpu.memory_space<vmem>>, %arg4: memref<1x256xf32, #tpu.memory_space<vmem>>, %arg5: memref<1x4x256xbf16, #tpu.memory_space<vmem>>) attributes {dimension_semantics = [#tpu.dimension_semantics<parallel>], iteration_bounds = array<i64: 8>, scalar_prefetch = 0 : i64, scratch_operands = 0 : i64, tpu.core_type = #tpu.core_type<tc>, window_params = [{transform_indices = @transform_0, window_bounds = array<i64: 1, 2, 4, 256>}, {pipeline_mode = #tpu.pipeline_mode<synchronous>, transform_indices = @transform_1, window_bounds = array<i64: 256, 256>}, {pipeline_mode = #tpu.pipeline_mode<synchronous>, transform_indices = @transform_2, window_bounds = array<i64: 256, 256>}, {pipeline_mode = #tpu.pipeline_mode<synchronous>, transform_indices = @transform_3, window_bounds = array<i64: 1, 256>}, {transform_indices = @transform_4, window_bounds = array<i64: 1, 4, 256>}]} {
    %c0 = arith.constant 0 : index
    %c0_0 = arith.constant 0 : index
    %c0_1 = arith.constant 0 : index
    %c0_2 = arith.constant 0 : index
    %0 = vector.load %arg1[%c0, %c0_0, %c0_1, %c0_2] : memref<1x2x4x256xbf16, #tpu.memory_space<vmem>>, vector<1x1x4x256xbf16>
    %1 = vector.shape_cast %0 : vector<1x1x4x256xbf16> to vector<4x256xbf16>
    %c0_3 = arith.constant 0 : index
    %c0_4 = arith.constant 0 : index
    %2 = vector.load %arg2[%c0_3, %c0_4] : memref<256x256xbf16, #tpu.memory_space<vmem>>, vector<256x256xbf16>
    %cst = arith.constant dense<0.000000e+00> : vector<4x256xf32>
    %3 = tpu.matmul %1, %2, %cst {dimension_numbers = #tpu.dot_dimension_numbers<[1], [0], [0], [1], [0, 0, 1, 1], [], []>} : vector<4x256xbf16>, vector<256x256xbf16>, vector<4x256xf32> -> vector<4x256xf32>
    %c0_5 = arith.constant 0 : index
    %c1 = arith.constant 1 : index
    %c0_6 = arith.constant 0 : index
    %c0_7 = arith.constant 0 : index
    %4 = vector.load %arg1[%c0_5, %c1, %c0_6, %c0_7] : memref<1x2x4x256xbf16, #tpu.memory_space<vmem>>, vector<1x1x4x256xbf16>
    %5 = vector.shape_cast %4 : vector<1x1x4x256xbf16> to vector<4x256xbf16>
    %c0_8 = arith.constant 0 : index
    %c0_9 = arith.constant 0 : index
    %6 = vector.load %arg3[%c0_8, %c0_9] : memref<256x256xbf16, #tpu.memory_space<vmem>>, vector<256x256xbf16>
    %cst_10 = arith.constant dense<0.000000e+00> : vector<4x256xf32>
    %7 = tpu.matmul %5, %6, %cst_10 {dimension_numbers = #tpu.dot_dimension_numbers<[1], [0], [0], [1], [0, 0, 1, 1], [], []>} : vector<4x256xbf16>, vector<256x256xbf16>, vector<4x256xf32> -> vector<4x256xf32>
    %8 = arith.addf %3, %7 : vector<4x256xf32>
    %c0_11 = arith.constant 0 : index
    %c0_12 = arith.constant 0 : index
    %9 = vector.load %arg4[%c0_11, %c0_12] : memref<1x256xf32, #tpu.memory_space<vmem>>, vector<1x256xf32>
    %10 = vector.broadcast %9 : vector<1x256xf32> to vector<4x256xf32>
    %11 = arith.addf %8, %10 : vector<4x256xf32>
    %cst_13 = arith.constant 0.000000e+00 : f32
    %12 = vector.broadcast %cst_13 : f32 to vector<4x256xf32>
    %13 = arith.maximumf %11, %12 : vector<4x256xf32>
    %14 = arith.truncf %13 : vector<4x256xf32> to vector<4x256xbf16>
    %c0_14 = arith.constant 0 : index
    %c0_15 = arith.constant 0 : index
    %c0_16 = arith.constant 0 : index
    %15 = vector.load %arg5[%c0_14, %c0_15, %c0_16] : memref<1x4x256xbf16, #tpu.memory_space<vmem>>, vector<1x4x256xbf16>
    %16 = vector.shape_cast %15 : vector<1x4x256xbf16> to vector<4x256xbf16>
    %17 = vector.shape_cast %14 : vector<4x256xbf16> to vector<1x4x256xbf16>
    tpu.vector_store %arg5[%c0_14, %c0_15, %c0_16], %17 {strides = array<i32>} : memref<1x4x256xbf16, #tpu.memory_space<vmem>>, vector<1x4x256xbf16>,
    return
  }
  func.func @transform_0(%arg0: i32) -> (i32, i32, i32, i32) {
    %c0_i32 = arith.constant 0 : i32
    %c0_i32_0 = arith.constant 0 : i32
    %c0_i32_1 = arith.constant 0 : i32
    %c0_i32_2 = arith.constant 0 : i32
    return %arg0, %c0_i32, %c0_i32_0, %c0_i32_1 : i32, i32, i32, i32
  }
  func.func @transform_1(%arg0: i32) -> (i32, i32) {
    %c0_i32 = arith.constant 0 : i32
    %c0_i32_0 = arith.constant 0 : i32
    %c0_i32_1 = arith.constant 0 : i32
    return %c0_i32, %c0_i32_0 : i32, i32
  }
  func.func @transform_2(%arg0: i32) -> (i32, i32) {
    %c0_i32 = arith.constant 0 : i32
    %c0_i32_0 = arith.constant 0 : i32
    %c0_i32_1 = arith.constant 0 : i32
    return %c0_i32, %c0_i32_0 : i32, i32
  }
  func.func @transform_3(%arg0: i32) -> (i32, i32) {
    %c0_i32 = arith.constant 0 : i32
    %c0_i32_0 = arith.constant 0 : i32
    %c0_i32_1 = arith.constant 0 : i32
    return %c0_i32, %c0_i32_0 : i32, i32
  }
  func.func @transform_4(%arg0: i32) -> (i32, i32, i32) {
    %c0_i32 = arith.constant 0 : i32
    %c0_i32_0 = arith.constant 0 : i32
    %c0_i32_1 = arith.constant 0 : i32
    return %arg0, %c0_i32, %c0_i32_0 : i32, i32, i32
  }
}

module attributes {stable_mosaic.version = 11 : i64} {
  func.func @_dec_convt_kernel(%arg0: i32, %arg1: memref<1x2x512xbf16, #tpu.memory_space<vmem>>, %arg2: memref<512x1024xbf16, #tpu.memory_space<vmem>>, %arg3: memref<512x1024xbf16, #tpu.memory_space<vmem>>, %arg4: memref<1x1024xf32, #tpu.memory_space<vmem>>, %arg5: memref<1x2x2x1024xbf16, #tpu.memory_space<vmem>>) attributes {dimension_semantics = [#tpu.dimension_semantics<parallel>], iteration_bounds = array<i64: 4>, scalar_prefetch = 0 : i64, scratch_operands = 0 : i64, tpu.core_type = #tpu.core_type<tc>, window_params = [{transform_indices = @transform_0, window_bounds = array<i64: 1, 2, 512>}, {pipeline_mode = #tpu.pipeline_mode<synchronous>, transform_indices = @transform_1, window_bounds = array<i64: 512, 1024>}, {pipeline_mode = #tpu.pipeline_mode<synchronous>, transform_indices = @transform_2, window_bounds = array<i64: 512, 1024>}, {pipeline_mode = #tpu.pipeline_mode<synchronous>, transform_indices = @transform_3, window_bounds = array<i64: 1, 1024>}, {transform_indices = @transform_4, window_bounds = array<i64: 1, 2, 2, 1024>}]} {
    %c0 = arith.constant 0 : index
    %c0_0 = arith.constant 0 : index
    %c0_1 = arith.constant 0 : index
    %0 = vector.load %arg1[%c0, %c0_0, %c0_1] : memref<1x2x512xbf16, #tpu.memory_space<vmem>>, vector<1x2x512xbf16>
    %1 = vector.shape_cast %0 : vector<1x2x512xbf16> to vector<2x512xbf16>
    %c0_2 = arith.constant 0 : index
    %c0_3 = arith.constant 0 : index
    %2 = vector.load %arg2[%c0_2, %c0_3] : memref<512x1024xbf16, #tpu.memory_space<vmem>>, vector<512x1024xbf16>
    %cst = arith.constant dense<0.000000e+00> : vector<2x1024xf32>
    %3 = tpu.matmul %1, %2, %cst {dimension_numbers = #tpu.dot_dimension_numbers<[1], [0], [0], [1], [0, 0, 1, 1], [], []>} : vector<2x512xbf16>, vector<512x1024xbf16>, vector<2x1024xf32> -> vector<2x1024xf32>
    %c0_4 = arith.constant 0 : index
    %c0_5 = arith.constant 0 : index
    %4 = vector.load %arg3[%c0_4, %c0_5] : memref<512x1024xbf16, #tpu.memory_space<vmem>>, vector<512x1024xbf16>
    %cst_6 = arith.constant dense<0.000000e+00> : vector<2x1024xf32>
    %5 = tpu.matmul %1, %4, %cst_6 {dimension_numbers = #tpu.dot_dimension_numbers<[1], [0], [0], [1], [0, 0, 1, 1], [], []>} : vector<2x512xbf16>, vector<512x1024xbf16>, vector<2x1024xf32> -> vector<2x1024xf32>
    %c0_7 = arith.constant 0 : index
    %c0_8 = arith.constant 0 : index
    %6 = vector.load %arg4[%c0_7, %c0_8] : memref<1x1024xf32, #tpu.memory_space<vmem>>, vector<1x1024xf32>
    %7 = vector.broadcast %6 : vector<1x1024xf32> to vector<2x1024xf32>
    %8 = arith.addf %3, %7 : vector<2x1024xf32>
    %cst_9 = arith.constant 0.000000e+00 : f32
    %9 = vector.broadcast %cst_9 : f32 to vector<2x1024xf32>
    %10 = arith.maximumf %8, %9 : vector<2x1024xf32>
    %11 = arith.truncf %10 : vector<2x1024xf32> to vector<2x1024xbf16>
    %c0_10 = arith.constant 0 : index
    %c0_11 = arith.constant 0 : index
    %c0_12 = arith.constant 0 : index
    %c0_13 = arith.constant 0 : index
    %12 = vector.load %arg5[%c0_10, %c0_11, %c0_12, %c0_13] : memref<1x2x2x1024xbf16, #tpu.memory_space<vmem>>, vector<1x1x2x1024xbf16>
    %13 = vector.shape_cast %12 : vector<1x1x2x1024xbf16> to vector<2x1024xbf16>
    %14 = vector.shape_cast %11 : vector<2x1024xbf16> to vector<1x1x2x1024xbf16>
    tpu.vector_store %arg5[%c0_10, %c0_11, %c0_12, %c0_13], %14 {strides = array<i32>} : memref<1x2x2x1024xbf16, #tpu.memory_space<vmem>>, vector<1x1x2x1024xbf16>,
    %c0_14 = arith.constant 0 : index
    %c0_15 = arith.constant 0 : index
    %15 = vector.load %arg4[%c0_14, %c0_15] : memref<1x1024xf32, #tpu.memory_space<vmem>>, vector<1x1024xf32>
    %16 = vector.broadcast %15 : vector<1x1024xf32> to vector<2x1024xf32>
    %17 = arith.addf %5, %16 : vector<2x1024xf32>
    %cst_16 = arith.constant 0.000000e+00 : f32
    %18 = vector.broadcast %cst_16 : f32 to vector<2x1024xf32>
    %19 = arith.maximumf %17, %18 : vector<2x1024xf32>
    %20 = arith.truncf %19 : vector<2x1024xf32> to vector<2x1024xbf16>
    %c0_17 = arith.constant 0 : index
    %c1 = arith.constant 1 : index
    %c0_18 = arith.constant 0 : index
    %c0_19 = arith.constant 0 : index
    %21 = vector.load %arg5[%c0_17, %c1, %c0_18, %c0_19] : memref<1x2x2x1024xbf16, #tpu.memory_space<vmem>>, vector<1x1x2x1024xbf16>
    %22 = vector.shape_cast %21 : vector<1x1x2x1024xbf16> to vector<2x1024xbf16>
    %23 = vector.shape_cast %20 : vector<2x1024xbf16> to vector<1x1x2x1024xbf16>
    tpu.vector_store %arg5[%c0_17, %c1, %c0_18, %c0_19], %23 {strides = array<i32>} : memref<1x2x2x1024xbf16, #tpu.memory_space<vmem>>, vector<1x1x2x1024xbf16>,
    return
  }
  func.func @transform_0(%arg0: i32) -> (i32, i32, i32) {
    %c0_i32 = arith.constant 0 : i32
    %c0_i32_0 = arith.constant 0 : i32
    %c0_i32_1 = arith.constant 0 : i32
    return %arg0, %c0_i32, %c0_i32_0 : i32, i32, i32
  }
  func.func @transform_1(%arg0: i32) -> (i32, i32) {
    %c0_i32 = arith.constant 0 : i32
    %c0_i32_0 = arith.constant 0 : i32
    %c0_i32_1 = arith.constant 0 : i32
    return %c0_i32, %c0_i32_0 : i32, i32
  }
  func.func @transform_2(%arg0: i32) -> (i32, i32) {
    %c0_i32 = arith.constant 0 : i32
    %c0_i32_0 = arith.constant 0 : i32
    %c0_i32_1 = arith.constant 0 : i32
    return %c0_i32, %c0_i32_0 : i32, i32
  }
  func.func @transform_3(%arg0: i32) -> (i32, i32) {
    %c0_i32 = arith.constant 0 : i32
    %c0_i32_0 = arith.constant 0 : i32
    %c0_i32_1 = arith.constant 0 : i32
    return %c0_i32, %c0_i32_0 : i32, i32
  }
  func.func @transform_4(%arg0: i32) -> (i32, i32, i32, i32) {
    %c0_i32 = arith.constant 0 : i32
    %c0_i32_0 = arith.constant 0 : i32
    %c0_i32_1 = arith.constant 0 : i32
    %c0_i32_2 = arith.constant 0 : i32
    return %arg0, %c0_i32, %c0_i32_0, %c0_i32_1 : i32, i32, i32, i32
  }
}

module attributes {stable_mosaic.version = 11 : i64} {
  func.func @_dec_convt_kernel(%arg0: i32, %arg1: memref<1x8x256xbf16, #tpu.memory_space<vmem>>, %arg2: memref<256x256xbf16, #tpu.memory_space<vmem>>, %arg3: memref<256x256xbf16, #tpu.memory_space<vmem>>, %arg4: memref<1x256xf32, #tpu.memory_space<vmem>>, %arg5: memref<1x2x8x256xbf16, #tpu.memory_space<vmem>>) attributes {dimension_semantics = [#tpu.dimension_semantics<parallel>], iteration_bounds = array<i64: 16>, scalar_prefetch = 0 : i64, scratch_operands = 0 : i64, tpu.core_type = #tpu.core_type<tc>, window_params = [{transform_indices = @transform_0, window_bounds = array<i64: 1, 8, 256>}, {pipeline_mode = #tpu.pipeline_mode<synchronous>, transform_indices = @transform_1, window_bounds = array<i64: 256, 256>}, {pipeline_mode = #tpu.pipeline_mode<synchronous>, transform_indices = @transform_2, window_bounds = array<i64: 256, 256>}, {pipeline_mode = #tpu.pipeline_mode<synchronous>, transform_indices = @transform_3, window_bounds = array<i64: 1, 256>}, {transform_indices = @transform_4, window_bounds = array<i64: 1, 2, 8, 256>}]} {
    %c0 = arith.constant 0 : index
    %c0_0 = arith.constant 0 : index
    %c0_1 = arith.constant 0 : index
    %0 = vector.load %arg1[%c0, %c0_0, %c0_1] : memref<1x8x256xbf16, #tpu.memory_space<vmem>>, vector<1x8x256xbf16>
    %1 = vector.shape_cast %0 : vector<1x8x256xbf16> to vector<8x256xbf16>
    %c0_2 = arith.constant 0 : index
    %c0_3 = arith.constant 0 : index
    %2 = vector.load %arg2[%c0_2, %c0_3] : memref<256x256xbf16, #tpu.memory_space<vmem>>, vector<256x256xbf16>
    %cst = arith.constant dense<0.000000e+00> : vector<8x256xf32>
    %3 = tpu.matmul %1, %2, %cst {dimension_numbers = #tpu.dot_dimension_numbers<[1], [0], [0], [1], [0, 0, 1, 1], [], []>} : vector<8x256xbf16>, vector<256x256xbf16>, vector<8x256xf32> -> vector<8x256xf32>
    %c0_4 = arith.constant 0 : index
    %c0_5 = arith.constant 0 : index
    %4 = vector.load %arg3[%c0_4, %c0_5] : memref<256x256xbf16, #tpu.memory_space<vmem>>, vector<256x256xbf16>
    %cst_6 = arith.constant dense<0.000000e+00> : vector<8x256xf32>
    %5 = tpu.matmul %1, %4, %cst_6 {dimension_numbers = #tpu.dot_dimension_numbers<[1], [0], [0], [1], [0, 0, 1, 1], [], []>} : vector<8x256xbf16>, vector<256x256xbf16>, vector<8x256xf32> -> vector<8x256xf32>
    %c0_7 = arith.constant 0 : index
    %c0_8 = arith.constant 0 : index
    %6 = vector.load %arg4[%c0_7, %c0_8] : memref<1x256xf32, #tpu.memory_space<vmem>>, vector<1x256xf32>
    %7 = vector.broadcast %6 : vector<1x256xf32> to vector<8x256xf32>
    %8 = arith.addf %3, %7 : vector<8x256xf32>
    %cst_9 = arith.constant 0.000000e+00 : f32
    %9 = vector.broadcast %cst_9 : f32 to vector<8x256xf32>
    %10 = arith.maximumf %8, %9 : vector<8x256xf32>
    %11 = arith.truncf %10 : vector<8x256xf32> to vector<8x256xbf16>
    %c0_10 = arith.constant 0 : index
    %c0_11 = arith.constant 0 : index
    %c0_12 = arith.constant 0 : index
    %c0_13 = arith.constant 0 : index
    %12 = vector.load %arg5[%c0_10, %c0_11, %c0_12, %c0_13] : memref<1x2x8x256xbf16, #tpu.memory_space<vmem>>, vector<1x1x8x256xbf16>
    %13 = vector.shape_cast %12 : vector<1x1x8x256xbf16> to vector<8x256xbf16>
    %14 = vector.shape_cast %11 : vector<8x256xbf16> to vector<1x1x8x256xbf16>
    tpu.vector_store %arg5[%c0_10, %c0_11, %c0_12, %c0_13], %14 {strides = array<i32>} : memref<1x2x8x256xbf16, #tpu.memory_space<vmem>>, vector<1x1x8x256xbf16>,
    %c0_14 = arith.constant 0 : index
    %c0_15 = arith.constant 0 : index
    %15 = vector.load %arg4[%c0_14, %c0_15] : memref<1x256xf32, #tpu.memory_space<vmem>>, vector<1x256xf32>
    %16 = vector.broadcast %15 : vector<1x256xf32> to vector<8x256xf32>
    %17 = arith.addf %5, %16 : vector<8x256xf32>
    %cst_16 = arith.constant 0.000000e+00 : f32
    %18 = vector.broadcast %cst_16 : f32 to vector<8x256xf32>
    %19 = arith.maximumf %17, %18 : vector<8x256xf32>
    %20 = arith.truncf %19 : vector<8x256xf32> to vector<8x256xbf16>
    %c0_17 = arith.constant 0 : index
    %c1 = arith.constant 1 : index
    %c0_18 = arith.constant 0 : index
    %c0_19 = arith.constant 0 : index
    %21 = vector.load %arg5[%c0_17, %c1, %c0_18, %c0_19] : memref<1x2x8x256xbf16, #tpu.memory_space<vmem>>, vector<1x1x8x256xbf16>
    %22 = vector.shape_cast %21 : vector<1x1x8x256xbf16> to vector<8x256xbf16>
    %23 = vector.shape_cast %20 : vector<8x256xbf16> to vector<1x1x8x256xbf16>
    tpu.vector_store %arg5[%c0_17, %c1, %c0_18, %c0_19], %23 {strides = array<i32>} : memref<1x2x8x256xbf16, #tpu.memory_space<vmem>>, vector<1x1x8x256xbf16>,
    return
  }
  func.func @transform_0(%arg0: i32) -> (i32, i32, i32) {
    %c0_i32 = arith.constant 0 : i32
    %c0_i32_0 = arith.constant 0 : i32
    %c0_i32_1 = arith.constant 0 : i32
    return %arg0, %c0_i32, %c0_i32_0 : i32, i32, i32
  }
  func.func @transform_1(%arg0: i32) -> (i32, i32) {
    %c0_i32 = arith.constant 0 : i32
    %c0_i32_0 = arith.constant 0 : i32
    %c0_i32_1 = arith.constant 0 : i32
    return %c0_i32, %c0_i32_0 : i32, i32
  }
  func.func @transform_2(%arg0: i32) -> (i32, i32) {
    %c0_i32 = arith.constant 0 : i32
    %c0_i32_0 = arith.constant 0 : i32
    %c0_i32_1 = arith.constant 0 : i32
    return %c0_i32, %c0_i32_0 : i32, i32
  }
  func.func @transform_3(%arg0: i32) -> (i32, i32) {
    %c0_i32 = arith.constant 0 : i32
    %c0_i32_0 = arith.constant 0 : i32
    %c0_i32_1 = arith.constant 0 : i32
    return %c0_i32, %c0_i32_0 : i32, i32
  }
  func.func @transform_4(%arg0: i32) -> (i32, i32, i32, i32) {
    %c0_i32 = arith.constant 0 : i32
    %c0_i32_0 = arith.constant 0 : i32
    %c0_i32_1 = arith.constant 0 : i32
    %c0_i32_2 = arith.constant 0 : i32
    return %arg0, %c0_i32, %c0_i32_0, %c0_i32_1 : i32, i32, i32, i32
  }
}

module attributes {stable_mosaic.version = 11 : i64} {
  func.func @_dec_convt_kernel(%arg0: i32, %arg1: memref<1x4x512xbf16, #tpu.memory_space<vmem>>, %arg2: memref<512x512xbf16, #tpu.memory_space<vmem>>, %arg3: memref<512x512xbf16, #tpu.memory_space<vmem>>, %arg4: memref<1x512xf32, #tpu.memory_space<vmem>>, %arg5: memref<1x2x4x512xbf16, #tpu.memory_space<vmem>>) attributes {dimension_semantics = [#tpu.dimension_semantics<parallel>], iteration_bounds = array<i64: 8>, scalar_prefetch = 0 : i64, scratch_operands = 0 : i64, tpu.core_type = #tpu.core_type<tc>, window_params = [{transform_indices = @transform_0, window_bounds = array<i64: 1, 4, 512>}, {pipeline_mode = #tpu.pipeline_mode<synchronous>, transform_indices = @transform_1, window_bounds = array<i64: 512, 512>}, {pipeline_mode = #tpu.pipeline_mode<synchronous>, transform_indices = @transform_2, window_bounds = array<i64: 512, 512>}, {pipeline_mode = #tpu.pipeline_mode<synchronous>, transform_indices = @transform_3, window_bounds = array<i64: 1, 512>}, {transform_indices = @transform_4, window_bounds = array<i64: 1, 2, 4, 512>}]} {
    %c0 = arith.constant 0 : index
    %c0_0 = arith.constant 0 : index
    %c0_1 = arith.constant 0 : index
    %0 = vector.load %arg1[%c0, %c0_0, %c0_1] : memref<1x4x512xbf16, #tpu.memory_space<vmem>>, vector<1x4x512xbf16>
    %1 = vector.shape_cast %0 : vector<1x4x512xbf16> to vector<4x512xbf16>
    %c0_2 = arith.constant 0 : index
    %c0_3 = arith.constant 0 : index
    %2 = vector.load %arg2[%c0_2, %c0_3] : memref<512x512xbf16, #tpu.memory_space<vmem>>, vector<512x512xbf16>
    %cst = arith.constant dense<0.000000e+00> : vector<4x512xf32>
    %3 = tpu.matmul %1, %2, %cst {dimension_numbers = #tpu.dot_dimension_numbers<[1], [0], [0], [1], [0, 0, 1, 1], [], []>} : vector<4x512xbf16>, vector<512x512xbf16>, vector<4x512xf32> -> vector<4x512xf32>
    %c0_4 = arith.constant 0 : index
    %c0_5 = arith.constant 0 : index
    %4 = vector.load %arg3[%c0_4, %c0_5] : memref<512x512xbf16, #tpu.memory_space<vmem>>, vector<512x512xbf16>
    %cst_6 = arith.constant dense<0.000000e+00> : vector<4x512xf32>
    %5 = tpu.matmul %1, %4, %cst_6 {dimension_numbers = #tpu.dot_dimension_numbers<[1], [0], [0], [1], [0, 0, 1, 1], [], []>} : vector<4x512xbf16>, vector<512x512xbf16>, vector<4x512xf32> -> vector<4x512xf32>
    %c0_7 = arith.constant 0 : index
    %c0_8 = arith.constant 0 : index
    %6 = vector.load %arg4[%c0_7, %c0_8] : memref<1x512xf32, #tpu.memory_space<vmem>>, vector<1x512xf32>
    %7 = vector.broadcast %6 : vector<1x512xf32> to vector<4x512xf32>
    %8 = arith.addf %3, %7 : vector<4x512xf32>
    %cst_9 = arith.constant 0.000000e+00 : f32
    %9 = vector.broadcast %cst_9 : f32 to vector<4x512xf32>
    %10 = arith.maximumf %8, %9 : vector<4x512xf32>
    %11 = arith.truncf %10 : vector<4x512xf32> to vector<4x512xbf16>
    %c0_10 = arith.constant 0 : index
    %c0_11 = arith.constant 0 : index
    %c0_12 = arith.constant 0 : index
    %c0_13 = arith.constant 0 : index
    %12 = vector.load %arg5[%c0_10, %c0_11, %c0_12, %c0_13] : memref<1x2x4x512xbf16, #tpu.memory_space<vmem>>, vector<1x1x4x512xbf16>
    %13 = vector.shape_cast %12 : vector<1x1x4x512xbf16> to vector<4x512xbf16>
    %14 = vector.shape_cast %11 : vector<4x512xbf16> to vector<1x1x4x512xbf16>
    tpu.vector_store %arg5[%c0_10, %c0_11, %c0_12, %c0_13], %14 {strides = array<i32>} : memref<1x2x4x512xbf16, #tpu.memory_space<vmem>>, vector<1x1x4x512xbf16>,
    %c0_14 = arith.constant 0 : index
    %c0_15 = arith.constant 0 : index
    %15 = vector.load %arg4[%c0_14, %c0_15] : memref<1x512xf32, #tpu.memory_space<vmem>>, vector<1x512xf32>
    %16 = vector.broadcast %15 : vector<1x512xf32> to vector<4x512xf32>
    %17 = arith.addf %5, %16 : vector<4x512xf32>
    %cst_16 = arith.constant 0.000000e+00 : f32
    %18 = vector.broadcast %cst_16 : f32 to vector<4x512xf32>
    %19 = arith.maximumf %17, %18 : vector<4x512xf32>
    %20 = arith.truncf %19 : vector<4x512xf32> to vector<4x512xbf16>
    %c0_17 = arith.constant 0 : index
    %c1 = arith.constant 1 : index
    %c0_18 = arith.constant 0 : index
    %c0_19 = arith.constant 0 : index
    %21 = vector.load %arg5[%c0_17, %c1, %c0_18, %c0_19] : memref<1x2x4x512xbf16, #tpu.memory_space<vmem>>, vector<1x1x4x512xbf16>
    %22 = vector.shape_cast %21 : vector<1x1x4x512xbf16> to vector<4x512xbf16>
    %23 = vector.shape_cast %20 : vector<4x512xbf16> to vector<1x1x4x512xbf16>
    tpu.vector_store %arg5[%c0_17, %c1, %c0_18, %c0_19], %23 {strides = array<i32>} : memref<1x2x4x512xbf16, #tpu.memory_space<vmem>>, vector<1x1x4x512xbf16>,
    return
  }
  func.func @transform_0(%arg0: i32) -> (i32, i32, i32) {
    %c0_i32 = arith.constant 0 : i32
    %c0_i32_0 = arith.constant 0 : i32
    %c0_i32_1 = arith.constant 0 : i32
    return %arg0, %c0_i32, %c0_i32_0 : i32, i32, i32
  }
  func.func @transform_1(%arg0: i32) -> (i32, i32) {
    %c0_i32 = arith.constant 0 : i32
    %c0_i32_0 = arith.constant 0 : i32
    %c0_i32_1 = arith.constant 0 : i32
    return %c0_i32, %c0_i32_0 : i32, i32
  }
  func.func @transform_2(%arg0: i32) -> (i32, i32) {
    %c0_i32 = arith.constant 0 : i32
    %c0_i32_0 = arith.constant 0 : i32
    %c0_i32_1 = arith.constant 0 : i32
    return %c0_i32, %c0_i32_0 : i32, i32
  }
  func.func @transform_3(%arg0: i32) -> (i32, i32) {
    %c0_i32 = arith.constant 0 : i32
    %c0_i32_0 = arith.constant 0 : i32
    %c0_i32_1 = arith.constant 0 : i32
    return %c0_i32, %c0_i32_0 : i32, i32
  }
  func.func @transform_4(%arg0: i32) -> (i32, i32, i32, i32) {
    %c0_i32 = arith.constant 0 : i32
    %c0_i32_0 = arith.constant 0 : i32
    %c0_i32_1 = arith.constant 0 : i32
    %c0_i32_2 = arith.constant 0 : i32
    return %arg0, %c0_i32, %c0_i32_0, %c0_i32_1 : i32, i32, i32, i32
  }
}

module attributes {stable_mosaic.version = 11 : i64} {
  func.func @_dec_convt_kernel(%arg0: i32, %arg1: memref<1x16x128xbf16, #tpu.memory_space<vmem>>, %arg2: memref<128x128xbf16, #tpu.memory_space<vmem>>, %arg3: memref<128x128xbf16, #tpu.memory_space<vmem>>, %arg4: memref<1x128xf32, #tpu.memory_space<vmem>>, %arg5: memref<1x2x16x128xbf16, #tpu.memory_space<vmem>>) attributes {dimension_semantics = [#tpu.dimension_semantics<parallel>], iteration_bounds = array<i64: 32>, scalar_prefetch = 0 : i64, scratch_operands = 0 : i64, tpu.core_type = #tpu.core_type<tc>, window_params = [{transform_indices = @transform_0, window_bounds = array<i64: 1, 16, 128>}, {pipeline_mode = #tpu.pipeline_mode<synchronous>, transform_indices = @transform_1, window_bounds = array<i64: 128, 128>}, {pipeline_mode = #tpu.pipeline_mode<synchronous>, transform_indices = @transform_2, window_bounds = array<i64: 128, 128>}, {pipeline_mode = #tpu.pipeline_mode<synchronous>, transform_indices = @transform_3, window_bounds = array<i64: 1, 128>}, {transform_indices = @transform_4, window_bounds = array<i64: 1, 2, 16, 128>}]} {
    %c0 = arith.constant 0 : index
    %c0_0 = arith.constant 0 : index
    %c0_1 = arith.constant 0 : index
    %0 = vector.load %arg1[%c0, %c0_0, %c0_1] : memref<1x16x128xbf16, #tpu.memory_space<vmem>>, vector<1x16x128xbf16>
    %1 = vector.shape_cast %0 : vector<1x16x128xbf16> to vector<16x128xbf16>
    %c0_2 = arith.constant 0 : index
    %c0_3 = arith.constant 0 : index
    %2 = vector.load %arg2[%c0_2, %c0_3] : memref<128x128xbf16, #tpu.memory_space<vmem>>, vector<128x128xbf16>
    %cst = arith.constant dense<0.000000e+00> : vector<16x128xf32>
    %3 = tpu.matmul %1, %2, %cst {dimension_numbers = #tpu.dot_dimension_numbers<[1], [0], [0], [1], [0, 0, 1, 1], [], []>} : vector<16x128xbf16>, vector<128x128xbf16>, vector<16x128xf32> -> vector<16x128xf32>
    %c0_4 = arith.constant 0 : index
    %c0_5 = arith.constant 0 : index
    %4 = vector.load %arg3[%c0_4, %c0_5] : memref<128x128xbf16, #tpu.memory_space<vmem>>, vector<128x128xbf16>
    %cst_6 = arith.constant dense<0.000000e+00> : vector<16x128xf32>
    %5 = tpu.matmul %1, %4, %cst_6 {dimension_numbers = #tpu.dot_dimension_numbers<[1], [0], [0], [1], [0, 0, 1, 1], [], []>} : vector<16x128xbf16>, vector<128x128xbf16>, vector<16x128xf32> -> vector<16x128xf32>
    %c0_7 = arith.constant 0 : index
    %c0_8 = arith.constant 0 : index
    %6 = vector.load %arg4[%c0_7, %c0_8] : memref<1x128xf32, #tpu.memory_space<vmem>>, vector<1x128xf32>
    %7 = vector.broadcast %6 : vector<1x128xf32> to vector<16x128xf32>
    %8 = arith.addf %3, %7 : vector<16x128xf32>
    %cst_9 = arith.constant 0.000000e+00 : f32
    %9 = vector.broadcast %cst_9 : f32 to vector<16x128xf32>
    %10 = arith.maximumf %8, %9 : vector<16x128xf32>
    %11 = arith.truncf %10 : vector<16x128xf32> to vector<16x128xbf16>
    %c0_10 = arith.constant 0 : index
    %c0_11 = arith.constant 0 : index
    %c0_12 = arith.constant 0 : index
    %c0_13 = arith.constant 0 : index
    %12 = vector.load %arg5[%c0_10, %c0_11, %c0_12, %c0_13] : memref<1x2x16x128xbf16, #tpu.memory_space<vmem>>, vector<1x1x16x128xbf16>
    %13 = vector.shape_cast %12 : vector<1x1x16x128xbf16> to vector<16x128xbf16>
    %14 = vector.shape_cast %11 : vector<16x128xbf16> to vector<1x1x16x128xbf16>
    tpu.vector_store %arg5[%c0_10, %c0_11, %c0_12, %c0_13], %14 {strides = array<i32>} : memref<1x2x16x128xbf16, #tpu.memory_space<vmem>>, vector<1x1x16x128xbf16>,
    %c0_14 = arith.constant 0 : index
    %c0_15 = arith.constant 0 : index
    %15 = vector.load %arg4[%c0_14, %c0_15] : memref<1x128xf32, #tpu.memory_space<vmem>>, vector<1x128xf32>
    %16 = vector.broadcast %15 : vector<1x128xf32> to vector<16x128xf32>
    %17 = arith.addf %5, %16 : vector<16x128xf32>
    %cst_16 = arith.constant 0.000000e+00 : f32
    %18 = vector.broadcast %cst_16 : f32 to vector<16x128xf32>
    %19 = arith.maximumf %17, %18 : vector<16x128xf32>
    %20 = arith.truncf %19 : vector<16x128xf32> to vector<16x128xbf16>
    %c0_17 = arith.constant 0 : index
    %c1 = arith.constant 1 : index
    %c0_18 = arith.constant 0 : index
    %c0_19 = arith.constant 0 : index
    %21 = vector.load %arg5[%c0_17, %c1, %c0_18, %c0_19] : memref<1x2x16x128xbf16, #tpu.memory_space<vmem>>, vector<1x1x16x128xbf16>
    %22 = vector.shape_cast %21 : vector<1x1x16x128xbf16> to vector<16x128xbf16>
    %23 = vector.shape_cast %20 : vector<16x128xbf16> to vector<1x1x16x128xbf16>
    tpu.vector_store %arg5[%c0_17, %c1, %c0_18, %c0_19], %23 {strides = array<i32>} : memref<1x2x16x128xbf16, #tpu.memory_space<vmem>>, vector<1x1x16x128xbf16>,
    return
  }
  func.func @transform_0(%arg0: i32) -> (i32, i32, i32) {
    %c0_i32 = arith.constant 0 : i32
    %c0_i32_0 = arith.constant 0 : i32
    %c0_i32_1 = arith.constant 0 : i32
    return %arg0, %c0_i32, %c0_i32_0 : i32, i32, i32
  }
  func.func @transform_1(%arg0: i32) -> (i32, i32) {
    %c0_i32 = arith.constant 0 : i32
    %c0_i32_0 = arith.constant 0 : i32
    %c0_i32_1 = arith.constant 0 : i32
    return %c0_i32, %c0_i32_0 : i32, i32
  }
  func.func @transform_2(%arg0: i32) -> (i32, i32) {
    %c0_i32 = arith.constant 0 : i32
    %c0_i32_0 = arith.constant 0 : i32
    %c0_i32_1 = arith.constant 0 : i32
    return %c0_i32, %c0_i32_0 : i32, i32
  }
  func.func @transform_3(%arg0: i32) -> (i32, i32) {
    %c0_i32 = arith.constant 0 : i32
    %c0_i32_0 = arith.constant 0 : i32
    %c0_i32_1 = arith.constant 0 : i32
    return %c0_i32, %c0_i32_0 : i32, i32
  }
  func.func @transform_4(%arg0: i32) -> (i32, i32, i32, i32) {
    %c0_i32 = arith.constant 0 : i32
    %c0_i32_0 = arith.constant 0 : i32
    %c0_i32_1 = arith.constant 0 : i32
    %c0_i32_2 = arith.constant 0 : i32
    return %arg0, %c0_i32, %c0_i32_0, %c0_i32_1 : i32, i32, i32, i32
  }
}

module attributes {stable_mosaic.version = 11 : i64} {
  func.func @_tail_kernel(%arg0: i32, %arg1: memref<1x32x2048xbf16, #tpu.memory_space<vmem>>, %arg2: memref<2048x96xbf16, #tpu.memory_space<vmem>>, %arg3: memref<1x96xf32, #tpu.memory_space<vmem>>, %arg4: memref<36x32xf32, #tpu.memory_space<vmem>>, %arg5: memref<96x108xf32, #tpu.memory_space<vmem>>, %arg6: memref<1x36x108xf32, #tpu.memory_space<vmem>>) attributes {dimension_semantics = [#tpu.dimension_semantics<parallel>], iteration_bounds = array<i64: 2>, scalar_prefetch = 0 : i64, scratch_operands = 0 : i64, tpu.core_type = #tpu.core_type<tc>, window_params = [{transform_indices = @transform_0, window_bounds = array<i64: 1, 32, 2048>}, {pipeline_mode = #tpu.pipeline_mode<synchronous>, transform_indices = @transform_1, window_bounds = array<i64: 2048, 96>}, {pipeline_mode = #tpu.pipeline_mode<synchronous>, transform_indices = @transform_2, window_bounds = array<i64: 1, 96>}, {pipeline_mode = #tpu.pipeline_mode<synchronous>, transform_indices = @transform_3, window_bounds = array<i64: 36, 32>}, {pipeline_mode = #tpu.pipeline_mode<synchronous>, transform_indices = @transform_4, window_bounds = array<i64: 96, 108>}, {transform_indices = @transform_5, window_bounds = array<i64: 1, 36, 108>}]} {
    %c0 = arith.constant 0 : index
    %c0_0 = arith.constant 0 : index
    %c0_1 = arith.constant 0 : index
    %0 = vector.load %arg1[%c0, %c0_0, %c0_1] : memref<1x32x2048xbf16, #tpu.memory_space<vmem>>, vector<1x32x2048xbf16>
    %1 = vector.shape_cast %0 : vector<1x32x2048xbf16> to vector<32x2048xbf16>
    %c0_2 = arith.constant 0 : index
    %c0_3 = arith.constant 0 : index
    %2 = vector.load %arg2[%c0_2, %c0_3] : memref<2048x96xbf16, #tpu.memory_space<vmem>>, vector<2048x96xbf16>
    %cst = arith.constant dense<0.000000e+00> : vector<32x96xf32>
    %3 = tpu.matmul %1, %2, %cst {dimension_numbers = #tpu.dot_dimension_numbers<[1], [0], [0], [1], [0, 0, 1, 1], [], []>} : vector<32x2048xbf16>, vector<2048x96xbf16>, vector<32x96xf32> -> vector<32x96xf32>
    %c0_4 = arith.constant 0 : index
    %c0_5 = arith.constant 0 : index
    %4 = vector.load %arg3[%c0_4, %c0_5] : memref<1x96xf32, #tpu.memory_space<vmem>>, vector<1x96xf32>
    %5 = vector.broadcast %4 : vector<1x96xf32> to vector<32x96xf32>
    %6 = arith.addf %3, %5 : vector<32x96xf32>
    %7 = arith.negf %6 : vector<32x96xf32>
    %8 = math.exp %7 : vector<32x96xf32>
    %cst_6 = arith.constant 1.000000e+00 : f32
    %9 = vector.broadcast %cst_6 : f32 to vector<32x96xf32>
    %10 = arith.addf %9, %8 : vector<32x96xf32>
    %11 = arith.divf %9, %10 : vector<32x96xf32>
    %c0_7 = arith.constant 0 : index
    %c0_8 = arith.constant 0 : index
    %12 = vector.load %arg4[%c0_7, %c0_8] : memref<36x32xf32, #tpu.memory_space<vmem>>, vector<36x32xf32>
    %cst_9 = arith.constant dense<0.000000e+00> : vector<36x96xf32>
    %13 = tpu.matmul %12, %11, %cst_9 {dimension_numbers = #tpu.dot_dimension_numbers<[1], [0], [0], [1], [0, 0, 1, 1], [], []>} : vector<36x32xf32>, vector<32x96xf32>, vector<36x96xf32> -> vector<36x96xf32>
    %c0_10 = arith.constant 0 : index
    %c0_11 = arith.constant 0 : index
    %14 = vector.load %arg5[%c0_10, %c0_11] : memref<96x108xf32, #tpu.memory_space<vmem>>, vector<96x108xf32>
    %cst_12 = arith.constant dense<0.000000e+00> : vector<36x108xf32>
    %15 = tpu.matmul %13, %14, %cst_12 {dimension_numbers = #tpu.dot_dimension_numbers<[1], [0], [0], [1], [0, 0, 1, 1], [], []>} : vector<36x96xf32>, vector<96x108xf32>, vector<36x108xf32> -> vector<36x108xf32>
    %c0_13 = arith.constant 0 : index
    %c0_14 = arith.constant 0 : index
    %c0_15 = arith.constant 0 : index
    %16 = vector.load %arg6[%c0_13, %c0_14, %c0_15] : memref<1x36x108xf32, #tpu.memory_space<vmem>>, vector<1x36x108xf32>
    %17 = vector.shape_cast %16 : vector<1x36x108xf32> to vector<36x108xf32>
    %18 = vector.shape_cast %15 : vector<36x108xf32> to vector<1x36x108xf32>
    tpu.vector_store %arg6[%c0_13, %c0_14, %c0_15], %18 {strides = array<i32>} : memref<1x36x108xf32, #tpu.memory_space<vmem>>, vector<1x36x108xf32>,
    return
  }
  func.func @transform_0(%arg0: i32) -> (i32, i32, i32) {
    %c0_i32 = arith.constant 0 : i32
    %c0_i32_0 = arith.constant 0 : i32
    %c0_i32_1 = arith.constant 0 : i32
    return %arg0, %c0_i32, %c0_i32_0 : i32, i32, i32
  }
  func.func @transform_1(%arg0: i32) -> (i32, i32) {
    %c0_i32 = arith.constant 0 : i32
    %c0_i32_0 = arith.constant 0 : i32
    %c0_i32_1 = arith.constant 0 : i32
    return %c0_i32, %c0_i32_0 : i32, i32
  }
  func.func @transform_2(%arg0: i32) -> (i32, i32) {
    %c0_i32 = arith.constant 0 : i32
    %c0_i32_0 = arith.constant 0 : i32
    %c0_i32_1 = arith.constant 0 : i32
    return %c0_i32, %c0_i32_0 : i32, i32
  }
  func.func @transform_3(%arg0: i32) -> (i32, i32) {
    %c0_i32 = arith.constant 0 : i32
    %c0_i32_0 = arith.constant 0 : i32
    %c0_i32_1 = arith.constant 0 : i32
    return %c0_i32, %c0_i32_0 : i32, i32
  }
  func.func @transform_4(%arg0: i32) -> (i32, i32) {
    %c0_i32 = arith.constant 0 : i32
    %c0_i32_0 = arith.constant 0 : i32
    %c0_i32_1 = arith.constant 0 : i32
    return %c0_i32, %c0_i32_0 : i32, i32
  }
  func.func @transform_5(%arg0: i32) -> (i32, i32, i32) {
    %c0_i32 = arith.constant 0 : i32
    %c0_i32_0 = arith.constant 0 : i32
    %c0_i32_1 = arith.constant 0 : i32
    return %arg0, %c0_i32, %c0_i32_0 : i32, i32, i32
  }
}

</mosaic_0001>

<bundles_post_ra>
// kernel: _forward.9
= control target key start
LH: loop header
LB: loop body
LE: loop exit
PB: predicated region body
PF: predicated region fallthrough
CT: control target
= control target key end

     0   :  { %s520_s15 = smov 0   ;;  %s550_s0 = inlined_call_operand.vmem [shape: bf16[36,2,18,6], index: 0, kind: input, shape index: {}]   ;;  %s551_s1 = inlined_call_operand.vmem [shape: bf16[6,64], index: 1, kind: input, shape index: {}]   ;;  %s552_s2 = inlined_call_operand.vmem [shape: bf16[6,64], index: 2, kind: input, shape index: {}]   ;;  %s553_s3 = inlined_call_operand.vmem [shape: f32[1,64], index: 3, kind: input, shape index: {}]   ;;  %s554_s4 = inlined_call_operand.vmem [shape: bf16[36,18,64], index: 4, kind: output, shape index: {}]  }
   0x1 LB: > { %s426_s16 = sadd.s32 4294967295, %s493_s15   ;;  %p430_p0 = scmp.ge.s32.totalorder %s493_s15, 1  ;;  %s493_s15 = sphi %s520_s15, %s14_s15  }
   0x2   : > { %p162_p1 = scmp.lt.s32.totalorder %s493_s15, 37 }
   0x4   : > { %p163_p2 = pnand %p430_p0, %p162_p1 }
   0x5   : > { %v207_v0 = vld [vmem:[%s552_s2] sm:$0x7] (!%p163_p2)  ;;  %vm223_vm0 = vcmask (!%p163_p2), 1042432   ;;  %p188_p3 = scmp.lt.s32.totalorder (!%p163_p2), %s426_s16, 35  ;;  %vm216_vm1 = vcmask (!%p163_p2), 48128   ;;  %vm369_vm2 = vcmask (!%p163_p2), 516096  }
   0x6   : > { %166 = sbr.rel (%p163_p2) target bundleno = 243 (0xf3), region = 36  ;;  %v202_v1 = vld [vmem:[%s551_s1] sm:$0x7] (!%p163_p2)  ;;  %471 = vmatprep.subr.msk.bf16.mxu0 (!%p163_p2), %vm223_vm0, %v207_v0  ;;  %v225_v2 = vsel (!%p163_p2), %vm223_vm0, %v207_v0, 0  ;;  %vm366_vm3 = vcmask (!%p163_p2), 519168  }
   0x7   : > { %472 = vmatprep.subr.msk.bf16.mxu1 (!%p163_p2), %vm223_vm0, %v202_v1  ;;  %v290_v3 = vsel (!%p163_p2), %vm223_vm0, %v202_v1, 0  ;;  %460 = vmatpush3.bf16.msra.mxu0 (!%p163_p2), %v225_v2  ;;  %v444_v10 = vld [vmem:[%s553_s3] ss:$0 sm:$0xff] (!%p163_p2) }
   0x8   : > { %466 = vmatpush3.bf16.msra.mxu1 (!%p163_p2), %v290_v3 }
   0xd   : > { %s556_s16 = smov (!%p188_p3, %s426_s16), 35 }
   0xe   : > { %s473_s21 = smul.u32 24, %s556_s16 }
   0xf   : > { %s474_s27 = smul.u32 12, %s556_s16 }
  0x10   : > { %s192_s24 = scalar_lea.vmem %s550_s0, %s473_s21 }
  0x11   : > { %v483_v4 = vld [vmem:[%s192_s24 + $0xc] sm:$0xff]   ;;  %v484_v5 = vld [vmem:[%s192_s24] sm:$0xff]   ;;  %v485_v6 = vld [vmem:[%s192_s24 + $0x14] ss:$0 sps:$4 sm:$0x11]   ;;  %s197_s30 = scalar_lea.vmem %s554_s4, %s474_s27 }
  0x12   : > { %461 = vmatprep.mubr.msk.bf16.mxu0 %vm216_vm1, %v483_v4  ;;  %467 = vmatprep.mubr.msk.bf16.mxu1 %vm216_vm1, %v484_v5  ;;  %v486_v7 = vld [vmem:[%s192_s24 + $0x8] ss:$0 sps:$4 sm:$0x11]  }
  0x13   : > { %462 = vmatmul.mubr.msk.bf16.vlgmr.msra.gmra.mrb[0].mxu0 %vm216_vm1, %v485_v6  ;;  %468 = vmatmul.mubr.msk.bf16.vlgmr.msra.gmra.mrb[0].mxu1 %vm216_vm1, %v486_v7 }
  0xe6   : > { %v463_v8 = vpop.f32.mrb[0].mxu0  ;;  %v469_v9 = vpop.f32.mrb[0].mxu1 }
  0xe7   : > { %v261_v11 = vpop.f32.mrb[1].mxu0  ;;  %v335_v12 = vadd.f32 %v469_v9, %v463_v8  ;;  %v326_v13 = vpop.f32.mrb[1].mxu1 }
  0xe8   : > { %v464_v14 = vpop.f32.mrb[2].mxu0  ;;  %v327_v15 = vadd.f32 %v326_v13, %v261_v11  ;;  %v470_v16 = vpop.f32.mrb[2].mxu1 }
  0xe9   : > { %v264_v17 = vpop.f32.mrb[3].mxu0  ;;  %v349_v18 = vadd.f32 %v444_v10, %v335_v12  ;;  %v329_v19 = vpop.f32.mrb[3].mxu1 }
  0xea   : > { %v347_v20 = vadd.f32 %v444_v10, %v327_v15  ;;  %v330_v21 = vadd.f32 %v329_v19, %v264_v17 }
  0xeb   : > { %v352_v22 = vmax.f32 %v349_v18, 0.0 }
  0xec   : > { %v350_v23 = vmax.f32 %v347_v20, 0.0  ;;  %v348_v24 = vadd.f32 %v444_v10, %v330_v21 }
  0xed   : > { %v452_v25 = vpack.c.bf16 %v352_v22, %v352_v22 }
  0xee   : > { %v450_v26 = vpack.c.bf16 %v350_v23, %v350_v23  ;;  %v351_v27 = vmax.f32 %v348_v24, 0.0 }
  0xef   : > { %370 = vst.msk [vmem:[%s197_s30 + $0x8] sm:$0x1] %vm369_vm2, %v452_v25 }
  0xf0   : > { %367 = vst.msk [vmem:[%s197_s30] sm:$0xf] %vm366_vm3, %v450_v26  ;;  %v451_v28 = vpack.c.bf16 %v351_v27, %v351_v27 }
  0xf2   : > { %368 = vst.msk [vmem:[%s197_s30 + $0x4] sm:$0xf] %vm366_vm3, %v451_v28 }
  0xf3 PF: > { %s14_s15 = sadd.s32 1, %s493_s15  }
  0xf4   : > { %p11_p4 = scmp.ge.s32.totalorder %s14_s15, 38  }
  0xf6   :  { %13 = sbr.rel (!%p11_p4) target bundleno = 1 (0x1), region = 67 }

// kernel: _forward.10
= control target key start
LH: loop header
LB: loop body
LE: loop exit
PB: predicated region body
PF: predicated region fallthrough
CT: control target
= control target key end

     0   :  { %s666_s15 = smov 0   ;;  %s738_s0 = inlined_call_operand.vmem [shape: bf16[18,2,9,128], index: 0, kind: input, shape index: {}]   ;;  %s739_s1 = inlined_call_operand.vmem [shape: bf16[128,128], index: 1, kind: input, shape index: {}]   ;;  %s740_s2 = inlined_call_operand.vmem [shape: bf16[128,128], index: 2, kind: input, shape index: {}]   ;;  %s741_s3 = inlined_call_operand.vmem [shape: f32[1,128], index: 3, kind: input, shape index: {}]   ;;  %s742_s4 = inlined_call_operand.vmem [shape: bf16[18,9,128], index: 4, kind: output, shape index: {}]  }
   0x1 LB: > { %s507_s16 = sadd.s32 4294967295, %s637_s15   ;;  %p511_p0 = scmp.ge.s32.totalorder %s637_s15, 1  ;;  %s637_s15 = sphi %s666_s15, %s14_s15  }
   0x2   : > { %p162_p1 = scmp.lt.s32.totalorder %s637_s15, 19 }
   0x4   : > { %p163_p2 = pnand %p511_p0, %p162_p1 }
   0x5   : > { %v613_v0 = vld [vmem:[%s740_s2] sm:$0xff] (!%p163_p2)   ;;  %v639_v1 = vmov (!%p163_p2), 0.0   ;;  %v615_v3 = vld [vmem:[%s740_s2 + $0x8] sm:$0xff] (!%p163_p2)   ;;  %vm640_vm0 = vmmov (!%p163_p2), 0   ;;  %p188_p3 = scmp.lt.s32.totalorder (!%p163_p2), %s507_s16, 17  ;;  %v617_v5 = vld [vmem:[%s740_s2 + $0x10] sm:$0xff] (!%p163_p2)  }
   0x6   : > { %166 = sbr.rel (%p163_p2) target bundleno = 263 (0x107), region = 36  ;;  %563 = vmatprep.subr.bf16.mxu0 (!%p163_p2), %v639_v1  ;;  %583 = vmatprep.subr.bf16.mxu1 (!%p163_p2), %v639_v1  ;;  %v614_v2 = vld [vmem:[%s739_s1] sm:$0xff] (!%p163_p2)   ;;  %v616_v4 = vld [vmem:[%s739_s1 + $0x8] sm:$0xff] (!%p163_p2)   ;;  %v618_v6 = vld [vmem:[%s739_s1 + $0x10] sm:$0xff] (!%p163_p2)   ;;  %vm446_vm1 = vcmask (!%p163_p2), 1040384  }
   0x7   : > { %564 = vmatpush3.bf16.msra.mxu0 (!%p163_p2), %v613_v0  ;;  %579 = vmatprep.mubr.msk.bf16.mxu0 (!%p163_p2), %vm640_vm0, %v639_v1  ;;  %v619_v7 = vld [vmem:[%s740_s2 + $0x18] sm:$0xff] (!%p163_p2)   ;;  %v621_v9 = vld [vmem:[%s740_s2 + $0x20] sm:$0xff] (!%p163_p2)   ;;  %v623_v11 = vld [vmem:[%s740_s2 + $0x28] sm:$0xff] (!%p163_p2)   ;;  %vm447_vm2 = vsmask.f32 (!%p163_p2), 256 }
   0x8   : > { %584 = vmatpush3.bf16.msra.mxu1 (!%p163_p2), %v614_v2  ;;  %565 = vmatprep.subr.bf16.mxu0 (!%p163_p2), %v639_v1  ;;  %v620_v8 = vld [vmem:[%s739_s1 + $0x18] sm:$0xff] (!%p163_p2)   ;;  %v622_v10 = vld [vmem:[%s739_s1 + $0x20] sm:$0xff] (!%p163_p2)   ;;  %v624_v12 = vld [vmem:[%s739_s1 + $0x28] sm:$0xff] (!%p163_p2)  }
   0x9   : > { %585 = vmatprep.subr.bf16.mxu1 (!%p163_p2), %v639_v1  ;;  %599 = vmatprep.mubr.msk.bf16.mxu1 (!%p163_p2), %vm640_vm0, %v639_v1  ;;  %v625_v13 = vld [vmem:[%s740_s2 + $0x30] sm:$0xff] (!%p163_p2)   ;;  %v627_v15 = vld [vmem:[%s740_s2 + $0x38] sm:$0xff] (!%p163_p2)   ;;  %v536_v21 = vld [vmem:[%s741_s3] ss:$0 sm:$0xff] (!%p163_p2) }
   0xa   : > { %v626_v14 = vld [vmem:[%s739_s1 + $0x30] sm:$0xff] (!%p163_p2)   ;;  %v628_v16 = vld [vmem:[%s739_s1 + $0x38] sm:$0xff] (!%p163_p2)   ;;  %vm448_vm3 = vmand (!%p163_p2), %vm446_vm1, %vm447_vm2 }
   0xb   : > { %566 = vmatpush3.bf16.msra.mxu0 (!%p163_p2), %v615_v3 }
   0xc   : > { %586 = vmatpush3.bf16.msra.mxu1 (!%p163_p2), %v616_v4  ;;  %567 = vmatprep.subr.bf16.mxu0 (!%p163_p2), %v639_v1 }
   0xd   : > { %587 = vmatprep.subr.bf16.mxu1 %v639_v1  ;;  %s744_s16 = smov (!%p188_p3, %s507_s16), 17 }
   0xe   : > { %s541_s7 = sshll.u32 %s744_s16, 4  ;;  %s542_s5 = sshll.u32 %s744_s16, 3 }
   0xf   : > { %568 = vmatpush3.bf16.msra.mxu0 %v617_v5  ;;  %s192_s14 = scalar_lea.vmem %s738_s0, %s541_s7  ;;  %s197_s8 = scalar_lea.vmem %s742_s4, %s542_s5 }
  0x10   : > { %588 = vmatpush3.bf16.msra.mxu1 %v618_v6  ;;  %569 = vmatprep.subr.bf16.mxu0 %v639_v1  ;;  %v629_v17 = vld [vmem:[%s192_s14 + $0x8] sm:$0x1f]   ;;  %v630_v18 = vld [vmem:[%s192_s14] sm:$0x1f]  }
  0x11   : > { %589 = vmatprep.subr.bf16.mxu1 %v639_v1  ;;  %v449_v35 = vld [vmem:[%s197_s8 + $0x4] sm:$0x1] }
  0x13   : > { %570 = vmatpush3.bf16.msra.mxu0 %v619_v7 }
  0x14   : > { %590 = vmatpush3.bf16.msra.mxu1 %v620_v8  ;;  %571 = vmatprep.subr.bf16.mxu0 %v639_v1 }
  0x15   : > { %591 = vmatprep.subr.bf16.mxu1 %v639_v1 }
  0x17   : > { %572 = vmatpush3.bf16.msra.mxu0 %v621_v9 }
  0x18   : > { %592 = vmatpush3.bf16.msra.mxu1 %v622_v10  ;;  %573 = vmatprep.subr.bf16.mxu0 %v639_v1 }
  0x19   : > { %593 = vmatprep.subr.bf16.mxu1 %v639_v1 }
  0x1b   : > { %574 = vmatpush3.bf16.msra.mxu0 %v623_v11 }
  0x1c   : > { %594 = vmatpush3.bf16.msra.mxu1 %v624_v12  ;;  %575 = vmatprep.subr.bf16.mxu0 %v639_v1 }
  0x1d   : > { %595 = vmatprep.subr.bf16.mxu1 %v639_v1 }
  0x1f   : > { %576 = vmatpush3.bf16.msra.mxu0 %v625_v13 }
  0x20   : > { %596 = vmatpush3.bf16.msra.mxu1 %v626_v14  ;;  %577 = vmatprep.subr.bf16.mxu0 %v639_v1 }
  0x21   : > { %597 = vmatprep.subr.bf16.mxu1 %v639_v1 }
  0x23   : > { %578 = vmatpush3.bf16.msra.mxu0 %v627_v15 }
  0x24   : > { %598 = vmatpush3.bf16.msra.mxu1 %v628_v16 }
  0x26   : > { %580 = vmatmul.mubr.bf16.vlgmr.msra.gmra.mrb[0].mxu0 %v629_v17 }
  0x27   : > { %600 = vmatmul.mubr.bf16.vlgmr.msra.gmra.mrb[0].mxu1 %v630_v18 }
  0xf9   : > { %v324_v19 = vpop.f32.mrb[0].mxu0 }
  0xfa   : > { %v419_v20 = vpop.f32.mrb[0].mxu1  ;;  %v581_v22 = vpop.f32.mrb[1].mxu0 }
  0xfb   : > { %v420_v23 = vadd.f32 %v419_v20, %v324_v19  ;;  %v601_v24 = vpop.f32.mrb[1].mxu1  ;;  %v327_v25 = vpop.f32.mrb[2].mxu0 }
  0xfc   : > { %v422_v26 = vpop.f32.mrb[2].mxu1  ;;  %v582_v27 = vpop.f32.mrb[3].mxu0 }
  0xfd   : > { %v433_v28 = vadd.f32 %v536_v21, %v420_v23  ;;  %v423_v29 = vadd.f32 %v422_v26, %v327_v25  ;;  %v602_v30 = vpop.f32.mrb[3].mxu1 }
  0xff   : > { %v435_v31 = vmax.f32 %v433_v28, 0.0  ;;  %v434_v32 = vadd.f32 %v536_v21, %v423_v29 }
 0x101   : > { %v543_v33 = vpack.c.bf16 %v435_v31, %v435_v31  ;;  %v436_v34 = vmax.f32 %v434_v32, 0.0 }
 0x103   : > { %445 = vst [vmem:[%s197_s8] sm:$0xf] %v543_v33  ;;  %v544_v36 = vpack.c.bf16 %v436_v34, %v436_v34 }
 0x105   : > { %v450_v37 = vsel %vm448_vm3, %v544_v36, %v449_v35 }
 0x106   : > { %451 = vst [vmem:[%s197_s8 + $0x4] sm:$0x1] %v450_v37 }
 0x107 PF: > { %s14_s15 = sadd.s32 1, %s637_s15  }
 0x108   : > { %p11_p4 = scmp.ge.s32.totalorder %s14_s15, 20  }
 0x10a   :  { %13 = sbr.rel (!%p11_p4) target bundleno = 1 (0x1), region = 67 }

// kernel: _forward.11
= control target key start
LH: loop header
LB: loop body
LE: loop exit
PB: predicated region body
PF: predicated region fallthrough
CT: control target
= control target key end

     0   :  { %s993_s15 = smov 0   ;;  %s1213_s0 = inlined_call_operand.vmem [shape: bf16[8,2,4,256], index: 0, kind: input, shape index: {}]   ;;  %s1214_s1 = inlined_call_operand.vmem [shape: bf16[256,256], index: 1, kind: input, shape index: {}]   ;;  %s1215_s2 = inlined_call_operand.vmem [shape: bf16[256,256], index: 2, kind: input, shape index: {}]   ;;  %s1216_s3 = inlined_call_operand.vmem [shape: f32[1,256], index: 3, kind: input, shape index: {}]   ;;  %s1217_s4 = inlined_call_operand.vmem [shape: bf16[8,4,256], index: 4, kind: output, shape index: {}]  }
   0x1 LB: > { %s774_s16 = sadd.s32 4294967295, %s966_s15   ;;  %p778_p0 = scmp.ge.s32.totalorder %s966_s15, 1  ;;  %s966_s15 = sphi %s993_s15, %s14_s15  }
   0x2   : > { %p162_p1 = scmp.lt.s32.totalorder %s966_s15, 9 }
   0x4   : > { %p163_p2 = pnand %p778_p0, %p162_p1 }
   0x5   : > { %v864_v0 = vld [vmem:[%s1215_s2 + $0x4] ss:$8 sps:$4 sm:$0xff] (!%p163_p2)   ;;  %v868_v2 = vld [vmem:[%s1215_s2] ss:$8 sps:$4 sm:$0xff] (!%p163_p2)   ;;  %v870_v4 = vld [vmem:[%s1215_s2 + $0x14] ss:$8 sps:$4 sm:$0xff] (!%p163_p2)  }
   0x6   : > { %166 = sbr.rel (%p163_p2) target bundleno = 293 (0x125), region = 36  ;;  %v866_v1 = vld [vmem:[%s1214_s1 + $0x4] ss:$8 sps:$4 sm:$0xff] (!%p163_p2)   ;;  %436 = vmatprep.subr.bf16.mxu0 (!%p163_p2), %v864_v0  ;;  %v869_v3 = vld [vmem:[%s1214_s1] ss:$8 sps:$4 sm:$0xff] (!%p163_p2)   ;;  %p188_p3 = scmp.lt.s32.totalorder (!%p163_p2), %s774_s16, 7 }
   0x7   : > { %648 = vmatprep.subr.bf16.mxu1 (!%p163_p2), %v866_v1  ;;  %437 = vmatpush1.bf16.msra.mxu0 (!%p163_p2), %v868_v2  ;;  %v872_v5 = vld [vmem:[%s1214_s1 + $0x14] ss:$8 sps:$4 sm:$0xff] (!%p163_p2)   ;;  %v874_v6 = vld [vmem:[%s1215_s2 + $0x10] ss:$8 sps:$4 sm:$0xff] (!%p163_p2)   ;;  %v876_v8 = vld [vmem:[%s1215_s2 + $0x24] ss:$8 sps:$4 sm:$0xff] (!%p163_p2)  }
   0x8   : > { %649 = vmatpush1.bf16.msra.mxu1 (!%p163_p2), %v869_v3  ;;  %438 = vmatprep.subr.bf16.mxu0 (!%p163_p2), %v870_v4  ;;  %v875_v7 = vld [vmem:[%s1214_s1 + $0x10] ss:$8 sps:$4 sm:$0xff] (!%p163_p2)   ;;  %v878_v9 = vld [vmem:[%s1214_s1 + $0x24] ss:$8 sps:$4 sm:$0xff] (!%p163_p2)   ;;  %v880_v10 = vld [vmem:[%s1215_s2 + $0x20] ss:$8 sps:$4 sm:$0xff] (!%p163_p2)   ;;  %v691_v4 = vlaneseq (!%p163_p2) }
   0x9   : > { %650 = vmatprep.subr.bf16.mxu1 (!%p163_p2), %v872_v5  ;;  %v881_v11 = vld [vmem:[%s1214_s1 + $0x20] ss:$8 sps:$4 sm:$0xff] (!%p163_p2)   ;;  %v882_v12 = vld [vmem:[%s1215_s2 + $0x34] ss:$8 sps:$4 sm:$0xff] (!%p163_p2)   ;;  %v886_v14 = vld [vmem:[%s1215_s2 + $0x30] ss:$8 sps:$4 sm:$0xff] (!%p163_p2)  }
   0xa   : > { %v884_v13 = vld [vmem:[%s1214_s1 + $0x34] ss:$8 sps:$4 sm:$0xff] (!%p163_p2)   ;;  %v887_v15 = vld [vmem:[%s1214_s1 + $0x30] ss:$8 sps:$4 sm:$0xff] (!%p163_p2)   ;;  %v888_v16 = vld [vmem:[%s1215_s2 + $0x44] ss:$8 sps:$4 sm:$0xff] (!%p163_p2)  }
   0xb   : > { %439 = vmatpush1.bf16.msra.mxu0 (!%p163_p2), %v874_v6  ;;  %v890_v17 = vld [vmem:[%s1214_s1 + $0x44] ss:$8 sps:$4 sm:$0xff] (!%p163_p2)   ;;  %v892_v18 = vld [vmem:[%s1215_s2 + $0x40] ss:$8 sps:$4 sm:$0xff] (!%p163_p2)   ;;  %v894_v20 = vld [vmem:[%s1215_s2 + $0x54] ss:$8 sps:$4 sm:$0xff] (!%p163_p2)  }
   0xc   : > { %651 = vmatpush1.bf16.msra.mxu1 (!%p163_p2), %v875_v7  ;;  %440 = vmatprep.subr.bf16.mxu0 (!%p163_p2), %v876_v8  ;;  %v893_v19 = vld [vmem:[%s1214_s1 + $0x40] ss:$8 sps:$4 sm:$0xff] (!%p163_p2)   ;;  %v896_v21 = vld [vmem:[%s1214_s1 + $0x54] ss:$8 sps:$4 sm:$0xff] (!%p163_p2)   ;;  %v898_v22 = vld [vmem:[%s1215_s2 + $0x50] ss:$8 sps:$4 sm:$0xff] (!%p163_p2)  }
   0xd   : > { %652 = vmatprep.subr.bf16.mxu1 %v878_v9  ;;  %v899_v23 = vld [vmem:[%s1214_s1 + $0x50] ss:$8 sps:$4 sm:$0xff]   ;;  %v900_v24 = vld [vmem:[%s1215_s2 + $0x64] ss:$8 sps:$4 sm:$0xff]   ;;  %v904_v26 = vld [vmem:[%s1215_s2 + $0x60] ss:$8 sps:$4 sm:$0xff]  }
   0xe   : > { %v902_v25 = vld [vmem:[%s1214_s1 + $0x64] ss:$8 sps:$4 sm:$0xff]   ;;  %v905_v27 = vld [vmem:[%s1214_s1 + $0x60] ss:$8 sps:$4 sm:$0xff]   ;;  %v906_v28 = vld [vmem:[%s1215_s2 + $0x74] ss:$8 sps:$4 sm:$0xff]  }
   0xf   : > { %441 = vmatpush1.bf16.msra.mxu0 %v880_v10  ;;  %v908_v29 = vld [vmem:[%s1214_s1 + $0x74] ss:$8 sps:$4 sm:$0xff]   ;;  %v910_v30 = vld [vmem:[%s1215_s2 + $0x70] ss:$8 sps:$4 sm:$0xff]   ;;  %v912_v32 = vld [vmem:[%s1215_s2 + $0x84] ss:$8 sps:$4 sm:$0xff]  }
  0x10   : > { %653 = vmatpush1.bf16.msra.mxu1 %v881_v11  ;;  %442 = vmatprep.subr.bf16.mxu0 %v882_v12  ;;  %v911_v31 = vld [vmem:[%s1214_s1 + $0x70] ss:$8 sps:$4 sm:$0xff]   ;;  %v914_v33 = vld [vmem:[%s1214_s1 + $0x84] ss:$8 sps:$4 sm:$0xff]   ;;  %v916_v34 = vld [vmem:[%s1215_s2 + $0x80] ss:$8 sps:$4 sm:$0xff]  }
  0x11   : > { %654 = vmatprep.subr.bf16.mxu1 %v884_v13  ;;  %v917_v35 = vld [vmem:[%s1214_s1 + $0x80] ss:$8 sps:$4 sm:$0xff]   ;;  %v918_v36 = vld [vmem:[%s1215_s2 + $0x94] ss:$8 sps:$4 sm:$0xff]   ;;  %s1219_s16 = smov (!%p188_p3, %s774_s16), 7  ;;  %v692_v5 = vshrl.u32 %v691_v4, 7 }
  0x12   : > { %v920_v37 = vld [vmem:[%s1214_s1 + $0x94] ss:$8 sps:$4 sm:$0xff]   ;;  %v922_v38 = vld [vmem:[%s1215_s2 + $0x90] ss:$8 sps:$4 sm:$0xff]   ;;  %v924_v40 = vld [vmem:[%s1215_s2 + $0xa4] ss:$8 sps:$4 sm:$0xff]  }
  0x13   : > { %443 = vmatpush1.bf16.msra.mxu0 %v886_v14  ;;  %v923_v39 = vld [vmem:[%s1214_s1 + $0x90] ss:$8 sps:$4 sm:$0xff]   ;;  %v926_v41 = vld [vmem:[%s1214_s1 + $0xa4] ss:$8 sps:$4 sm:$0xff]   ;;  %s854_s29 = sshll.u32 %s1219_s16, 3  ;;  %v693_v6 = vsub.s32 0, %v692_v5 }
  0x14   : > { %655 = vmatpush1.bf16.msra.mxu1 %v887_v15  ;;  %444 = vmatprep.subr.bf16.mxu0 %v888_v16  ;;  %v928_v42 = vld [vmem:[%s1215_s2 + $0xa0] ss:$8 sps:$4 sm:$0xff]   ;;  %v930_v44 = vld [vmem:[%s1215_s2 + $0xb4] ss:$8 sps:$4 sm:$0xff]   ;;  %s192_s12 = scalar_lea.vmem %s1213_s0, %s854_s29  ;;  %v934_v46 = vld [vmem:[%s1215_s2 + $0xb0] ss:$8 sps:$4 sm:$0xff]  }
  0x15   : > { %656 = vmatprep.subr.bf16.mxu1 %v890_v17  ;;  %v929_v43 = vld [vmem:[%s1214_s1 + $0xa0] ss:$8 sps:$4 sm:$0xff]   ;;  %v932_v45 = vld [vmem:[%s1214_s1 + $0xb4] ss:$8 sps:$4 sm:$0xff]   ;;  %v935_v48 = vld [vmem:[%s1214_s1 + $0xb0] ss:$8 sps:$4 sm:$0xff]  }
  0x16   : > { %v784_v47 = vld.sshfl [vmem:[%s192_s12 + $0x4] sm:$0x33 pattern:$0x76325410]  ;;  %v940_v54 = vld [vmem:[%s1215_s2 + $0xc0] ss:$8 sps:$4 sm:$0xff]  }
  0x17   : > { %445 = vmatpush1.bf16.msra.mxu0 %v892_v18  ;;  %v273_v49 = vcombine.high %v784_v47, %v784_v47  ;;  %v817_v50 = vld.sshfl [vmem:[%s192_s12] sm:$0x33 pattern:$0x76325410]  ;;  %v936_v51 = vld [vmem:[%s1215_s2 + $0xc4] ss:$8 sps:$4 sm:$0xff]  }
  0x18   : > { %657 = vmatpush1.bf16.msra.mxu1 %v893_v19  ;;  %446 = vmatprep.subr.bf16.mxu0 %v894_v20  ;;  %v938_v52 = vld [vmem:[%s1214_s1 + $0xc4] ss:$8 sps:$4 sm:$0xff]   ;;  %v485_v53 = vcombine.high %v817_v50, %v817_v50  ;;  %v941_v55 = vld [vmem:[%s1214_s1 + $0xc0] ss:$8 sps:$4 sm:$0xff]   ;;  %v942_v56 = vld [vmem:[%s1215_s2 + $0xd4] ss:$8 sps:$4 sm:$0xff]  }
  0x19   : > { %658 = vmatprep.subr.bf16.mxu1 %v896_v21  ;;  %468 = vmatprep.mubr.bf16.mxu0 %v273_v49  ;;  %v944_v57 = vld [vmem:[%s1214_s1 + $0xd4] ss:$8 sps:$4 sm:$0xff]   ;;  %v946_v58 = vld [vmem:[%s1215_s2 + $0xd0] ss:$8 sps:$4 sm:$0xff]   ;;  %v948_v60 = vld [vmem:[%s1215_s2 + $0xe4] ss:$8 sps:$4 sm:$0xff]  }
  0x1a   : > { %680 = vmatprep.mubr.bf16.mxu1 %v485_v53  ;;  %v947_v59 = vld [vmem:[%s1214_s1 + $0xd0] ss:$8 sps:$4 sm:$0xff]   ;;  %v950_v61 = vld [vmem:[%s1214_s1 + $0xe4] ss:$8 sps:$4 sm:$0xff]   ;;  %v952_v62 = vld [vmem:[%s1215_s2 + $0xe0] ss:$8 sps:$4 sm:$0xff]  }
  0x1b   : > { %447 = vmatpush1.bf16.msra.mxu0 %v898_v22  ;;  %v953_v63 = vld [vmem:[%s1214_s1 + $0xe0] ss:$8 sps:$4 sm:$0xff]   ;;  %v954_v0 = vld [vmem:[%s1215_s2 + $0xf4] ss:$8 sps:$4 sm:$0xff]   ;;  %v958_v2 = vld [vmem:[%s1215_s2 + $0xf0] ss:$8 sps:$4 sm:$0xff]  }
  0x1c   : > { %659 = vmatpush1.bf16.msra.mxu1 %v899_v23  ;;  %448 = vmatprep.subr.bf16.mxu0 %v900_v24  ;;  %v956_v1 = vld [vmem:[%s1214_s1 + $0xf4] ss:$8 sps:$4 sm:$0xff]   ;;  %v959_v3 = vld [vmem:[%s1214_s1 + $0xf0] ss:$8 sps:$4 sm:$0xff]   ;;  %v689_v7 = vld [vmem:[%s1216_s3] sm:$0x3] }
  0x1d   : > { %660 = vmatprep.subr.bf16.mxu1 %v902_v25  ;;  %v697_v8 = vsub.s32 1, %v692_v5  ;;  %v694_v9 = vrot.slane %v689_v7, %v693_v6  ;;  %s855_s5 = sshll.u32 %s1219_s16, 2 }
  0x1e   : > { %s197_s8 = scalar_lea.vmem %s1217_s4, %s855_s5 }
  0x1f   : > { %449 = vmatpush1.bf16.msra.mxu0 %v904_v26  ;;  %v698_v12 = vrot.slane %v689_v7, %v697_v8 }
  0x20   : > { %661 = vmatpush1.bf16.msra.mxu1 %v905_v27  ;;  %450 = vmatprep.subr.bf16.mxu0 %v906_v28 }
  0x21   : > { %662 = vmatprep.subr.bf16.mxu1 %v908_v29 }
  0x23   : > { %451 = vmatpush1.bf16.msra.mxu0 %v910_v30 }
  0x24   : > { %663 = vmatpush1.bf16.msra.mxu1 %v911_v31  ;;  %452 = vmatprep.subr.bf16.mxu0 %v912_v32 }
  0x25   : > { %664 = vmatprep.subr.bf16.mxu1 %v914_v33 }
  0x27   : > { %453 = vmatpush1.bf16.msra.mxu0 %v916_v34 }
  0x28   : > { %665 = vmatpush1.bf16.msra.mxu1 %v917_v35  ;;  %454 = vmatprep.subr.bf16.mxu0 %v918_v36 }
  0x29   : > { %666 = vmatprep.subr.bf16.mxu1 %v920_v37 }
  0x2b   : > { %455 = vmatpush1.bf16.msra.mxu0 %v922_v38 }
  0x2c   : > { %667 = vmatpush1.bf16.msra.mxu1 %v923_v39  ;;  %456 = vmatprep.subr.bf16.mxu0 %v924_v40 }
  0x2d   : > { %668 = vmatprep.subr.bf16.mxu1 %v926_v41 }
  0x2f   : > { %457 = vmatpush1.bf16.msra.mxu0 %v928_v42 }
  0x30   : > { %669 = vmatpush1.bf16.msra.mxu1 %v929_v43  ;;  %458 = vmatprep.subr.bf16.mxu0 %v930_v44 }
  0x31   : > { %670 = vmatprep.subr.bf16.mxu1 %v932_v45 }
  0x33   : > { %459 = vmatpush1.bf16.msra.mxu0 %v934_v46 }
  0x34   : > { %671 = vmatpush1.bf16.msra.mxu1 %v935_v48  ;;  %460 = vmatprep.subr.bf16.mxu0 %v936_v51 }
  0x35   : > { %672 = vmatprep.subr.bf16.mxu1 %v938_v52 }
  0x37   : > { %461 = vmatpush1.bf16.msra.mxu0 %v940_v54 }
  0x38   : > { %673 = vmatpush1.bf16.msra.mxu1 %v941_v55  ;;  %462 = vmatprep.subr.bf16.mxu0 %v942_v56 }
  0x39   : > { %674 = vmatprep.subr.bf16.mxu1 %v944_v57 }
  0x3b   : > { %463 = vmatpush1.bf16.msra.mxu0 %v946_v58 }
  0x3c   : > { %675 = vmatpush1.bf16.msra.mxu1 %v947_v59  ;;  %464 = vmatprep.subr.bf16.mxu0 %v948_v60 }
  0x3d   : > { %676 = vmatprep.subr.bf16.mxu1 %v950_v61 }
  0x3f   : > { %465 = vmatpush1.bf16.msra.mxu0 %v952_v62 }
  0x40   : > { %677 = vmatpush1.bf16.msra.mxu1 %v953_v63  ;;  %466 = vmatprep.subr.bf16.mxu0 %v954_v0 }
  0x41   : > { %678 = vmatprep.subr.bf16.mxu1 %v956_v1 }
  0x43   : > { %467 = vmatpush1.bf16.msra.mxu0 %v958_v2 }
  0x44   : > { %679 = vmatpush1.bf16.msra.mxu1 %v959_v3 }
  0x46   : > { %469 = vmatmul.mubr.bf16.vlgmr.msra.gmra.mrb[0].mxu0 %v784_v47 }
  0x47   : > { %681 = vmatmul.mubr.bf16.vlgmr.msra.gmra.mrb[0].mxu1 %v817_v50 }
 0x119   : > { %v470_v10 = vpop.f32.mrb[0].mxu0 }
 0x11a   : > { %v682_v11 = vpop.f32.mrb[0].mxu1  ;;  %v472_v14 = vpop.f32.mrb[1].mxu0 }
 0x11b   : > { %v683_v13 = vadd.f32 %v682_v11, %v470_v10  ;;  %v684_v15 = vpop.f32.mrb[1].mxu1  ;;  %v474_v17 = vpop.f32.mrb[2].mxu0 }
 0x11c   : > { %v685_v16 = vadd.f32 %v684_v15, %v472_v14  ;;  %v686_v18 = vpop.f32.mrb[2].mxu1  ;;  %v475_v20 = vpop.f32.mrb[3].mxu0 }
 0x11d   : > { %v701_v19 = vadd.f32 %v694_v9, %v683_v13  ;;  %v687_v21 = vpop.f32.mrb[3].mxu1 }
 0x11e   : > { %v702_v22 = vadd.f32 %v698_v12, %v685_v16 }
 0x11f   : > { %v703_v23 = vmax.f32 %v701_v19, 0.0 }
 0x120   : > { %v704_v24 = vmax.f32 %v702_v22, 0.0 }
 0x122   : > { %v850_v25 = vpack.c.bf16 %v704_v24, %v703_v23 }
 0x124   : > { %851 = vst.sshfl [vmem:[%s197_s8] sm:$0x33 pattern:$0x76325410] %v850_v25 }
 0x125 PF: > { %s14_s15 = sadd.s32 1, %s966_s15  }
 0x126   : > { %p11_p4 = scmp.ge.s32.totalorder %s14_s15, 10  }
 0x128   :  { %13 = sbr.rel (!%p11_p4) target bundleno = 1 (0x1), region = 67 }

// kernel: _forward.12
= control target key start
LH: loop header
LB: loop body
LE: loop exit
PB: predicated region body
PF: predicated region fallthrough
CT: control target
= control target key end

     0   :  { %s2933_s15 = smov 0   ;;  %s3783_s0 = inlined_call_operand.vmem [shape: bf16[4,2,2,512], index: 0, kind: input, shape index: {}]   ;;  %s3784_s1 = inlined_call_operand.vmem [shape: bf16[512,512], index: 1, kind: input, shape index: {}]   ;;  %s3785_s2 = inlined_call_operand.vmem [shape: bf16[512,512], index: 2, kind: input, shape index: {}]   ;;  %s3786_s3 = inlined_call_operand.vmem [shape: f32[1,512], index: 3, kind: input, shape index: {}]   ;;  %s3787_s4 = inlined_call_operand.vmem [shape: bf16[4,2,512], index: 4, kind: output, shape index: {}]  }
   0x1 LB: > { %s2235_s16 = sadd.s32 4294967295, %s2905_s15   ;;  %p2239_p0 = scmp.ge.s32.totalorder %s2905_s15, 1  ;;  %s2905_s15 = sphi %s2933_s15, %s14_s15  }
   0x2   : > { %p161_p1 = scmp.lt.s32.totalorder %s2905_s15, 5 }
   0x4   : > { %p162_p2 = pnand %p2239_p0, %p161_p1 }
   0x5   : > { %v2515_v0 = vld [vmem:[%s3785_s2 + $0x4] ss:$16 sps:$4 sm:$0xff] (!%p162_p2)   ;;  %v2519_v2 = vld [vmem:[%s3785_s2] ss:$16 sps:$4 sm:$0xff] (!%p162_p2)   ;;  %p185_p3 = scmp.lt.s32.totalorder (!%p162_p2), %s2235_s16, 3  ;;  %v464_v40 = vlaneseq (!%p162_p2) }
   0x6   : > { %165 = sbr.rel (%p162_p2) target bundleno = 490 (0x1ea), region = 36  ;;  %v2517_v1 = vld [vmem:[%s3785_s2 + $0x204] ss:$16 sps:$4 sm:$0xff] (!%p162_p2)   ;;  %1121 = vmatprep.subr.bf16.mxu0 (!%p162_p2), %v2515_v0  ;;  %v2520_v3 = vld [vmem:[%s3785_s2 + $0x200] ss:$16 sps:$4 sm:$0xff] (!%p162_p2)  }
   0x7   : > { %1162 = vmatprep.subr.bf16.mxu1 (!%p162_p2), %v2517_v1  ;;  %v2521_v4 = vld [vmem:[%s3785_s2 + $0x24] ss:$16 sps:$4 sm:$0xff] (!%p162_p2)   ;;  %1122 = vmatpush1.bf16.msra.mxu0 (!%p162_p2), %v2519_v2  ;;  %v2525_v6 = vld [vmem:[%s3785_s2 + $0x20] ss:$16 sps:$4 sm:$0xff] (!%p162_p2)   ;;  %v2907_v38 = vmov (!%p162_p2), 1966171168  }
   0x8   : > { %1163 = vmatpush1.bf16.msra.mxu1 (!%p162_p2), %v2520_v3  ;;  %v2523_v5 = vld [vmem:[%s3785_s2 + $0x224] ss:$16 sps:$4 sm:$0xff] (!%p162_p2)   ;;  %1123 = vmatprep.subr.bf16.mxu0 (!%p162_p2), %v2521_v4  ;;  %v2526_v7 = vld [vmem:[%s3785_s2 + $0x220] ss:$16 sps:$4 sm:$0xff] (!%p162_p2)   ;;  %v462_v39 = vunpack.c.l.s4 (!%p162_p2), %v2907_v38  ;;  %v3074_v46 = vshrl.u32 (!%p162_p2), %v464_v40, 7 }
   0x9   : > { %1164 = vmatprep.subr.bf16.mxu1 (!%p162_p2), %v2523_v5  ;;  %v2527_v8 = vld [vmem:[%s3785_s2 + $0x44] ss:$16 sps:$4 sm:$0xff] (!%p162_p2)   ;;  %v2531_v10 = vld [vmem:[%s3785_s2 + $0x40] ss:$16 sps:$4 sm:$0xff] (!%p162_p2)   ;;  %v2647_v38 = vld [vmem:[%s3785_s2 + $0xc8] ss:$16 sps:$4 sm:$0xff] (!%p162_p2)  }
   0xa   : > { %v2529_v9 = vld [vmem:[%s3785_s2 + $0x244] ss:$16 sps:$4 sm:$0xff] (!%p162_p2)   ;;  %v2532_v11 = vld [vmem:[%s3785_s2 + $0x240] ss:$16 sps:$4 sm:$0xff] (!%p162_p2)   ;;  %v463_v45 = vunpack.c.0.s8 (!%p162_p2), %v462_v39  ;;  %v2650_v39 = vld [vmem:[%s3785_s2 + $0x2c8] ss:$16 sps:$4 sm:$0xff] (!%p162_p2)  }
   0xb   : > { %1124 = vmatpush1.bf16.msra.mxu0 (!%p162_p2), %v2525_v6  ;;  %v2533_v12 = vld [vmem:[%s3785_s2 + $0x64] ss:$16 sps:$4 sm:$0xff] (!%p162_p2)   ;;  %v2537_v14 = vld [vmem:[%s3785_s2 + $0x60] ss:$16 sps:$4 sm:$0xff] (!%p162_p2)   ;;  %v2655_v40 = vld [vmem:[%s3785_s2 + $0xec] ss:$16 sps:$4 sm:$0xff] (!%p162_p2)  }
   0xc   : > { %1165 = vmatpush1.bf16.msra.mxu1 (!%p162_p2), %v2526_v7  ;;  %1125 = vmatprep.subr.bf16.mxu0 (!%p162_p2), %v2527_v8  ;;  %v2535_v13 = vld [vmem:[%s3785_s2 + $0x264] ss:$16 sps:$4 sm:$0xff] (!%p162_p2)   ;;  %v2538_v15 = vld [vmem:[%s3785_s2 + $0x260] ss:$16 sps:$4 sm:$0xff] (!%p162_p2)   ;;  %v3094_v51 = vsub.s32 (!%p162_p2), %v463_v45, %v3074_v46  ;;  %v2664_v45 = vld [vmem:[%s3785_s2 + $0x30c] ss:$16 sps:$4 sm:$0xff] (!%p162_p2)  }
   0xd   : > { %1166 = vmatprep.subr.bf16.mxu1 %v2529_v9  ;;  %v2539_v16 = vld [vmem:[%s3785_s2 + $0x84] ss:$16 sps:$4 sm:$0xff]   ;;  %v2543_v18 = vld [vmem:[%s3785_s2 + $0x80] ss:$16 sps:$4 sm:$0xff]   ;;  %s3789_s16 = smov (!%p185_p3, %s2235_s16), 3 }
   0xe   : > { %v2541_v17 = vld [vmem:[%s3785_s2 + $0x284] ss:$16 sps:$4 sm:$0xff]   ;;  %v2544_v19 = vld [vmem:[%s3785_s2 + $0x280] ss:$16 sps:$4 sm:$0xff]   ;;  %s2240_s29 = sshll.u32 %s3789_s16, 3  ;;  %s2241_s11 = sshll.u32 %s3789_s16, 2 }
   0xf   : > { %1126 = vmatpush1.bf16.msra.mxu0 %v2531_v10  ;;  %v2545_v20 = vld [vmem:[%s3785_s2 + $0xa4] ss:$16 sps:$4 sm:$0xff]   ;;  %v2549_v22 = vld [vmem:[%s3785_s2 + $0xa0] ss:$16 sps:$4 sm:$0xff]   ;;  %s3088_s12 = scalar_lea.vmem %s3783_s0, %s2240_s29  ;;  %s192_s17 = scalar_lea.vmem %s3787_s4, %s2241_s11 }
  0x10   : > { %1167 = vmatpush1.bf16.msra.mxu1 %v2532_v11  ;;  %1127 = vmatprep.subr.bf16.mxu0 %v2533_v12  ;;  %v2547_v21 = vld [vmem:[%s3785_s2 + $0x2a4] ss:$16 sps:$4 sm:$0xff]   ;;  %v2550_v23 = vld [vmem:[%s3785_s2 + $0x2a0] ss:$16 sps:$4 sm:$0xff]   ;;  %v2613_v11 = vld [vmem:[%s3785_s2 + $0xc] ss:$16 sps:$4 sm:$0xff]  }
  0x11   : > { %1168 = vmatprep.subr.bf16.mxu1 %v2535_v13  ;;  %v2551_v24 = vld [vmem:[%s3785_s2 + $0xc4] ss:$16 sps:$4 sm:$0xff]   ;;  %v2555_v26 = vld [vmem:[%s3785_s2 + $0xc0] ss:$16 sps:$4 sm:$0xff]   ;;  %v2616_v12 = vld [vmem:[%s3785_s2 + $0x20c] ss:$16 sps:$4 sm:$0xff]  }
  0x12   : > { %v2553_v25 = vld [vmem:[%s3785_s2 + $0x2c4] ss:$16 sps:$4 sm:$0xff]   ;;  %v2556_v27 = vld [vmem:[%s3785_s2 + $0x2c0] ss:$16 sps:$4 sm:$0xff]  }
  0x13   : > { %1128 = vmatpush1.bf16.msra.mxu0 %v2537_v14  ;;  %v2557_v28 = vld [vmem:[%s3785_s2 + $0xe4] ss:$16 sps:$4 sm:$0xff]   ;;  %v2561_v30 = vld [vmem:[%s3785_s2 + $0xe0] ss:$16 sps:$4 sm:$0xff]   ;;  %v2611_v14 = vld [vmem:[%s3785_s2 + $0x8] ss:$16 sps:$4 sm:$0xff]  }
  0x14   : > { %1169 = vmatpush1.bf16.msra.mxu1 %v2538_v15  ;;  %1129 = vmatprep.subr.bf16.mxu0 %v2539_v16  ;;  %v2559_v29 = vld [vmem:[%s3785_s2 + $0x2e4] ss:$16 sps:$4 sm:$0xff]   ;;  %v2562_v31 = vld [vmem:[%s3785_s2 + $0x2e0] ss:$16 sps:$4 sm:$0xff]   ;;  %v2614_v15 = vld [vmem:[%s3785_s2 + $0x208] ss:$16 sps:$4 sm:$0xff]  }
  0x15   : > { %1170 = vmatprep.subr.bf16.mxu1 %v2541_v17  ;;  %v2563_v32 = vld [vmem:[%s3785_s2 + $0x104] ss:$16 sps:$4 sm:$0xff]   ;;  %v2567_v34 = vld [vmem:[%s3785_s2 + $0x100] ss:$16 sps:$4 sm:$0xff]   ;;  %v2619_v16 = vld [vmem:[%s3785_s2 + $0x2c] ss:$16 sps:$4 sm:$0xff]  }
  0x16   : > { %v2565_v33 = vld [vmem:[%s3785_s2 + $0x304] ss:$16 sps:$4 sm:$0xff]   ;;  %v2568_v35 = vld [vmem:[%s3785_s2 + $0x300] ss:$16 sps:$4 sm:$0xff]   ;;  %v2622_v17 = vld [vmem:[%s3785_s2 + $0x22c] ss:$16 sps:$4 sm:$0xff]  }
  0x17   : > { %1130 = vmatpush1.bf16.msra.mxu0 %v2543_v18  ;;  %v2569_v36 = vld [vmem:[%s3785_s2 + $0x124] ss:$16 sps:$4 sm:$0xff]   ;;  %v2573_v41 = vld [vmem:[%s3785_s2 + $0x120] ss:$16 sps:$4 sm:$0xff]   ;;  %v2617_v18 = vld [vmem:[%s3785_s2 + $0x28] ss:$16 sps:$4 sm:$0xff]  }
  0x18   : > { %1171 = vmatpush1.bf16.msra.mxu1 %v2544_v19  ;;  %1131 = vmatprep.subr.bf16.mxu0 %v2545_v20  ;;  %v2571_v37 = vld [vmem:[%s3785_s2 + $0x324] ss:$16 sps:$4 sm:$0xff]   ;;  %v2574_v42 = vld [vmem:[%s3785_s2 + $0x320] ss:$16 sps:$4 sm:$0xff]   ;;  %v2620_v19 = vld [vmem:[%s3785_s2 + $0x228] ss:$16 sps:$4 sm:$0xff]  }
  0x19   : > { %1172 = vmatprep.subr.bf16.mxu1 %v2547_v21  ;;  %v2575_v43 = vld [vmem:[%s3785_s2 + $0x144] ss:$16 sps:$4 sm:$0xff]   ;;  %v2579_v47 = vld [vmem:[%s3785_s2 + $0x140] ss:$16 sps:$4 sm:$0xff]   ;;  %v2625_v20 = vld [vmem:[%s3785_s2 + $0x4c] ss:$16 sps:$4 sm:$0xff]  }
  0x1a   : > { %v2577_v44 = vld [vmem:[%s3785_s2 + $0x344] ss:$16 sps:$4 sm:$0xff]   ;;  %v2580_v48 = vld [vmem:[%s3785_s2 + $0x340] ss:$16 sps:$4 sm:$0xff]   ;;  %v2628_v21 = vld [vmem:[%s3785_s2 + $0x24c] ss:$16 sps:$4 sm:$0xff]  }
  0x1b   : > { %1132 = vmatpush1.bf16.msra.mxu0 %v2549_v22  ;;  %v2581_v49 = vld [vmem:[%s3785_s2 + $0x164] ss:$16 sps:$4 sm:$0xff]   ;;  %v2585_v53 = vld [vmem:[%s3785_s2 + $0x160] ss:$16 sps:$4 sm:$0xff]   ;;  %v2623_v22 = vld [vmem:[%s3785_s2 + $0x48] ss:$16 sps:$4 sm:$0xff]  }
  0x1c   : > { %1173 = vmatpush1.bf16.msra.mxu1 %v2550_v23  ;;  %1133 = vmatprep.subr.bf16.mxu0 %v2551_v24  ;;  %v2583_v50 = vld [vmem:[%s3785_s2 + $0x364] ss:$16 sps:$4 sm:$0xff]   ;;  %v2586_v54 = vld [vmem:[%s3785_s2 + $0x360] ss:$16 sps:$4 sm:$0xff]   ;;  %v2626_v23 = vld [vmem:[%s3785_s2 + $0x248] ss:$16 sps:$4 sm:$0xff]  }
  0x1d   : > { %1174 = vmatprep.subr.bf16.mxu1 %v2553_v25  ;;  %v2243_v52 = vld.sshfl [vmem:[%s3088_s12 + $0x4] sm:$0x33 pattern:$0x75316420]  ;;  %v2591_v59 = vld [vmem:[%s3785_s2 + $0x180] ss:$16 sps:$4 sm:$0xff]  }
  0x1e   : > { %v460_v55 = vcombine.high %v2243_v52, %v2243_v52  ;;  %v2587_v56 = vld [vmem:[%s3785_s2 + $0x184] ss:$16 sps:$4 sm:$0xff]   ;;  %v2592_v60 = vld [vmem:[%s3785_s2 + $0x380] ss:$16 sps:$4 sm:$0xff]   ;;  %v3150_v9 = vrot.slane %v2243_v52, %v3094_v51  ;;  %v2631_v24 = vld [vmem:[%s3785_s2 + $0x6c] ss:$16 sps:$4 sm:$0xff]  }
  0x1f   : > { %1134 = vmatpush1.bf16.msra.mxu0 %v2555_v26  ;;  %v2589_v57 = vld [vmem:[%s3785_s2 + $0x384] ss:$16 sps:$4 sm:$0xff]   ;;  %v2597_v0 = vld [vmem:[%s3785_s2 + $0x1a0] ss:$16 sps:$4 sm:$0xff]   ;;  %v2634_v25 = vld [vmem:[%s3785_s2 + $0x26c] ss:$16 sps:$4 sm:$0xff]  }
  0x20   : > { %1175 = vmatpush1.bf16.msra.mxu1 %v2556_v27  ;;  %1135 = vmatprep.subr.bf16.mxu0 %v2557_v28  ;;  %v474_v58 = vrot.slane %v460_v55, %v3094_v51  ;;  %v2593_v62 = vld [vmem:[%s3785_s2 + $0x1a4] ss:$16 sps:$4 sm:$0xff]   ;;  %v2598_v1 = vld [vmem:[%s3785_s2 + $0x3a0] ss:$16 sps:$4 sm:$0xff]   ;;  %v3163_v13 = vcombine.high %v3150_v9, %v3150_v9  ;;  %v2629_v26 = vld [vmem:[%s3785_s2 + $0x68] ss:$16 sps:$4 sm:$0xff]  }
  0x21   : > { %1176 = vmatprep.subr.bf16.mxu1 %v2559_v29  ;;  %v2595_v63 = vld [vmem:[%s3785_s2 + $0x3a4] ss:$16 sps:$4 sm:$0xff]   ;;  %v2603_v4 = vld [vmem:[%s3785_s2 + $0x1c0] ss:$16 sps:$4 sm:$0xff]   ;;  %v2632_v27 = vld [vmem:[%s3785_s2 + $0x268] ss:$16 sps:$4 sm:$0xff]  }
  0x22   : > { %v476_v61 = vcombine.high %v474_v58, %v474_v58  ;;  %1153 = vmatprep.mubr.bf16.mxu0 %v474_v58  ;;  %v2599_v2 = vld [vmem:[%s3785_s2 + $0x1c4] ss:$16 sps:$4 sm:$0xff]   ;;  %v2604_v5 = vld [vmem:[%s3785_s2 + $0x3c0] ss:$16 sps:$4 sm:$0xff]   ;;  %v2637_v28 = vld [vmem:[%s3785_s2 + $0x8c] ss:$16 sps:$4 sm:$0xff]  }
  0x23   : > { %1136 = vmatpush1.bf16.msra.mxu0 %v2561_v30  ;;  %v2601_v3 = vld [vmem:[%s3785_s2 + $0x3c4] ss:$16 sps:$4 sm:$0xff]   ;;  %v2609_v8 = vld [vmem:[%s3785_s2 + $0x1e0] ss:$16 sps:$4 sm:$0xff]   ;;  %v2640_v29 = vld [vmem:[%s3785_s2 + $0x28c] ss:$16 sps:$4 sm:$0xff]  }
  0x24   : > { %1177 = vmatpush1.bf16.msra.mxu1 %v2562_v31  ;;  %1137 = vmatprep.subr.bf16.mxu0 %v2563_v32  ;;  %v2605_v6 = vld [vmem:[%s3785_s2 + $0x1e4] ss:$16 sps:$4 sm:$0xff]   ;;  %v2610_v10 = vld [vmem:[%s3785_s2 + $0x3e0] ss:$16 sps:$4 sm:$0xff]   ;;  %v2635_v30 = vld [vmem:[%s3785_s2 + $0x88] ss:$16 sps:$4 sm:$0xff]  }
  0x25   : > { %1178 = vmatprep.subr.bf16.mxu1 %v2565_v33  ;;  %1194 = vmatprep.mubr.bf16.mxu1 %v476_v61  ;;  %v2607_v7 = vld [vmem:[%s3785_s2 + $0x3e4] ss:$16 sps:$4 sm:$0xff]   ;;  %v2638_v31 = vld [vmem:[%s3785_s2 + $0x288] ss:$16 sps:$4 sm:$0xff]   ;;  %v2643_v32 = vld [vmem:[%s3785_s2 + $0xac] ss:$16 sps:$4 sm:$0xff]  }
  0x26   : > { %v2646_v33 = vld [vmem:[%s3785_s2 + $0x2ac] ss:$16 sps:$4 sm:$0xff]   ;;  %v2665_v52 = vld [vmem:[%s3785_s2 + $0x128] ss:$16 sps:$4 sm:$0xff]  }
  0x27   : > { %1138 = vmatpush1.bf16.msra.mxu0 %v2567_v34  ;;  %v2641_v34 = vld [vmem:[%s3785_s2 + $0xa8] ss:$16 sps:$4 sm:$0xff]   ;;  %v2676_v55 = vld [vmem:[%s3785_s2 + $0x34c] ss:$16 sps:$4 sm:$0xff]  }
  0x28   : > { %1179 = vmatpush1.bf16.msra.mxu1 %v2568_v35  ;;  %1139 = vmatprep.subr.bf16.mxu0 %v2569_v36  ;;  %v2644_v35 = vld [vmem:[%s3785_s2 + $0x2a8] ss:$16 sps:$4 sm:$0xff]   ;;  %v2649_v36 = vld [vmem:[%s3785_s2 + $0xcc] ss:$16 sps:$4 sm:$0xff]  }
  0x29   : > { %1180 = vmatprep.subr.bf16.mxu1 %v2571_v37  ;;  %v2652_v37 = vld [vmem:[%s3785_s2 + $0x2cc] ss:$16 sps:$4 sm:$0xff]  }
  0x2b   : > { %1140 = vmatpush1.bf16.msra.mxu0 %v2573_v41  ;;  %v2658_v41 = vld [vmem:[%s3785_s2 + $0x2ec] ss:$16 sps:$4 sm:$0xff]  }
  0x2c   : > { %1181 = vmatpush1.bf16.msra.mxu1 %v2574_v42  ;;  %1141 = vmatprep.subr.bf16.mxu0 %v2575_v43  ;;  %v2653_v42 = vld [vmem:[%s3785_s2 + $0xe8] ss:$16 sps:$4 sm:$0xff]  }
  0x2d   : > { %1182 = vmatprep.subr.bf16.mxu1 %v2577_v44  ;;  %v2656_v43 = vld [vmem:[%s3785_s2 + $0x2e8] ss:$16 sps:$4 sm:$0xff]   ;;  %v2661_v44 = vld [vmem:[%s3785_s2 + $0x10c] ss:$16 sps:$4 sm:$0xff]  }
  0x2f   : > { %1142 = vmatpush1.bf16.msra.mxu0 %v2579_v47  ;;  %v2659_v47 = vld [vmem:[%s3785_s2 + $0x108] ss:$16 sps:$4 sm:$0xff]  }
  0x30   : > { %1183 = vmatpush1.bf16.msra.mxu1 %v2580_v48  ;;  %1143 = vmatprep.subr.bf16.mxu0 %v2581_v49  ;;  %v2662_v48 = vld [vmem:[%s3785_s2 + $0x308] ss:$16 sps:$4 sm:$0xff]   ;;  %v2667_v49 = vld [vmem:[%s3785_s2 + $0x12c] ss:$16 sps:$4 sm:$0xff]  }
  0x31   : > { %1184 = vmatprep.subr.bf16.mxu1 %v2583_v50  ;;  %v2670_v50 = vld [vmem:[%s3785_s2 + $0x32c] ss:$16 sps:$4 sm:$0xff]  }
  0x33   : > { %1144 = vmatpush1.bf16.msra.mxu0 %v2585_v53  ;;  %v2668_v53 = vld [vmem:[%s3785_s2 + $0x328] ss:$16 sps:$4 sm:$0xff]  }
  0x34   : > { %1185 = vmatpush1.bf16.msra.mxu1 %v2586_v54  ;;  %1145 = vmatprep.subr.bf16.mxu0 %v2587_v56  ;;  %v2673_v54 = vld [vmem:[%s3785_s2 + $0x14c] ss:$16 sps:$4 sm:$0xff]   ;;  %v2671_v56 = vld [vmem:[%s3785_s2 + $0x148] ss:$16 sps:$4 sm:$0xff]  }
  0x35   : > { %1186 = vmatprep.subr.bf16.mxu1 %v2589_v57  ;;  %v2674_v57 = vld [vmem:[%s3785_s2 + $0x348] ss:$16 sps:$4 sm:$0xff]  }
  0x37   : > { %1146 = vmatpush1.bf16.msra.mxu0 %v2591_v59  ;;  %v2682_v59 = vld [vmem:[%s3785_s2 + $0x36c] ss:$16 sps:$4 sm:$0xff]  }
  0x38   : > { %1187 = vmatpush1.bf16.msra.mxu1 %v2592_v60  ;;  %1147 = vmatprep.subr.bf16.mxu0 %v2593_v62  ;;  %v2677_v60 = vld [vmem:[%s3785_s2 + $0x168] ss:$16 sps:$4 sm:$0xff]   ;;  %v2685_v62 = vld [vmem:[%s3785_s2 + $0x18c] ss:$16 sps:$4 sm:$0xff]  }
  0x39   : > { %1188 = vmatprep.subr.bf16.mxu1 %v2595_v63  ;;  %v2688_v63 = vld [vmem:[%s3785_s2 + $0x38c] ss:$16 sps:$4 sm:$0xff]  }
  0x3b   : > { %1148 = vmatpush1.bf16.msra.mxu0 %v2597_v0  ;;  %v2683_v0 = vld [vmem:[%s3785_s2 + $0x188] ss:$16 sps:$4 sm:$0xff]  }
  0x3c   : > { %1189 = vmatpush1.bf16.msra.mxu1 %v2598_v1  ;;  %1149 = vmatprep.subr.bf16.mxu0 %v2599_v2  ;;  %v2686_v1 = vld [vmem:[%s3785_s2 + $0x388] ss:$16 sps:$4 sm:$0xff]   ;;  %v2691_v2 = vld [vmem:[%s3785_s2 + $0x1ac] ss:$16 sps:$4 sm:$0xff]  }
  0x3d   : > { %1190 = vmatprep.subr.bf16.mxu1 %v2601_v3  ;;  %v2694_v3 = vld [vmem:[%s3785_s2 + $0x3ac] ss:$16 sps:$4 sm:$0xff]  }
  0x3f   : > { %1150 = vmatpush1.bf16.msra.mxu0 %v2603_v4  ;;  %v2689_v4 = vld [vmem:[%s3785_s2 + $0x1a8] ss:$16 sps:$4 sm:$0xff]  }
  0x40   : > { %1191 = vmatpush1.bf16.msra.mxu1 %v2604_v5  ;;  %1151 = vmatprep.subr.bf16.mxu0 %v2605_v6  ;;  %v2692_v5 = vld [vmem:[%s3785_s2 + $0x3a8] ss:$16 sps:$4 sm:$0xff]   ;;  %v2697_v6 = vld [vmem:[%s3785_s2 + $0x1cc] ss:$16 sps:$4 sm:$0xff]  }
  0x41   : > { %1192 = vmatprep.subr.bf16.mxu1 %v2607_v7  ;;  %v2700_v7 = vld [vmem:[%s3785_s2 + $0x3cc] ss:$16 sps:$4 sm:$0xff]  }
  0x43   : > { %1152 = vmatpush1.bf16.msra.mxu0 %v2609_v8  ;;  %v2695_v8 = vld [vmem:[%s3785_s2 + $0x1c8] ss:$16 sps:$4 sm:$0xff]  }
  0x44   : > { %1193 = vmatpush1.bf16.msra.mxu1 %v2610_v10  ;;  %1203 = vmatprep.subr.bf16.mxu0 %v2613_v11  ;;  %v2698_v10 = vld [vmem:[%s3785_s2 + $0x3c8] ss:$16 sps:$4 sm:$0xff]   ;;  %v2703_v11 = vld [vmem:[%s3785_s2 + $0x1ec] ss:$16 sps:$4 sm:$0xff]  }
  0x45   : > { %1244 = vmatprep.subr.bf16.mxu1 %v2616_v12  ;;  %v2706_v12 = vld [vmem:[%s3785_s2 + $0x3ec] ss:$16 sps:$4 sm:$0xff]  }
  0x46   : > { %1154 = vmatmul.mubr.bf16.vlgmr.msra.gmra.mrb[0].mxu0 %v3150_v9 }
  0x47   : > { %1195 = vmatmul.mubr.bf16.vlgmr.msra.gmra.mrb[0].mxu1 %v3163_v13  ;;  %1204 = vmatpush1.bf16.msra.mxu0 %v2611_v14  ;;  %v2701_v14 = vld [vmem:[%s3785_s2 + $0x1e8] ss:$16 sps:$4 sm:$0xff]  }
  0x48   : > { %1245 = vmatpush1.bf16.msra.mxu1 %v2614_v15  ;;  %1205 = vmatprep.subr.bf16.mxu0 %v2619_v16  ;;  %v2704_v15 = vld [vmem:[%s3785_s2 + $0x3e8] ss:$16 sps:$4 sm:$0xff]   ;;  %v2709_v16 = vld [vmem:[%s3784_s1 + $0x4] ss:$16 sps:$4 sm:$0xff]  }
  0x49   : > { %1246 = vmatprep.subr.bf16.mxu1 %v2622_v17  ;;  %1235 = vmatprep.mubr.bf16.mxu0 %v474_v58  ;;  %v2679_v58 = vld [vmem:[%s3785_s2 + $0x16c] ss:$16 sps:$4 sm:$0xff]   ;;  %v2712_v17 = vld [vmem:[%s3784_s1 + $0x204] ss:$16 sps:$4 sm:$0xff]  }
  0x4a   : > { %1276 = vmatprep.mubr.bf16.mxu1 %v476_v61  ;;  %v2680_v61 = vld [vmem:[%s3785_s2 + $0x368] ss:$16 sps:$4 sm:$0xff]  }
  0x4b   : > { %1206 = vmatpush1.bf16.msra.mxu0 %v2617_v18  ;;  %v2707_v18 = vld [vmem:[%s3784_s1] ss:$16 sps:$4 sm:$0xff]  }
  0x4c   : > { %1247 = vmatpush1.bf16.msra.mxu1 %v2620_v19  ;;  %1207 = vmatprep.subr.bf16.mxu0 %v2625_v20  ;;  %v2710_v19 = vld [vmem:[%s3784_s1 + $0x200] ss:$16 sps:$4 sm:$0xff]   ;;  %v2715_v20 = vld [vmem:[%s3784_s1 + $0x24] ss:$16 sps:$4 sm:$0xff]  }
  0x4d   : > { %1248 = vmatprep.subr.bf16.mxu1 %v2628_v21  ;;  %v3369_v21 = vld.sshfl [vmem:[%s3088_s12] sm:$0x33 pattern:$0x75316420] }
  0x4f   : > { %1208 = vmatpush1.bf16.msra.mxu0 %v2623_v22  ;;  %v2718_v22 = vld [vmem:[%s3784_s1 + $0x224] ss:$16 sps:$4 sm:$0xff]  }
  0x50   : > { %1249 = vmatpush1.bf16.msra.mxu1 %v2626_v23  ;;  %1209 = vmatprep.subr.bf16.mxu0 %v2631_v24  ;;  %v1293_v23 = vcombine.high %v3369_v21, %v3369_v21  ;;  %v2713_v24 = vld [vmem:[%s3784_s1 + $0x20] ss:$16 sps:$4 sm:$0xff]  }
  0x51   : > { %1250 = vmatprep.subr.bf16.mxu1 %v2634_v25 }
  0x52   : > { %v3382_v25 = vrot.slane %v1293_v23, %v3094_v51  ;;  %v2800_v23 = vld [vmem:[%s3784_s1 + $0x3e0] ss:$16 sps:$4 sm:$0xff]  }
  0x53   : > { %1210 = vmatpush1.bf16.msra.mxu0 %v2629_v26  ;;  %v2716_v26 = vld [vmem:[%s3784_s1 + $0x220] ss:$16 sps:$4 sm:$0xff]  }
  0x54   : > { %1251 = vmatpush1.bf16.msra.mxu1 %v2632_v27  ;;  %1211 = vmatprep.subr.bf16.mxu0 %v2637_v28  ;;  %v2721_v27 = vld [vmem:[%s3784_s1 + $0x44] ss:$16 sps:$4 sm:$0xff]   ;;  %v2719_v28 = vld [vmem:[%s3784_s1 + $0x40] ss:$16 sps:$4 sm:$0xff]  }
  0x55   : > { %1252 = vmatprep.subr.bf16.mxu1 %v2640_v29  ;;  %v2722_v29 = vld [vmem:[%s3784_s1 + $0x240] ss:$16 sps:$4 sm:$0xff]  }
  0x57   : > { %1212 = vmatpush1.bf16.msra.mxu0 %v2635_v30  ;;  %v2727_v30 = vld [vmem:[%s3784_s1 + $0x64] ss:$16 sps:$4 sm:$0xff]  }
  0x58   : > { %1253 = vmatpush1.bf16.msra.mxu1 %v2638_v31  ;;  %1213 = vmatprep.subr.bf16.mxu0 %v2643_v32  ;;  %v2730_v31 = vld [vmem:[%s3784_s1 + $0x264] ss:$16 sps:$4 sm:$0xff]   ;;  %v2725_v32 = vld [vmem:[%s3784_s1 + $0x60] ss:$16 sps:$4 sm:$0xff]  }
  0x59   : > { %1254 = vmatprep.subr.bf16.mxu1 %v2646_v33  ;;  %v2728_v33 = vld [vmem:[%s3784_s1 + $0x260] ss:$16 sps:$4 sm:$0xff]  }
  0x5b   : > { %1214 = vmatpush1.bf16.msra.mxu0 %v2641_v34  ;;  %v2733_v34 = vld [vmem:[%s3784_s1 + $0x84] ss:$16 sps:$4 sm:$0xff]  }
  0x5c   : > { %1255 = vmatpush1.bf16.msra.mxu1 %v2644_v35  ;;  %1215 = vmatprep.subr.bf16.mxu0 %v2649_v36  ;;  %v2736_v35 = vld [vmem:[%s3784_s1 + $0x284] ss:$16 sps:$4 sm:$0xff]   ;;  %v2731_v36 = vld [vmem:[%s3784_s1 + $0x80] ss:$16 sps:$4 sm:$0xff]  }
  0x5d   : > { %1256 = vmatprep.subr.bf16.mxu1 %v2652_v37  ;;  %v2734_v37 = vld [vmem:[%s3784_s1 + $0x280] ss:$16 sps:$4 sm:$0xff]  }
  0x5f   : > { %1216 = vmatpush1.bf16.msra.mxu0 %v2647_v38  ;;  %v2739_v38 = vld [vmem:[%s3784_s1 + $0xa4] ss:$16 sps:$4 sm:$0xff]  }
  0x60   : > { %1257 = vmatpush1.bf16.msra.mxu1 %v2650_v39  ;;  %1217 = vmatprep.subr.bf16.mxu0 %v2655_v40  ;;  %v2742_v39 = vld [vmem:[%s3784_s1 + $0x2a4] ss:$16 sps:$4 sm:$0xff]   ;;  %v2737_v40 = vld [vmem:[%s3784_s1 + $0xa0] ss:$16 sps:$4 sm:$0xff]  }
  0x61   : > { %1258 = vmatprep.subr.bf16.mxu1 %v2658_v41  ;;  %v2740_v41 = vld [vmem:[%s3784_s1 + $0x2a0] ss:$16 sps:$4 sm:$0xff]  }
  0x63   : > { %1218 = vmatpush1.bf16.msra.mxu0 %v2653_v42  ;;  %v2745_v42 = vld [vmem:[%s3784_s1 + $0xc4] ss:$16 sps:$4 sm:$0xff]  }
  0x64   : > { %1259 = vmatpush1.bf16.msra.mxu1 %v2656_v43  ;;  %1219 = vmatprep.subr.bf16.mxu0 %v2661_v44  ;;  %v2748_v43 = vld [vmem:[%s3784_s1 + $0x2c4] ss:$16 sps:$4 sm:$0xff]   ;;  %v2743_v44 = vld [vmem:[%s3784_s1 + $0xc0] ss:$16 sps:$4 sm:$0xff]  }
  0x65   : > { %1260 = vmatprep.subr.bf16.mxu1 %v2664_v45  ;;  %v2746_v45 = vld [vmem:[%s3784_s1 + $0x2c0] ss:$16 sps:$4 sm:$0xff]  }
  0x67   : > { %1220 = vmatpush1.bf16.msra.mxu0 %v2659_v47  ;;  %v2751_v47 = vld [vmem:[%s3784_s1 + $0xe4] ss:$16 sps:$4 sm:$0xff]  }
  0x68   : > { %1261 = vmatpush1.bf16.msra.mxu1 %v2662_v48  ;;  %1221 = vmatprep.subr.bf16.mxu0 %v2667_v49  ;;  %v2754_v48 = vld [vmem:[%s3784_s1 + $0x2e4] ss:$16 sps:$4 sm:$0xff]   ;;  %v2749_v49 = vld [vmem:[%s3784_s1 + $0xe0] ss:$16 sps:$4 sm:$0xff]  }
  0x69   : > { %1262 = vmatprep.subr.bf16.mxu1 %v2670_v50  ;;  %v2752_v50 = vld [vmem:[%s3784_s1 + $0x2e0] ss:$16 sps:$4 sm:$0xff]  }
  0x6b   : > { %1222 = vmatpush1.bf16.msra.mxu0 %v2665_v52  ;;  %v2757_v52 = vld [vmem:[%s3784_s1 + $0x104] ss:$16 sps:$4 sm:$0xff]  }
  0x6c   : > { %1263 = vmatpush1.bf16.msra.mxu1 %v2668_v53  ;;  %1223 = vmatprep.subr.bf16.mxu0 %v2673_v54  ;;  %v2760_v53 = vld [vmem:[%s3784_s1 + $0x304] ss:$16 sps:$4 sm:$0xff]   ;;  %v2755_v54 = vld [vmem:[%s3784_s1 + $0x100] ss:$16 sps:$4 sm:$0xff]  }
  0x6d   : > { %1264 = vmatprep.subr.bf16.mxu1 %v2676_v55  ;;  %v2758_v55 = vld [vmem:[%s3784_s1 + $0x300] ss:$16 sps:$4 sm:$0xff]  }
  0x6f   : > { %1224 = vmatpush1.bf16.msra.mxu0 %v2671_v56  ;;  %v2763_v56 = vld [vmem:[%s3784_s1 + $0x124] ss:$16 sps:$4 sm:$0xff]  }
  0x70   : > { %1265 = vmatpush1.bf16.msra.mxu1 %v2674_v57  ;;  %1225 = vmatprep.subr.bf16.mxu0 %v2679_v58  ;;  %v2766_v57 = vld [vmem:[%s3784_s1 + $0x324] ss:$16 sps:$4 sm:$0xff]   ;;  %v2761_v58 = vld [vmem:[%s3784_s1 + $0x120] ss:$16 sps:$4 sm:$0xff]  }
  0x71   : > { %1266 = vmatprep.subr.bf16.mxu1 %v2682_v59  ;;  %v2764_v59 = vld [vmem:[%s3784_s1 + $0x320] ss:$16 sps:$4 sm:$0xff]  }
  0x73   : > { %1226 = vmatpush1.bf16.msra.mxu0 %v2677_v60  ;;  %v2769_v60 = vld [vmem:[%s3784_s1 + $0x144] ss:$16 sps:$4 sm:$0xff]  }
  0x74   : > { %1267 = vmatpush1.bf16.msra.mxu1 %v2680_v61  ;;  %1227 = vmatprep.subr.bf16.mxu0 %v2685_v62  ;;  %v2772_v61 = vld [vmem:[%s3784_s1 + $0x344] ss:$16 sps:$4 sm:$0xff]   ;;  %v2767_v62 = vld [vmem:[%s3784_s1 + $0x140] ss:$16 sps:$4 sm:$0xff]  }
  0x75   : > { %1268 = vmatprep.subr.bf16.mxu1 %v2688_v63  ;;  %v2770_v63 = vld [vmem:[%s3784_s1 + $0x340] ss:$16 sps:$4 sm:$0xff]  }
  0x77   : > { %1228 = vmatpush1.bf16.msra.mxu0 %v2683_v0  ;;  %v2775_v0 = vld [vmem:[%s3784_s1 + $0x164] ss:$16 sps:$4 sm:$0xff]  }
  0x78   : > { %1269 = vmatpush1.bf16.msra.mxu1 %v2686_v1  ;;  %1229 = vmatprep.subr.bf16.mxu0 %v2691_v2  ;;  %v2778_v1 = vld [vmem:[%s3784_s1 + $0x364] ss:$16 sps:$4 sm:$0xff]   ;;  %v2773_v2 = vld [vmem:[%s3784_s1 + $0x160] ss:$16 sps:$4 sm:$0xff]  }
  0x79   : > { %1270 = vmatprep.subr.bf16.mxu1 %v2694_v3  ;;  %v2776_v3 = vld [vmem:[%s3784_s1 + $0x360] ss:$16 sps:$4 sm:$0xff]  }
  0x7b   : > { %1230 = vmatpush1.bf16.msra.mxu0 %v2689_v4  ;;  %v2781_v4 = vld [vmem:[%s3784_s1 + $0x184] ss:$16 sps:$4 sm:$0xff]  }
  0x7c   : > { %1271 = vmatpush1.bf16.msra.mxu1 %v2692_v5  ;;  %1231 = vmatprep.subr.bf16.mxu0 %v2697_v6  ;;  %v2784_v5 = vld [vmem:[%s3784_s1 + $0x384] ss:$16 sps:$4 sm:$0xff]   ;;  %v2779_v6 = vld [vmem:[%s3784_s1 + $0x180] ss:$16 sps:$4 sm:$0xff]  }
  0x7d   : > { %1272 = vmatprep.subr.bf16.mxu1 %v2700_v7  ;;  %v2782_v7 = vld [vmem:[%s3784_s1 + $0x380] ss:$16 sps:$4 sm:$0xff]  }
  0x7f   : > { %1232 = vmatpush1.bf16.msra.mxu0 %v2695_v8  ;;  %v2787_v8 = vld [vmem:[%s3784_s1 + $0x1a4] ss:$16 sps:$4 sm:$0xff]  }
  0x80   : > { %1273 = vmatpush1.bf16.msra.mxu1 %v2698_v10  ;;  %1233 = vmatprep.subr.bf16.mxu0 %v2703_v11  ;;  %v2790_v10 = vld [vmem:[%s3784_s1 + $0x3a4] ss:$16 sps:$4 sm:$0xff]   ;;  %v2785_v11 = vld [vmem:[%s3784_s1 + $0x1a0] ss:$16 sps:$4 sm:$0xff]  }
  0x81   : > { %1274 = vmatprep.subr.bf16.mxu1 %v2706_v12  ;;  %v2788_v12 = vld [vmem:[%s3784_s1 + $0x3a0] ss:$16 sps:$4 sm:$0xff]  }
  0x83   : > { %1234 = vmatpush1.bf16.msra.mxu0 %v2701_v14  ;;  %v2793_v14 = vld [vmem:[%s3784_s1 + $0x1c4] ss:$16 sps:$4 sm:$0xff]  }
  0x84   : > { %1275 = vmatpush1.bf16.msra.mxu1 %v2704_v15  ;;  %1954 = vmatprep.subr.bf16.mxu0 %v2709_v16  ;;  %v2796_v15 = vld [vmem:[%s3784_s1 + $0x3c4] ss:$16 sps:$4 sm:$0xff]   ;;  %v2791_v16 = vld [vmem:[%s3784_s1 + $0x1c0] ss:$16 sps:$4 sm:$0xff]  }
  0x85   : > { %1995 = vmatprep.subr.bf16.mxu1 %v2712_v17  ;;  %v2794_v17 = vld [vmem:[%s3784_s1 + $0x3c0] ss:$16 sps:$4 sm:$0xff]  }
  0x86   : > { %1236 = vmatmul.mubr.bf16.vlgmr.msra.gmra.mrb[4].mxu0 %v3150_v9  ;;  %v2724_v9 = vld [vmem:[%s3784_s1 + $0x244] ss:$16 sps:$4 sm:$0xff]  }
  0x87   : > { %1277 = vmatmul.mubr.bf16.vlgmr.msra.gmra.mrb[4].mxu1 %v3163_v13  ;;  %1955 = vmatpush1.bf16.msra.mxu0 %v2707_v18  ;;  %v3395_v13 = vcombine.high %v3382_v25, %v3382_v25  ;;  %v2799_v18 = vld [vmem:[%s3784_s1 + $0x1e4] ss:$16 sps:$4 sm:$0xff]  }
  0x88   : > { %1996 = vmatpush1.bf16.msra.mxu1 %v2710_v19  ;;  %1956 = vmatprep.subr.bf16.mxu0 %v2715_v20  ;;  %v2802_v19 = vld [vmem:[%s3784_s1 + $0x3e4] ss:$16 sps:$4 sm:$0xff]   ;;  %v3557_v20 = vrot.slane %v3369_v21, %v3094_v51  ;;  %v2808_v21 = vld [vmem:[%s3784_s1 + $0x20c] ss:$16 sps:$4 sm:$0xff]  }
  0x89   : > { %1997 = vmatprep.subr.bf16.mxu1 %v2718_v22  ;;  %1986 = vmatprep.mubr.bf16.mxu0 %v3382_v25  ;;  %v2797_v22 = vld [vmem:[%s3784_s1 + $0x1e0] ss:$16 sps:$4 sm:$0xff]  }
  0x8a   : > { %2027 = vmatprep.mubr.bf16.mxu1 %v3395_v13 }
  0x8b   : > { %1957 = vmatpush1.bf16.msra.mxu0 %v2713_v24  ;;  %v2805_v24 = vld [vmem:[%s3784_s1 + $0xc] ss:$16 sps:$4 sm:$0xff]  }
  0x8c   : > { %1998 = vmatpush1.bf16.msra.mxu1 %v2716_v26  ;;  %1958 = vmatprep.subr.bf16.mxu0 %v2721_v27  ;;  %v3573_v26 = vcombine.high %v3557_v20, %v3557_v20  ;;  %v2803_v27 = vld [vmem:[%s3784_s1 + $0x8] ss:$16 sps:$4 sm:$0xff]  }
  0x8d   : > { %1999 = vmatprep.subr.bf16.mxu1 %v2724_v9  ;;  %v2806_v9 = vld [vmem:[%s3784_s1 + $0x208] ss:$16 sps:$4 sm:$0xff]  }
  0x8f   : > { %1959 = vmatpush1.bf16.msra.mxu0 %v2719_v28  ;;  %v2811_v28 = vld [vmem:[%s3784_s1 + $0x2c] ss:$16 sps:$4 sm:$0xff]  }
  0x90   : > { %2000 = vmatpush1.bf16.msra.mxu1 %v2722_v29  ;;  %1960 = vmatprep.subr.bf16.mxu0 %v2727_v30  ;;  %v2814_v29 = vld [vmem:[%s3784_s1 + $0x22c] ss:$16 sps:$4 sm:$0xff]   ;;  %v2809_v30 = vld [vmem:[%s3784_s1 + $0x28] ss:$16 sps:$4 sm:$0xff]  }
  0x91   : > { %2001 = vmatprep.subr.bf16.mxu1 %v2730_v31  ;;  %v2812_v31 = vld [vmem:[%s3784_s1 + $0x228] ss:$16 sps:$4 sm:$0xff]  }
  0x93   : > { %1961 = vmatpush1.bf16.msra.mxu0 %v2725_v32  ;;  %v2817_v32 = vld [vmem:[%s3784_s1 + $0x4c] ss:$16 sps:$4 sm:$0xff]  }
  0x94   : > { %2002 = vmatpush1.bf16.msra.mxu1 %v2728_v33  ;;  %1962 = vmatprep.subr.bf16.mxu0 %v2733_v34  ;;  %v2820_v33 = vld [vmem:[%s3784_s1 + $0x24c] ss:$16 sps:$4 sm:$0xff]   ;;  %v2815_v34 = vld [vmem:[%s3784_s1 + $0x48] ss:$16 sps:$4 sm:$0xff]  }
  0x95   : > { %2003 = vmatprep.subr.bf16.mxu1 %v2736_v35  ;;  %v2818_v35 = vld [vmem:[%s3784_s1 + $0x248] ss:$16 sps:$4 sm:$0xff]  }
  0x97   : > { %1963 = vmatpush1.bf16.msra.mxu0 %v2731_v36  ;;  %v2823_v36 = vld [vmem:[%s3784_s1 + $0x6c] ss:$16 sps:$4 sm:$0xff]  }
  0x98   : > { %2004 = vmatpush1.bf16.msra.mxu1 %v2734_v37  ;;  %1964 = vmatprep.subr.bf16.mxu0 %v2739_v38  ;;  %v2824_v37 = vld [vmem:[%s3784_s1 + $0x268] ss:$16 sps:$4 sm:$0xff]   ;;  %v2829_v38 = vld [vmem:[%s3784_s1 + $0x8c] ss:$16 sps:$4 sm:$0xff]  }
  0x99   : > { %2005 = vmatprep.subr.bf16.mxu1 %v2742_v39  ;;  %v2832_v39 = vld [vmem:[%s3784_s1 + $0x28c] ss:$16 sps:$4 sm:$0xff]  }
  0x9b   : > { %1965 = vmatpush1.bf16.msra.mxu0 %v2737_v40  ;;  %v2827_v40 = vld [vmem:[%s3784_s1 + $0x88] ss:$16 sps:$4 sm:$0xff]  }
  0x9c   : > { %2006 = vmatpush1.bf16.msra.mxu1 %v2740_v41  ;;  %1966 = vmatprep.subr.bf16.mxu0 %v2745_v42  ;;  %v2830_v41 = vld [vmem:[%s3784_s1 + $0x288] ss:$16 sps:$4 sm:$0xff]   ;;  %v2835_v42 = vld [vmem:[%s3784_s1 + $0xac] ss:$16 sps:$4 sm:$0xff]  }
  0x9d   : > { %2007 = vmatprep.subr.bf16.mxu1 %v2748_v43  ;;  %v2838_v43 = vld [vmem:[%s3784_s1 + $0x2ac] ss:$16 sps:$4 sm:$0xff]  }
  0x9f   : > { %1967 = vmatpush1.bf16.msra.mxu0 %v2743_v44  ;;  %v2833_v44 = vld [vmem:[%s3784_s1 + $0xa8] ss:$16 sps:$4 sm:$0xff]  }
  0xa0   : > { %2008 = vmatpush1.bf16.msra.mxu1 %v2746_v45  ;;  %1968 = vmatprep.subr.bf16.mxu0 %v2751_v47  ;;  %v2836_v45 = vld [vmem:[%s3784_s1 + $0x2a8] ss:$16 sps:$4 sm:$0xff]   ;;  %v2841_v47 = vld [vmem:[%s3784_s1 + $0xcc] ss:$16 sps:$4 sm:$0xff]  }
  0xa1   : > { %2009 = vmatprep.subr.bf16.mxu1 %v2754_v48  ;;  %v2844_v48 = vld [vmem:[%s3784_s1 + $0x2cc] ss:$16 sps:$4 sm:$0xff]  }
  0xa3   : > { %1969 = vmatpush1.bf16.msra.mxu0 %v2749_v49  ;;  %v2839_v49 = vld [vmem:[%s3784_s1 + $0xc8] ss:$16 sps:$4 sm:$0xff]  }
  0xa4   : > { %2010 = vmatpush1.bf16.msra.mxu1 %v2752_v50  ;;  %1970 = vmatprep.subr.bf16.mxu0 %v2757_v52  ;;  %v2842_v50 = vld [vmem:[%s3784_s1 + $0x2c8] ss:$16 sps:$4 sm:$0xff]   ;;  %v2847_v52 = vld [vmem:[%s3784_s1 + $0xec] ss:$16 sps:$4 sm:$0xff]  }
  0xa5   : > { %2011 = vmatprep.subr.bf16.mxu1 %v2760_v53  ;;  %v2850_v53 = vld [vmem:[%s3784_s1 + $0x2ec] ss:$16 sps:$4 sm:$0xff]  }
  0xa7   : > { %1971 = vmatpush1.bf16.msra.mxu0 %v2755_v54  ;;  %v2845_v54 = vld [vmem:[%s3784_s1 + $0xe8] ss:$16 sps:$4 sm:$0xff]  }
  0xa8   : > { %2012 = vmatpush1.bf16.msra.mxu1 %v2758_v55  ;;  %1972 = vmatprep.subr.bf16.mxu0 %v2763_v56  ;;  %v2848_v55 = vld [vmem:[%s3784_s1 + $0x2e8] ss:$16 sps:$4 sm:$0xff]   ;;  %v2853_v56 = vld [vmem:[%s3784_s1 + $0x10c] ss:$16 sps:$4 sm:$0xff]  }
  0xa9   : > { %2013 = vmatprep.subr.bf16.mxu1 %v2766_v57  ;;  %v2856_v57 = vld [vmem:[%s3784_s1 + $0x30c] ss:$16 sps:$4 sm:$0xff]  }
  0xab   : > { %1973 = vmatpush1.bf16.msra.mxu0 %v2761_v58  ;;  %v2851_v58 = vld [vmem:[%s3784_s1 + $0x108] ss:$16 sps:$4 sm:$0xff]  }
  0xac   : > { %2014 = vmatpush1.bf16.msra.mxu1 %v2764_v59  ;;  %1974 = vmatprep.subr.bf16.mxu0 %v2769_v60  ;;  %v2854_v59 = vld [vmem:[%s3784_s1 + $0x308] ss:$16 sps:$4 sm:$0xff]   ;;  %v2859_v60 = vld [vmem:[%s3784_s1 + $0x12c] ss:$16 sps:$4 sm:$0xff]  }
  0xad   : > { %2015 = vmatprep.subr.bf16.mxu1 %v2772_v61  ;;  %v2862_v61 = vld [vmem:[%s3784_s1 + $0x32c] ss:$16 sps:$4 sm:$0xff]  }
  0xaf   : > { %1975 = vmatpush1.bf16.msra.mxu0 %v2767_v62  ;;  %v2857_v62 = vld [vmem:[%s3784_s1 + $0x128] ss:$16 sps:$4 sm:$0xff]  }
  0xb0   : > { %2016 = vmatpush1.bf16.msra.mxu1 %v2770_v63  ;;  %1976 = vmatprep.subr.bf16.mxu0 %v2775_v0  ;;  %v2860_v63 = vld [vmem:[%s3784_s1 + $0x328] ss:$16 sps:$4 sm:$0xff]   ;;  %v2865_v0 = vld [vmem:[%s3784_s1 + $0x14c] ss:$16 sps:$4 sm:$0xff]  }
  0xb1   : > { %2017 = vmatprep.subr.bf16.mxu1 %v2778_v1  ;;  %v2868_v1 = vld [vmem:[%s3784_s1 + $0x34c] ss:$16 sps:$4 sm:$0xff]  }
  0xb3   : > { %1977 = vmatpush1.bf16.msra.mxu0 %v2773_v2  ;;  %v2863_v2 = vld [vmem:[%s3784_s1 + $0x148] ss:$16 sps:$4 sm:$0xff]  }
  0xb4   : > { %2018 = vmatpush1.bf16.msra.mxu1 %v2776_v3  ;;  %1978 = vmatprep.subr.bf16.mxu0 %v2781_v4  ;;  %v2866_v3 = vld [vmem:[%s3784_s1 + $0x348] ss:$16 sps:$4 sm:$0xff]   ;;  %v2871_v4 = vld [vmem:[%s3784_s1 + $0x16c] ss:$16 sps:$4 sm:$0xff]  }
  0xb5   : > { %2019 = vmatprep.subr.bf16.mxu1 %v2784_v5  ;;  %v2874_v5 = vld [vmem:[%s3784_s1 + $0x36c] ss:$16 sps:$4 sm:$0xff]  }
  0xb7   : > { %1979 = vmatpush1.bf16.msra.mxu0 %v2779_v6  ;;  %v2869_v6 = vld [vmem:[%s3784_s1 + $0x168] ss:$16 sps:$4 sm:$0xff]  }
  0xb8   : > { %2020 = vmatpush1.bf16.msra.mxu1 %v2782_v7  ;;  %1980 = vmatprep.subr.bf16.mxu0 %v2787_v8  ;;  %v2872_v7 = vld [vmem:[%s3784_s1 + $0x368] ss:$16 sps:$4 sm:$0xff]   ;;  %v2877_v8 = vld [vmem:[%s3784_s1 + $0x18c] ss:$16 sps:$4 sm:$0xff]  }
  0xb9   : > { %2021 = vmatprep.subr.bf16.mxu1 %v2790_v10  ;;  %v2880_v10 = vld [vmem:[%s3784_s1 + $0x38c] ss:$16 sps:$4 sm:$0xff]  }
  0xbb   : > { %1981 = vmatpush1.bf16.msra.mxu0 %v2785_v11  ;;  %v2875_v11 = vld [vmem:[%s3784_s1 + $0x188] ss:$16 sps:$4 sm:$0xff]  }
  0xbc   : > { %2022 = vmatpush1.bf16.msra.mxu1 %v2788_v12  ;;  %1982 = vmatprep.subr.bf16.mxu0 %v2793_v14  ;;  %v2878_v12 = vld [vmem:[%s3784_s1 + $0x388] ss:$16 sps:$4 sm:$0xff]   ;;  %v2883_v14 = vld [vmem:[%s3784_s1 + $0x1ac] ss:$16 sps:$4 sm:$0xff]  }
  0xbd   : > { %2023 = vmatprep.subr.bf16.mxu1 %v2796_v15  ;;  %v2886_v15 = vld [vmem:[%s3784_s1 + $0x3ac] ss:$16 sps:$4 sm:$0xff]  }
  0xbf   : > { %1983 = vmatpush1.bf16.msra.mxu0 %v2791_v16  ;;  %v2881_v16 = vld [vmem:[%s3784_s1 + $0x1a8] ss:$16 sps:$4 sm:$0xff]  }
  0xc0   : > { %2024 = vmatpush1.bf16.msra.mxu1 %v2794_v17  ;;  %1984 = vmatprep.subr.bf16.mxu0 %v2799_v18  ;;  %v2884_v17 = vld [vmem:[%s3784_s1 + $0x3a8] ss:$16 sps:$4 sm:$0xff]   ;;  %v2889_v18 = vld [vmem:[%s3784_s1 + $0x1cc] ss:$16 sps:$4 sm:$0xff]  }
  0xc1   : > { %2025 = vmatprep.subr.bf16.mxu1 %v2802_v19  ;;  %v2892_v19 = vld [vmem:[%s3784_s1 + $0x3cc] ss:$16 sps:$4 sm:$0xff]  }
  0xc3   : > { %1985 = vmatpush1.bf16.msra.mxu0 %v2797_v22  ;;  %v2887_v22 = vld [vmem:[%s3784_s1 + $0x1c8] ss:$16 sps:$4 sm:$0xff]  }
  0xc4   : > { %2026 = vmatpush1.bf16.msra.mxu1 %v2800_v23  ;;  %2036 = vmatprep.subr.bf16.mxu0 %v2805_v24  ;;  %v2890_v23 = vld [vmem:[%s3784_s1 + $0x3c8] ss:$16 sps:$4 sm:$0xff]   ;;  %v2895_v24 = vld [vmem:[%s3784_s1 + $0x1ec] ss:$16 sps:$4 sm:$0xff]  }
  0xc5   : > { %2077 = vmatprep.subr.bf16.mxu1 %v2808_v21  ;;  %v2898_v21 = vld [vmem:[%s3784_s1 + $0x3ec] ss:$16 sps:$4 sm:$0xff]  }
  0xc6   : > { %1987 = vmatmul.mubr.bf16.vlgmr.msra.gmra.mrb[8].mxu0 %v3557_v20 }
  0xc7   : > { %2028 = vmatmul.mubr.bf16.vlgmr.msra.gmra.mrb[8].mxu1 %v3573_v26  ;;  %2037 = vmatpush1.bf16.msra.mxu0 %v2803_v27  ;;  %v2893_v27 = vld [vmem:[%s3784_s1 + $0x1e8] ss:$16 sps:$4 sm:$0xff]  }
  0xc8   : > { %2078 = vmatpush1.bf16.msra.mxu1 %v2806_v9  ;;  %2038 = vmatprep.subr.bf16.mxu0 %v2811_v28  ;;  %v2896_v9 = vld [vmem:[%s3784_s1 + $0x3e8] ss:$16 sps:$4 sm:$0xff]  }
  0xc9   : > { %2079 = vmatprep.subr.bf16.mxu1 %v2814_v29  ;;  %2068 = vmatprep.mubr.bf16.mxu0 %v3382_v25  ;;  %v2826_v25 = vld [vmem:[%s3784_s1 + $0x26c] ss:$16 sps:$4 sm:$0xff]  }
  0xca   : > { %2109 = vmatprep.mubr.bf16.mxu1 %v3395_v13  ;;  %v2821_v13 = vld [vmem:[%s3784_s1 + $0x68] ss:$16 sps:$4 sm:$0xff]  }
  0xcb   : > { %2039 = vmatpush1.bf16.msra.mxu0 %v2809_v30 }
  0xcc   : > { %2080 = vmatpush1.bf16.msra.mxu1 %v2812_v31  ;;  %2040 = vmatprep.subr.bf16.mxu0 %v2817_v32 }
  0xcd   : > { %2081 = vmatprep.subr.bf16.mxu1 %v2820_v33 }
  0xcf   : > { %2041 = vmatpush1.bf16.msra.mxu0 %v2815_v34 }
  0xd0   : > { %2082 = vmatpush1.bf16.msra.mxu1 %v2818_v35  ;;  %2042 = vmatprep.subr.bf16.mxu0 %v2823_v36 }
  0xd1   : > { %2083 = vmatprep.subr.bf16.mxu1 %v2826_v25 }
  0xd3   : > { %2043 = vmatpush1.bf16.msra.mxu0 %v2821_v13 }
  0xd4   : > { %2084 = vmatpush1.bf16.msra.mxu1 %v2824_v37  ;;  %2044 = vmatprep.subr.bf16.mxu0 %v2829_v38 }
  0xd5   : > { %2085 = vmatprep.subr.bf16.mxu1 %v2832_v39 }
  0xd7   : > { %2045 = vmatpush1.bf16.msra.mxu0 %v2827_v40 }
  0xd8   : > { %2086 = vmatpush1.bf16.msra.mxu1 %v2830_v41  ;;  %2046 = vmatprep.subr.bf16.mxu0 %v2835_v42 }
  0xd9   : > { %2087 = vmatprep.subr.bf16.mxu1 %v2838_v43 }
  0xdb   : > { %2047 = vmatpush1.bf16.msra.mxu0 %v2833_v44  ;;  %v2122_v44 = vsub.s32 0, %v3074_v46 }
  0xdc   : > { %2088 = vmatpush1.bf16.msra.mxu1 %v2836_v45  ;;  %2048 = vmatprep.subr.bf16.mxu0 %v2841_v47  ;;  %v2118_v45 = vld [vmem:[%s3786_s3] sm:$0xf]  ;;  %v2126_v47 = vsub.s32 1, %v3074_v46 }
  0xdd   : > { %2089 = vmatprep.subr.bf16.mxu1 %v2844_v48 }
  0xdf   : > { %2049 = vmatpush1.bf16.msra.mxu0 %v2839_v49 }
  0xe0   : > { %2090 = vmatpush1.bf16.msra.mxu1 %v2842_v50  ;;  %2050 = vmatprep.subr.bf16.mxu0 %v2847_v52  ;;  %v2123_v52 = vrot.slane %v2118_v45, %v2122_v44 }
  0xe1   : > { %2091 = vmatprep.subr.bf16.mxu1 %v2850_v53 }
  0xe3   : > { %2051 = vmatpush1.bf16.msra.mxu0 %v2845_v54 }
  0xe4   : > { %2092 = vmatpush1.bf16.msra.mxu1 %v2848_v55  ;;  %2052 = vmatprep.subr.bf16.mxu0 %v2853_v56  ;;  %v2127_v56 = vrot.slane %v2118_v45, %v2126_v47 }
  0xe5   : > { %2093 = vmatprep.subr.bf16.mxu1 %v2856_v57 }
  0xe7   : > { %2053 = vmatpush1.bf16.msra.mxu0 %v2851_v58 }
  0xe8   : > { %2094 = vmatpush1.bf16.msra.mxu1 %v2854_v59  ;;  %2054 = vmatprep.subr.bf16.mxu0 %v2859_v60 }
  0xe9   : > { %2095 = vmatprep.subr.bf16.mxu1 %v2862_v61 }
  0xeb   : > { %2055 = vmatpush1.bf16.msra.mxu0 %v2857_v62 }
  0xec   : > { %2096 = vmatpush1.bf16.msra.mxu1 %v2860_v63  ;;  %2056 = vmatprep.subr.bf16.mxu0 %v2865_v0 }
  0xed   : > { %2097 = vmatprep.subr.bf16.mxu1 %v2868_v1 }
  0xef   : > { %2057 = vmatpush1.bf16.msra.mxu0 %v2863_v2 }
  0xf0   : > { %2098 = vmatpush1.bf16.msra.mxu1 %v2866_v3  ;;  %2058 = vmatprep.subr.bf16.mxu0 %v2871_v4  ;;  %v2130_v4 = vsub.s32 2, %v3074_v46 }
  0xf1   : > { %2099 = vmatprep.subr.bf16.mxu1 %v2874_v5  ;;  %v2134_v5 = vsub.s32 3, %v3074_v46 }
  0xf3   : > { %2059 = vmatpush1.bf16.msra.mxu0 %v2869_v6 }
  0xf4   : > { %2100 = vmatpush1.bf16.msra.mxu1 %v2872_v7  ;;  %2060 = vmatprep.subr.bf16.mxu0 %v2877_v8 }
  0xf5   : > { %2101 = vmatprep.subr.bf16.mxu1 %v2880_v10  ;;  %v2131_v10 = vrot.slane %v2118_v45, %v2130_v4 }
  0xf7   : > { %2061 = vmatpush1.bf16.msra.mxu0 %v2875_v11 }
  0xf8   : > { %2102 = vmatpush1.bf16.msra.mxu1 %v2878_v12  ;;  %2062 = vmatprep.subr.bf16.mxu0 %v2883_v14 }
  0xf9   : > { %2103 = vmatprep.subr.bf16.mxu1 %v2886_v15  ;;  %v2135_v15 = vrot.slane %v2118_v45, %v2134_v5 }
  0xfb   : > { %2063 = vmatpush1.bf16.msra.mxu0 %v2881_v16 }
  0xfc   : > { %2104 = vmatpush1.bf16.msra.mxu1 %v2884_v17  ;;  %2064 = vmatprep.subr.bf16.mxu0 %v2889_v18 }
  0xfd   : > { %2105 = vmatprep.subr.bf16.mxu1 %v2892_v19 }
  0xff   : > { %2065 = vmatpush1.bf16.msra.mxu0 %v2887_v22 }
 0x100   : > { %2106 = vmatpush1.bf16.msra.mxu1 %v2890_v23  ;;  %2066 = vmatprep.subr.bf16.mxu0 %v2895_v24 }
 0x101   : > { %2107 = vmatprep.subr.bf16.mxu1 %v2898_v21 }
 0x103   : > { %2067 = vmatpush1.bf16.msra.mxu0 %v2893_v27 }
 0x104   : > { %2108 = vmatpush1.bf16.msra.mxu1 %v2896_v9 }
 0x106   : > { %2069 = vmatmul.mubr.bf16.vlgmr.msra.gmra.mrb[12].mxu0 %v3557_v20 }
 0x107   : > { %2110 = vmatmul.mubr.bf16.vlgmr.msra.gmra.mrb[12].mxu1 %v3573_v26 }
 0x119   : > { %v1155_v28 = vpop.f32.mrb[0].mxu0 }
 0x11a   : > { %v1196_v29 = vpop.f32.mrb[0].mxu1  ;;  %v1157_v31 = vpop.f32.mrb[1].mxu0 }
 0x11b   : > { %v1197_v30 = vadd.f32 %v1196_v29, %v1155_v28  ;;  %v1198_v32 = vpop.f32.mrb[1].mxu1  ;;  %v1159_v34 = vpop.f32.mrb[2].mxu0 }
 0x11c   : > { %v1199_v33 = vadd.f32 %v1198_v32, %v1157_v31  ;;  %v1200_v35 = vpop.f32.mrb[2].mxu1  ;;  %v1160_v36 = vpop.f32.mrb[3].mxu0 }
 0x11d   : > { %v1201_v25 = vpop.f32.mrb[3].mxu1 }
 0x159   : > { %v1237_v13 = vpop.f32.mrb[4].mxu0 }
 0x15a   : > { %v1278_v37 = vpop.f32.mrb[4].mxu1  ;;  %v1239_v39 = vpop.f32.mrb[5].mxu0 }
 0x15b   : > { %v1279_v38 = vadd.f32 %v1278_v37, %v1237_v13  ;;  %v1280_v40 = vpop.f32.mrb[5].mxu1  ;;  %v1241_v42 = vpop.f32.mrb[6].mxu0 }
 0x15c   : > { %v1281_v41 = vadd.f32 %v1280_v40, %v1239_v39  ;;  %v1282_v20 = vpop.f32.mrb[6].mxu1  ;;  %v1242_v43 = vpop.f32.mrb[7].mxu0 }
 0x15d   : > { %v1283_v26 = vpop.f32.mrb[7].mxu1 }
 0x199   : > { %v1988_v48 = vpop.f32.mrb[8].mxu0 }
 0x19a   : > { %v2029_v49 = vpop.f32.mrb[8].mxu1  ;;  %v1989_v50 = vadd.f32 %v1988_v48, %v1197_v30  ;;  %v1990_v53 = vpop.f32.mrb[9].mxu0 }
 0x19b   : > { %v2031_v54 = vpop.f32.mrb[9].mxu1  ;;  %v1991_v55 = vadd.f32 %v1990_v53, %v1199_v33  ;;  %v1992_v57 = vpop.f32.mrb[10].mxu0 }
 0x19c   : > { %v2033_v58 = vpop.f32.mrb[10].mxu1  ;;  %v2030_v59 = vadd.f32 %v2029_v49, %v1989_v50  ;;  %v1993_v60 = vpop.f32.mrb[11].mxu0 }
 0x19d   : > { %v2034_v61 = vpop.f32.mrb[11].mxu1  ;;  %v2032_v62 = vadd.f32 %v2031_v54, %v1991_v55 }
 0x19e   : > { %v2140_v63 = vadd.f32 %v2123_v52, %v2030_v59 }
 0x19f   : > { %v2141_v0 = vadd.f32 %v2127_v56, %v2032_v62 }
 0x1a0   : > { %v2144_v1 = vmax.f32 %v2140_v63, 0.0 }
 0x1a1   : > { %v2145_v2 = vmax.f32 %v2141_v0, 0.0 }
 0x1a3   : > { %v2501_v3 = vpack.c.bf16 %v2145_v2, %v2144_v1 }
 0x1a5   : > { %v2164_v28 = vrot.slane %v2501_v3, %v3094_v51 }
 0x1d9   : > { %v2070_v6 = vpop.f32.mrb[12].mxu0 }
 0x1da   : > { %v2111_v7 = vpop.f32.mrb[12].mxu1  ;;  %v2071_v8 = vadd.f32 %v2070_v6, %v1279_v38  ;;  %v2072_v11 = vpop.f32.mrb[13].mxu0 }
 0x1db   : > { %v2113_v12 = vpop.f32.mrb[13].mxu1  ;;  %v2073_v14 = vadd.f32 %v2072_v11, %v1281_v41  ;;  %v2074_v16 = vpop.f32.mrb[14].mxu0 }
 0x1dc   : > { %v2115_v17 = vpop.f32.mrb[14].mxu1  ;;  %v2112_v18 = vadd.f32 %v2111_v7, %v2071_v8  ;;  %v2075_v19 = vpop.f32.mrb[15].mxu0 }
 0x1dd   : > { %v2116_v22 = vpop.f32.mrb[15].mxu1  ;;  %v2114_v23 = vadd.f32 %v2113_v12, %v2073_v14 }
 0x1de   : > { %v2142_v24 = vadd.f32 %v2131_v10, %v2112_v18 }
 0x1df   : > { %v2143_v21 = vadd.f32 %v2135_v15, %v2114_v23 }
 0x1e0   : > { %v2146_v27 = vmax.f32 %v2142_v24, 0.0 }
 0x1e1   : > { %v2147_v9 = vmax.f32 %v2143_v21, 0.0 }
 0x1e3   : > { %v2502_v46 = vpack.c.bf16 %v2147_v9, %v2146_v27 }
 0x1e5   : > { %v2171_v29 = vrot.slane %v2502_v46, %v3094_v51 }
 0x1e7   : > { %v2172_v30 = vcombine.low %v2164_v28, %v2171_v29 }
 0x1e9   : > { %2503 = vst.sshfl [vmem:[%s192_s17] sm:$0x55 pattern:$0x73625140] %v2172_v30 }
 0x1ea PF: > { %s14_s15 = sadd.s32 1, %s2905_s15  }
 0x1eb   : > { %p11_p4 = scmp.ge.s32.totalorder %s14_s15, 6  }
 0x1ed   :  { %13 = sbr.rel (!%p11_p4) target bundleno = 1 (0x1), region = 67 }

// kernel: _forward.13
= control target key start
LH: loop header
LB: loop body
LE: loop exit
PB: predicated region body
PF: predicated region fallthrough
CT: control target
= control target key end

     0   :  { %s4861_s15 = smov 0   ;;  %s6553_s0 = inlined_call_operand.vmem [shape: bf16[4,2,512], index: 0, kind: input, shape index: {}]   ;;  %s6554_s1 = inlined_call_operand.vmem [shape: bf16[512,1024], index: 1, kind: input, shape index: {}]   ;;  %s6555_s2 = inlined_call_operand.vmem [shape: bf16[512,1024], index: 2, kind: input, shape index: {}]   ;;  %s6556_s3 = inlined_call_operand.vmem [shape: f32[1,1024], index: 3, kind: input, shape index: {}]   ;;  %s6557_s4 = inlined_call_operand.vmem [shape: bf16[4,2,2,1024], index: 4, kind: output, shape index: {}]  }
   0x1 LB: > { %s4239_s16 = sadd.s32 4294967295, %s4833_s15   ;;  %p4243_p0 = scmp.ge.s32.totalorder %s4833_s15, 1  ;;  %s4833_s15 = sphi %s4861_s15, %s14_s15  }
   0x2   : > { %p161_p1 = scmp.lt.s32.totalorder %s4833_s15, 5 }
   0x4   : > { %p162_p2 = pnand %p4243_p0, %p161_p1 }
   0x5   : > { %v194_v0 = vld [vmem:[%s6554_s1] sm:$0xff] (!%p162_p2)  ;;  %v195_v2 = vld [vmem:[%s6554_s1 + $0x8] sm:$0xff] (!%p162_p2)  ;;  %p185_p3 = scmp.lt.s32.totalorder (!%p162_p2), %s4239_s16, 3  ;;  %v708_v35 = vlaneseq (!%p162_p2)  ;;  %v4835_v36 = vmov (!%p162_p2), 1966171168  }
   0x6   : > { %165 = sbr.rel (%p162_p2) target bundleno = 749 (0x2ed), region = 36  ;;  %v198_v1 = vld [vmem:[%s6554_s1 + $0x20] sm:$0xff] (!%p162_p2)  ;;  %v199_v4 = vld [vmem:[%s6554_s1 + $0x28] sm:$0xff] (!%p162_p2)  ;;  %v758_v37 = vunpack.c.l.s4 (!%p162_p2), %v4835_v36 }
   0x7   : > { %v4248_v3 = vcombine.high (!%p162_p2), %v194_v0, %v198_v1  ;;  %v4247_v5 = vcombine.low (!%p162_p2), %v194_v0, %v198_v1  ;;  %v202_v6 = vld [vmem:[%s6554_s1 + $0x40] sm:$0xff] (!%p162_p2)  ;;  %v4250_v8 = vcombine.high (!%p162_p2), %v195_v2, %v199_v4  ;;  %v4249_v9 = vcombine.low (!%p162_p2), %v195_v2, %v199_v4  ;;  %v203_v11 = vld [vmem:[%s6554_s1 + $0x48] sm:$0xff] (!%p162_p2) }
   0x8   : > { %v206_v7 = vld [vmem:[%s6554_s1 + $0x60] sm:$0xff] (!%p162_p2)  ;;  %v207_v12 = vld [vmem:[%s6554_s1 + $0x68] sm:$0xff] (!%p162_p2)  ;;  %v4948_v46 = vshrl.u32 (!%p162_p2), %v708_v35, 7  ;;  %v759_v47 = vunpack.c.0.s8 (!%p162_p2), %v758_v37 }
   0x9   : > { %v4256_v10 = vcombine.high (!%p162_p2), %v202_v6, %v206_v7  ;;  %v210_v13 = vld [vmem:[%s6554_s1 + $0x80] sm:$0xff] (!%p162_p2)  ;;  %2057 = vmatprep.subr.bf16.mxu0 (!%p162_p2), %v4248_v3  ;;  %v4258_v14 = vcombine.high (!%p162_p2), %v203_v11, %v207_v12  ;;  %v211_v16 = vld [vmem:[%s6554_s1 + $0x88] sm:$0xff] (!%p162_p2)  ;;  %2139 = vmatprep.subr.bf16.mxu1 (!%p162_p2), %v4250_v8  ;;  %v4255_v18 = vcombine.low (!%p162_p2), %v202_v6, %v206_v7 }
   0xa   : > { %v214_v15 = vld [vmem:[%s6554_s1 + $0xa0] sm:$0xff] (!%p162_p2)  ;;  %v215_v17 = vld [vmem:[%s6554_s1 + $0xa8] sm:$0xff] (!%p162_p2)  ;;  %2058 = vmatpush1.bf16.msra.mxu0 (!%p162_p2), %v4247_v5  ;;  %2140 = vmatpush1.bf16.msra.mxu1 (!%p162_p2), %v4249_v9  ;;  %v4257_v19 = vcombine.low (!%p162_p2), %v203_v11, %v207_v12  ;;  %v4966_v56 = vsub.s32 (!%p162_p2), %v759_v47, %v4948_v46 }
   0xb   : > { %2059 = vmatprep.subr.bf16.mxu0 (!%p162_p2), %v4256_v10  ;;  %v4264_v20 = vcombine.high (!%p162_p2), %v210_v13, %v214_v15  ;;  %2141 = vmatprep.subr.bf16.mxu1 (!%p162_p2), %v4258_v14  ;;  %v4266_v21 = vcombine.high (!%p162_p2), %v211_v16, %v215_v17  ;;  %v218_v22 = vld [vmem:[%s6554_s1 + $0xc0] sm:$0xff] (!%p162_p2)  ;;  %v219_v24 = vld [vmem:[%s6554_s1 + $0xc8] sm:$0xff] (!%p162_p2)  ;;  %v4263_v26 = vcombine.low (!%p162_p2), %v210_v13, %v214_v15 }
   0xc   : > { %v222_v23 = vld [vmem:[%s6554_s1 + $0xe0] sm:$0xff] (!%p162_p2)  ;;  %v223_v25 = vld [vmem:[%s6554_s1 + $0xe8] sm:$0xff] (!%p162_p2)  ;;  %v4265_v27 = vcombine.low (!%p162_p2), %v211_v16, %v215_v17 }
   0xd   : > { %v4272_v28 = vcombine.high %v218_v22, %v222_v23  ;;  %v4274_v29 = vcombine.high %v219_v24, %v223_v25  ;;  %v226_v30 = vld [vmem:[%s6554_s1 + $0x100] sm:$0xff]  ;;  %v227_v32 = vld [vmem:[%s6554_s1 + $0x108] sm:$0xff]  ;;  %s6559_s16 = smov (!%p185_p3, %s4239_s16), 3  ;;  %v4271_v34 = vcombine.low %v218_v22, %v222_v23  ;;  %v4273_v38 = vcombine.low %v219_v24, %v223_v25 }
   0xe   : > { %2060 = vmatpush1.bf16.msra.mxu0 %v4255_v18  ;;  %2142 = vmatpush1.bf16.msra.mxu1 %v4257_v19  ;;  %v230_v31 = vld [vmem:[%s6554_s1 + $0x120] sm:$0xff]  ;;  %v231_v33 = vld [vmem:[%s6554_s1 + $0x128] sm:$0xff]  ;;  %s4244_s17 = sshll.u32 %s6559_s16, 2  ;;  %s4245_s13 = sshll.u32 %s6559_s16, 4 }
   0xf   : > { %2061 = vmatprep.subr.bf16.mxu0 %v4264_v20  ;;  %2143 = vmatprep.subr.bf16.mxu1 %v4266_v21  ;;  %v4280_v39 = vcombine.high %v226_v30, %v230_v31  ;;  %v4282_v40 = vcombine.high %v227_v32, %v231_v33  ;;  %v234_v41 = vld [vmem:[%s6554_s1 + $0x140] sm:$0xff]  ;;  %v235_v43 = vld [vmem:[%s6554_s1 + $0x148] sm:$0xff]  ;;  %v4279_v45 = vcombine.low %v226_v30, %v230_v31  ;;  %s188_s24 = scalar_lea.vmem %s6553_s0, %s4244_s17  ;;  %s6459_s25 = scalar_lea.vmem %s6557_s4, %s4245_s13 }
  0x10   : > { %v238_v42 = vld [vmem:[%s6554_s1 + $0x160] sm:$0xff]  ;;  %v239_v44 = vld [vmem:[%s6554_s1 + $0x168] sm:$0xff]  ;;  %v4281_v48 = vcombine.low %v227_v32, %v231_v33 }
  0x11   : > { %v4288_v49 = vcombine.high %v234_v41, %v238_v42  ;;  %v4290_v50 = vcombine.high %v235_v43, %v239_v44  ;;  %v242_v51 = vld [vmem:[%s6554_s1 + $0x180] sm:$0xff]  ;;  %v243_v53 = vld [vmem:[%s6554_s1 + $0x188] sm:$0xff]  ;;  %v4287_v55 = vcombine.low %v234_v41, %v238_v42  ;;  %v4289_v57 = vcombine.low %v235_v43, %v239_v44 }
  0x12   : > { %2062 = vmatpush1.bf16.msra.mxu0 %v4263_v26  ;;  %2144 = vmatpush1.bf16.msra.mxu1 %v4265_v27  ;;  %v246_v52 = vld [vmem:[%s6554_s1 + $0x1a0] sm:$0xff]  ;;  %v247_v54 = vld [vmem:[%s6554_s1 + $0x1a8] sm:$0xff] }
  0x13   : > { %2063 = vmatprep.subr.bf16.mxu0 %v4272_v28  ;;  %2145 = vmatprep.subr.bf16.mxu1 %v4274_v29  ;;  %v4296_v58 = vcombine.high %v242_v51, %v246_v52  ;;  %v4968_v59 = vld.sshfl [vmem:[%s188_s24] sm:$0x33 pattern:$0x75316420]  ;;  %v4298_v60 = vcombine.high %v243_v53, %v247_v54  ;;  %v251_v0 = vld [vmem:[%s6554_s1 + $0x1c8] sm:$0xff]  ;;  %v4295_v2 = vcombine.low %v242_v51, %v246_v52 }
  0x14   : > { %v250_v61 = vld [vmem:[%s6554_s1 + $0x1c0] sm:$0xff]  ;;  %v756_v63 = vcombine.high %v4968_v59, %v4968_v59  ;;  %v255_v1 = vld [vmem:[%s6554_s1 + $0x1e8] sm:$0xff]  ;;  %v4297_v4 = vcombine.low %v243_v53, %v247_v54 }
  0x15   : > { %v254_v62 = vld [vmem:[%s6554_s1 + $0x1e0] sm:$0xff]  ;;  %v4306_v6 = vcombine.high %v251_v0, %v255_v1  ;;  %v259_v9 = vld [vmem:[%s6554_s1 + $0x208] sm:$0xff]  ;;  %v4305_v12 = vcombine.low %v251_v0, %v255_v1 }
  0x16   : > { %2064 = vmatpush1.bf16.msra.mxu0 %v4271_v34  ;;  %2146 = vmatpush1.bf16.msra.mxu1 %v4273_v38  ;;  %v4985_v3 = vrot.slane %v756_v63, %v4966_v56  ;;  %v4304_v5 = vcombine.high %v250_v61, %v254_v62  ;;  %v258_v7 = vld [vmem:[%s6554_s1 + $0x200] sm:$0xff]  ;;  %v263_v10 = vld [vmem:[%s6554_s1 + $0x228] sm:$0xff]  ;;  %v4303_v11 = vcombine.low %v250_v61, %v254_v62 }
  0x17   : > { %2065 = vmatprep.subr.bf16.mxu0 %v4280_v39  ;;  %2147 = vmatprep.subr.bf16.mxu1 %v4282_v40  ;;  %v262_v8 = vld [vmem:[%s6554_s1 + $0x220] sm:$0xff]  ;;  %v4314_v14 = vcombine.high %v259_v9, %v263_v10  ;;  %v267_v17 = vld [vmem:[%s6554_s1 + $0x248] sm:$0xff]  ;;  %v4313_v20 = vcombine.low %v259_v9, %v263_v10 }
  0x18   : > { %2089 = vmatprep.mubr.bf16.mxu0 %v4985_v3  ;;  %2171 = vmatprep.mubr.bf16.mxu1 %v4985_v3  ;;  %v4312_v13 = vcombine.high %v258_v7, %v262_v8  ;;  %v266_v15 = vld [vmem:[%s6554_s1 + $0x240] sm:$0xff]  ;;  %v271_v18 = vld [vmem:[%s6554_s1 + $0x268] sm:$0xff]  ;;  %v4311_v19 = vcombine.low %v258_v7, %v262_v8 }
  0x19   : > { %v270_v16 = vld [vmem:[%s6554_s1 + $0x260] sm:$0xff]  ;;  %v4322_v22 = vcombine.high %v267_v17, %v271_v18  ;;  %v275_v25 = vld [vmem:[%s6554_s1 + $0x288] sm:$0xff]  ;;  %v4321_v28 = vcombine.low %v267_v17, %v271_v18 }
  0x1a   : > { %2066 = vmatpush1.bf16.msra.mxu0 %v4279_v45  ;;  %2148 = vmatpush1.bf16.msra.mxu1 %v4281_v48  ;;  %v4320_v21 = vcombine.high %v266_v15, %v270_v16  ;;  %v274_v23 = vld [vmem:[%s6554_s1 + $0x280] sm:$0xff]  ;;  %v279_v26 = vld [vmem:[%s6554_s1 + $0x2a8] sm:$0xff]  ;;  %v4319_v27 = vcombine.low %v266_v15, %v270_v16 }
  0x1b   : > { %2067 = vmatprep.subr.bf16.mxu0 %v4288_v49  ;;  %2149 = vmatprep.subr.bf16.mxu1 %v4290_v50  ;;  %v278_v24 = vld [vmem:[%s6554_s1 + $0x2a0] sm:$0xff]  ;;  %v4330_v30 = vcombine.high %v275_v25, %v279_v26  ;;  %v283_v33 = vld [vmem:[%s6554_s1 + $0x2c8] sm:$0xff]  ;;  %v4329_v36 = vcombine.low %v275_v25, %v279_v26 }
  0x1c   : > { %v4328_v29 = vcombine.high %v274_v23, %v278_v24  ;;  %v282_v31 = vld [vmem:[%s6554_s1 + $0x2c0] sm:$0xff]  ;;  %v287_v34 = vld [vmem:[%s6554_s1 + $0x2e8] sm:$0xff]  ;;  %v4327_v35 = vcombine.low %v274_v23, %v278_v24 }
  0x1d   : > { %v286_v32 = vld [vmem:[%s6554_s1 + $0x2e0] sm:$0xff]  ;;  %v4338_v38 = vcombine.high %v283_v33, %v287_v34  ;;  %v291_v41 = vld [vmem:[%s6554_s1 + $0x308] sm:$0xff]  ;;  %v4337_v44 = vcombine.low %v283_v33, %v287_v34 }
  0x1e   : > { %2068 = vmatpush1.bf16.msra.mxu0 %v4287_v55  ;;  %2150 = vmatpush1.bf16.msra.mxu1 %v4289_v57  ;;  %v4336_v37 = vcombine.high %v282_v31, %v286_v32  ;;  %v290_v39 = vld [vmem:[%s6554_s1 + $0x300] sm:$0xff]  ;;  %v295_v42 = vld [vmem:[%s6554_s1 + $0x328] sm:$0xff]  ;;  %v4335_v43 = vcombine.low %v282_v31, %v286_v32 }
  0x1f   : > { %2069 = vmatprep.subr.bf16.mxu0 %v4296_v58  ;;  %2151 = vmatprep.subr.bf16.mxu1 %v4298_v60  ;;  %v294_v40 = vld [vmem:[%s6554_s1 + $0x320] sm:$0xff]  ;;  %v4346_v47 = vcombine.high %v291_v41, %v295_v42  ;;  %v299_v50 = vld [vmem:[%s6554_s1 + $0x348] sm:$0xff]  ;;  %v4345_v53 = vcombine.low %v291_v41, %v295_v42 }
  0x20   : > { %v4344_v45 = vcombine.high %v290_v39, %v294_v40  ;;  %v298_v48 = vld [vmem:[%s6554_s1 + $0x340] sm:$0xff]  ;;  %v303_v51 = vld [vmem:[%s6554_s1 + $0x368] sm:$0xff]  ;;  %v4343_v52 = vcombine.low %v290_v39, %v294_v40 }
  0x21   : > { %v302_v49 = vld [vmem:[%s6554_s1 + $0x360] sm:$0xff]  ;;  %v4354_v55 = vcombine.high %v299_v50, %v303_v51  ;;  %v307_v60 = vld [vmem:[%s6554_s1 + $0x388] sm:$0xff]  ;;  %v4353_v63 = vcombine.low %v299_v50, %v303_v51 }
  0x22   : > { %2070 = vmatpush1.bf16.msra.mxu0 %v4295_v2  ;;  %2152 = vmatpush1.bf16.msra.mxu1 %v4297_v4  ;;  %v4352_v54 = vcombine.high %v298_v48, %v302_v49  ;;  %v306_v57 = vld [vmem:[%s6554_s1 + $0x380] sm:$0xff]  ;;  %v311_v61 = vld [vmem:[%s6554_s1 + $0x3a8] sm:$0xff]  ;;  %v4351_v62 = vcombine.low %v298_v48, %v302_v49 }
  0x23   : > { %2071 = vmatprep.subr.bf16.mxu0 %v4304_v5  ;;  %2153 = vmatprep.subr.bf16.mxu1 %v4306_v6  ;;  %v310_v58 = vld [vmem:[%s6554_s1 + $0x3a0] sm:$0xff]  ;;  %v4362_v1 = vcombine.high %v307_v60, %v311_v61  ;;  %v315_v5 = vld [vmem:[%s6554_s1 + $0x3c8] sm:$0xff]  ;;  %v4361_v8 = vcombine.low %v307_v60, %v311_v61 }
  0x24   : > { %v4360_v0 = vcombine.high %v306_v57, %v310_v58  ;;  %v314_v2 = vld [vmem:[%s6554_s1 + $0x3c0] sm:$0xff]  ;;  %v319_v6 = vld [vmem:[%s6554_s1 + $0x3e8] sm:$0xff]  ;;  %v4359_v7 = vcombine.low %v306_v57, %v310_v58 }
  0x25   : > { %v318_v4 = vld [vmem:[%s6554_s1 + $0x3e0] sm:$0xff]  ;;  %v4370_v10 = vcombine.high %v315_v5, %v319_v6  ;;  %v4369_v16 = vcombine.low %v315_v5, %v319_v6  ;;  %v335_v23 = vld [vmem:[%s6554_s1 + $0x468] sm:$0xff] }
  0x26   : > { %2072 = vmatpush1.bf16.msra.mxu0 %v4303_v11  ;;  %2154 = vmatpush1.bf16.msra.mxu1 %v4305_v12  ;;  %v4368_v9 = vcombine.high %v314_v2, %v318_v4  ;;  %v322_v11 = vld [vmem:[%s6554_s1 + $0x400] sm:$0xff]  ;;  %v4367_v15 = vcombine.low %v314_v2, %v318_v4  ;;  %v343_v31 = vld [vmem:[%s6554_s1 + $0x4a8] sm:$0xff] }
  0x27   : > { %2073 = vmatprep.subr.bf16.mxu0 %v4312_v13  ;;  %2155 = vmatprep.subr.bf16.mxu1 %v4314_v14  ;;  %v326_v12 = vld [vmem:[%s6554_s1 + $0x420] sm:$0xff]  ;;  %v323_v13 = vld [vmem:[%s6554_s1 + $0x408] sm:$0xff] }
  0x28   : > { %v327_v14 = vld [vmem:[%s6554_s1 + $0x428] sm:$0xff]  ;;  %v4376_v17 = vcombine.high %v322_v11, %v326_v12  ;;  %v4375_v24 = vcombine.low %v322_v11, %v326_v12 }
  0x29   : > { %v4378_v18 = vcombine.high %v323_v13, %v327_v14  ;;  %v4377_v25 = vcombine.low %v323_v13, %v327_v14  ;;  %v351_v39 = vld [vmem:[%s6554_s1 + $0x4e8] sm:$0xff] }
  0x2a   : > { %2074 = vmatpush1.bf16.msra.mxu0 %v4311_v19  ;;  %2156 = vmatpush1.bf16.msra.mxu1 %v4313_v20  ;;  %v330_v19 = vld [vmem:[%s6554_s1 + $0x440] sm:$0xff]  ;;  %v359_v48 = vld [vmem:[%s6554_s1 + $0x528] sm:$0xff] }
  0x2b   : > { %2075 = vmatprep.subr.bf16.mxu0 %v4320_v21  ;;  %2157 = vmatprep.subr.bf16.mxu1 %v4322_v22  ;;  %v334_v20 = vld [vmem:[%s6554_s1 + $0x460] sm:$0xff]  ;;  %v5105_v21 = vrot.slane %v4968_v59, %v4966_v56  ;;  %v331_v22 = vld [vmem:[%s6554_s1 + $0x448] sm:$0xff] }
  0x2c   : > { %v4384_v26 = vcombine.high %v330_v19, %v334_v20  ;;  %v338_v59 = vld [vmem:[%s6554_s1 + $0x480] sm:$0xff]  ;;  %v4383_v32 = vcombine.low %v330_v19, %v334_v20  ;;  %v4385_v33 = vcombine.low %v331_v22, %v335_v23  ;;  %v367_v57 = vld [vmem:[%s6554_s1 + $0x568] sm:$0xff] }
  0x2d   : > { %v375_v2 = vld [vmem:[%s6554_s1 + $0x5a8] sm:$0xff] }
  0x2e   : > { %2076 = vmatpush1.bf16.msra.mxu0 %v4319_v27  ;;  %2158 = vmatpush1.bf16.msra.mxu1 %v4321_v28  ;;  %v4386_v27 = vcombine.high %v331_v22, %v335_v23  ;;  %v342_v28 = vld [vmem:[%s6554_s1 + $0x4a0] sm:$0xff]  ;;  %v383_v11 = vld [vmem:[%s6554_s1 + $0x5e8] sm:$0xff] }
  0x2f   : > { %2077 = vmatprep.subr.bf16.mxu0 %v4328_v29  ;;  %2159 = vmatprep.subr.bf16.mxu1 %v4330_v30  ;;  %v5121_v29 = vcombine.high %v4985_v3, %v4985_v3  ;;  %v339_v30 = vld [vmem:[%s6554_s1 + $0x488] sm:$0xff]  ;;  %v4392_v34 = vcombine.high %v338_v59, %v342_v28  ;;  %v4391_v40 = vcombine.low %v338_v59, %v342_v28 }
  0x30   : > { %v4393_v41 = vcombine.low %v339_v30, %v343_v31  ;;  %v391_v19 = vld [vmem:[%s6554_s1 + $0x628] sm:$0xff] }
  0x31   : > { %v399_v59 = vld [vmem:[%s6554_s1 + $0x668] sm:$0xff] }
  0x32   : > { %2078 = vmatpush1.bf16.msra.mxu0 %v4327_v35  ;;  %2160 = vmatpush1.bf16.msra.mxu1 %v4329_v36  ;;  %v4394_v35 = vcombine.high %v339_v30, %v343_v31  ;;  %v346_v36 = vld [vmem:[%s6554_s1 + $0x4c0] sm:$0xff] }
  0x33   : > { %2079 = vmatprep.subr.bf16.mxu0 %v4336_v37  ;;  %2161 = vmatprep.subr.bf16.mxu1 %v4338_v38  ;;  %v350_v37 = vld [vmem:[%s6554_s1 + $0x4e0] sm:$0xff]  ;;  %v347_v38 = vld [vmem:[%s6554_s1 + $0x4c8] sm:$0xff] }
  0x34   : > { %v4400_v42 = vcombine.high %v346_v36, %v350_v37  ;;  %v4399_v49 = vcombine.low %v346_v36, %v350_v37  ;;  %v4401_v50 = vcombine.low %v347_v38, %v351_v39  ;;  %v407_v36 = vld [vmem:[%s6554_s1 + $0x6a8] sm:$0xff] }
  0x36   : > { %2080 = vmatpush1.bf16.msra.mxu0 %v4335_v43  ;;  %2162 = vmatpush1.bf16.msra.mxu1 %v4337_v44  ;;  %v4402_v43 = vcombine.high %v347_v38, %v351_v39  ;;  %v354_v44 = vld [vmem:[%s6554_s1 + $0x500] sm:$0xff] }
  0x37   : > { %2081 = vmatprep.subr.bf16.mxu0 %v4344_v45  ;;  %2163 = vmatprep.subr.bf16.mxu1 %v4346_v47  ;;  %v358_v45 = vld [vmem:[%s6554_s1 + $0x520] sm:$0xff]  ;;  %v355_v47 = vld [vmem:[%s6554_s1 + $0x508] sm:$0xff] }
  0x38   : > { %v4408_v51 = vcombine.high %v354_v44, %v358_v45  ;;  %v4407_v58 = vcombine.low %v354_v44, %v358_v45  ;;  %v4409_v60 = vcombine.low %v355_v47, %v359_v48  ;;  %v415_v44 = vld [vmem:[%s6554_s1 + $0x6e8] sm:$0xff] }
  0x3a   : > { %2082 = vmatpush1.bf16.msra.mxu0 %v4343_v52  ;;  %2164 = vmatpush1.bf16.msra.mxu1 %v4345_v53  ;;  %v4410_v52 = vcombine.high %v355_v47, %v359_v48  ;;  %v362_v53 = vld [vmem:[%s6554_s1 + $0x540] sm:$0xff] }
  0x3b   : > { %2083 = vmatprep.subr.bf16.mxu0 %v4352_v54  ;;  %2165 = vmatprep.subr.bf16.mxu1 %v4354_v55  ;;  %v366_v54 = vld [vmem:[%s6554_s1 + $0x560] sm:$0xff]  ;;  %v363_v55 = vld [vmem:[%s6554_s1 + $0x548] sm:$0xff] }
  0x3c   : > { %v4416_v61 = vcombine.high %v362_v53, %v366_v54  ;;  %v4415_v4 = vcombine.low %v362_v53, %v366_v54  ;;  %v4417_v5 = vcombine.low %v363_v55, %v367_v57  ;;  %v423_v53 = vld [vmem:[%s6554_s1 + $0x728] sm:$0xff] }
  0x3e   : > { %2084 = vmatpush1.bf16.msra.mxu0 %v4351_v62  ;;  %2166 = vmatpush1.bf16.msra.mxu1 %v4353_v63  ;;  %v4418_v62 = vcombine.high %v363_v55, %v367_v57  ;;  %v370_v63 = vld [vmem:[%s6554_s1 + $0x580] sm:$0xff] }
  0x3f   : > { %2085 = vmatprep.subr.bf16.mxu0 %v4360_v0  ;;  %2167 = vmatprep.subr.bf16.mxu1 %v4362_v1  ;;  %v374_v0 = vld [vmem:[%s6554_s1 + $0x5a0] sm:$0xff]  ;;  %v371_v1 = vld [vmem:[%s6554_s1 + $0x588] sm:$0xff] }
  0x40   : > { %v4424_v6 = vcombine.high %v370_v63, %v374_v0  ;;  %v4423_v12 = vcombine.low %v370_v63, %v374_v0  ;;  %v4425_v13 = vcombine.low %v371_v1, %v375_v2  ;;  %v431_v63 = vld [vmem:[%s6554_s1 + $0x768] sm:$0xff] }
  0x42   : > { %2086 = vmatpush1.bf16.msra.mxu0 %v4359_v7  ;;  %2168 = vmatpush1.bf16.msra.mxu1 %v4361_v8  ;;  %v4426_v7 = vcombine.high %v371_v1, %v375_v2  ;;  %v378_v8 = vld [vmem:[%s6554_s1 + $0x5c0] sm:$0xff] }
  0x43   : > { %2087 = vmatprep.subr.bf16.mxu0 %v4368_v9  ;;  %2169 = vmatprep.subr.bf16.mxu1 %v4370_v10  ;;  %v382_v9 = vld [vmem:[%s6554_s1 + $0x5e0] sm:$0xff]  ;;  %v379_v10 = vld [vmem:[%s6554_s1 + $0x5c8] sm:$0xff] }
  0x44   : > { %v4432_v14 = vcombine.high %v378_v8, %v382_v9  ;;  %v4431_v20 = vcombine.low %v378_v8, %v382_v9  ;;  %v4433_v22 = vcombine.low %v379_v10, %v383_v11  ;;  %v439_v8 = vld [vmem:[%s6554_s1 + $0x7a8] sm:$0xff] }
  0x46   : > { %2088 = vmatpush1.bf16.msra.mxu0 %v4367_v15  ;;  %2170 = vmatpush1.bf16.msra.mxu1 %v4369_v16  ;;  %v4434_v15 = vcombine.high %v379_v10, %v383_v11  ;;  %v386_v16 = vld [vmem:[%s6554_s1 + $0x600] sm:$0xff] }
  0x47   : > { %2098 = vmatprep.subr.bf16.mxu0 %v4376_v17  ;;  %2180 = vmatprep.subr.bf16.mxu1 %v4378_v18  ;;  %v390_v17 = vld [vmem:[%s6554_s1 + $0x620] sm:$0xff]  ;;  %v387_v18 = vld [vmem:[%s6554_s1 + $0x608] sm:$0xff] }
  0x48   : > { %v4440_v23 = vcombine.high %v386_v16, %v390_v17  ;;  %v4439_v28 = vcombine.low %v386_v16, %v390_v17  ;;  %v4441_v30 = vcombine.low %v387_v18, %v391_v19  ;;  %v447_v16 = vld [vmem:[%s6554_s1 + $0x7e8] sm:$0xff] }
  0x49   : > { %2090 = vmatmul.mubr.bf16.vlgmr.msra.gmra.mrb[0].mxu0 %v5105_v21  ;;  %2172 = vmatmul.mubr.bf16.vlgmr.msra.gmra.mrb[0].mxu1 %v5105_v21 }
  0x4a   : > { %2099 = vmatpush1.bf16.msra.mxu0 %v4375_v24  ;;  %2181 = vmatpush1.bf16.msra.mxu1 %v4377_v25  ;;  %v4442_v24 = vcombine.high %v387_v18, %v391_v19  ;;  %v394_v25 = vld [vmem:[%s6554_s1 + $0x640] sm:$0xff] }
  0x4b   : > { %2100 = vmatprep.subr.bf16.mxu0 %v4384_v26  ;;  %2182 = vmatprep.subr.bf16.mxu1 %v4386_v27  ;;  %v398_v26 = vld [vmem:[%s6554_s1 + $0x660] sm:$0xff]  ;;  %v395_v27 = vld [vmem:[%s6554_s1 + $0x648] sm:$0xff] }
  0x4c   : > { %2130 = vmatprep.mubr.bf16.mxu0 %v5121_v29  ;;  %2212 = vmatprep.mubr.bf16.mxu1 %v5121_v29  ;;  %v4448_v31 = vcombine.high %v394_v25, %v398_v26  ;;  %v4447_v37 = vcombine.low %v394_v25, %v398_v26  ;;  %v4449_v38 = vcombine.low %v395_v27, %v399_v59  ;;  %v201_v25 = vld [vmem:[%s6554_s1 + $0x38] sm:$0xff] }
  0x4e   : > { %2101 = vmatpush1.bf16.msra.mxu0 %v4383_v32  ;;  %2183 = vmatpush1.bf16.msra.mxu1 %v4385_v33  ;;  %v4450_v32 = vcombine.high %v395_v27, %v399_v59  ;;  %v402_v33 = vld [vmem:[%s6554_s1 + $0x680] sm:$0xff] }
  0x4f   : > { %2102 = vmatprep.subr.bf16.mxu0 %v4392_v34  ;;  %2184 = vmatprep.subr.bf16.mxu1 %v4394_v35  ;;  %v406_v34 = vld [vmem:[%s6554_s1 + $0x6a0] sm:$0xff]  ;;  %v403_v35 = vld [vmem:[%s6554_s1 + $0x688] sm:$0xff] }
  0x50   : > { %v4456_v39 = vcombine.high %v402_v33, %v406_v34  ;;  %v4455_v45 = vcombine.low %v402_v33, %v406_v34  ;;  %v4457_v47 = vcombine.low %v403_v35, %v407_v36  ;;  %v205_v33 = vld [vmem:[%s6554_s1 + $0x58] sm:$0xff] }
  0x51   : > { %v209_v34 = vld [vmem:[%s6554_s1 + $0x78] sm:$0xff] }
  0x52   : > { %2103 = vmatpush1.bf16.msra.mxu0 %v4391_v40  ;;  %2185 = vmatpush1.bf16.msra.mxu1 %v4393_v41  ;;  %v4458_v40 = vcombine.high %v403_v35, %v407_v36  ;;  %v410_v41 = vld [vmem:[%s6554_s1 + $0x6c0] sm:$0xff] }
  0x53   : > { %2104 = vmatprep.subr.bf16.mxu0 %v4400_v42  ;;  %2186 = vmatprep.subr.bf16.mxu1 %v4402_v43  ;;  %v414_v42 = vld [vmem:[%s6554_s1 + $0x6e0] sm:$0xff]  ;;  %v411_v43 = vld [vmem:[%s6554_s1 + $0x6c8] sm:$0xff] }
  0x54   : > { %v4464_v48 = vcombine.high %v410_v41, %v414_v42  ;;  %v4463_v54 = vcombine.low %v410_v41, %v414_v42  ;;  %v4465_v55 = vcombine.low %v411_v43, %v415_v44  ;;  %v213_v41 = vld [vmem:[%s6554_s1 + $0x98] sm:$0xff] }
  0x55   : > { %v217_v42 = vld [vmem:[%s6554_s1 + $0xb8] sm:$0xff] }
  0x56   : > { %2105 = vmatpush1.bf16.msra.mxu0 %v4399_v49  ;;  %2187 = vmatpush1.bf16.msra.mxu1 %v4401_v50  ;;  %v4466_v49 = vcombine.high %v411_v43, %v415_v44  ;;  %v418_v50 = vld [vmem:[%s6554_s1 + $0x700] sm:$0xff]  ;;  %v4261_v44 = vcombine.low %v205_v33, %v209_v34 }
  0x57   : > { %2106 = vmatprep.subr.bf16.mxu0 %v4408_v51  ;;  %2188 = vmatprep.subr.bf16.mxu1 %v4410_v52  ;;  %v422_v51 = vld [vmem:[%s6554_s1 + $0x720] sm:$0xff]  ;;  %v419_v52 = vld [vmem:[%s6554_s1 + $0x708] sm:$0xff] }
  0x58   : > { %v4472_v57 = vcombine.high %v418_v50, %v422_v51  ;;  %v4471_v0 = vcombine.low %v418_v50, %v422_v51  ;;  %v4473_v1 = vcombine.low %v419_v52, %v423_v53  ;;  %v221_v50 = vld [vmem:[%s6554_s1 + $0xd8] sm:$0xff] }
  0x59   : > { %v225_v51 = vld [vmem:[%s6554_s1 + $0xf8] sm:$0xff] }
  0x5a   : > { %2107 = vmatpush1.bf16.msra.mxu0 %v4407_v58  ;;  %2189 = vmatpush1.bf16.msra.mxu1 %v4409_v60  ;;  %v4474_v58 = vcombine.high %v419_v52, %v423_v53  ;;  %v426_v60 = vld [vmem:[%s6554_s1 + $0x740] sm:$0xff]  ;;  %v4269_v53 = vcombine.low %v213_v41, %v217_v42 }
  0x5b   : > { %2108 = vmatprep.subr.bf16.mxu0 %v4416_v61  ;;  %2190 = vmatprep.subr.bf16.mxu1 %v4418_v62  ;;  %v430_v61 = vld [vmem:[%s6554_s1 + $0x760] sm:$0xff]  ;;  %v427_v62 = vld [vmem:[%s6554_s1 + $0x748] sm:$0xff] }
  0x5c   : > { %v4480_v2 = vcombine.high %v426_v60, %v430_v61  ;;  %v4479_v9 = vcombine.low %v426_v60, %v430_v61  ;;  %v4481_v10 = vcombine.low %v427_v62, %v431_v63  ;;  %v229_v60 = vld [vmem:[%s6554_s1 + $0x118] sm:$0xff] }
  0x5d   : > { %v233_v61 = vld [vmem:[%s6554_s1 + $0x138] sm:$0xff] }
  0x5e   : > { %2109 = vmatpush1.bf16.msra.mxu0 %v4415_v4  ;;  %2191 = vmatpush1.bf16.msra.mxu1 %v4417_v5  ;;  %v4482_v4 = vcombine.high %v427_v62, %v431_v63  ;;  %v434_v5 = vld [vmem:[%s6554_s1 + $0x780] sm:$0xff]  ;;  %v4277_v63 = vcombine.low %v221_v50, %v225_v51 }
  0x5f   : > { %2110 = vmatprep.subr.bf16.mxu0 %v4424_v6  ;;  %2192 = vmatprep.subr.bf16.mxu1 %v4426_v7  ;;  %v438_v6 = vld [vmem:[%s6554_s1 + $0x7a0] sm:$0xff]  ;;  %v435_v7 = vld [vmem:[%s6554_s1 + $0x788] sm:$0xff] }
  0x60   : > { %v4488_v11 = vcombine.high %v434_v5, %v438_v6  ;;  %v4487_v17 = vcombine.low %v434_v5, %v438_v6  ;;  %v4489_v18 = vcombine.low %v435_v7, %v439_v8  ;;  %v237_v5 = vld [vmem:[%s6554_s1 + $0x158] sm:$0xff] }
  0x61   : > { %v241_v6 = vld [vmem:[%s6554_s1 + $0x178] sm:$0xff] }
  0x62   : > { %2111 = vmatpush1.bf16.msra.mxu0 %v4423_v12  ;;  %2193 = vmatpush1.bf16.msra.mxu1 %v4425_v13  ;;  %v4490_v12 = vcombine.high %v435_v7, %v439_v8  ;;  %v442_v13 = vld [vmem:[%s6554_s1 + $0x7c0] sm:$0xff]  ;;  %v4285_v8 = vcombine.low %v229_v60, %v233_v61 }
  0x63   : > { %2112 = vmatprep.subr.bf16.mxu0 %v4432_v14  ;;  %2194 = vmatprep.subr.bf16.mxu1 %v4434_v15  ;;  %v446_v14 = vld [vmem:[%s6554_s1 + $0x7e0] sm:$0xff]  ;;  %v443_v15 = vld [vmem:[%s6554_s1 + $0x7c8] sm:$0xff] }
  0x64   : > { %v4496_v19 = vcombine.high %v442_v13, %v446_v14  ;;  %v4495_v26 = vcombine.low %v442_v13, %v446_v14  ;;  %v4497_v27 = vcombine.low %v443_v15, %v447_v16  ;;  %v245_v13 = vld [vmem:[%s6554_s1 + $0x198] sm:$0xff] }
  0x65   : > { %v249_v14 = vld [vmem:[%s6554_s1 + $0x1b8] sm:$0xff] }
  0x66   : > { %2113 = vmatpush1.bf16.msra.mxu0 %v4431_v20  ;;  %2195 = vmatpush1.bf16.msra.mxu1 %v4433_v22  ;;  %v4498_v20 = vcombine.high %v443_v15, %v447_v16  ;;  %v196_v22 = vld [vmem:[%s6554_s1 + $0x10] sm:$0xff]  ;;  %v4293_v16 = vcombine.low %v237_v5, %v241_v6 }
  0x67   : > { %2114 = vmatprep.subr.bf16.mxu0 %v4440_v23  ;;  %2196 = vmatprep.subr.bf16.mxu1 %v4442_v24  ;;  %v200_v23 = vld [vmem:[%s6554_s1 + $0x30] sm:$0xff]  ;;  %v197_v24 = vld [vmem:[%s6554_s1 + $0x18] sm:$0xff] }
  0x68   : > { %v4252_v59 = vcombine.high %v196_v22, %v200_v23  ;;  %v4251_v35 = vcombine.low %v196_v22, %v200_v23  ;;  %v4253_v36 = vcombine.low %v197_v24, %v201_v25  ;;  %v253_v22 = vld [vmem:[%s6554_s1 + $0x1d8] sm:$0xff] }
  0x69   : > { %v257_v23 = vld [vmem:[%s6554_s1 + $0x1f8] sm:$0xff] }
  0x6a   : > { %2115 = vmatpush1.bf16.msra.mxu0 %v4439_v28  ;;  %2197 = vmatpush1.bf16.msra.mxu1 %v4441_v30  ;;  %v4254_v28 = vcombine.high %v197_v24, %v201_v25  ;;  %v204_v30 = vld [vmem:[%s6554_s1 + $0x50] sm:$0xff]  ;;  %v4301_v25 = vcombine.low %v245_v13, %v249_v14 }
  0x6b   : > { %2116 = vmatprep.subr.bf16.mxu0 %v4448_v31  ;;  %2198 = vmatprep.subr.bf16.mxu1 %v4450_v32  ;;  %v208_v31 = vld [vmem:[%s6554_s1 + $0x70] sm:$0xff]  ;;  %v5309_v32 = vcombine.high %v5105_v21, %v5105_v21 }
  0x6c   : > { %v4259_v43 = vcombine.low %v204_v30, %v208_v31 }
  0x6e   : > { %2117 = vmatpush1.bf16.msra.mxu0 %v4447_v37  ;;  %2199 = vmatpush1.bf16.msra.mxu1 %v4449_v38  ;;  %v4260_v37 = vcombine.high %v204_v30, %v208_v31  ;;  %v4262_v38 = vcombine.high %v205_v33, %v209_v34  ;;  %v261_v30 = vld [vmem:[%s6554_s1 + $0x218] sm:$0xff]  ;;  %v4309_v34 = vcombine.low %v253_v22, %v257_v23 }
  0x6f   : > { %2118 = vmatprep.subr.bf16.mxu0 %v4456_v39  ;;  %2200 = vmatprep.subr.bf16.mxu1 %v4458_v40  ;;  %v212_v39 = vld [vmem:[%s6554_s1 + $0x90] sm:$0xff]  ;;  %v265_v31 = vld [vmem:[%s6554_s1 + $0x238] sm:$0xff] }
  0x70   : > { %v216_v40 = vld [vmem:[%s6554_s1 + $0xb0] sm:$0xff] }
  0x71   : > { %v4267_v52 = vcombine.low %v212_v39, %v216_v40 }
  0x72   : > { %2119 = vmatpush1.bf16.msra.mxu0 %v4455_v45  ;;  %2201 = vmatpush1.bf16.msra.mxu1 %v4457_v47  ;;  %v4268_v45 = vcombine.high %v212_v39, %v216_v40  ;;  %v4270_v47 = vcombine.high %v213_v41, %v217_v42  ;;  %v269_v39 = vld [vmem:[%s6554_s1 + $0x258] sm:$0xff]  ;;  %v4317_v42 = vcombine.low %v261_v30, %v265_v31 }
  0x73   : > { %2120 = vmatprep.subr.bf16.mxu0 %v4464_v48  ;;  %2202 = vmatprep.subr.bf16.mxu1 %v4466_v49  ;;  %v220_v48 = vld [vmem:[%s6554_s1 + $0xd0] sm:$0xff]  ;;  %v273_v40 = vld [vmem:[%s6554_s1 + $0x278] sm:$0xff] }
  0x74   : > { %v224_v49 = vld [vmem:[%s6554_s1 + $0xf0] sm:$0xff] }
  0x75   : > { %v4275_v62 = vcombine.low %v220_v48, %v224_v49 }
  0x76   : > { %2121 = vmatpush1.bf16.msra.mxu0 %v4463_v54  ;;  %2203 = vmatpush1.bf16.msra.mxu1 %v4465_v55  ;;  %v4276_v54 = vcombine.high %v220_v48, %v224_v49  ;;  %v4278_v55 = vcombine.high %v221_v50, %v225_v51  ;;  %v277_v48 = vld [vmem:[%s6554_s1 + $0x298] sm:$0xff]  ;;  %v4325_v51 = vcombine.low %v269_v39, %v273_v40 }
  0x77   : > { %2122 = vmatprep.subr.bf16.mxu0 %v4472_v57  ;;  %2204 = vmatprep.subr.bf16.mxu1 %v4474_v58  ;;  %v228_v57 = vld [vmem:[%s6554_s1 + $0x110] sm:$0xff]  ;;  %v281_v49 = vld [vmem:[%s6554_s1 + $0x2b8] sm:$0xff] }
  0x78   : > { %v232_v58 = vld [vmem:[%s6554_s1 + $0x130] sm:$0xff] }
  0x79   : > { %v4283_v7 = vcombine.low %v228_v57, %v232_v58 }
  0x7a   : > { %2123 = vmatpush1.bf16.msra.mxu0 %v4471_v0  ;;  %2205 = vmatpush1.bf16.msra.mxu1 %v4473_v1  ;;  %v4284_v0 = vcombine.high %v228_v57, %v232_v58  ;;  %v4286_v1 = vcombine.high %v229_v60, %v233_v61  ;;  %v285_v57 = vld [vmem:[%s6554_s1 + $0x2d8] sm:$0xff]  ;;  %v4333_v61 = vcombine.low %v277_v48, %v281_v49 }
  0x7b   : > { %2124 = vmatprep.subr.bf16.mxu0 %v4480_v2  ;;  %2206 = vmatprep.subr.bf16.mxu1 %v4482_v4  ;;  %v236_v2 = vld [vmem:[%s6554_s1 + $0x150] sm:$0xff]  ;;  %v289_v58 = vld [vmem:[%s6554_s1 + $0x2f8] sm:$0xff] }
  0x7c   : > { %v240_v4 = vld [vmem:[%s6554_s1 + $0x170] sm:$0xff] }
  0x7d   : > { %v4291_v15 = vcombine.low %v236_v2, %v240_v4 }
  0x7e   : > { %2125 = vmatpush1.bf16.msra.mxu0 %v4479_v9  ;;  %2207 = vmatpush1.bf16.msra.mxu1 %v4481_v10  ;;  %v4292_v9 = vcombine.high %v236_v2, %v240_v4  ;;  %v4294_v10 = vcombine.high %v237_v5, %v241_v6  ;;  %v293_v2 = vld [vmem:[%s6554_s1 + $0x318] sm:$0xff]  ;;  %v4341_v6 = vcombine.low %v285_v57, %v289_v58 }
  0x7f   : > { %2126 = vmatprep.subr.bf16.mxu0 %v4488_v11  ;;  %2208 = vmatprep.subr.bf16.mxu1 %v4490_v12  ;;  %v244_v11 = vld [vmem:[%s6554_s1 + $0x190] sm:$0xff]  ;;  %v297_v4 = vld [vmem:[%s6554_s1 + $0x338] sm:$0xff] }
  0x80   : > { %v248_v12 = vld [vmem:[%s6554_s1 + $0x1b0] sm:$0xff] }
  0x81   : > { %v4299_v24 = vcombine.low %v244_v11, %v248_v12 }
  0x82   : > { %2127 = vmatpush1.bf16.msra.mxu0 %v4487_v17  ;;  %2209 = vmatpush1.bf16.msra.mxu1 %v4489_v18  ;;  %v4300_v17 = vcombine.high %v244_v11, %v248_v12  ;;  %v4302_v18 = vcombine.high %v245_v13, %v249_v14  ;;  %v301_v11 = vld [vmem:[%s6554_s1 + $0x358] sm:$0xff]  ;;  %v4349_v14 = vcombine.low %v293_v2, %v297_v4 }
  0x83   : > { %2128 = vmatprep.subr.bf16.mxu0 %v4496_v19  ;;  %2210 = vmatprep.subr.bf16.mxu1 %v4498_v20  ;;  %v252_v19 = vld [vmem:[%s6554_s1 + $0x1d0] sm:$0xff]  ;;  %v305_v12 = vld [vmem:[%s6554_s1 + $0x378] sm:$0xff] }
  0x84   : > { %v256_v20 = vld [vmem:[%s6554_s1 + $0x1f0] sm:$0xff] }
  0x85   : > { %v4307_v33 = vcombine.low %v252_v19, %v256_v20 }
  0x86   : > { %2129 = vmatpush1.bf16.msra.mxu0 %v4495_v26  ;;  %2211 = vmatpush1.bf16.msra.mxu1 %v4497_v27  ;;  %v4308_v26 = vcombine.high %v252_v19, %v256_v20  ;;  %v4310_v27 = vcombine.high %v253_v22, %v257_v23  ;;  %v309_v19 = vld [vmem:[%s6554_s1 + $0x398] sm:$0xff]  ;;  %v4357_v23 = vcombine.low %v301_v11, %v305_v12 }
  0x87   : > { %2221 = vmatprep.subr.bf16.mxu0 %v4252_v59  ;;  %2303 = vmatprep.subr.bf16.mxu1 %v4254_v28  ;;  %v260_v59 = vld [vmem:[%s6554_s1 + $0x210] sm:$0xff]  ;;  %v313_v20 = vld [vmem:[%s6554_s1 + $0x3b8] sm:$0xff] }
  0x88   : > { %v264_v28 = vld [vmem:[%s6554_s1 + $0x230] sm:$0xff] }
  0x89   : > { %2131 = vmatmul.mubr.bf16.vlgmr.msra.gmra.mrb[0].mxu0 %v5309_v32  ;;  %2213 = vmatmul.mubr.bf16.vlgmr.msra.gmra.mrb[0].mxu1 %v5309_v32  ;;  %v4315_v41 = vcombine.low %v260_v59, %v264_v28 }
  0x8a   : > { %2222 = vmatpush1.bf16.msra.mxu0 %v4251_v35  ;;  %2304 = vmatpush1.bf16.msra.mxu1 %v4253_v36  ;;  %v4316_v35 = vcombine.high %v260_v59, %v264_v28  ;;  %v4318_v36 = vcombine.high %v261_v30, %v265_v31  ;;  %v317_v59 = vld [vmem:[%s6554_s1 + $0x3d8] sm:$0xff]  ;;  %v4365_v31 = vcombine.low %v309_v19, %v313_v20 }
  0x8b   : > { %2223 = vmatprep.subr.bf16.mxu0 %v4260_v37  ;;  %2305 = vmatprep.subr.bf16.mxu1 %v4262_v38  ;;  %v268_v37 = vld [vmem:[%s6554_s1 + $0x250] sm:$0xff]  ;;  %v321_v28 = vld [vmem:[%s6554_s1 + $0x3f8] sm:$0xff] }
  0x8c   : > { %2253 = vmatprep.mubr.bf16.mxu0 %v4985_v3  ;;  %2335 = vmatprep.mubr.bf16.mxu1 %v4985_v3  ;;  %v272_v38 = vld [vmem:[%s6554_s1 + $0x270] sm:$0xff] }
  0x8d   : > { %v4323_v50 = vcombine.low %v268_v37, %v272_v38 }
  0x8e   : > { %2224 = vmatpush1.bf16.msra.mxu0 %v4259_v43  ;;  %2306 = vmatpush1.bf16.msra.mxu1 %v4261_v44  ;;  %v4324_v43 = vcombine.high %v268_v37, %v272_v38  ;;  %v4326_v44 = vcombine.high %v269_v39, %v273_v40  ;;  %v325_v37 = vld [vmem:[%s6554_s1 + $0x418] sm:$0xff]  ;;  %v4373_v40 = vcombine.low %v317_v59, %v321_v28 }
  0x8f   : > { %2225 = vmatprep.subr.bf16.mxu0 %v4268_v45  ;;  %2307 = vmatprep.subr.bf16.mxu1 %v4270_v47  ;;  %v276_v45 = vld [vmem:[%s6554_s1 + $0x290] sm:$0xff]  ;;  %v329_v38 = vld [vmem:[%s6554_s1 + $0x438] sm:$0xff] }
  0x90   : > { %v280_v47 = vld [vmem:[%s6554_s1 + $0x2b0] sm:$0xff] }
  0x91   : > { %v4331_v60 = vcombine.low %v276_v45, %v280_v47 }
  0x92   : > { %2226 = vmatpush1.bf16.msra.mxu0 %v4267_v52  ;;  %2308 = vmatpush1.bf16.msra.mxu1 %v4269_v53  ;;  %v4332_v52 = vcombine.high %v276_v45, %v280_v47  ;;  %v4334_v53 = vcombine.high %v277_v48, %v281_v49  ;;  %v333_v45 = vld [vmem:[%s6554_s1 + $0x458] sm:$0xff]  ;;  %v4381_v49 = vcombine.low %v325_v37, %v329_v38 }
  0x93   : > { %2227 = vmatprep.subr.bf16.mxu0 %v4276_v54  ;;  %2309 = vmatprep.subr.bf16.mxu1 %v4278_v55  ;;  %v284_v54 = vld [vmem:[%s6554_s1 + $0x2d0] sm:$0xff]  ;;  %v337_v47 = vld [vmem:[%s6554_s1 + $0x478] sm:$0xff] }
  0x94   : > { %v288_v55 = vld [vmem:[%s6554_s1 + $0x2f0] sm:$0xff] }
  0x95   : > { %v4339_v5 = vcombine.low %v284_v54, %v288_v55 }
  0x96   : > { %2228 = vmatpush1.bf16.msra.mxu0 %v4275_v62  ;;  %2310 = vmatpush1.bf16.msra.mxu1 %v4277_v63  ;;  %v4340_v62 = vcombine.high %v284_v54, %v288_v55  ;;  %v4342_v63 = vcombine.high %v285_v57, %v289_v58  ;;  %v341_v54 = vld [vmem:[%s6554_s1 + $0x498] sm:$0xff]  ;;  %v4389_v58 = vcombine.low %v333_v45, %v337_v47 }
  0x97   : > { %2229 = vmatprep.subr.bf16.mxu0 %v4284_v0  ;;  %2311 = vmatprep.subr.bf16.mxu1 %v4286_v1  ;;  %v292_v0 = vld [vmem:[%s6554_s1 + $0x310] sm:$0xff]  ;;  %v345_v55 = vld [vmem:[%s6554_s1 + $0x4b8] sm:$0xff] }
  0x98   : > { %v296_v1 = vld [vmem:[%s6554_s1 + $0x330] sm:$0xff] }
  0x99   : > { %v4347_v13 = vcombine.low %v292_v0, %v296_v1 }
  0x9a   : > { %2230 = vmatpush1.bf16.msra.mxu0 %v4283_v7  ;;  %2312 = vmatpush1.bf16.msra.mxu1 %v4285_v8  ;;  %v4348_v7 = vcombine.high %v292_v0, %v296_v1  ;;  %v4350_v8 = vcombine.high %v293_v2, %v297_v4  ;;  %v349_v0 = vld [vmem:[%s6554_s1 + $0x4d8] sm:$0xff]  ;;  %v4397_v4 = vcombine.low %v341_v54, %v345_v55 }
  0x9b   : > { %2231 = vmatprep.subr.bf16.mxu0 %v4292_v9  ;;  %2313 = vmatprep.subr.bf16.mxu1 %v4294_v10  ;;  %v300_v9 = vld [vmem:[%s6554_s1 + $0x350] sm:$0xff]  ;;  %v353_v1 = vld [vmem:[%s6554_s1 + $0x4f8] sm:$0xff] }
  0x9c   : > { %v304_v10 = vld [vmem:[%s6554_s1 + $0x370] sm:$0xff] }
  0x9d   : > { %v4355_v22 = vcombine.low %v300_v9, %v304_v10 }
  0x9e   : > { %2232 = vmatpush1.bf16.msra.mxu0 %v4291_v15  ;;  %2314 = vmatpush1.bf16.msra.mxu1 %v4293_v16  ;;  %v4356_v15 = vcombine.high %v300_v9, %v304_v10  ;;  %v4358_v16 = vcombine.high %v301_v11, %v305_v12  ;;  %v357_v9 = vld [vmem:[%s6554_s1 + $0x518] sm:$0xff]  ;;  %v4405_v12 = vcombine.low %v349_v0, %v353_v1 }
  0x9f   : > { %2233 = vmatprep.subr.bf16.mxu0 %v4300_v17  ;;  %2315 = vmatprep.subr.bf16.mxu1 %v4302_v18  ;;  %v308_v17 = vld [vmem:[%s6554_s1 + $0x390] sm:$0xff]  ;;  %v361_v10 = vld [vmem:[%s6554_s1 + $0x538] sm:$0xff] }
  0xa0   : > { %v312_v18 = vld [vmem:[%s6554_s1 + $0x3b0] sm:$0xff] }
  0xa1   : > { %v4363_v30 = vcombine.low %v308_v17, %v312_v18 }
  0xa2   : > { %2234 = vmatpush1.bf16.msra.mxu0 %v4299_v24  ;;  %2316 = vmatpush1.bf16.msra.mxu1 %v4301_v25  ;;  %v4364_v24 = vcombine.high %v308_v17, %v312_v18  ;;  %v4366_v25 = vcombine.high %v309_v19, %v313_v20  ;;  %v365_v17 = vld [vmem:[%s6554_s1 + $0x558] sm:$0xff]  ;;  %v4413_v20 = vcombine.low %v357_v9, %v361_v10 }
  0xa3   : > { %2235 = vmatprep.subr.bf16.mxu0 %v4308_v26  ;;  %2317 = vmatprep.subr.bf16.mxu1 %v4310_v27  ;;  %v316_v26 = vld [vmem:[%s6554_s1 + $0x3d0] sm:$0xff]  ;;  %v369_v18 = vld [vmem:[%s6554_s1 + $0x578] sm:$0xff] }
  0xa4   : > { %v320_v27 = vld [vmem:[%s6554_s1 + $0x3f0] sm:$0xff] }
  0xa5   : > { %v4371_v39 = vcombine.low %v316_v26, %v320_v27 }
  0xa6   : > { %2236 = vmatpush1.bf16.msra.mxu0 %v4307_v33  ;;  %2318 = vmatpush1.bf16.msra.mxu1 %v4309_v34  ;;  %v4372_v33 = vcombine.high %v316_v26, %v320_v27  ;;  %v4374_v34 = vcombine.high %v317_v59, %v321_v28  ;;  %v373_v26 = vld [vmem:[%s6554_s1 + $0x598] sm:$0xff]  ;;  %v4421_v28 = vcombine.low %v365_v17, %v369_v18 }
  0xa7   : > { %2237 = vmatprep.subr.bf16.mxu0 %v4316_v35  ;;  %2319 = vmatprep.subr.bf16.mxu1 %v4318_v36  ;;  %v324_v35 = vld [vmem:[%s6554_s1 + $0x410] sm:$0xff]  ;;  %v377_v27 = vld [vmem:[%s6554_s1 + $0x5b8] sm:$0xff] }
  0xa8   : > { %v328_v36 = vld [vmem:[%s6554_s1 + $0x430] sm:$0xff] }
  0xa9   : > { %v4379_v48 = vcombine.low %v324_v35, %v328_v36 }
  0xaa   : > { %2238 = vmatpush1.bf16.msra.mxu0 %v4315_v41  ;;  %2320 = vmatpush1.bf16.msra.mxu1 %v4317_v42  ;;  %v4380_v41 = vcombine.high %v324_v35, %v328_v36  ;;  %v4382_v42 = vcombine.high %v325_v37, %v329_v38  ;;  %v381_v35 = vld [vmem:[%s6554_s1 + $0x5d8] sm:$0xff]  ;;  %v4429_v38 = vcombine.low %v373_v26, %v377_v27 }
  0xab   : > { %2239 = vmatprep.subr.bf16.mxu0 %v4324_v43  ;;  %2321 = vmatprep.subr.bf16.mxu1 %v4326_v44  ;;  %v332_v43 = vld [vmem:[%s6554_s1 + $0x450] sm:$0xff]  ;;  %v385_v36 = vld [vmem:[%s6554_s1 + $0x5f8] sm:$0xff] }
  0xac   : > { %v336_v44 = vld [vmem:[%s6554_s1 + $0x470] sm:$0xff] }
  0xad   : > { %v4387_v57 = vcombine.low %v332_v43, %v336_v44 }
  0xae   : > { %2240 = vmatpush1.bf16.msra.mxu0 %v4323_v50  ;;  %2322 = vmatpush1.bf16.msra.mxu1 %v4325_v51  ;;  %v4388_v50 = vcombine.high %v332_v43, %v336_v44  ;;  %v4390_v51 = vcombine.high %v333_v45, %v337_v47  ;;  %v389_v43 = vld [vmem:[%s6554_s1 + $0x618] sm:$0xff]  ;;  %v4437_v47 = vcombine.low %v381_v35, %v385_v36 }
  0xaf   : > { %2241 = vmatprep.subr.bf16.mxu0 %v4332_v52  ;;  %2323 = vmatprep.subr.bf16.mxu1 %v4334_v53  ;;  %v340_v52 = vld [vmem:[%s6554_s1 + $0x490] sm:$0xff]  ;;  %v393_v44 = vld [vmem:[%s6554_s1 + $0x638] sm:$0xff] }
  0xb0   : > { %v344_v53 = vld [vmem:[%s6554_s1 + $0x4b0] sm:$0xff] }
  0xb1   : > { %v4395_v2 = vcombine.low %v340_v52, %v344_v53 }
  0xb2   : > { %2242 = vmatpush1.bf16.msra.mxu0 %v4331_v60  ;;  %2324 = vmatpush1.bf16.msra.mxu1 %v4333_v61  ;;  %v4396_v60 = vcombine.high %v340_v52, %v344_v53  ;;  %v4398_v61 = vcombine.high %v341_v54, %v345_v55  ;;  %v397_v52 = vld [vmem:[%s6554_s1 + $0x658] sm:$0xff]  ;;  %v4445_v55 = vcombine.low %v389_v43, %v393_v44 }
  0xb3   : > { %2243 = vmatprep.subr.bf16.mxu0 %v4340_v62  ;;  %2325 = vmatprep.subr.bf16.mxu1 %v4342_v63  ;;  %v348_v62 = vld [vmem:[%s6554_s1 + $0x4d0] sm:$0xff]  ;;  %v401_v53 = vld [vmem:[%s6554_s1 + $0x678] sm:$0xff] }
  0xb4   : > { %v352_v63 = vld [vmem:[%s6554_s1 + $0x4f0] sm:$0xff] }
  0xb5   : > { %v4403_v11 = vcombine.low %v348_v62, %v352_v63 }
  0xb6   : > { %2244 = vmatpush1.bf16.msra.mxu0 %v4339_v5  ;;  %2326 = vmatpush1.bf16.msra.mxu1 %v4341_v6  ;;  %v4404_v5 = vcombine.high %v348_v62, %v352_v63  ;;  %v4406_v6 = vcombine.high %v349_v0, %v353_v1  ;;  %v405_v62 = vld [vmem:[%s6554_s1 + $0x698] sm:$0xff]  ;;  %v4453_v1 = vcombine.low %v397_v52, %v401_v53 }
  0xb7   : > { %2245 = vmatprep.subr.bf16.mxu0 %v4348_v7  ;;  %2327 = vmatprep.subr.bf16.mxu1 %v4350_v8  ;;  %v356_v7 = vld [vmem:[%s6554_s1 + $0x510] sm:$0xff]  ;;  %v409_v63 = vld [vmem:[%s6554_s1 + $0x6b8] sm:$0xff] }
  0xb8   : > { %v360_v8 = vld [vmem:[%s6554_s1 + $0x530] sm:$0xff] }
  0xb9   : > { %v4411_v19 = vcombine.low %v356_v7, %v360_v8 }
  0xba   : > { %2246 = vmatpush1.bf16.msra.mxu0 %v4347_v13  ;;  %2328 = vmatpush1.bf16.msra.mxu1 %v4349_v14  ;;  %v4412_v13 = vcombine.high %v356_v7, %v360_v8  ;;  %v4414_v14 = vcombine.high %v357_v9, %v361_v10  ;;  %v413_v7 = vld [vmem:[%s6554_s1 + $0x6d8] sm:$0xff]  ;;  %v4461_v10 = vcombine.low %v405_v62, %v409_v63 }
  0xbb   : > { %2247 = vmatprep.subr.bf16.mxu0 %v4356_v15  ;;  %2329 = vmatprep.subr.bf16.mxu1 %v4358_v16  ;;  %v364_v15 = vld [vmem:[%s6554_s1 + $0x550] sm:$0xff]  ;;  %v417_v8 = vld [vmem:[%s6554_s1 + $0x6f8] sm:$0xff] }
  0xbc   : > { %v368_v16 = vld [vmem:[%s6554_s1 + $0x570] sm:$0xff] }
  0xbd   : > { %v4419_v59 = vcombine.low %v364_v15, %v368_v16 }
  0xbe   : > { %2248 = vmatpush1.bf16.msra.mxu0 %v4355_v22  ;;  %2330 = vmatpush1.bf16.msra.mxu1 %v4357_v23  ;;  %v4420_v22 = vcombine.high %v364_v15, %v368_v16  ;;  %v4422_v23 = vcombine.high %v365_v17, %v369_v18  ;;  %v421_v15 = vld [vmem:[%s6554_s1 + $0x718] sm:$0xff]  ;;  %v4469_v18 = vcombine.low %v413_v7, %v417_v8 }
  0xbf   : > { %2249 = vmatprep.subr.bf16.mxu0 %v4364_v24  ;;  %2331 = vmatprep.subr.bf16.mxu1 %v4366_v25  ;;  %v372_v24 = vld [vmem:[%s6554_s1 + $0x590] sm:$0xff]  ;;  %v425_v16 = vld [vmem:[%s6554_s1 + $0x738] sm:$0xff] }
  0xc0   : > { %v376_v25 = vld [vmem:[%s6554_s1 + $0x5b0] sm:$0xff] }
  0xc1   : > { %v4427_v37 = vcombine.low %v372_v24, %v376_v25 }
  0xc2   : > { %2250 = vmatpush1.bf16.msra.mxu0 %v4363_v30  ;;  %2332 = vmatpush1.bf16.msra.mxu1 %v4365_v31  ;;  %v4428_v30 = vcombine.high %v372_v24, %v376_v25  ;;  %v4430_v31 = vcombine.high %v373_v26, %v377_v27  ;;  %v429_v24 = vld [vmem:[%s6554_s1 + $0x758] sm:$0xff]  ;;  %v4477_v27 = vcombine.low %v421_v15, %v425_v16 }
  0xc3   : > { %2251 = vmatprep.subr.bf16.mxu0 %v4372_v33  ;;  %2333 = vmatprep.subr.bf16.mxu1 %v4374_v34  ;;  %v380_v33 = vld [vmem:[%s6554_s1 + $0x5d0] sm:$0xff]  ;;  %v433_v25 = vld [vmem:[%s6554_s1 + $0x778] sm:$0xff] }
  0xc4   : > { %v384_v34 = vld [vmem:[%s6554_s1 + $0x5f0] sm:$0xff] }
  0xc5   : > { %v4435_v45 = vcombine.low %v380_v33, %v384_v34 }
  0xc6   : > { %2252 = vmatpush1.bf16.msra.mxu0 %v4371_v39  ;;  %2334 = vmatpush1.bf16.msra.mxu1 %v4373_v40  ;;  %v4436_v39 = vcombine.high %v380_v33, %v384_v34  ;;  %v4438_v40 = vcombine.high %v381_v35, %v385_v36  ;;  %v437_v33 = vld [vmem:[%s6554_s1 + $0x798] sm:$0xff]  ;;  %v4485_v36 = vcombine.low %v429_v24, %v433_v25 }
  0xc7   : > { %2262 = vmatprep.subr.bf16.mxu0 %v4380_v41  ;;  %2344 = vmatprep.subr.bf16.mxu1 %v4382_v42  ;;  %v388_v41 = vld [vmem:[%s6554_s1 + $0x610] sm:$0xff]  ;;  %v441_v34 = vld [vmem:[%s6554_s1 + $0x7b8] sm:$0xff] }
  0xc8   : > { %v392_v42 = vld [vmem:[%s6554_s1 + $0x630] sm:$0xff] }
  0xc9   : > { %2254 = vmatmul.mubr.bf16.vlgmr.msra.gmra.mrb[4].mxu0 %v5105_v21  ;;  %2336 = vmatmul.mubr.bf16.vlgmr.msra.gmra.mrb[4].mxu1 %v5105_v21  ;;  %v4443_v54 = vcombine.low %v388_v41, %v392_v42 }
  0xca   : > { %2263 = vmatpush1.bf16.msra.mxu0 %v4379_v48  ;;  %2345 = vmatpush1.bf16.msra.mxu1 %v4381_v49  ;;  %v4444_v48 = vcombine.high %v388_v41, %v392_v42  ;;  %v4446_v49 = vcombine.high %v389_v43, %v393_v44  ;;  %v445_v41 = vld [vmem:[%s6554_s1 + $0x7d8] sm:$0xff]  ;;  %v4493_v44 = vcombine.low %v437_v33, %v441_v34 }
  0xcb   : > { %2264 = vmatprep.subr.bf16.mxu0 %v4388_v50  ;;  %2346 = vmatprep.subr.bf16.mxu1 %v4390_v51  ;;  %v396_v50 = vld [vmem:[%s6554_s1 + $0x650] sm:$0xff]  ;;  %v449_v42 = vld [vmem:[%s6554_s1 + $0x7f8] sm:$0xff] }
  0xcc   : > { %2294 = vmatprep.mubr.bf16.mxu0 %v5121_v29  ;;  %2376 = vmatprep.mubr.bf16.mxu1 %v5121_v29  ;;  %v400_v51 = vld [vmem:[%s6554_s1 + $0x670] sm:$0xff] }
  0xcd   : > { %v4451_v0 = vcombine.low %v396_v50, %v400_v51 }
  0xce   : > { %2265 = vmatpush1.bf16.msra.mxu0 %v4387_v57  ;;  %2347 = vmatpush1.bf16.msra.mxu1 %v4389_v58  ;;  %v4452_v57 = vcombine.high %v396_v50, %v400_v51  ;;  %v4454_v58 = vcombine.high %v397_v52, %v401_v53  ;;  %v451_v50 = vld [vmem:[%s6555_s2 + $0x8] sm:$0xff]  ;;  %v4501_v53 = vcombine.low %v445_v41, %v449_v42 }
  0xcf   : > { %2266 = vmatprep.subr.bf16.mxu0 %v4396_v60  ;;  %2348 = vmatprep.subr.bf16.mxu1 %v4398_v61  ;;  %v404_v60 = vld [vmem:[%s6554_s1 + $0x690] sm:$0xff]  ;;  %v455_v51 = vld [vmem:[%s6555_s2 + $0x28] sm:$0xff] }
  0xd0   : > { %v408_v61 = vld [vmem:[%s6554_s1 + $0x6b0] sm:$0xff] }
  0xd1   : > { %v4459_v9 = vcombine.low %v404_v60, %v408_v61 }
  0xd2   : > { %2267 = vmatpush1.bf16.msra.mxu0 %v4395_v2  ;;  %2349 = vmatpush1.bf16.msra.mxu1 %v4397_v4  ;;  %v4460_v2 = vcombine.high %v404_v60, %v408_v61  ;;  %v4462_v4 = vcombine.high %v405_v62, %v409_v63  ;;  %v459_v60 = vld [vmem:[%s6555_s2 + $0x48] sm:$0xff]  ;;  %v4509_v63 = vcombine.low %v451_v50, %v455_v51 }
  0xd3   : > { %2268 = vmatprep.subr.bf16.mxu0 %v4404_v5  ;;  %2350 = vmatprep.subr.bf16.mxu1 %v4406_v6  ;;  %v412_v5 = vld [vmem:[%s6554_s1 + $0x6d0] sm:$0xff]  ;;  %v463_v61 = vld [vmem:[%s6555_s2 + $0x68] sm:$0xff] }
  0xd4   : > { %v416_v6 = vld [vmem:[%s6554_s1 + $0x6f0] sm:$0xff] }
  0xd5   : > { %v4467_v17 = vcombine.low %v412_v5, %v416_v6 }
  0xd6   : > { %2269 = vmatpush1.bf16.msra.mxu0 %v4403_v11  ;;  %2351 = vmatpush1.bf16.msra.mxu1 %v4405_v12  ;;  %v4468_v11 = vcombine.high %v412_v5, %v416_v6  ;;  %v4470_v12 = vcombine.high %v413_v7, %v417_v8  ;;  %v467_v5 = vld [vmem:[%s6555_s2 + $0x88] sm:$0xff]  ;;  %v4517_v8 = vcombine.low %v459_v60, %v463_v61 }
  0xd7   : > { %2270 = vmatprep.subr.bf16.mxu0 %v4412_v13  ;;  %2352 = vmatprep.subr.bf16.mxu1 %v4414_v14  ;;  %v420_v13 = vld [vmem:[%s6554_s1 + $0x710] sm:$0xff]  ;;  %v471_v6 = vld [vmem:[%s6555_s2 + $0xa8] sm:$0xff] }
  0xd8   : > { %v424_v14 = vld [vmem:[%s6554_s1 + $0x730] sm:$0xff] }
  0xd9   : > { %v4475_v26 = vcombine.low %v420_v13, %v424_v14 }
  0xda   : > { %2271 = vmatpush1.bf16.msra.mxu0 %v4411_v19  ;;  %2353 = vmatpush1.bf16.msra.mxu1 %v4413_v20  ;;  %v4476_v19 = vcombine.high %v420_v13, %v424_v14  ;;  %v4478_v20 = vcombine.high %v421_v15, %v425_v16  ;;  %v475_v13 = vld [vmem:[%s6555_s2 + $0xc8] sm:$0xff]  ;;  %v4525_v16 = vcombine.low %v467_v5, %v471_v6 }
  0xdb   : > { %2272 = vmatprep.subr.bf16.mxu0 %v4420_v22  ;;  %2354 = vmatprep.subr.bf16.mxu1 %v4422_v23  ;;  %v428_v22 = vld [vmem:[%s6554_s1 + $0x750] sm:$0xff]  ;;  %v479_v14 = vld [vmem:[%s6555_s2 + $0xe8] sm:$0xff] }
  0xdc   : > { %v432_v23 = vld [vmem:[%s6554_s1 + $0x770] sm:$0xff] }
  0xdd   : > { %v4483_v35 = vcombine.low %v428_v22, %v432_v23 }
  0xde   : > { %2273 = vmatpush1.bf16.msra.mxu0 %v4419_v59  ;;  %2355 = vmatpush1.bf16.msra.mxu1 %v4421_v28  ;;  %v4484_v59 = vcombine.high %v428_v22, %v432_v23  ;;  %v4486_v28 = vcombine.high %v429_v24, %v433_v25  ;;  %v483_v22 = vld [vmem:[%s6555_s2 + $0x108] sm:$0xff]  ;;  %v4533_v25 = vcombine.low %v475_v13, %v479_v14 }
  0xdf   : > { %2274 = vmatprep.subr.bf16.mxu0 %v4428_v30  ;;  %2356 = vmatprep.subr.bf16.mxu1 %v4430_v31  ;;  %v436_v30 = vld [vmem:[%s6554_s1 + $0x790] sm:$0xff]  ;;  %v487_v23 = vld [vmem:[%s6555_s2 + $0x128] sm:$0xff] }
  0xe0   : > { %v440_v31 = vld [vmem:[%s6554_s1 + $0x7b0] sm:$0xff] }
  0xe1   : > { %v4491_v43 = vcombine.low %v436_v30, %v440_v31 }
  0xe2   : > { %2275 = vmatpush1.bf16.msra.mxu0 %v4427_v37  ;;  %2357 = vmatpush1.bf16.msra.mxu1 %v4429_v38  ;;  %v4492_v37 = vcombine.high %v436_v30, %v440_v31  ;;  %v4494_v38 = vcombine.high %v437_v33, %v441_v34  ;;  %v491_v30 = vld [vmem:[%s6555_s2 + $0x148] sm:$0xff]  ;;  %v4541_v34 = vcombine.low %v483_v22, %v487_v23 }
  0xe3   : > { %2276 = vmatprep.subr.bf16.mxu0 %v4436_v39  ;;  %2358 = vmatprep.subr.bf16.mxu1 %v4438_v40  ;;  %v444_v39 = vld [vmem:[%s6554_s1 + $0x7d0] sm:$0xff]  ;;  %v495_v31 = vld [vmem:[%s6555_s2 + $0x168] sm:$0xff] }
  0xe4   : > { %v448_v40 = vld [vmem:[%s6554_s1 + $0x7f0] sm:$0xff] }
  0xe5   : > { %v4499_v52 = vcombine.low %v444_v39, %v448_v40 }
  0xe6   : > { %2277 = vmatpush1.bf16.msra.mxu0 %v4435_v45  ;;  %2359 = vmatpush1.bf16.msra.mxu1 %v4437_v47  ;;  %v4500_v45 = vcombine.high %v444_v39, %v448_v40  ;;  %v4502_v47 = vcombine.high %v445_v41, %v449_v42  ;;  %v499_v39 = vld [vmem:[%s6555_s2 + $0x188] sm:$0xff]  ;;  %v4549_v42 = vcombine.low %v491_v30, %v495_v31 }
  0xe7   : > { %2278 = vmatprep.subr.bf16.mxu0 %v4444_v48  ;;  %2360 = vmatprep.subr.bf16.mxu1 %v4446_v49  ;;  %v450_v48 = vld [vmem:[%s6555_s2] sm:$0xff]  ;;  %v503_v40 = vld [vmem:[%s6555_s2 + $0x1a8] sm:$0xff] }
  0xe8   : > { %v454_v49 = vld [vmem:[%s6555_s2 + $0x20] sm:$0xff] }
  0xe9   : > { %v4507_v62 = vcombine.low %v450_v48, %v454_v49 }
  0xea   : > { %2279 = vmatpush1.bf16.msra.mxu0 %v4443_v54  ;;  %2361 = vmatpush1.bf16.msra.mxu1 %v4445_v55  ;;  %v4508_v54 = vcombine.high %v450_v48, %v454_v49  ;;  %v4510_v55 = vcombine.high %v451_v50, %v455_v51  ;;  %v507_v48 = vld [vmem:[%s6555_s2 + $0x1c8] sm:$0xff]  ;;  %v4557_v51 = vcombine.low %v499_v39, %v503_v40 }
  0xeb   : > { %2280 = vmatprep.subr.bf16.mxu0 %v4452_v57  ;;  %2362 = vmatprep.subr.bf16.mxu1 %v4454_v58  ;;  %v458_v57 = vld [vmem:[%s6555_s2 + $0x40] sm:$0xff]  ;;  %v511_v49 = vld [vmem:[%s6555_s2 + $0x1e8] sm:$0xff] }
  0xec   : > { %v462_v58 = vld [vmem:[%s6555_s2 + $0x60] sm:$0xff] }
  0xed   : > { %v4515_v7 = vcombine.low %v458_v57, %v462_v58 }
  0xee   : > { %2281 = vmatpush1.bf16.msra.mxu0 %v4451_v0  ;;  %2363 = vmatpush1.bf16.msra.mxu1 %v4453_v1  ;;  %v4516_v0 = vcombine.high %v458_v57, %v462_v58  ;;  %v4518_v1 = vcombine.high %v459_v60, %v463_v61  ;;  %v515_v57 = vld [vmem:[%s6555_s2 + $0x208] sm:$0xff]  ;;  %v4565_v61 = vcombine.low %v507_v48, %v511_v49 }
  0xef   : > { %2282 = vmatprep.subr.bf16.mxu0 %v4460_v2  ;;  %2364 = vmatprep.subr.bf16.mxu1 %v4462_v4  ;;  %v466_v2 = vld [vmem:[%s6555_s2 + $0x80] sm:$0xff]  ;;  %v519_v58 = vld [vmem:[%s6555_s2 + $0x228] sm:$0xff] }
  0xf0   : > { %v470_v4 = vld [vmem:[%s6555_s2 + $0xa0] sm:$0xff] }
  0xf1   : > { %v4523_v15 = vcombine.low %v466_v2, %v470_v4 }
  0xf2   : > { %2283 = vmatpush1.bf16.msra.mxu0 %v4459_v9  ;;  %2365 = vmatpush1.bf16.msra.mxu1 %v4461_v10  ;;  %v4524_v9 = vcombine.high %v466_v2, %v470_v4  ;;  %v4526_v10 = vcombine.high %v467_v5, %v471_v6  ;;  %v523_v2 = vld [vmem:[%s6555_s2 + $0x248] sm:$0xff]  ;;  %v4573_v6 = vcombine.low %v515_v57, %v519_v58 }
  0xf3   : > { %2284 = vmatprep.subr.bf16.mxu0 %v4468_v11  ;;  %2366 = vmatprep.subr.bf16.mxu1 %v4470_v12  ;;  %v474_v11 = vld [vmem:[%s6555_s2 + $0xc0] sm:$0xff]  ;;  %v527_v4 = vld [vmem:[%s6555_s2 + $0x268] sm:$0xff] }
  0xf4   : > { %v478_v12 = vld [vmem:[%s6555_s2 + $0xe0] sm:$0xff] }
  0xf5   : > { %v4531_v24 = vcombine.low %v474_v11, %v478_v12 }
  0xf6   : > { %2285 = vmatpush1.bf16.msra.mxu0 %v4467_v17  ;;  %2367 = vmatpush1.bf16.msra.mxu1 %v4469_v18  ;;  %v4532_v17 = vcombine.high %v474_v11, %v478_v12  ;;  %v4534_v18 = vcombine.high %v475_v13, %v479_v14  ;;  %v531_v11 = vld [vmem:[%s6555_s2 + $0x288] sm:$0xff]  ;;  %v4581_v14 = vcombine.low %v523_v2, %v527_v4 }
  0xf7   : > { %2286 = vmatprep.subr.bf16.mxu0 %v4476_v19  ;;  %2368 = vmatprep.subr.bf16.mxu1 %v4478_v20  ;;  %v482_v19 = vld [vmem:[%s6555_s2 + $0x100] sm:$0xff]  ;;  %v535_v12 = vld [vmem:[%s6555_s2 + $0x2a8] sm:$0xff] }
  0xf8   : > { %v486_v20 = vld [vmem:[%s6555_s2 + $0x120] sm:$0xff] }
  0xf9   : > { %v4539_v33 = vcombine.low %v482_v19, %v486_v20 }
  0xfa   : > { %2287 = vmatpush1.bf16.msra.mxu0 %v4475_v26  ;;  %2369 = vmatpush1.bf16.msra.mxu1 %v4477_v27  ;;  %v4540_v26 = vcombine.high %v482_v19, %v486_v20  ;;  %v4542_v27 = vcombine.high %v483_v22, %v487_v23  ;;  %v539_v19 = vld [vmem:[%s6555_s2 + $0x2c8] sm:$0xff]  ;;  %v4589_v23 = vcombine.low %v531_v11, %v535_v12 }
  0xfb   : > { %2288 = vmatprep.subr.bf16.mxu0 %v4484_v59  ;;  %2370 = vmatprep.subr.bf16.mxu1 %v4486_v28  ;;  %v490_v59 = vld [vmem:[%s6555_s2 + $0x140] sm:$0xff]  ;;  %v543_v20 = vld [vmem:[%s6555_s2 + $0x2e8] sm:$0xff] }
  0xfc   : > { %v494_v28 = vld [vmem:[%s6555_s2 + $0x160] sm:$0xff] }
  0xfd   : > { %v4547_v41 = vcombine.low %v490_v59, %v494_v28 }
  0xfe   : > { %2289 = vmatpush1.bf16.msra.mxu0 %v4483_v35  ;;  %2371 = vmatpush1.bf16.msra.mxu1 %v4485_v36  ;;  %v4548_v35 = vcombine.high %v490_v59, %v494_v28  ;;  %v4550_v36 = vcombine.high %v491_v30, %v495_v31  ;;  %v547_v59 = vld [vmem:[%s6555_s2 + $0x308] sm:$0xff]  ;;  %v4597_v31 = vcombine.low %v539_v19, %v543_v20 }
  0xff   : > { %2290 = vmatprep.subr.bf16.mxu0 %v4492_v37  ;;  %2372 = vmatprep.subr.bf16.mxu1 %v4494_v38  ;;  %v498_v37 = vld [vmem:[%s6555_s2 + $0x180] sm:$0xff]  ;;  %v551_v28 = vld [vmem:[%s6555_s2 + $0x328] sm:$0xff] }
 0x100   : > { %v502_v38 = vld [vmem:[%s6555_s2 + $0x1a0] sm:$0xff] }
 0x101   : > { %v4555_v50 = vcombine.low %v498_v37, %v502_v38 }
 0x102   : > { %2291 = vmatpush1.bf16.msra.mxu0 %v4491_v43  ;;  %2373 = vmatpush1.bf16.msra.mxu1 %v4493_v44  ;;  %v4556_v43 = vcombine.high %v498_v37, %v502_v38  ;;  %v4558_v44 = vcombine.high %v499_v39, %v503_v40  ;;  %v555_v37 = vld [vmem:[%s6555_s2 + $0x348] sm:$0xff]  ;;  %v4605_v40 = vcombine.low %v547_v59, %v551_v28 }
 0x103   : > { %2292 = vmatprep.subr.bf16.mxu0 %v4500_v45  ;;  %2374 = vmatprep.subr.bf16.mxu1 %v4502_v47  ;;  %v506_v45 = vld [vmem:[%s6555_s2 + $0x1c0] sm:$0xff]  ;;  %v559_v38 = vld [vmem:[%s6555_s2 + $0x368] sm:$0xff] }
 0x104   : > { %v510_v47 = vld [vmem:[%s6555_s2 + $0x1e0] sm:$0xff] }
 0x105   : > { %v4563_v60 = vcombine.low %v506_v45, %v510_v47 }
 0x106   : > { %2293 = vmatpush1.bf16.msra.mxu0 %v4499_v52  ;;  %2375 = vmatpush1.bf16.msra.mxu1 %v4501_v53  ;;  %v4564_v52 = vcombine.high %v506_v45, %v510_v47  ;;  %v4566_v53 = vcombine.high %v507_v48, %v511_v49  ;;  %v563_v45 = vld [vmem:[%s6555_s2 + $0x388] sm:$0xff]  ;;  %v4613_v49 = vcombine.low %v555_v37, %v559_v38 }
 0x107   : > { %3782 = vmatprep.subr.bf16.mxu0 %v4508_v54  ;;  %3864 = vmatprep.subr.bf16.mxu1 %v4510_v55  ;;  %v514_v54 = vld [vmem:[%s6555_s2 + $0x200] sm:$0xff]  ;;  %v567_v47 = vld [vmem:[%s6555_s2 + $0x3a8] sm:$0xff] }
 0x108   : > { %v518_v55 = vld [vmem:[%s6555_s2 + $0x220] sm:$0xff] }
 0x109   : > { %2295 = vmatmul.mubr.bf16.vlgmr.msra.gmra.mrb[4].mxu0 %v5309_v32  ;;  %2377 = vmatmul.mubr.bf16.vlgmr.msra.gmra.mrb[4].mxu1 %v5309_v32  ;;  %v4571_v5 = vcombine.low %v514_v54, %v518_v55 }
 0x10a   : > { %3783 = vmatpush1.bf16.msra.mxu0 %v4507_v62  ;;  %3865 = vmatpush1.bf16.msra.mxu1 %v4509_v63  ;;  %v4572_v62 = vcombine.high %v514_v54, %v518_v55  ;;  %v4574_v63 = vcombine.high %v515_v57, %v519_v58  ;;  %v571_v54 = vld [vmem:[%s6555_s2 + $0x3c8] sm:$0xff]  ;;  %v4621_v58 = vcombine.low %v563_v45, %v567_v47 }
 0x10b   : > { %3784 = vmatprep.subr.bf16.mxu0 %v4516_v0  ;;  %3866 = vmatprep.subr.bf16.mxu1 %v4518_v1  ;;  %v522_v0 = vld [vmem:[%s6555_s2 + $0x240] sm:$0xff]  ;;  %v575_v55 = vld [vmem:[%s6555_s2 + $0x3e8] sm:$0xff] }
 0x10c   : > { %3814 = vmatprep.mubr.bf16.mxu0 %v4985_v3  ;;  %3896 = vmatprep.mubr.bf16.mxu1 %v4985_v3  ;;  %v526_v1 = vld [vmem:[%s6555_s2 + $0x260] sm:$0xff] }
 0x10d   : > { %v4579_v13 = vcombine.low %v522_v0, %v526_v1 }
 0x10e   : > { %3785 = vmatpush1.bf16.msra.mxu0 %v4515_v7  ;;  %3867 = vmatpush1.bf16.msra.mxu1 %v4517_v8  ;;  %v4580_v7 = vcombine.high %v522_v0, %v526_v1  ;;  %v4582_v8 = vcombine.high %v523_v2, %v527_v4  ;;  %v579_v0 = vld [vmem:[%s6555_s2 + $0x408] sm:$0xff]  ;;  %v4629_v4 = vcombine.low %v571_v54, %v575_v55 }
 0x10f   : > { %3786 = vmatprep.subr.bf16.mxu0 %v4524_v9  ;;  %3868 = vmatprep.subr.bf16.mxu1 %v4526_v10  ;;  %v530_v9 = vld [vmem:[%s6555_s2 + $0x280] sm:$0xff]  ;;  %v583_v1 = vld [vmem:[%s6555_s2 + $0x428] sm:$0xff] }
 0x110   : > { %v534_v10 = vld [vmem:[%s6555_s2 + $0x2a0] sm:$0xff] }
 0x111   : > { %v4587_v22 = vcombine.low %v530_v9, %v534_v10 }
 0x112   : > { %3787 = vmatpush1.bf16.msra.mxu0 %v4523_v15  ;;  %3869 = vmatpush1.bf16.msra.mxu1 %v4525_v16  ;;  %v4588_v15 = vcombine.high %v530_v9, %v534_v10  ;;  %v4590_v16 = vcombine.high %v531_v11, %v535_v12  ;;  %v587_v9 = vld [vmem:[%s6555_s2 + $0x448] sm:$0xff]  ;;  %v4637_v12 = vcombine.low %v579_v0, %v583_v1 }
 0x113   : > { %3788 = vmatprep.subr.bf16.mxu0 %v4532_v17  ;;  %3870 = vmatprep.subr.bf16.mxu1 %v4534_v18  ;;  %v538_v17 = vld [vmem:[%s6555_s2 + $0x2c0] sm:$0xff]  ;;  %v591_v10 = vld [vmem:[%s6555_s2 + $0x468] sm:$0xff] }
 0x114   : > { %v542_v18 = vld [vmem:[%s6555_s2 + $0x2e0] sm:$0xff] }
 0x115   : > { %v4595_v30 = vcombine.low %v538_v17, %v542_v18 }
 0x116   : > { %3789 = vmatpush1.bf16.msra.mxu0 %v4531_v24  ;;  %3871 = vmatpush1.bf16.msra.mxu1 %v4533_v25  ;;  %v4596_v24 = vcombine.high %v538_v17, %v542_v18  ;;  %v4598_v25 = vcombine.high %v539_v19, %v543_v20  ;;  %v595_v17 = vld [vmem:[%s6555_s2 + $0x488] sm:$0xff]  ;;  %v4645_v20 = vcombine.low %v587_v9, %v591_v10 }
 0x117   : > { %3790 = vmatprep.subr.bf16.mxu0 %v4540_v26  ;;  %3872 = vmatprep.subr.bf16.mxu1 %v4542_v27  ;;  %v546_v26 = vld [vmem:[%s6555_s2 + $0x300] sm:$0xff]  ;;  %v599_v18 = vld [vmem:[%s6555_s2 + $0x4a8] sm:$0xff] }
 0x118   : > { %v550_v27 = vld [vmem:[%s6555_s2 + $0x320] sm:$0xff] }
 0x119   : > { %v4603_v39 = vcombine.low %v546_v26, %v550_v27 }
 0x11a   : > { %3791 = vmatpush1.bf16.msra.mxu0 %v4539_v33  ;;  %3873 = vmatpush1.bf16.msra.mxu1 %v4541_v34  ;;  %v4604_v33 = vcombine.high %v546_v26, %v550_v27  ;;  %v4606_v34 = vcombine.high %v547_v59, %v551_v28  ;;  %v603_v26 = vld [vmem:[%s6555_s2 + $0x4c8] sm:$0xff]  ;;  %v4653_v28 = vcombine.low %v595_v17, %v599_v18 }
 0x11b   : > { %3792 = vmatprep.subr.bf16.mxu0 %v4548_v35  ;;  %3874 = vmatprep.subr.bf16.mxu1 %v4550_v36  ;;  %v554_v35 = vld [vmem:[%s6555_s2 + $0x340] sm:$0xff]  ;;  %v607_v27 = vld [vmem:[%s6555_s2 + $0x4e8] sm:$0xff] }
 0x11c   : > { %v558_v36 = vld [vmem:[%s6555_s2 + $0x360] sm:$0xff] }
 0x11d   : > { %v4611_v48 = vcombine.low %v554_v35, %v558_v36 }
 0x11e   : > { %3793 = vmatpush1.bf16.msra.mxu0 %v4547_v41  ;;  %3875 = vmatpush1.bf16.msra.mxu1 %v4549_v42  ;;  %v4612_v41 = vcombine.high %v554_v35, %v558_v36  ;;  %v4614_v42 = vcombine.high %v555_v37, %v559_v38  ;;  %v611_v35 = vld [vmem:[%s6555_s2 + $0x508] sm:$0xff]  ;;  %v4661_v38 = vcombine.low %v603_v26, %v607_v27 }
 0x11f   : > { %3794 = vmatprep.subr.bf16.mxu0 %v4556_v43  ;;  %3876 = vmatprep.subr.bf16.mxu1 %v4558_v44  ;;  %v562_v43 = vld [vmem:[%s6555_s2 + $0x380] sm:$0xff]  ;;  %v615_v36 = vld [vmem:[%s6555_s2 + $0x528] sm:$0xff] }
 0x120   : > { %v566_v44 = vld [vmem:[%s6555_s2 + $0x3a0] sm:$0xff] }
 0x121   : > { %v4619_v57 = vcombine.low %v562_v43, %v566_v44 }
 0x122   : > { %3795 = vmatpush1.bf16.msra.mxu0 %v4555_v50  ;;  %3877 = vmatpush1.bf16.msra.mxu1 %v4557_v51  ;;  %v4620_v50 = vcombine.high %v562_v43, %v566_v44  ;;  %v4622_v51 = vcombine.high %v563_v45, %v567_v47  ;;  %v710_v43 = vsub.s32 0, %v4948_v46  ;;  %v619_v44 = vld [vmem:[%s6555_s2 + $0x548] sm:$0xff] }
 0x123   : > { %3796 = vmatprep.subr.bf16.mxu0 %v4564_v52  ;;  %3878 = vmatprep.subr.bf16.mxu1 %v4566_v53  ;;  %v570_v52 = vld [vmem:[%s6555_s2 + $0x3c0] sm:$0xff]  ;;  %v623_v45 = vld [vmem:[%s6555_s2 + $0x568] sm:$0xff] }
 0x124   : > { %v574_v53 = vld [vmem:[%s6555_s2 + $0x3e0] sm:$0xff] }
 0x125   : > { %v4627_v2 = vcombine.low %v570_v52, %v574_v53 }
 0x126   : > { %3797 = vmatpush1.bf16.msra.mxu0 %v4563_v60  ;;  %3879 = vmatpush1.bf16.msra.mxu1 %v4565_v61  ;;  %v4628_v60 = vcombine.high %v570_v52, %v574_v53  ;;  %v4630_v61 = vcombine.high %v571_v54, %v575_v55  ;;  %v722_v52 = vsub.s32 3, %v4948_v46  ;;  %v4678_v54 = vcombine.high %v619_v44, %v623_v45  ;;  %v626_v55 = vld [vmem:[%s6555_s2 + $0x580] sm:$0xff] }
 0x127   : > { %3798 = vmatprep.subr.bf16.mxu0 %v4572_v62  ;;  %3880 = vmatprep.subr.bf16.mxu1 %v4574_v63  ;;  %v578_v62 = vld [vmem:[%s6555_s2 + $0x400] sm:$0xff] }
 0x128   : > { %v582_v63 = vld [vmem:[%s6555_s2 + $0x420] sm:$0xff] }
 0x129   : > { %v4635_v11 = vcombine.low %v578_v62, %v582_v63 }
 0x12a   : > { %3799 = vmatpush1.bf16.msra.mxu0 %v4571_v5  ;;  %3881 = vmatpush1.bf16.msra.mxu1 %v4573_v6  ;;  %v4636_v5 = vcombine.high %v578_v62, %v582_v63  ;;  %v4638_v6 = vcombine.high %v579_v0, %v583_v1 }
 0x12b   : > { %3800 = vmatprep.subr.bf16.mxu0 %v4580_v7  ;;  %3882 = vmatprep.subr.bf16.mxu1 %v4582_v8  ;;  %v586_v7 = vld [vmem:[%s6555_s2 + $0x440] sm:$0xff] }
 0x12c   : > { %v590_v8 = vld [vmem:[%s6555_s2 + $0x460] sm:$0xff] }
 0x12d   : > { %v4643_v19 = vcombine.low %v586_v7, %v590_v8 }
 0x12e   : > { %3801 = vmatpush1.bf16.msra.mxu0 %v4579_v13  ;;  %3883 = vmatpush1.bf16.msra.mxu1 %v4581_v14  ;;  %v4644_v13 = vcombine.high %v586_v7, %v590_v8  ;;  %v4646_v14 = vcombine.high %v587_v9, %v591_v10  ;;  %v634_v7 = vld [vmem:[%s6555_s2 + $0x5c0] sm:$0xff] }
 0x12f   : > { %3802 = vmatprep.subr.bf16.mxu0 %v4588_v15  ;;  %3884 = vmatprep.subr.bf16.mxu1 %v4590_v16  ;;  %v594_v15 = vld [vmem:[%s6555_s2 + $0x480] sm:$0xff] }
 0x130   : > { %v598_v16 = vld [vmem:[%s6555_s2 + $0x4a0] sm:$0xff] }
 0x131   : > { %v4651_v59 = vcombine.low %v594_v15, %v598_v16  ;;  %v638_v8 = vld [vmem:[%s6555_s2 + $0x5e0] sm:$0xff] }
 0x132   : > { %3803 = vmatpush1.bf16.msra.mxu0 %v4587_v22  ;;  %3885 = vmatpush1.bf16.msra.mxu1 %v4589_v23  ;;  %v4652_v22 = vcombine.high %v594_v15, %v598_v16  ;;  %v4654_v23 = vcombine.high %v595_v17, %v599_v18 }
 0x133   : > { %3804 = vmatprep.subr.bf16.mxu0 %v4596_v24  ;;  %3886 = vmatprep.subr.bf16.mxu1 %v4598_v25  ;;  %v602_v24 = vld [vmem:[%s6555_s2 + $0x4c0] sm:$0xff] }
 0x134   : > { %v606_v25 = vld [vmem:[%s6555_s2 + $0x4e0] sm:$0xff] }
 0x135   : > { %v4659_v37 = vcombine.low %v602_v24, %v606_v25 }
 0x136   : > { %3805 = vmatpush1.bf16.msra.mxu0 %v4595_v30  ;;  %3887 = vmatpush1.bf16.msra.mxu1 %v4597_v31  ;;  %v4660_v30 = vcombine.high %v602_v24, %v606_v25  ;;  %v4662_v31 = vcombine.high %v603_v26, %v607_v27  ;;  %v4692_v25 = vcombine.high %v634_v7, %v638_v8 }
 0x137   : > { %3806 = vmatprep.subr.bf16.mxu0 %v4604_v33  ;;  %3888 = vmatprep.subr.bf16.mxu1 %v4606_v34  ;;  %v610_v33 = vld [vmem:[%s6555_s2 + $0x500] sm:$0xff] }
 0x138   : > { %v614_v34 = vld [vmem:[%s6555_s2 + $0x520] sm:$0xff] }
 0x139   : > { %v4667_v47 = vcombine.low %v610_v33, %v614_v34 }
 0x13a   : > { %3807 = vmatpush1.bf16.msra.mxu0 %v4603_v39  ;;  %3889 = vmatpush1.bf16.msra.mxu1 %v4605_v40  ;;  %v4668_v39 = vcombine.high %v610_v33, %v614_v34  ;;  %v4670_v40 = vcombine.high %v611_v35, %v615_v36  ;;  %v643_v34 = vld [vmem:[%s6555_s2 + $0x608] sm:$0xff] }
 0x13b   : > { %3808 = vmatprep.subr.bf16.mxu0 %v4612_v41  ;;  %3890 = vmatprep.subr.bf16.mxu1 %v4614_v42  ;;  %v618_v41 = vld [vmem:[%s6555_s2 + $0x540] sm:$0xff] }
 0x13c   : > { %v622_v42 = vld [vmem:[%s6555_s2 + $0x560] sm:$0xff] }
 0x13d   : > { %v4676_v53 = vcombine.high %v618_v41, %v622_v42  ;;  %v4675_v0 = vcombine.low %v618_v41, %v622_v42 }
 0x13e   : > { %3809 = vmatpush1.bf16.msra.mxu0 %v4611_v48  ;;  %3891 = vmatpush1.bf16.msra.mxu1 %v4613_v49  ;;  %v5961_v48 = vld [vmem:[%s6556_s3] sm:$0xff]  ;;  %v718_v49 = vsub.s32 2, %v4948_v46 }
 0x13f   : > { %3810 = vmatprep.subr.bf16.mxu0 %v4620_v50  ;;  %3892 = vmatprep.subr.bf16.mxu1 %v4622_v51  ;;  %v714_v50 = vsub.s32 1, %v4948_v46  ;;  %v4669_v51 = vcombine.low %v611_v35, %v615_v36  ;;  %v723_v1 = vrot.slane %v5961_v48, %v722_v52  ;;  %v647_v35 = vld [vmem:[%s6555_s2 + $0x628] sm:$0xff] }
 0x140   : > { %v719_v62 = vrot.slane %v5961_v48, %v718_v49  ;;  %v4702_v42 = vcombine.high %v643_v34, %v647_v35 }
 0x141   : > { %v715_v63 = vrot.slane %v5961_v48, %v714_v50 }
 0x142   : > { %3811 = vmatpush1.bf16.msra.mxu0 %v4619_v57  ;;  %3893 = vmatpush1.bf16.msra.mxu1 %v4621_v58  ;;  %v630_v57 = vld [vmem:[%s6555_s2 + $0x5a0] sm:$0xff]  ;;  %v711_v58 = vrot.slane %v5961_v48, %v710_v43 }
 0x143   : > { %3812 = vmatprep.subr.bf16.mxu0 %v4628_v60  ;;  %3894 = vmatprep.subr.bf16.mxu1 %v4630_v61  ;;  %v627_v60 = vld [vmem:[%s6555_s2 + $0x588] sm:$0xff]  ;;  %v4683_v18 = vcombine.low %v626_v55, %v630_v57 }
 0x144   : > { %v631_v61 = vld [vmem:[%s6555_s2 + $0x5a8] sm:$0xff] }
 0x145   : > { %v4685_v24 = vcombine.low %v627_v60, %v631_v61 }
 0x146   : > { %3813 = vmatpush1.bf16.msra.mxu0 %v4627_v2  ;;  %3895 = vmatpush1.bf16.msra.mxu1 %v4629_v4  ;;  %v4677_v2 = vcombine.low %v619_v44, %v623_v45  ;;  %v4684_v4 = vcombine.high %v626_v55, %v630_v57  ;;  %v650_v44 = vld [vmem:[%s6555_s2 + $0x640] sm:$0xff]  ;;  %v4701_v57 = vcombine.low %v643_v34, %v647_v35  ;;  %v691_v34 = vld [vmem:[%s6555_s2 + $0x788] sm:$0xff] }
 0x147   : > { %3823 = vmatprep.subr.bf16.mxu0 %v4636_v5  ;;  %3905 = vmatprep.subr.bf16.mxu1 %v4638_v6  ;;  %v4686_v6 = vcombine.high %v627_v60, %v631_v61  ;;  %v654_v45 = vld [vmem:[%s6555_s2 + $0x660] sm:$0xff]  ;;  %v695_v35 = vld [vmem:[%s6555_s2 + $0x7a8] sm:$0xff] }
 0x148   : > { %v658_v61 = vld [vmem:[%s6555_s2 + $0x680] sm:$0xff] }
 0x149   : > { %3815 = vmatmul.mubr.bf16.vlgmr.msra.gmra.mrb[8].mxu0 %v5105_v21  ;;  %3897 = vmatmul.mubr.bf16.vlgmr.msra.gmra.mrb[8].mxu1 %v5105_v21 }
 0x14a   : > { %3824 = vmatpush1.bf16.msra.mxu0 %v4635_v11  ;;  %3906 = vmatpush1.bf16.msra.mxu1 %v4637_v12  ;;  %v635_v12 = vld [vmem:[%s6555_s2 + $0x5c8] sm:$0xff] }
 0x14b   : > { %3825 = vmatprep.subr.bf16.mxu0 %v4644_v13  ;;  %3907 = vmatprep.subr.bf16.mxu1 %v4646_v14  ;;  %v639_v13 = vld [vmem:[%s6555_s2 + $0x5e8] sm:$0xff] }
 0x14c   : > { %3855 = vmatprep.mubr.bf16.mxu0 %v5121_v29  ;;  %3937 = vmatprep.mubr.bf16.mxu1 %v5121_v29 }
 0x14e   : > { %3826 = vmatpush1.bf16.msra.mxu0 %v4643_v19  ;;  %3908 = vmatpush1.bf16.msra.mxu1 %v4645_v20 }
 0x14f   : > { %3827 = vmatprep.subr.bf16.mxu0 %v4652_v22  ;;  %3909 = vmatprep.subr.bf16.mxu1 %v4654_v23 }
 0x152   : > { %3828 = vmatpush1.bf16.msra.mxu0 %v4651_v59  ;;  %3910 = vmatpush1.bf16.msra.mxu1 %v4653_v28  ;;  %v4694_v28 = vcombine.high %v635_v12, %v639_v13 }
 0x153   : > { %3829 = vmatprep.subr.bf16.mxu0 %v4660_v30  ;;  %3911 = vmatprep.subr.bf16.mxu1 %v4662_v31  ;;  %v642_v30 = vld [vmem:[%s6555_s2 + $0x600] sm:$0xff] }
 0x154   : > { %v646_v31 = vld [vmem:[%s6555_s2 + $0x620] sm:$0xff] }
 0x156   : > { %3830 = vmatpush1.bf16.msra.mxu0 %v4659_v37  ;;  %3912 = vmatpush1.bf16.msra.mxu1 %v4661_v38  ;;  %v4691_v37 = vcombine.low %v634_v7, %v638_v8  ;;  %v670_v7 = vld [vmem:[%s6555_s2 + $0x6e0] sm:$0xff]  ;;  %v667_v8 = vld [vmem:[%s6555_s2 + $0x6c8] sm:$0xff] }
 0x157   : > { %3831 = vmatprep.subr.bf16.mxu0 %v4668_v39  ;;  %3913 = vmatprep.subr.bf16.mxu1 %v4670_v40  ;;  %v4693_v39 = vcombine.low %v635_v12, %v639_v13  ;;  %v4700_v40 = vcombine.high %v642_v30, %v646_v31 }
 0x15a   : > { %3832 = vmatpush1.bf16.msra.mxu0 %v4667_v47  ;;  %3914 = vmatpush1.bf16.msra.mxu1 %v4669_v51  ;;  %v651_v51 = vld [vmem:[%s6555_s2 + $0x648] sm:$0xff] }
 0x15b   : > { %3833 = vmatprep.subr.bf16.mxu0 %v4676_v53  ;;  %3915 = vmatprep.subr.bf16.mxu1 %v4678_v54  ;;  %v655_v53 = vld [vmem:[%s6555_s2 + $0x668] sm:$0xff]  ;;  %v4699_v54 = vcombine.low %v642_v30, %v646_v31  ;;  %v690_v31 = vld [vmem:[%s6555_s2 + $0x780] sm:$0xff] }
 0x15c   : > { %v2132_v5 = vpop.f32.mrb[0].mxu0  ;;  %v2214_v10 = vpop.f32.mrb[0].mxu1  ;;  %v4710_v60 = vcombine.high %v651_v51, %v655_v53 }
 0x15d   : > { %v4770_v9 = vadd.f32 %v2132_v5, %v711_v58  ;;  %v2134_v11 = vpop.f32.mrb[1].mxu0  ;;  %v4772_v14 = vadd.f32 %v2214_v10, %v719_v62  ;;  %v2216_v16 = vpop.f32.mrb[1].mxu1  ;;  %v4708_v58 = vcombine.high %v650_v44, %v654_v45  ;;  %v662_v62 = vld [vmem:[%s6555_s2 + $0x6a0] sm:$0xff] }
 0x15e   : > { %v4771_v15 = vadd.f32 %v2134_v11, %v715_v63  ;;  %v2136_v17 = vpop.f32.mrb[2].mxu0  ;;  %3834 = vmatpush1.bf16.msra.mxu0 %v4675_v0  ;;  %v4773_v20 = vadd.f32 %v2216_v16, %v723_v1  ;;  %v2218_v22 = vpop.f32.mrb[2].mxu1  ;;  %3916 = vmatpush1.bf16.msra.mxu1 %v4677_v2  ;;  %v659_v63 = vld [vmem:[%s6555_s2 + $0x688] sm:$0xff]  ;;  %v4707_v1 = vcombine.low %v650_v44, %v654_v45 }
 0x15f   : > { %v2385_v19 = vmax.f32 %v4770_v9, 0.0  ;;  %v2137_v23 = vpop.f32.mrb[3].mxu0  ;;  %3835 = vmatprep.subr.bf16.mxu0 %v4684_v4  ;;  %v2387_v26 = vmax.f32 %v4772_v14, 0.0  ;;  %v2219_v59 = vpop.f32.mrb[3].mxu1  ;;  %3917 = vmatprep.subr.bf16.mxu1 %v4686_v6  ;;  %v663_v0 = vld [vmem:[%s6555_s2 + $0x6a8] sm:$0xff]  ;;  %v4709_v2 = vcombine.low %v651_v51, %v655_v53  ;;  %v4716_v4 = vcombine.high %v658_v61, %v662_v62  ;;  %v666_v6 = vld [vmem:[%s6555_s2 + $0x6c0] sm:$0xff] }
 0x160   : > { %v2386_v27 = vmax.f32 %v4771_v15, 0.0  ;;  %v2388_v33 = vmax.f32 %v4773_v20, 0.0  ;;  %v4718_v5 = vcombine.high %v659_v63, %v663_v0  ;;  %v671_v9 = vld [vmem:[%s6555_s2 + $0x6e8] sm:$0xff]  ;;  %v4715_v10 = vcombine.low %v658_v61, %v662_v62  ;;  %v674_v14 = vld [vmem:[%s6555_s2 + $0x700] sm:$0xff] }
 0x161   : > { %v4717_v11 = vcombine.low %v659_v63, %v663_v0  ;;  %v4724_v12 = vcombine.high %v666_v6, %v670_v7  ;;  %v4726_v13 = vcombine.high %v667_v8, %v671_v9  ;;  %v678_v15 = vld [vmem:[%s6555_s2 + $0x720] sm:$0xff]  ;;  %v675_v16 = vld [vmem:[%s6555_s2 + $0x708] sm:$0xff] }
 0x162   : > { %v4503_v36 = vpack.c.bf16 %v2386_v27, %v2385_v19  ;;  %3836 = vmatpush1.bf16.msra.mxu0 %v4683_v18  ;;  %v4504_v38 = vpack.c.bf16 %v2388_v33, %v2387_v26  ;;  %3918 = vmatpush1.bf16.msra.mxu1 %v4685_v24  ;;  %v679_v17 = vld [vmem:[%s6555_s2 + $0x728] sm:$0xff]  ;;  %v4723_v18 = vcombine.low %v666_v6, %v670_v7  ;;  %v682_v23 = vld [vmem:[%s6555_s2 + $0x740] sm:$0xff] }
 0x163   : > { %3837 = vmatprep.subr.bf16.mxu0 %v4692_v25  ;;  %3919 = vmatprep.subr.bf16.mxu1 %v4694_v28  ;;  %v4725_v19 = vcombine.low %v667_v8, %v671_v9  ;;  %v4732_v20 = vcombine.high %v674_v14, %v678_v15  ;;  %v4734_v22 = vcombine.high %v675_v16, %v679_v17  ;;  %v686_v24 = vld [vmem:[%s6555_s2 + $0x760] sm:$0xff]  ;;  %v683_v25 = vld [vmem:[%s6555_s2 + $0x748] sm:$0xff] }
 0x164   : > { %v2419_v41 = vrot.slane %v4503_v36, %v4966_v56  ;;  %v2426_v47 = vrot.slane %v4504_v38, %v4966_v56  ;;  %v687_v26 = vld [vmem:[%s6555_s2 + $0x768] sm:$0xff]  ;;  %v4731_v27 = vcombine.low %v674_v14, %v678_v15  ;;  %v4733_v59 = vcombine.low %v675_v16, %v679_v17  ;;  %v694_v33 = vld [vmem:[%s6555_s2 + $0x7a0] sm:$0xff] }
 0x165   : > { %v4740_v28 = vcombine.high %v682_v23, %v686_v24  ;;  %v4742_v30 = vcombine.high %v683_v25, %v687_v26  ;;  %v4739_v36 = vcombine.low %v682_v23, %v686_v24  ;;  %v4748_v38 = vcombine.high %v690_v31, %v694_v33  ;;  %v703_v44 = vld [vmem:[%s6555_s2 + $0x7e8] sm:$0xff] }
 0x166   : > { %3838 = vmatpush1.bf16.msra.mxu0 %v4691_v37  ;;  %v6028_v55 = vcombine.low %v2419_v41, %v2426_v47  ;;  %3920 = vmatpush1.bf16.msra.mxu1 %v4693_v39  ;;  %v4741_v37 = vcombine.low %v683_v25, %v687_v26  ;;  %v4750_v39 = vcombine.high %v691_v34, %v695_v35  ;;  %v702_v41 = vld [vmem:[%s6555_s2 + $0x7e0] sm:$0xff] }
 0x167   : > { %3839 = vmatprep.subr.bf16.mxu0 %v4700_v40  ;;  %3921 = vmatprep.subr.bf16.mxu1 %v4702_v42  ;;  %v698_v40 = vld [vmem:[%s6555_s2 + $0x7c0] sm:$0xff]  ;;  %v699_v42 = vld [vmem:[%s6555_s2 + $0x7c8] sm:$0xff]  ;;  %v4747_v45 = vcombine.low %v690_v31, %v694_v33  ;;  %v4749_v47 = vcombine.low %v691_v34, %v695_v35  ;;  %v492_v35 = vld [vmem:[%s6555_s2 + $0x150] sm:$0xff] }
 0x168   : > { %v4756_v51 = vcombine.high %v698_v40, %v702_v41  ;;  %v4758_v53 = vcombine.high %v699_v42, %v703_v44  ;;  %v4755_v61 = vcombine.low %v698_v40, %v702_v41  ;;  %v4757_v62 = vcombine.low %v699_v42, %v703_v44  ;;  %v500_v44 = vld [vmem:[%s6555_s2 + $0x190] sm:$0xff] }
 0x16a   : > { %3840 = vmatpush1.bf16.msra.mxu0 %v4699_v54  ;;  %3922 = vmatpush1.bf16.msra.mxu1 %v4701_v57  ;;  %v452_v54 = vld [vmem:[%s6555_s2 + $0x10] sm:$0xff] }
 0x16b   : > { %3841 = vmatprep.subr.bf16.mxu0 %v4708_v58  ;;  %3923 = vmatprep.subr.bf16.mxu1 %v4710_v60  ;;  %v456_v57 = vld [vmem:[%s6555_s2 + $0x30] sm:$0xff]  ;;  %v453_v58 = vld [vmem:[%s6555_s2 + $0x18] sm:$0xff] }
 0x16c   : > { %v457_v60 = vld [vmem:[%s6555_s2 + $0x38] sm:$0xff]  ;;  %v4512_v63 = vcombine.high %v452_v54, %v456_v57  ;;  %v4511_v6 = vcombine.low %v452_v54, %v456_v57 }
 0x16d   : > { %v4514_v0 = vcombine.high %v453_v58, %v457_v60  ;;  %v4513_v7 = vcombine.low %v453_v58, %v457_v60  ;;  %v508_v60 = vld [vmem:[%s6555_s2 + $0x1d0] sm:$0xff] }
 0x16e   : > { %3842 = vmatpush1.bf16.msra.mxu0 %v4707_v1  ;;  %3924 = vmatpush1.bf16.msra.mxu1 %v4709_v2  ;;  %v460_v1 = vld [vmem:[%s6555_s2 + $0x50] sm:$0xff] }
 0x16f   : > { %3843 = vmatprep.subr.bf16.mxu0 %v4716_v4  ;;  %3925 = vmatprep.subr.bf16.mxu1 %v4718_v5  ;;  %v464_v2 = vld [vmem:[%s6555_s2 + $0x70] sm:$0xff]  ;;  %v461_v4 = vld [vmem:[%s6555_s2 + $0x58] sm:$0xff] }
 0x170   : > { %v465_v5 = vld [vmem:[%s6555_s2 + $0x78] sm:$0xff]  ;;  %v4520_v8 = vcombine.high %v460_v1, %v464_v2  ;;  %v4519_v14 = vcombine.low %v460_v1, %v464_v2 }
 0x171   : > { %v4522_v9 = vcombine.high %v461_v4, %v465_v5  ;;  %v4521_v15 = vcombine.low %v461_v4, %v465_v5  ;;  %v516_v5 = vld [vmem:[%s6555_s2 + $0x210] sm:$0xff] }
 0x172   : > { %3844 = vmatpush1.bf16.msra.mxu0 %v4715_v10  ;;  %3926 = vmatpush1.bf16.msra.mxu1 %v4717_v11  ;;  %v468_v10 = vld [vmem:[%s6555_s2 + $0x90] sm:$0xff] }
 0x173   : > { %3845 = vmatprep.subr.bf16.mxu0 %v4724_v12  ;;  %3927 = vmatprep.subr.bf16.mxu1 %v4726_v13  ;;  %v472_v11 = vld [vmem:[%s6555_s2 + $0xb0] sm:$0xff]  ;;  %v469_v12 = vld [vmem:[%s6555_s2 + $0x98] sm:$0xff] }
 0x174   : > { %v473_v13 = vld [vmem:[%s6555_s2 + $0xb8] sm:$0xff]  ;;  %v4528_v16 = vcombine.high %v468_v10, %v472_v11  ;;  %v4527_v23 = vcombine.low %v468_v10, %v472_v11 }
 0x175   : > { %v4530_v17 = vcombine.high %v469_v12, %v473_v13  ;;  %v4529_v24 = vcombine.low %v469_v12, %v473_v13  ;;  %v524_v13 = vld [vmem:[%s6555_s2 + $0x250] sm:$0xff] }
 0x176   : > { %3846 = vmatpush1.bf16.msra.mxu0 %v4723_v18  ;;  %3928 = vmatpush1.bf16.msra.mxu1 %v4725_v19  ;;  %v476_v18 = vld [vmem:[%s6555_s2 + $0xd0] sm:$0xff] }
 0x177   : > { %3847 = vmatprep.subr.bf16.mxu0 %v4732_v20  ;;  %3929 = vmatprep.subr.bf16.mxu1 %v4734_v22  ;;  %v480_v19 = vld [vmem:[%s6555_s2 + $0xf0] sm:$0xff]  ;;  %v477_v20 = vld [vmem:[%s6555_s2 + $0xd8] sm:$0xff] }
 0x178   : > { %v481_v22 = vld [vmem:[%s6555_s2 + $0xf8] sm:$0xff]  ;;  %v4536_v25 = vcombine.high %v476_v18, %v480_v19 }
 0x179   : > { %v4538_v26 = vcombine.high %v477_v20, %v481_v22  ;;  %v4537_v31 = vcombine.low %v477_v20, %v481_v22  ;;  %v532_v22 = vld [vmem:[%s6555_s2 + $0x290] sm:$0xff] }
 0x17a   : > { %3848 = vmatpush1.bf16.msra.mxu0 %v4731_v27  ;;  %3930 = vmatpush1.bf16.msra.mxu1 %v4733_v59  ;;  %v484_v27 = vld [vmem:[%s6555_s2 + $0x110] sm:$0xff] }
 0x17b   : > { %3849 = vmatprep.subr.bf16.mxu0 %v4740_v28  ;;  %3931 = vmatprep.subr.bf16.mxu1 %v4742_v30  ;;  %v488_v59 = vld [vmem:[%s6555_s2 + $0x130] sm:$0xff]  ;;  %v489_v28 = vld [vmem:[%s6555_s2 + $0x138] sm:$0xff]  ;;  %v4535_v30 = vcombine.low %v476_v18, %v480_v19 }
 0x17c   : > { %v4544_v33 = vcombine.high %v484_v27, %v488_v59 }
 0x17e   : > { %3850 = vmatpush1.bf16.msra.mxu0 %v4739_v36  ;;  %3932 = vmatpush1.bf16.msra.mxu1 %v4741_v37  ;;  %v496_v36 = vld [vmem:[%s6555_s2 + $0x170] sm:$0xff]  ;;  %v493_v37 = vld [vmem:[%s6555_s2 + $0x158] sm:$0xff] }
 0x17f   : > { %3851 = vmatprep.subr.bf16.mxu0 %v4748_v38  ;;  %3933 = vmatprep.subr.bf16.mxu1 %v4750_v39  ;;  %v497_v38 = vld [vmem:[%s6555_s2 + $0x178] sm:$0xff]  ;;  %v4543_v39 = vcombine.low %v484_v27, %v488_v59  ;;  %v4552_v41 = vcombine.high %v492_v35, %v496_v36 }
 0x180   : > { %v4554_v42 = vcombine.high %v493_v37, %v497_v38  ;;  %v4553_v54 = vcombine.low %v493_v37, %v497_v38  ;;  %v548_v38 = vld [vmem:[%s6555_s2 + $0x310] sm:$0xff] }
 0x182   : > { %3852 = vmatpush1.bf16.msra.mxu0 %v4747_v45  ;;  %3934 = vmatpush1.bf16.msra.mxu1 %v4749_v47  ;;  %v504_v45 = vld [vmem:[%s6555_s2 + $0x1b0] sm:$0xff]  ;;  %v501_v47 = vld [vmem:[%s6555_s2 + $0x198] sm:$0xff] }
 0x183   : > { %3853 = vmatprep.subr.bf16.mxu0 %v4756_v51  ;;  %3935 = vmatprep.subr.bf16.mxu1 %v4758_v53  ;;  %v505_v51 = vld [vmem:[%s6555_s2 + $0x1b8] sm:$0xff]  ;;  %v4551_v53 = vcombine.low %v492_v35, %v496_v36  ;;  %v4560_v57 = vcombine.high %v500_v44, %v504_v45 }
 0x184   : > { %v4562_v58 = vcombine.high %v501_v47, %v505_v51  ;;  %v4561_v1 = vcombine.low %v501_v47, %v505_v51  ;;  %v556_v51 = vld [vmem:[%s6555_s2 + $0x350] sm:$0xff] }
 0x186   : > { %3854 = vmatpush1.bf16.msra.mxu0 %v4755_v61  ;;  %3936 = vmatpush1.bf16.msra.mxu1 %v4757_v62  ;;  %v512_v61 = vld [vmem:[%s6555_s2 + $0x1f0] sm:$0xff]  ;;  %v509_v62 = vld [vmem:[%s6555_s2 + $0x1d8] sm:$0xff] }
 0x187   : > { %3946 = vmatprep.subr.bf16.mxu0 %v4512_v63  ;;  %4028 = vmatprep.subr.bf16.mxu1 %v4514_v0  ;;  %v513_v63 = vld [vmem:[%s6555_s2 + $0x1f8] sm:$0xff]  ;;  %v4559_v0 = vcombine.low %v500_v44, %v504_v45  ;;  %v4568_v2 = vcombine.high %v508_v60, %v512_v61 }
 0x188   : > { %v4570_v4 = vcombine.high %v509_v62, %v513_v63  ;;  %v4569_v10 = vcombine.low %v509_v62, %v513_v63  ;;  %v564_v63 = vld [vmem:[%s6555_s2 + $0x390] sm:$0xff] }
 0x189   : > { %3856 = vmatmul.mubr.bf16.vlgmr.msra.gmra.mrb[8].mxu0 %v5309_v32  ;;  %3938 = vmatmul.mubr.bf16.vlgmr.msra.gmra.mrb[8].mxu1 %v5309_v32 }
 0x18a   : > { %3947 = vmatpush1.bf16.msra.mxu0 %v4511_v6  ;;  %4029 = vmatpush1.bf16.msra.mxu1 %v4513_v7  ;;  %v520_v6 = vld [vmem:[%s6555_s2 + $0x230] sm:$0xff]  ;;  %v517_v7 = vld [vmem:[%s6555_s2 + $0x218] sm:$0xff] }
 0x18b   : > { %3948 = vmatprep.subr.bf16.mxu0 %v4520_v8  ;;  %4030 = vmatprep.subr.bf16.mxu1 %v4522_v9  ;;  %v521_v8 = vld [vmem:[%s6555_s2 + $0x238] sm:$0xff]  ;;  %v4567_v9 = vcombine.low %v508_v60, %v512_v61  ;;  %v4576_v11 = vcombine.high %v516_v5, %v520_v6 }
 0x18c   : > { %3978 = vmatprep.mubr.bf16.mxu0 %v4985_v3  ;;  %4060 = vmatprep.mubr.bf16.mxu1 %v4985_v3  ;;  %v485_v3 = vld [vmem:[%s6555_s2 + $0x118] sm:$0xff]  ;;  %v4578_v12 = vcombine.high %v517_v7, %v521_v8  ;;  %v4577_v18 = vcombine.low %v517_v7, %v521_v8  ;;  %v572_v8 = vld [vmem:[%s6555_s2 + $0x3d0] sm:$0xff] }
 0x18d   : > { %v4546_v34 = vcombine.high %v485_v3, %v489_v28  ;;  %v4545_v40 = vcombine.low %v485_v3, %v489_v28  ;;  %v540_v28 = vld [vmem:[%s6555_s2 + $0x2d0] sm:$0xff] }
 0x18e   : > { %3949 = vmatpush1.bf16.msra.mxu0 %v4519_v14  ;;  %4031 = vmatpush1.bf16.msra.mxu1 %v4521_v15  ;;  %v528_v14 = vld [vmem:[%s6555_s2 + $0x270] sm:$0xff]  ;;  %v525_v15 = vld [vmem:[%s6555_s2 + $0x258] sm:$0xff] }
 0x18f   : > { %3950 = vmatprep.subr.bf16.mxu0 %v4528_v16  ;;  %4032 = vmatprep.subr.bf16.mxu1 %v4530_v17  ;;  %v529_v16 = vld [vmem:[%s6555_s2 + $0x278] sm:$0xff]  ;;  %v4575_v17 = vcombine.low %v516_v5, %v520_v6  ;;  %v4584_v19 = vcombine.high %v524_v13, %v528_v14 }
 0x190   : > { %v4586_v20 = vcombine.high %v525_v15, %v529_v16  ;;  %v4585_v27 = vcombine.low %v525_v15, %v529_v16  ;;  %v580_v16 = vld [vmem:[%s6555_s2 + $0x410] sm:$0xff] }
 0x192   : > { %3951 = vmatpush1.bf16.msra.mxu0 %v4527_v23  ;;  %4033 = vmatpush1.bf16.msra.mxu1 %v4529_v24  ;;  %v536_v23 = vld [vmem:[%s6555_s2 + $0x2b0] sm:$0xff]  ;;  %v533_v24 = vld [vmem:[%s6555_s2 + $0x298] sm:$0xff] }
 0x193   : > { %3952 = vmatprep.subr.bf16.mxu0 %v4536_v25  ;;  %4034 = vmatprep.subr.bf16.mxu1 %v4538_v26  ;;  %v537_v25 = vld [vmem:[%s6555_s2 + $0x2b8] sm:$0xff]  ;;  %v4583_v26 = vcombine.low %v524_v13, %v528_v14  ;;  %v4592_v59 = vcombine.high %v532_v22, %v536_v23 }
 0x194   : > { %v4594_v3 = vcombine.high %v533_v24, %v537_v25  ;;  %v4593_v35 = vcombine.low %v533_v24, %v537_v25  ;;  %v588_v25 = vld [vmem:[%s6555_s2 + $0x450] sm:$0xff] }
 0x196   : > { %3953 = vmatpush1.bf16.msra.mxu0 %v4535_v30  ;;  %4035 = vmatpush1.bf16.msra.mxu1 %v4537_v31  ;;  %v544_v30 = vld [vmem:[%s6555_s2 + $0x2f0] sm:$0xff]  ;;  %v541_v31 = vld [vmem:[%s6555_s2 + $0x2d8] sm:$0xff] }
 0x197   : > { %3954 = vmatprep.subr.bf16.mxu0 %v4544_v33  ;;  %4036 = vmatprep.subr.bf16.mxu1 %v4546_v34  ;;  %v545_v33 = vld [vmem:[%s6555_s2 + $0x2f8] sm:$0xff]  ;;  %v4591_v34 = vcombine.low %v532_v22, %v536_v23  ;;  %v4600_v36 = vcombine.high %v540_v28, %v544_v30 }
 0x198   : > { %v4602_v37 = vcombine.high %v541_v31, %v545_v33  ;;  %v4601_v44 = vcombine.low %v541_v31, %v545_v33  ;;  %v596_v33 = vld [vmem:[%s6555_s2 + $0x490] sm:$0xff] }
 0x19a   : > { %3955 = vmatpush1.bf16.msra.mxu0 %v4543_v39  ;;  %4037 = vmatpush1.bf16.msra.mxu1 %v4545_v40  ;;  %v552_v39 = vld [vmem:[%s6555_s2 + $0x330] sm:$0xff]  ;;  %v549_v40 = vld [vmem:[%s6555_s2 + $0x318] sm:$0xff] }
 0x19b   : > { %3956 = vmatprep.subr.bf16.mxu0 %v4552_v41  ;;  %4038 = vmatprep.subr.bf16.mxu1 %v4554_v42  ;;  %v553_v41 = vld [vmem:[%s6555_s2 + $0x338] sm:$0xff]  ;;  %v4599_v42 = vcombine.low %v540_v28, %v544_v30  ;;  %v4608_v45 = vcombine.high %v548_v38, %v552_v39 }
 0x19c   : > { %v4610_v47 = vcombine.high %v549_v40, %v553_v41  ;;  %v4609_v60 = vcombine.low %v549_v40, %v553_v41  ;;  %v604_v41 = vld [vmem:[%s6555_s2 + $0x4d0] sm:$0xff] }
 0x19e   : > { %3957 = vmatpush1.bf16.msra.mxu0 %v4551_v53  ;;  %4039 = vmatpush1.bf16.msra.mxu1 %v4553_v54  ;;  %v560_v53 = vld [vmem:[%s6555_s2 + $0x370] sm:$0xff]  ;;  %v557_v54 = vld [vmem:[%s6555_s2 + $0x358] sm:$0xff] }
 0x19f   : > { %3958 = vmatprep.subr.bf16.mxu0 %v4560_v57  ;;  %4040 = vmatprep.subr.bf16.mxu1 %v4562_v58  ;;  %v561_v57 = vld [vmem:[%s6555_s2 + $0x378] sm:$0xff]  ;;  %v4607_v58 = vcombine.low %v548_v38, %v552_v39  ;;  %v4616_v61 = vcombine.high %v556_v51, %v560_v53 }
 0x1a0   : > { %v4618_v62 = vcombine.high %v557_v54, %v561_v57  ;;  %v4617_v5 = vcombine.low %v557_v54, %v561_v57  ;;  %v612_v54 = vld [vmem:[%s6555_s2 + $0x510] sm:$0xff] }
 0x1a1   : > { %v616_v57 = vld [vmem:[%s6555_s2 + $0x530] sm:$0xff] }
 0x1a2   : > { %3959 = vmatpush1.bf16.msra.mxu0 %v4559_v0  ;;  %4041 = vmatpush1.bf16.msra.mxu1 %v4561_v1  ;;  %v568_v0 = vld [vmem:[%s6555_s2 + $0x3b0] sm:$0xff]  ;;  %v565_v1 = vld [vmem:[%s6555_s2 + $0x398] sm:$0xff] }
 0x1a3   : > { %3960 = vmatprep.subr.bf16.mxu0 %v4568_v2  ;;  %4042 = vmatprep.subr.bf16.mxu1 %v4570_v4  ;;  %v569_v2 = vld [vmem:[%s6555_s2 + $0x3b8] sm:$0xff]  ;;  %v4615_v4 = vcombine.low %v556_v51, %v560_v53  ;;  %v4624_v6 = vcombine.high %v564_v63, %v568_v0 }
 0x1a4   : > { %v4626_v7 = vcombine.high %v565_v1, %v569_v2  ;;  %v4625_v13 = vcombine.low %v565_v1, %v569_v2  ;;  %v624_v1 = vld [vmem:[%s6555_s2 + $0x570] sm:$0xff]  ;;  %v726_v2 = vsub.s32 4, %v4948_v46 }
 0x1a6   : > { %3961 = vmatpush1.bf16.msra.mxu0 %v4567_v9  ;;  %4043 = vmatpush1.bf16.msra.mxu1 %v4569_v10  ;;  %v576_v9 = vld [vmem:[%s6555_s2 + $0x3f0] sm:$0xff]  ;;  %v573_v10 = vld [vmem:[%s6555_s2 + $0x3d8] sm:$0xff] }
 0x1a7   : > { %3962 = vmatprep.subr.bf16.mxu0 %v4576_v11  ;;  %4044 = vmatprep.subr.bf16.mxu1 %v4578_v12  ;;  %v577_v11 = vld [vmem:[%s6555_s2 + $0x3f8] sm:$0xff]  ;;  %v4623_v12 = vcombine.low %v564_v63, %v568_v0  ;;  %v4632_v14 = vcombine.high %v572_v8, %v576_v9  ;;  %v620_v0 = vld [vmem:[%s6555_s2 + $0x550] sm:$0xff] }
 0x1a8   : > { %v4634_v15 = vcombine.high %v573_v10, %v577_v11  ;;  %v4633_v22 = vcombine.low %v573_v10, %v577_v11  ;;  %v738_v10 = vsub.s32 7, %v4948_v46  ;;  %v4680_v11 = vcombine.high %v620_v0, %v624_v1 }
 0x1aa   : > { %3963 = vmatpush1.bf16.msra.mxu0 %v4575_v17  ;;  %4045 = vmatpush1.bf16.msra.mxu1 %v4577_v18  ;;  %v584_v17 = vld [vmem:[%s6555_s2 + $0x430] sm:$0xff]  ;;  %v581_v18 = vld [vmem:[%s6555_s2 + $0x418] sm:$0xff] }
 0x1ab   : > { %3964 = vmatprep.subr.bf16.mxu0 %v4584_v19  ;;  %4046 = vmatprep.subr.bf16.mxu1 %v4586_v20  ;;  %v585_v19 = vld [vmem:[%s6555_s2 + $0x438] sm:$0xff]  ;;  %v4631_v20 = vcombine.low %v572_v8, %v576_v9  ;;  %v4640_v23 = vcombine.high %v580_v16, %v584_v17  ;;  %v730_v8 = vsub.s32 5, %v4948_v46 }
 0x1ac   : > { %v4642_v24 = vcombine.high %v581_v18, %v585_v19  ;;  %v4641_v28 = vcombine.low %v581_v18, %v585_v19 }
 0x1ad   : > { %v731_v19 = vrot.slane %v5961_v48, %v730_v8 }
 0x1ae   : > { %3965 = vmatpush1.bf16.msra.mxu0 %v4583_v26  ;;  %4047 = vmatpush1.bf16.msra.mxu1 %v4585_v27  ;;  %v592_v26 = vld [vmem:[%s6555_s2 + $0x470] sm:$0xff]  ;;  %v589_v27 = vld [vmem:[%s6555_s2 + $0x458] sm:$0xff] }
 0x1af   : > { %3966 = vmatprep.subr.bf16.mxu0 %v4592_v59  ;;  %4048 = vmatprep.subr.bf16.mxu1 %v4594_v3  ;;  %v593_v59 = vld [vmem:[%s6555_s2 + $0x478] sm:$0xff]  ;;  %v4639_v3 = vcombine.low %v580_v16, %v584_v17  ;;  %v4648_v30 = vcombine.high %v588_v25, %v592_v26 }
 0x1b0   : > { %v4650_v31 = vcombine.high %v589_v27, %v593_v59  ;;  %v4649_v38 = vcombine.low %v589_v27, %v593_v59  ;;  %v629_v16 = vld [vmem:[%s6555_s2 + $0x598] sm:$0xff]  ;;  %v636_v27 = vld [vmem:[%s6555_s2 + $0x5d0] sm:$0xff] }
 0x1b1   : > { %v633_v17 = vld [vmem:[%s6555_s2 + $0x5b8] sm:$0xff]  ;;  %v640_v59 = vld [vmem:[%s6555_s2 + $0x5f0] sm:$0xff] }
 0x1b2   : > { %3967 = vmatpush1.bf16.msra.mxu0 %v4591_v34  ;;  %4049 = vmatpush1.bf16.msra.mxu1 %v4593_v35  ;;  %v600_v34 = vld [vmem:[%s6555_s2 + $0x4b0] sm:$0xff]  ;;  %v597_v35 = vld [vmem:[%s6555_s2 + $0x498] sm:$0xff] }
 0x1b3   : > { %3968 = vmatprep.subr.bf16.mxu0 %v4600_v36  ;;  %4050 = vmatprep.subr.bf16.mxu1 %v4602_v37  ;;  %v601_v36 = vld [vmem:[%s6555_s2 + $0x4b8] sm:$0xff]  ;;  %v4647_v37 = vcombine.low %v588_v25, %v592_v26  ;;  %v4656_v39 = vcombine.high %v596_v33, %v600_v34  ;;  %v4690_v26 = vcombine.high %v629_v16, %v633_v17 }
 0x1b4   : > { %v4658_v40 = vcombine.high %v597_v35, %v601_v36 }
 0x1b6   : > { %3969 = vmatpush1.bf16.msra.mxu0 %v4599_v42  ;;  %4051 = vmatpush1.bf16.msra.mxu1 %v4601_v44  ;;  %v608_v42 = vld [vmem:[%s6555_s2 + $0x4f0] sm:$0xff]  ;;  %v609_v44 = vld [vmem:[%s6555_s2 + $0x4f8] sm:$0xff] }
 0x1b7   : > { %3970 = vmatprep.subr.bf16.mxu0 %v4608_v45  ;;  %4052 = vmatprep.subr.bf16.mxu1 %v4610_v47  ;;  %v4655_v45 = vcombine.low %v596_v33, %v600_v34  ;;  %v4657_v47 = vcombine.low %v597_v35, %v601_v36  ;;  %v4664_v51 = vcombine.high %v604_v41, %v608_v42 }
 0x1ba   : > { %3971 = vmatpush1.bf16.msra.mxu0 %v4607_v58  ;;  %4053 = vmatpush1.bf16.msra.mxu1 %v4609_v60  ;;  %v617_v58 = vld [vmem:[%s6555_s2 + $0x538] sm:$0xff]  ;;  %v4663_v60 = vcombine.low %v604_v41, %v608_v42  ;;  %v4689_v42 = vcombine.low %v629_v16, %v633_v17 }
 0x1bb   : > { %3972 = vmatprep.subr.bf16.mxu0 %v4616_v61  ;;  %4054 = vmatprep.subr.bf16.mxu1 %v4618_v62  ;;  %v4672_v62 = vcombine.high %v612_v54, %v616_v57 }
 0x1be   : > { %3973 = vmatpush1.bf16.msra.mxu0 %v4615_v4  ;;  %4055 = vmatpush1.bf16.msra.mxu1 %v4617_v5  ;;  %v621_v4 = vld [vmem:[%s6555_s2 + $0x558] sm:$0xff] }
 0x1bf   : > { %3974 = vmatprep.subr.bf16.mxu0 %v4624_v6  ;;  %4056 = vmatprep.subr.bf16.mxu1 %v4626_v7  ;;  %v625_v5 = vld [vmem:[%s6555_s2 + $0x578] sm:$0xff]  ;;  %v4671_v6 = vcombine.low %v612_v54, %v616_v57  ;;  %v734_v7 = vsub.s32 6, %v4948_v46  ;;  %v648_v54 = vld [vmem:[%s6555_s2 + $0x630] sm:$0xff] }
 0x1c1   : > { %v735_v18 = vrot.slane %v5961_v48, %v734_v7 }
 0x1c2   : > { %3975 = vmatpush1.bf16.msra.mxu0 %v4623_v12  ;;  %4057 = vmatpush1.bf16.msra.mxu1 %v4625_v13  ;;  %v4682_v12 = vcombine.high %v621_v4, %v625_v5  ;;  %v628_v13 = vld [vmem:[%s6555_s2 + $0x590] sm:$0xff] }
 0x1c3   : > { %3976 = vmatprep.subr.bf16.mxu0 %v4632_v14  ;;  %4058 = vmatprep.subr.bf16.mxu1 %v4634_v15  ;;  %v632_v14 = vld [vmem:[%s6555_s2 + $0x5b0] sm:$0xff]  ;;  %v727_v15 = vrot.slane %v5961_v48, %v726_v2 }
 0x1c6   : > { %3977 = vmatpush1.bf16.msra.mxu0 %v4631_v20  ;;  %4059 = vmatpush1.bf16.msra.mxu1 %v4633_v22  ;;  %v4679_v20 = vcombine.low %v620_v0, %v624_v1  ;;  %v739_v22 = vrot.slane %v5961_v48, %v738_v10  ;;  %v637_v48 = vld [vmem:[%s6555_s2 + $0x5d8] sm:$0xff] }
 0x1c7   : > { %3987 = vmatprep.subr.bf16.mxu0 %v4640_v23  ;;  %4069 = vmatprep.subr.bf16.mxu1 %v4642_v24  ;;  %v4681_v23 = vcombine.low %v621_v4, %v625_v5  ;;  %v4688_v24 = vcombine.high %v628_v13, %v632_v14  ;;  %v652_v5 = vld [vmem:[%s6555_s2 + $0x650] sm:$0xff] }
 0x1c9   : > { %3979 = vmatmul.mubr.bf16.vlgmr.msra.gmra.mrb[12].mxu0 %v5105_v21  ;;  %4061 = vmatmul.mubr.bf16.vlgmr.msra.gmra.mrb[12].mxu1 %v5105_v21  ;;  %v605_v21 = vld [vmem:[%s6555_s2 + $0x4d8] sm:$0xff] }
 0x1ca   : > { %3988 = vmatpush1.bf16.msra.mxu0 %v4639_v3  ;;  %4070 = vmatpush1.bf16.msra.mxu1 %v4641_v28  ;;  %v4666_v53 = vcombine.high %v605_v21, %v609_v44  ;;  %v4665_v61 = vcombine.low %v605_v21, %v609_v44  ;;  %v4696_v21 = vcombine.high %v636_v27, %v640_v59 }
 0x1cb   : > { %3989 = vmatprep.subr.bf16.mxu0 %v4648_v30  ;;  %4071 = vmatprep.subr.bf16.mxu1 %v4650_v31  ;;  %v641_v31 = vld [vmem:[%s6555_s2 + $0x5f8] sm:$0xff] }
 0x1cc   : > { %4019 = vmatprep.mubr.bf16.mxu0 %v5121_v29  ;;  %4101 = vmatprep.mubr.bf16.mxu1 %v5121_v29  ;;  %v613_v29 = vld [vmem:[%s6555_s2 + $0x518] sm:$0xff] }
 0x1cd   : > { %v4674_v63 = vcombine.high %v613_v29, %v617_v58  ;;  %v4673_v9 = vcombine.low %v613_v29, %v617_v58  ;;  %v645_v29 = vld [vmem:[%s6555_s2 + $0x618] sm:$0xff] }
 0x1ce   : > { %3990 = vmatpush1.bf16.msra.mxu0 %v4647_v37  ;;  %4072 = vmatpush1.bf16.msra.mxu1 %v4649_v38  ;;  %v4687_v37 = vcombine.low %v628_v13, %v632_v14  ;;  %v649_v58 = vld [vmem:[%s6555_s2 + $0x638] sm:$0xff] }
 0x1cf   : > { %3991 = vmatprep.subr.bf16.mxu0 %v4656_v39  ;;  %4073 = vmatprep.subr.bf16.mxu1 %v4658_v40  ;;  %v4706_v4 = vcombine.high %v645_v29, %v649_v58 }
 0x1d2   : > { %3992 = vmatpush1.bf16.msra.mxu0 %v4655_v45  ;;  %4074 = vmatpush1.bf16.msra.mxu1 %v4657_v47 }
 0x1d3   : > { %3993 = vmatprep.subr.bf16.mxu0 %v4664_v51  ;;  %4075 = vmatprep.subr.bf16.mxu1 %v4666_v53  ;;  %v4698_v51 = vcombine.high %v637_v48, %v641_v31  ;;  %v644_v53 = vld [vmem:[%s6555_s2 + $0x610] sm:$0xff] }
 0x1d4   : > { %v4704_v0 = vcombine.high %v644_v53, %v648_v54  ;;  %v4703_v13 = vcombine.low %v644_v53, %v648_v54 }
 0x1d6   : > { %3994 = vmatpush1.bf16.msra.mxu0 %v4663_v60  ;;  %4076 = vmatpush1.bf16.msra.mxu1 %v4665_v61  ;;  %v4695_v61 = vcombine.low %v636_v27, %v640_v59 }
 0x1d7   : > { %3995 = vmatprep.subr.bf16.mxu0 %v4672_v62  ;;  %4077 = vmatprep.subr.bf16.mxu1 %v4674_v63  ;;  %v4697_v63 = vcombine.low %v637_v48, %v641_v31  ;;  %v673_v48 = vld [vmem:[%s6555_s2 + $0x6f8] sm:$0xff] }
 0x1da   : > { %3996 = vmatpush1.bf16.msra.mxu0 %v4671_v6  ;;  %4078 = vmatpush1.bf16.msra.mxu1 %v4673_v9  ;;  %v656_v6 = vld [vmem:[%s6555_s2 + $0x670] sm:$0xff] }
 0x1db   : > { %3997 = vmatprep.subr.bf16.mxu0 %v4680_v11  ;;  %4079 = vmatprep.subr.bf16.mxu1 %v4682_v12  ;;  %v653_v11 = vld [vmem:[%s6555_s2 + $0x658] sm:$0xff]  ;;  %v4712_v16 = vcombine.high %v652_v5, %v656_v6 }
 0x1dc   : > { %v2296_v25 = vpop.f32.mrb[4].mxu0  ;;  %v2378_v28 = vpop.f32.mrb[4].mxu1  ;;  %v657_v12 = vld [vmem:[%s6555_s2 + $0x678] sm:$0xff] }
 0x1dd   : > { %v4774_v3 = vadd.f32 %v2296_v25, %v727_v15  ;;  %v2298_v30 = vpop.f32.mrb[5].mxu0  ;;  %v4776_v33 = vadd.f32 %v2378_v28, %v735_v18  ;;  %v2380_v35 = vpop.f32.mrb[5].mxu1  ;;  %v4705_v15 = vcombine.low %v645_v29, %v649_v58  ;;  %v4714_v17 = vcombine.high %v653_v11, %v657_v12  ;;  %v660_v18 = vld [vmem:[%s6555_s2 + $0x690] sm:$0xff] }
 0x1de   : > { %v4775_v34 = vadd.f32 %v2298_v30, %v731_v19  ;;  %v2300_v36 = vpop.f32.mrb[6].mxu0  ;;  %3998 = vmatpush1.bf16.msra.mxu0 %v4679_v20  ;;  %v4777_v39 = vadd.f32 %v2380_v35, %v739_v22  ;;  %v2382_v40 = vpop.f32.mrb[6].mxu1  ;;  %4080 = vmatpush1.bf16.msra.mxu1 %v4681_v23  ;;  %v664_v19 = vld [vmem:[%s6555_s2 + $0x6b0] sm:$0xff]  ;;  %v2449_v20 = vrot.slane %v6028_v55, %v4966_v56  ;;  %v661_v23 = vld [vmem:[%s6555_s2 + $0x698] sm:$0xff] }
 0x1df   : > { %v2389_v38 = vmax.f32 %v4774_v3, 0.0  ;;  %v2301_v41 = vpop.f32.mrb[7].mxu0  ;;  %3999 = vmatprep.subr.bf16.mxu0 %v4688_v24  ;;  %v2391_v44 = vmax.f32 %v4776_v33, 0.0  ;;  %v2383_v47 = vpop.f32.mrb[7].mxu1  ;;  %4081 = vmatprep.subr.bf16.mxu1 %v4690_v26  ;;  %v665_v24 = vld [vmem:[%s6555_s2 + $0x6b8] sm:$0xff]  ;;  %v4711_v25 = vcombine.low %v652_v5, %v656_v6  ;;  %v4713_v55 = vcombine.low %v653_v11, %v657_v12  ;;  %v668_v3 = vld [vmem:[%s6555_s2 + $0x6d0] sm:$0xff] }
 0x1e0   : > { %v2390_v45 = vmax.f32 %v4775_v34, 0.0  ;;  %v2392_v57 = vmax.f32 %v4777_v39, 0.0  ;;  %v4720_v27 = vcombine.high %v660_v18, %v664_v19  ;;  %v4722_v59 = vcombine.high %v661_v23, %v665_v24  ;;  %v672_v28 = vld [vmem:[%s6555_s2 + $0x6f0] sm:$0xff]  ;;  %v669_v30 = vld [vmem:[%s6555_s2 + $0x6d8] sm:$0xff] }
 0x1e1   : > { %v4719_v31 = vcombine.low %v660_v18, %v664_v19  ;;  %v4721_v33 = vcombine.low %v661_v23, %v665_v24  ;;  %v4728_v34 = vcombine.high %v668_v3, %v672_v28  ;;  %v4730_v35 = vcombine.high %v669_v30, %v673_v48  ;;  %v676_v36 = vld [vmem:[%s6555_s2 + $0x710] sm:$0xff]  ;;  %v681_v39 = vld [vmem:[%s6555_s2 + $0x738] sm:$0xff]  ;;  %v2460_v18 = vld [vmem:[%s6556_s3] sm:$0xff] }
 0x1e2   : > { %v4505_v60 = vpack.c.bf16 %v2390_v45, %v2389_v38  ;;  %4000 = vmatpush1.bf16.msra.mxu0 %v4687_v37  ;;  %v4506_v62 = vpack.c.bf16 %v2392_v57, %v2391_v44  ;;  %4082 = vmatpush1.bf16.msra.mxu1 %v4689_v42  ;;  %v680_v37 = vld [vmem:[%s6555_s2 + $0x730] sm:$0xff]  ;;  %v677_v38 = vld [vmem:[%s6555_s2 + $0x718] sm:$0xff]  ;;  %v4727_v40 = vcombine.low %v668_v3, %v672_v28 }
 0x1e3   : > { %4001 = vmatprep.subr.bf16.mxu0 %v4696_v21  ;;  %4083 = vmatprep.subr.bf16.mxu1 %v4698_v51  ;;  %v4729_v41 = vcombine.low %v669_v30, %v673_v48  ;;  %v4736_v42 = vcombine.high %v676_v36, %v680_v37  ;;  %v4738_v21 = vcombine.high %v677_v38, %v681_v39  ;;  %v684_v44 = vld [vmem:[%s6555_s2 + $0x750] sm:$0xff]  ;;  %v685_v47 = vld [vmem:[%s6555_s2 + $0x758] sm:$0xff] }
 0x1e4   : > { %v2433_v1 = vrot.slane %v4505_v60, %v4966_v56  ;;  %v2440_v9 = vrot.slane %v4506_v62, %v4966_v56  ;;  %v688_v45 = vld [vmem:[%s6555_s2 + $0x770] sm:$0xff]  ;;  %v689_v51 = vld [vmem:[%s6555_s2 + $0x778] sm:$0xff]  ;;  %v4735_v53 = vcombine.low %v676_v36, %v680_v37  ;;  %v4737_v54 = vcombine.low %v677_v38, %v681_v39 }
 0x1e5   : > { %v4744_v57 = vcombine.high %v684_v44, %v688_v45  ;;  %v4746_v29 = vcombine.high %v685_v47, %v689_v51  ;;  %v692_v58 = vld [vmem:[%s6555_s2 + $0x790] sm:$0xff]  ;;  %v697_v62 = vld [vmem:[%s6555_s2 + $0x7b8] sm:$0xff]  ;;  %v2465_v19 = vrot.slane %v2460_v18, %v710_v43  ;;  %v2477_v23 = vrot.slane %v2460_v18, %v722_v52 }
 0x1e6   : > { %4002 = vmatpush1.bf16.msra.mxu0 %v4695_v61  ;;  %v2442_v14 = vcombine.low %v2433_v1, %v2440_v9  ;;  %4084 = vmatpush1.bf16.msra.mxu1 %v4697_v63  ;;  %v696_v60 = vld [vmem:[%s6555_s2 + $0x7b0] sm:$0xff]  ;;  %v693_v61 = vld [vmem:[%s6555_s2 + $0x798] sm:$0xff]  ;;  %v4743_v63 = vcombine.low %v684_v44, %v688_v45  ;;  %v2481_v38 = vrot.slane %v2460_v18, %v726_v2 }
 0x1e7   : > { %4003 = vmatprep.subr.bf16.mxu0 %v4704_v0  ;;  %4085 = vmatprep.subr.bf16.mxu1 %v4706_v4  ;;  %v4745_v0 = vcombine.low %v685_v47, %v689_v51  ;;  %v4752_v1 = vcombine.high %v692_v58, %v696_v60  ;;  %v4754_v4 = vcombine.high %v693_v61, %v697_v62  ;;  %v700_v5 = vld [vmem:[%s6555_s2 + $0x7d0] sm:$0xff]  ;;  %v701_v9 = vld [vmem:[%s6555_s2 + $0x7d8] sm:$0xff] }
 0x1e8   : > { %v2456_v22 = vrot.slane %v2442_v14, %v4966_v56  ;;  %v704_v6 = vld [vmem:[%s6555_s2 + $0x7f0] sm:$0xff]  ;;  %v705_v11 = vld [vmem:[%s6555_s2 + $0x7f8] sm:$0xff]  ;;  %v4751_v12 = vcombine.low %v692_v58, %v696_v60  ;;  %v2489_v39 = vrot.slane %v2460_v18, %v734_v7 }
 0x1e9   : > { %v4760_v14 = vcombine.high %v700_v5, %v704_v6 }
 0x1ea   : > { %4004 = vmatpush1.bf16.msra.mxu0 %v4703_v13  ;;  %v2457_v26 = vcombine.low %v2449_v20, %v2456_v22  ;;  %4086 = vmatpush1.bf16.msra.mxu1 %v4705_v15  ;;  %v4753_v13 = vcombine.low %v693_v61, %v697_v62  ;;  %v4762_v15 = vcombine.high %v701_v9, %v705_v11 }
 0x1eb   : > { %4005 = vmatprep.subr.bf16.mxu0 %v4712_v16  ;;  %4087 = vmatprep.subr.bf16.mxu1 %v4714_v17  ;;  %v4759_v16 = vcombine.low %v700_v5, %v704_v6  ;;  %v4761_v17 = vcombine.low %v701_v9, %v705_v11  ;;  %v2473_v20 = vrot.slane %v2460_v18, %v718_v49 }
 0x1ec   : > { %2459 = vst [vmem:[%s6459_s25] sm:$0xff] %v2457_v26  ;;  %v2469_v22 = vrot.slane %v2460_v18, %v714_v50 }
 0x1ee   : > { %4006 = vmatpush1.bf16.msra.mxu0 %v4711_v25  ;;  %4088 = vmatpush1.bf16.msra.mxu1 %v4713_v55 }
 0x1ef   : > { %4007 = vmatprep.subr.bf16.mxu0 %v4720_v27  ;;  %4089 = vmatprep.subr.bf16.mxu1 %v4722_v59 }
 0x1f2   : > { %4008 = vmatpush1.bf16.msra.mxu0 %v4719_v31  ;;  %4090 = vmatpush1.bf16.msra.mxu1 %v4721_v33 }
 0x1f3   : > { %4009 = vmatprep.subr.bf16.mxu0 %v4728_v34  ;;  %4091 = vmatprep.subr.bf16.mxu1 %v4730_v35 }
 0x1f6   : > { %4010 = vmatpush1.bf16.msra.mxu0 %v4727_v40  ;;  %4092 = vmatpush1.bf16.msra.mxu1 %v4729_v41  ;;  %v2485_v40 = vrot.slane %v2460_v18, %v730_v8  ;;  %v2493_v41 = vrot.slane %v2460_v18, %v738_v10 }
 0x1f7   : > { %4011 = vmatprep.subr.bf16.mxu0 %v4736_v42  ;;  %4093 = vmatprep.subr.bf16.mxu1 %v4738_v21 }
 0x1fa   : > { %4012 = vmatpush1.bf16.msra.mxu0 %v4735_v53  ;;  %4094 = vmatpush1.bf16.msra.mxu1 %v4737_v54 }
 0x1fb   : > { %4013 = vmatprep.subr.bf16.mxu0 %v4744_v57  ;;  %4095 = vmatprep.subr.bf16.mxu1 %v4746_v29 }
 0x1fe   : > { %4014 = vmatpush1.bf16.msra.mxu0 %v4743_v63  ;;  %4096 = vmatpush1.bf16.msra.mxu1 %v4745_v0 }
 0x1ff   : > { %4015 = vmatprep.subr.bf16.mxu0 %v4752_v1  ;;  %4097 = vmatprep.subr.bf16.mxu1 %v4754_v4 }
 0x202   : > { %4016 = vmatpush1.bf16.msra.mxu0 %v4751_v12  ;;  %4098 = vmatpush1.bf16.msra.mxu1 %v4753_v13 }
 0x203   : > { %4017 = vmatprep.subr.bf16.mxu0 %v4760_v14  ;;  %4099 = vmatprep.subr.bf16.mxu1 %v4762_v15 }
 0x206   : > { %4018 = vmatpush1.bf16.msra.mxu0 %v4759_v16  ;;  %4100 = vmatpush1.bf16.msra.mxu1 %v4761_v17 }
 0x209   : > { %4020 = vmatmul.mubr.bf16.vlgmr.msra.gmra.mrb[12].mxu0 %v5309_v32  ;;  %4102 = vmatmul.mubr.bf16.vlgmr.msra.gmra.mrb[12].mxu1 %v5309_v32 }
 0x25c   : > { %v3857_v24 = vpop.f32.mrb[8].mxu0  ;;  %v3939_v26 = vpop.f32.mrb[8].mxu1 }
 0x25d   : > { %v4778_v25 = vadd.f32 %v3857_v24, %v2465_v19  ;;  %v3859_v32 = vpop.f32.mrb[9].mxu0  ;;  %v4780_v55 = vadd.f32 %v3939_v26, %v2473_v20  ;;  %v3941_v59 = vpop.f32.mrb[9].mxu1 }
 0x25e   : > { %v4779_v27 = vadd.f32 %v3859_v32, %v2469_v22  ;;  %v3861_v3 = vpop.f32.mrb[10].mxu0  ;;  %v4781_v30 = vadd.f32 %v3941_v59, %v2477_v23  ;;  %v3943_v43 = vpop.f32.mrb[10].mxu1 }
 0x25f   : > { %v4110_v28 = vmax.f32 %v4778_v25, 0.0  ;;  %v3862_v48 = vpop.f32.mrb[11].mxu0  ;;  %v4112_v31 = vmax.f32 %v4780_v55, 0.0  ;;  %v3944_v33 = vpop.f32.mrb[11].mxu1 }
 0x260   : > { %v4111_v49 = vmax.f32 %v4779_v27, 0.0  ;;  %v4113_v34 = vmax.f32 %v4781_v30, 0.0 }
 0x262   : > { %v4763_v50 = vpack.c.bf16 %v4111_v49, %v4110_v28  ;;  %v4764_v35 = vpack.c.bf16 %v4113_v34, %v4112_v31 }
 0x264   : > { %v4144_v52 = vrot.slane %v4763_v50, %v4966_v56  ;;  %v4151_v36 = vrot.slane %v4764_v35, %v4966_v56 }
 0x266   : > { %v4166_v37 = vcombine.low %v4144_v52, %v4151_v36 }
 0x268   : > { %v4174_v1 = vrot.slane %v4166_v37, %v4966_v56 }
 0x2dc   : > { %v4021_v42 = vpop.f32.mrb[12].mxu0  ;;  %v4103_v44 = vpop.f32.mrb[12].mxu1 }
 0x2dd   : > { %v4782_v21 = vadd.f32 %v4021_v42, %v2481_v38  ;;  %v4023_v45 = vpop.f32.mrb[13].mxu0  ;;  %v4784_v47 = vadd.f32 %v4103_v44, %v2489_v39  ;;  %v4105_v53 = vpop.f32.mrb[13].mxu1 }
 0x2de   : > { %v4783_v51 = vadd.f32 %v4023_v45, %v2485_v40  ;;  %v4025_v54 = vpop.f32.mrb[14].mxu0  ;;  %v4785_v2 = vadd.f32 %v4105_v53, %v2493_v41  ;;  %v4107_v29 = vpop.f32.mrb[14].mxu1 }
 0x2df   : > { %v4114_v57 = vmax.f32 %v4782_v21, 0.0  ;;  %v4026_v58 = vpop.f32.mrb[15].mxu0  ;;  %v4116_v7 = vmax.f32 %v4784_v47, 0.0  ;;  %v4108_v61 = vpop.f32.mrb[15].mxu1 }
 0x2e0   : > { %v4115_v60 = vmax.f32 %v4783_v51, 0.0  ;;  %v4117_v8 = vmax.f32 %v4785_v2, 0.0 }
 0x2e2   : > { %v4765_v62 = vpack.c.bf16 %v4115_v60, %v4114_v57  ;;  %v4766_v46 = vpack.c.bf16 %v4117_v8, %v4116_v7 }
 0x2e4   : > { %v4158_v10 = vrot.slane %v4765_v62, %v4966_v56  ;;  %v4165_v63 = vrot.slane %v4766_v46, %v4966_v56 }
 0x2e6   : > { %v4167_v0 = vcombine.low %v4158_v10, %v4165_v63 }
 0x2e8   : > { %v4181_v4 = vrot.slane %v4167_v0, %v4966_v56 }
 0x2ea   : > { %v4182_v5 = vcombine.low %v4174_v1, %v4181_v4 }
 0x2ec   : > { %4767 = vst [vmem:[%s6459_s25 + $0x8] sm:$0xff] %v4182_v5 }
 0x2ed PF: > { %s14_s15 = sadd.s32 1, %s4833_s15  }
 0x2ee   : > { %p11_p4 = scmp.ge.s32.totalorder %s14_s15, 6  }
 0x2f0   :  { %13 = sbr.rel (!%p11_p4) target bundleno = 1 (0x1), region = 67 }

// kernel: _forward.15
= control target key start
LH: loop header
LB: loop body
LE: loop exit
PB: predicated region body
PF: predicated region fallthrough
CT: control target
= control target key end

     0   :  { %s997_s15 = smov 0   ;;  %s1220_s0 = inlined_call_operand.vmem [shape: bf16[16,8,256], index: 0, kind: input, shape index: {}]   ;;  %s1221_s1 = inlined_call_operand.vmem [shape: bf16[256,256], index: 1, kind: input, shape index: {}]   ;;  %s1222_s2 = inlined_call_operand.vmem [shape: bf16[256,256], index: 2, kind: input, shape index: {}]   ;;  %s1223_s3 = inlined_call_operand.vmem [shape: f32[1,256], index: 3, kind: input, shape index: {}]   ;;  %s1224_s4 = inlined_call_operand.vmem [shape: bf16[16,2,8,256], index: 4, kind: output, shape index: {}]  }
   0x1 LB: > { %s774_s16 = sadd.s32 4294967295, %s970_s15   ;;  %p778_p0 = scmp.ge.s32.totalorder %s970_s15, 1  ;;  %s970_s15 = sphi %s997_s15, %s14_s15  }
   0x2   : > { %p162_p1 = scmp.lt.s32.totalorder %s970_s15, 17 }
   0x4   : > { %p163_p2 = pnand %p778_p0, %p162_p1 }
   0x5   : > { %v866_v0 = vld [vmem:[%s1221_s1 + $0x4] ss:$8 sps:$4 sm:$0xff] (!%p163_p2)   ;;  %v870_v2 = vld [vmem:[%s1221_s1] ss:$8 sps:$4 sm:$0xff] (!%p163_p2)   ;;  %v872_v4 = vld [vmem:[%s1221_s1 + $0x14] ss:$8 sps:$4 sm:$0xff] (!%p163_p2)  }
   0x6   : > { %166 = sbr.rel (%p163_p2) target bundleno = 291 (0x123), region = 36  ;;  %v868_v1 = vld [vmem:[%s1222_s2 + $0x4] ss:$8 sps:$4 sm:$0xff] (!%p163_p2)   ;;  %442 = vmatprep.subr.bf16.mxu0 (!%p163_p2), %v866_v0  ;;  %v871_v3 = vld [vmem:[%s1222_s2] ss:$8 sps:$4 sm:$0xff] (!%p163_p2)   ;;  %p188_p3 = scmp.lt.s32.totalorder (!%p163_p2), %s774_s16, 15 }
   0x7   : > { %666 = vmatprep.subr.bf16.mxu1 (!%p163_p2), %v868_v1  ;;  %443 = vmatpush1.bf16.msra.mxu0 (!%p163_p2), %v870_v2  ;;  %v874_v5 = vld [vmem:[%s1222_s2 + $0x14] ss:$8 sps:$4 sm:$0xff] (!%p163_p2)   ;;  %v876_v6 = vld [vmem:[%s1221_s1 + $0x10] ss:$8 sps:$4 sm:$0xff] (!%p163_p2)   ;;  %v878_v8 = vld [vmem:[%s1221_s1 + $0x24] ss:$8 sps:$4 sm:$0xff] (!%p163_p2)  }
   0x8   : > { %667 = vmatpush1.bf16.msra.mxu1 (!%p163_p2), %v871_v3  ;;  %444 = vmatprep.subr.bf16.mxu0 (!%p163_p2), %v872_v4  ;;  %v877_v7 = vld [vmem:[%s1222_s2 + $0x10] ss:$8 sps:$4 sm:$0xff] (!%p163_p2)   ;;  %v880_v9 = vld [vmem:[%s1222_s2 + $0x24] ss:$8 sps:$4 sm:$0xff] (!%p163_p2)   ;;  %v882_v10 = vld [vmem:[%s1221_s1 + $0x20] ss:$8 sps:$4 sm:$0xff] (!%p163_p2)   ;;  %v265_v3 = vlaneseq (!%p163_p2) }
   0x9   : > { %668 = vmatprep.subr.bf16.mxu1 (!%p163_p2), %v874_v5  ;;  %v883_v11 = vld [vmem:[%s1222_s2 + $0x20] ss:$8 sps:$4 sm:$0xff] (!%p163_p2)   ;;  %v884_v12 = vld [vmem:[%s1221_s1 + $0x34] ss:$8 sps:$4 sm:$0xff] (!%p163_p2)   ;;  %v888_v14 = vld [vmem:[%s1221_s1 + $0x30] ss:$8 sps:$4 sm:$0xff] (!%p163_p2)  }
   0xa   : > { %v886_v13 = vld [vmem:[%s1222_s2 + $0x34] ss:$8 sps:$4 sm:$0xff] (!%p163_p2)   ;;  %v889_v15 = vld [vmem:[%s1222_s2 + $0x30] ss:$8 sps:$4 sm:$0xff] (!%p163_p2)   ;;  %v890_v16 = vld [vmem:[%s1221_s1 + $0x44] ss:$8 sps:$4 sm:$0xff] (!%p163_p2)  }
   0xb   : > { %445 = vmatpush1.bf16.msra.mxu0 (!%p163_p2), %v876_v6  ;;  %v892_v17 = vld [vmem:[%s1222_s2 + $0x44] ss:$8 sps:$4 sm:$0xff] (!%p163_p2)   ;;  %v894_v18 = vld [vmem:[%s1221_s1 + $0x40] ss:$8 sps:$4 sm:$0xff] (!%p163_p2)   ;;  %v896_v20 = vld [vmem:[%s1221_s1 + $0x54] ss:$8 sps:$4 sm:$0xff] (!%p163_p2)  }
   0xc   : > { %669 = vmatpush1.bf16.msra.mxu1 (!%p163_p2), %v877_v7  ;;  %446 = vmatprep.subr.bf16.mxu0 (!%p163_p2), %v878_v8  ;;  %v895_v19 = vld [vmem:[%s1222_s2 + $0x40] ss:$8 sps:$4 sm:$0xff] (!%p163_p2)   ;;  %v898_v21 = vld [vmem:[%s1222_s2 + $0x54] ss:$8 sps:$4 sm:$0xff] (!%p163_p2)   ;;  %v900_v22 = vld [vmem:[%s1221_s1 + $0x50] ss:$8 sps:$4 sm:$0xff] (!%p163_p2)  }
   0xd   : > { %670 = vmatprep.subr.bf16.mxu1 %v880_v9  ;;  %v901_v23 = vld [vmem:[%s1222_s2 + $0x50] ss:$8 sps:$4 sm:$0xff]   ;;  %v902_v24 = vld [vmem:[%s1221_s1 + $0x64] ss:$8 sps:$4 sm:$0xff]   ;;  %v906_v26 = vld [vmem:[%s1221_s1 + $0x60] ss:$8 sps:$4 sm:$0xff]  }
   0xe   : > { %v904_v25 = vld [vmem:[%s1222_s2 + $0x64] ss:$8 sps:$4 sm:$0xff]   ;;  %v907_v27 = vld [vmem:[%s1222_s2 + $0x60] ss:$8 sps:$4 sm:$0xff]   ;;  %v908_v28 = vld [vmem:[%s1221_s1 + $0x74] ss:$8 sps:$4 sm:$0xff]  }
   0xf   : > { %447 = vmatpush1.bf16.msra.mxu0 %v882_v10  ;;  %v910_v29 = vld [vmem:[%s1222_s2 + $0x74] ss:$8 sps:$4 sm:$0xff]   ;;  %v912_v30 = vld [vmem:[%s1221_s1 + $0x70] ss:$8 sps:$4 sm:$0xff]   ;;  %v914_v32 = vld [vmem:[%s1221_s1 + $0x84] ss:$8 sps:$4 sm:$0xff]  }
  0x10   : > { %671 = vmatpush1.bf16.msra.mxu1 %v883_v11  ;;  %448 = vmatprep.subr.bf16.mxu0 %v884_v12  ;;  %v913_v31 = vld [vmem:[%s1222_s2 + $0x70] ss:$8 sps:$4 sm:$0xff]   ;;  %v916_v33 = vld [vmem:[%s1222_s2 + $0x84] ss:$8 sps:$4 sm:$0xff]   ;;  %v918_v34 = vld [vmem:[%s1221_s1 + $0x80] ss:$8 sps:$4 sm:$0xff]  }
  0x11   : > { %672 = vmatprep.subr.bf16.mxu1 %v886_v13  ;;  %v919_v35 = vld [vmem:[%s1222_s2 + $0x80] ss:$8 sps:$4 sm:$0xff]   ;;  %v920_v36 = vld [vmem:[%s1221_s1 + $0x94] ss:$8 sps:$4 sm:$0xff]   ;;  %s1226_s16 = smov (!%p188_p3, %s774_s16), 15  ;;  %v266_v4 = vshrl.u32 %v265_v3, 7 }
  0x12   : > { %v922_v37 = vld [vmem:[%s1222_s2 + $0x94] ss:$8 sps:$4 sm:$0xff]   ;;  %v924_v38 = vld [vmem:[%s1221_s1 + $0x90] ss:$8 sps:$4 sm:$0xff]   ;;  %v926_v40 = vld [vmem:[%s1221_s1 + $0xa4] ss:$8 sps:$4 sm:$0xff]  }
  0x13   : > { %449 = vmatpush1.bf16.msra.mxu0 %v888_v14  ;;  %v925_v39 = vld [vmem:[%s1222_s2 + $0x90] ss:$8 sps:$4 sm:$0xff]   ;;  %s854_s27 = sshll.u32 %s1226_s16, 3  ;;  %v928_v41 = vld [vmem:[%s1222_s2 + $0xa4] ss:$8 sps:$4 sm:$0xff]   ;;  %v267_v5 = vsub.s32 0, %v266_v4 }
  0x14   : > { %673 = vmatpush1.bf16.msra.mxu1 %v889_v15  ;;  %450 = vmatprep.subr.bf16.mxu0 %v890_v16  ;;  %v930_v42 = vld [vmem:[%s1221_s1 + $0xa0] ss:$8 sps:$4 sm:$0xff]   ;;  %s192_s10 = scalar_lea.vmem %s1220_s0, %s854_s27  ;;  %v932_v44 = vld [vmem:[%s1221_s1 + $0xb4] ss:$8 sps:$4 sm:$0xff]   ;;  %v936_v48 = vld [vmem:[%s1221_s1 + $0xb0] ss:$8 sps:$4 sm:$0xff]  }
  0x15   : > { %674 = vmatprep.subr.bf16.mxu1 %v892_v17  ;;  %v931_v43 = vld [vmem:[%s1222_s2 + $0xa0] ss:$8 sps:$4 sm:$0xff]   ;;  %v934_v45 = vld [vmem:[%s1222_s2 + $0xb4] ss:$8 sps:$4 sm:$0xff]   ;;  %v937_v49 = vld [vmem:[%s1222_s2 + $0xb0] ss:$8 sps:$4 sm:$0xff]  }
  0x16   : > { %v198_v46 = vld [vmem:[%s192_s10] sm:$0xff]  ;;  %v944_v54 = vld [vmem:[%s1221_s1 + $0xd4] ss:$8 sps:$4 sm:$0xff]   ;;  %v948_v56 = vld [vmem:[%s1221_s1 + $0xd0] ss:$8 sps:$4 sm:$0xff]   ;;  %v271_v8 = vsub.s32 1, %v266_v4 }
  0x17   : > { %451 = vmatpush1.bf16.msra.mxu0 %v894_v18  ;;  %v784_v47 = vcombine.high %v198_v46, %v198_v46  ;;  %v938_v50 = vld [vmem:[%s1221_s1 + $0xc4] ss:$8 sps:$4 sm:$0xff]   ;;  %v942_v52 = vld [vmem:[%s1221_s1 + $0xc0] ss:$8 sps:$4 sm:$0xff]   ;;  %v946_v55 = vld [vmem:[%s1222_s2 + $0xd4] ss:$8 sps:$4 sm:$0xff]   ;;  %v783_v2 = vcombine.low %v198_v46, %v198_v46 }
  0x18   : > { %675 = vmatpush1.bf16.msra.mxu1 %v895_v19  ;;  %452 = vmatprep.subr.bf16.mxu0 %v896_v20  ;;  %v940_v51 = vld [vmem:[%s1222_s2 + $0xc4] ss:$8 sps:$4 sm:$0xff]   ;;  %v943_v53 = vld [vmem:[%s1222_s2 + $0xc0] ss:$8 sps:$4 sm:$0xff]   ;;  %v949_v57 = vld [vmem:[%s1222_s2 + $0xd0] ss:$8 sps:$4 sm:$0xff]  }
  0x19   : > { %676 = vmatprep.subr.bf16.mxu1 %v898_v21  ;;  %474 = vmatprep.mubr.bf16.mxu0 %v784_v47  ;;  %v950_v58 = vld [vmem:[%s1221_s1 + $0xe4] ss:$8 sps:$4 sm:$0xff]   ;;  %v954_v60 = vld [vmem:[%s1221_s1 + $0xe0] ss:$8 sps:$4 sm:$0xff]   ;;  %v956_v62 = vld [vmem:[%s1221_s1 + $0xf4] ss:$8 sps:$4 sm:$0xff]  }
  0x1a   : > { %698 = vmatprep.mubr.bf16.mxu1 %v784_v47  ;;  %v952_v59 = vld [vmem:[%s1222_s2 + $0xe4] ss:$8 sps:$4 sm:$0xff]   ;;  %v955_v61 = vld [vmem:[%s1222_s2 + $0xe0] ss:$8 sps:$4 sm:$0xff]   ;;  %v958_v63 = vld [vmem:[%s1222_s2 + $0xf4] ss:$8 sps:$4 sm:$0xff]  }
  0x1b   : > { %453 = vmatpush1.bf16.msra.mxu0 %v900_v22  ;;  %v960_v0 = vld [vmem:[%s1221_s1 + $0xf0] ss:$8 sps:$4 sm:$0xff]   ;;  %v263_v6 = vld [vmem:[%s1223_s3] sm:$0x3]  ;;  %s855_s7 = sshll.u32 %s1226_s16, 4 }
  0x1c   : > { %677 = vmatpush1.bf16.msra.mxu1 %v901_v23  ;;  %454 = vmatprep.subr.bf16.mxu0 %v902_v24  ;;  %v961_v1 = vld [vmem:[%s1222_s2 + $0xf0] ss:$8 sps:$4 sm:$0xff]   ;;  %v494_v7 = vld [vmem:[%s1223_s3] sm:$0x3]  ;;  %v268_v9 = vrot.slane %v263_v6, %v267_v5  ;;  %v272_v11 = vrot.slane %v263_v6, %v271_v8  ;;  %s197_s10 = scalar_lea.vmem %s1224_s4, %s855_s7 }
  0x1d   : > { %678 = vmatprep.subr.bf16.mxu1 %v904_v25  ;;  %v499_v10 = vrot.slane %v494_v7, %v267_v5  ;;  %v503_v12 = vrot.slane %v494_v7, %v271_v8 }
  0x1f   : > { %455 = vmatpush1.bf16.msra.mxu0 %v906_v26 }
  0x20   : > { %679 = vmatpush1.bf16.msra.mxu1 %v907_v27  ;;  %456 = vmatprep.subr.bf16.mxu0 %v908_v28 }
  0x21   : > { %680 = vmatprep.subr.bf16.mxu1 %v910_v29 }
  0x23   : > { %457 = vmatpush1.bf16.msra.mxu0 %v912_v30 }
  0x24   : > { %681 = vmatpush1.bf16.msra.mxu1 %v913_v31  ;;  %458 = vmatprep.subr.bf16.mxu0 %v914_v32 }
  0x25   : > { %682 = vmatprep.subr.bf16.mxu1 %v916_v33 }
  0x27   : > { %459 = vmatpush1.bf16.msra.mxu0 %v918_v34 }
  0x28   : > { %683 = vmatpush1.bf16.msra.mxu1 %v919_v35  ;;  %460 = vmatprep.subr.bf16.mxu0 %v920_v36 }
  0x29   : > { %684 = vmatprep.subr.bf16.mxu1 %v922_v37 }
  0x2b   : > { %461 = vmatpush1.bf16.msra.mxu0 %v924_v38 }
  0x2c   : > { %685 = vmatpush1.bf16.msra.mxu1 %v925_v39  ;;  %462 = vmatprep.subr.bf16.mxu0 %v926_v40 }
  0x2d   : > { %686 = vmatprep.subr.bf16.mxu1 %v928_v41 }
  0x2f   : > { %463 = vmatpush1.bf16.msra.mxu0 %v930_v42 }
  0x30   : > { %687 = vmatpush1.bf16.msra.mxu1 %v931_v43  ;;  %464 = vmatprep.subr.bf16.mxu0 %v932_v44 }
  0x31   : > { %688 = vmatprep.subr.bf16.mxu1 %v934_v45 }
  0x33   : > { %465 = vmatpush1.bf16.msra.mxu0 %v936_v48 }
  0x34   : > { %689 = vmatpush1.bf16.msra.mxu1 %v937_v49  ;;  %466 = vmatprep.subr.bf16.mxu0 %v938_v50 }
  0x35   : > { %690 = vmatprep.subr.bf16.mxu1 %v940_v51 }
  0x37   : > { %467 = vmatpush1.bf16.msra.mxu0 %v942_v52 }
  0x38   : > { %691 = vmatpush1.bf16.msra.mxu1 %v943_v53  ;;  %468 = vmatprep.subr.bf16.mxu0 %v944_v54 }
  0x39   : > { %692 = vmatprep.subr.bf16.mxu1 %v946_v55 }
  0x3b   : > { %469 = vmatpush1.bf16.msra.mxu0 %v948_v56 }
  0x3c   : > { %693 = vmatpush1.bf16.msra.mxu1 %v949_v57  ;;  %470 = vmatprep.subr.bf16.mxu0 %v950_v58 }
  0x3d   : > { %694 = vmatprep.subr.bf16.mxu1 %v952_v59 }
  0x3f   : > { %471 = vmatpush1.bf16.msra.mxu0 %v954_v60 }
  0x40   : > { %695 = vmatpush1.bf16.msra.mxu1 %v955_v61  ;;  %472 = vmatprep.subr.bf16.mxu0 %v956_v62 }
  0x41   : > { %696 = vmatprep.subr.bf16.mxu1 %v958_v63 }
  0x43   : > { %473 = vmatpush1.bf16.msra.mxu0 %v960_v0 }
  0x44   : > { %697 = vmatpush1.bf16.msra.mxu1 %v961_v1 }
  0x46   : > { %475 = vmatmul.mubr.bf16.vlgmr.msra.gmra.mrb[0].mxu0 %v783_v2 }
  0x47   : > { %699 = vmatmul.mubr.bf16.vlgmr.msra.gmra.mrb[0].mxu1 %v783_v2 }
 0x119   : > { %v476_v13 = vpop.f32.mrb[0].mxu0 }
 0x11a   : > { %v700_v14 = vpop.f32.mrb[0].mxu1  ;;  %v477_v15 = vadd.f32 %v476_v13, %v268_v9  ;;  %v478_v17 = vpop.f32.mrb[1].mxu0 }
 0x11b   : > { %v701_v16 = vadd.f32 %v700_v14, %v499_v10  ;;  %v702_v18 = vpop.f32.mrb[1].mxu1  ;;  %v479_v19 = vadd.f32 %v478_v17, %v272_v11  ;;  %v480_v21 = vpop.f32.mrb[2].mxu0 }
 0x11c   : > { %v703_v20 = vadd.f32 %v702_v18, %v503_v12  ;;  %v704_v22 = vpop.f32.mrb[2].mxu1  ;;  %v483_v23 = vmax.f32 %v477_v15, 0.0  ;;  %v481_v25 = vpop.f32.mrb[3].mxu0 }
 0x11d   : > { %v707_v24 = vmax.f32 %v701_v16, 0.0  ;;  %v705_v26 = vpop.f32.mrb[3].mxu1  ;;  %v484_v27 = vmax.f32 %v479_v19, 0.0 }
 0x11e   : > { %v708_v28 = vmax.f32 %v703_v20, 0.0 }
 0x11f   : > { %v856_v29 = vpack.c.bf16 %v484_v27, %v483_v23 }
 0x120   : > { %v857_v30 = vpack.c.bf16 %v708_v28, %v707_v24 }
 0x121   : > { %493 = vst [vmem:[%s197_s10] sm:$0xff] %v856_v29 }
 0x122   : > { %851 = vst [vmem:[%s197_s10 + $0x8] sm:$0xff] %v857_v30 }
 0x123 PF: > { %s14_s15 = sadd.s32 1, %s970_s15  }
 0x124   : > { %p11_p4 = scmp.ge.s32.totalorder %s14_s15, 18  }
 0x126   :  { %13 = sbr.rel (!%p11_p4) target bundleno = 1 (0x1), region = 67 }

// kernel: _forward.16
= control target key start
LH: loop header
LB: loop body
LE: loop exit
PB: predicated region body
PF: predicated region fallthrough
CT: control target
= control target key end

     0   :  { %s684_s15 = smov 0   ;;  %s756_s0 = inlined_call_operand.vmem [shape: bf16[32,16,128], index: 0, kind: input, shape index: {}]   ;;  %s757_s1 = inlined_call_operand.vmem [shape: bf16[128,128], index: 1, kind: input, shape index: {}]   ;;  %s758_s2 = inlined_call_operand.vmem [shape: bf16[128,128], index: 2, kind: input, shape index: {}]   ;;  %s759_s3 = inlined_call_operand.vmem [shape: f32[1,128], index: 3, kind: input, shape index: {}]   ;;  %s760_s4 = inlined_call_operand.vmem [shape: bf16[32,2,16,128], index: 4, kind: output, shape index: {}]  }
   0x1 LB: > { %s511_s16 = sadd.s32 4294967295, %s655_s15   ;;  %p515_p0 = scmp.ge.s32.totalorder %s655_s15, 1  ;;  %s655_s15 = sphi %s684_s15, %s14_s15  }
   0x2   : > { %p162_p1 = scmp.lt.s32.totalorder %s655_s15, 33 }
   0x4   : > { %p163_p2 = pnand %p515_p0, %p162_p1 }
   0x5   : > { %v632_v0 = vld [vmem:[%s757_s1] sm:$0xff] (!%p163_p2)   ;;  %v657_v1 = vmov (!%p163_p2), 0.0   ;;  %v634_v3 = vld [vmem:[%s757_s1 + $0x8] sm:$0xff] (!%p163_p2)   ;;  %vm658_vm0 = vmmov (!%p163_p2), 0   ;;  %p188_p3 = scmp.lt.s32.totalorder (!%p163_p2), %s511_s16, 31  ;;  %v636_v5 = vld [vmem:[%s757_s1 + $0x10] sm:$0xff] (!%p163_p2)  }
   0x6   : > { %166 = sbr.rel (%p163_p2) target bundleno = 260 (0x104), region = 36  ;;  %582 = vmatprep.subr.bf16.mxu0 (!%p163_p2), %v657_v1  ;;  %602 = vmatprep.subr.bf16.mxu1 (!%p163_p2), %v657_v1  ;;  %v633_v2 = vld [vmem:[%s758_s2] sm:$0xff] (!%p163_p2)   ;;  %v635_v4 = vld [vmem:[%s758_s2 + $0x8] sm:$0xff] (!%p163_p2)   ;;  %v637_v6 = vld [vmem:[%s758_s2 + $0x10] sm:$0xff] (!%p163_p2)  }
   0x7   : > { %583 = vmatpush3.bf16.msra.mxu0 (!%p163_p2), %v632_v0  ;;  %598 = vmatprep.mubr.msk.bf16.mxu0 (!%p163_p2), %vm658_vm0, %v657_v1  ;;  %v638_v7 = vld [vmem:[%s757_s1 + $0x18] sm:$0xff] (!%p163_p2)   ;;  %v640_v9 = vld [vmem:[%s757_s1 + $0x20] sm:$0xff] (!%p163_p2)   ;;  %v642_v11 = vld [vmem:[%s757_s1 + $0x28] sm:$0xff] (!%p163_p2)  }
   0x8   : > { %603 = vmatpush3.bf16.msra.mxu1 (!%p163_p2), %v633_v2  ;;  %584 = vmatprep.subr.bf16.mxu0 (!%p163_p2), %v657_v1  ;;  %v639_v8 = vld [vmem:[%s758_s2 + $0x18] sm:$0xff] (!%p163_p2)   ;;  %v641_v10 = vld [vmem:[%s758_s2 + $0x20] sm:$0xff] (!%p163_p2)   ;;  %v643_v12 = vld [vmem:[%s758_s2 + $0x28] sm:$0xff] (!%p163_p2)  }
   0x9   : > { %604 = vmatprep.subr.bf16.mxu1 (!%p163_p2), %v657_v1  ;;  %618 = vmatprep.mubr.msk.bf16.mxu1 (!%p163_p2), %vm658_vm0, %v657_v1  ;;  %v644_v13 = vld [vmem:[%s757_s1 + $0x30] sm:$0xff] (!%p163_p2)   ;;  %v646_v15 = vld [vmem:[%s757_s1 + $0x38] sm:$0xff] (!%p163_p2)   ;;  %v520_v18 = vld [vmem:[%s759_s3] ss:$0 sm:$0xff] (!%p163_p2) }
   0xa   : > { %v645_v14 = vld [vmem:[%s758_s2 + $0x30] sm:$0xff] (!%p163_p2)   ;;  %v647_v16 = vld [vmem:[%s758_s2 + $0x38] sm:$0xff] (!%p163_p2)  }
   0xb   : > { %585 = vmatpush3.bf16.msra.mxu0 (!%p163_p2), %v634_v3 }
   0xc   : > { %605 = vmatpush3.bf16.msra.mxu1 (!%p163_p2), %v635_v4  ;;  %586 = vmatprep.subr.bf16.mxu0 (!%p163_p2), %v657_v1 }
   0xd   : > { %606 = vmatprep.subr.bf16.mxu1 %v657_v1  ;;  %s762_s16 = smov (!%p188_p3, %s511_s16), 31 }
   0xe   : > { %s547_s7 = sshll.u32 %s762_s16, 3  ;;  %s548_s5 = sshll.u32 %s762_s16, 4 }
   0xf   : > { %587 = vmatpush3.bf16.msra.mxu0 %v636_v5  ;;  %s192_s14 = scalar_lea.vmem %s756_s0, %s547_s7  ;;  %s197_s8 = scalar_lea.vmem %s760_s4, %s548_s5 }
  0x10   : > { %607 = vmatpush3.bf16.msra.mxu1 %v637_v6  ;;  %588 = vmatprep.subr.bf16.mxu0 %v657_v1  ;;  %v648_v17 = vld [vmem:[%s192_s14] sm:$0xff]  }
  0x11   : > { %608 = vmatprep.subr.bf16.mxu1 %v657_v1 }
  0x13   : > { %589 = vmatpush3.bf16.msra.mxu0 %v638_v7 }
  0x14   : > { %609 = vmatpush3.bf16.msra.mxu1 %v639_v8  ;;  %590 = vmatprep.subr.bf16.mxu0 %v657_v1 }
  0x15   : > { %610 = vmatprep.subr.bf16.mxu1 %v657_v1 }
  0x17   : > { %591 = vmatpush3.bf16.msra.mxu0 %v640_v9 }
  0x18   : > { %611 = vmatpush3.bf16.msra.mxu1 %v641_v10  ;;  %592 = vmatprep.subr.bf16.mxu0 %v657_v1 }
  0x19   : > { %612 = vmatprep.subr.bf16.mxu1 %v657_v1 }
  0x1b   : > { %593 = vmatpush3.bf16.msra.mxu0 %v642_v11 }
  0x1c   : > { %613 = vmatpush3.bf16.msra.mxu1 %v643_v12  ;;  %594 = vmatprep.subr.bf16.mxu0 %v657_v1 }
  0x1d   : > { %614 = vmatprep.subr.bf16.mxu1 %v657_v1 }
  0x1f   : > { %595 = vmatpush3.bf16.msra.mxu0 %v644_v13 }
  0x20   : > { %615 = vmatpush3.bf16.msra.mxu1 %v645_v14  ;;  %596 = vmatprep.subr.bf16.mxu0 %v657_v1 }
  0x21   : > { %616 = vmatprep.subr.bf16.mxu1 %v657_v1 }
  0x23   : > { %597 = vmatpush3.bf16.msra.mxu0 %v646_v15 }
  0x24   : > { %617 = vmatpush3.bf16.msra.mxu1 %v647_v16 }
  0x26   : > { %599 = vmatmul.mubr.bf16.vlgmr.msra.gmra.mrb[0].mxu0 %v648_v17 }
  0x27   : > { %619 = vmatmul.mubr.bf16.vlgmr.msra.gmra.mrb[0].mxu1 %v648_v17 }
  0xf9   : > { %v328_v19 = vpop.f32.mrb[0].mxu0 }
  0xfa   : > { %v329_v20 = vadd.f32 %v520_v18, %v328_v19  ;;  %v436_v21 = vpop.f32.mrb[0].mxu1  ;;  %v600_v22 = vpop.f32.mrb[1].mxu0 }
  0xfb   : > { %v437_v23 = vadd.f32 %v520_v18, %v436_v21  ;;  %v620_v24 = vpop.f32.mrb[1].mxu1  ;;  %v331_v25 = vpop.f32.mrb[2].mxu0 }
  0xfc   : > { %v332_v26 = vadd.f32 %v520_v18, %v331_v25  ;;  %v439_v27 = vpop.f32.mrb[2].mxu1  ;;  %v601_v28 = vpop.f32.mrb[3].mxu0  ;;  %v335_v31 = vmax.f32 %v329_v20, 0.0 }
  0xfd   : > { %v440_v29 = vadd.f32 %v520_v18, %v439_v27  ;;  %v621_v30 = vpop.f32.mrb[3].mxu1  ;;  %v443_v33 = vmax.f32 %v437_v23, 0.0 }
  0xfe   : > { %v336_v32 = vmax.f32 %v332_v26, 0.0 }
  0xff   : > { %v444_v34 = vmax.f32 %v440_v29, 0.0 }
 0x100   : > { %v556_v35 = vpack.c.bf16 %v336_v32, %v335_v31 }
 0x101   : > { %v561_v36 = vpack.c.bf16 %v444_v34, %v443_v33 }
 0x102   : > { %557 = vst [vmem:[%s197_s8] sm:$0xff] %v556_v35  }
 0x103   : > { %563 = vst [vmem:[%s197_s8 + $0x8] sm:$0xff] %v561_v36  }
 0x104 PF: > { %s14_s15 = sadd.s32 1, %s655_s15  }
 0x105   : > { %p11_p4 = scmp.ge.s32.totalorder %s14_s15, 34  }
 0x107   :  { %13 = sbr.rel (!%p11_p4) target bundleno = 1 (0x1), region = 67 }

// kernel: _forward.14
= control target key start
LH: loop header
LB: loop body
LE: loop exit
PB: predicated region body
PF: predicated region fallthrough
CT: control target
= control target key end

     0   :  { %s2973_s15 = smov 0   ;;  %s3815_s0 = inlined_call_operand.vmem [shape: bf16[8,4,512], index: 0, kind: input, shape index: {}]   ;;  %s3816_s1 = inlined_call_operand.vmem [shape: bf16[512,512], index: 1, kind: input, shape index: {}]   ;;  %s3817_s2 = inlined_call_operand.vmem [shape: bf16[512,512], index: 2, kind: input, shape index: {}]   ;;  %s3818_s3 = inlined_call_operand.vmem [shape: f32[1,512], index: 3, kind: input, shape index: {}]   ;;  %s3819_s4 = inlined_call_operand.vmem [shape: bf16[8,2,4,512], index: 4, kind: output, shape index: {}]  }
   0x1 LB: > { %s2247_s16 = sadd.s32 4294967295, %s2945_s15   ;;  %p2251_p0 = scmp.ge.s32.totalorder %s2945_s15, 1  ;;  %s2945_s15 = sphi %s2973_s15, %s14_s15  }
   0x2   : > { %p162_p1 = scmp.lt.s32.totalorder %s2945_s15, 9 }
   0x4   : > { %p163_p2 = pnand %p2251_p0, %p162_p1 }
   0x5   : > { %v2554_v0 = vld [vmem:[%s3816_s1 + $0x4] ss:$16 sps:$4 sm:$0xff] (!%p163_p2)   ;;  %v2556_v1 = vld [vmem:[%s3816_s1 + $0xc] ss:$16 sps:$4 sm:$0xff] (!%p163_p2)   ;;  %v2558_v2 = vld [vmem:[%s3816_s1] ss:$16 sps:$4 sm:$0xff] (!%p163_p2)   ;;  %v457_v36 = vlaneseq (!%p163_p2) }
   0x6   : > { %166 = sbr.rel (%p163_p2) target bundleno = 486 (0x1e6), region = 36  ;;  %1139 = vmatprep.subr.bf16.mxu0 (!%p163_p2), %v2554_v0  ;;  %v2559_v3 = vld [vmem:[%s3816_s1 + $0x8] ss:$16 sps:$4 sm:$0xff] (!%p163_p2)   ;;  %1221 = vmatprep.subr.bf16.mxu1 (!%p163_p2), %v2556_v1  ;;  %v2560_v4 = vld [vmem:[%s3816_s1 + $0x24] ss:$16 sps:$4 sm:$0xff] (!%p163_p2)   ;;  %p188_p3 = scmp.lt.s32.totalorder (!%p163_p2), %s2247_s16, 7 }
   0x7   : > { %1140 = vmatpush1.bf16.msra.mxu0 (!%p163_p2), %v2558_v2  ;;  %1222 = vmatpush1.bf16.msra.mxu1 (!%p163_p2), %v2559_v3  ;;  %v2562_v5 = vld [vmem:[%s3816_s1 + $0x2c] ss:$16 sps:$4 sm:$0xff] (!%p163_p2)   ;;  %v2564_v6 = vld [vmem:[%s3816_s1 + $0x20] ss:$16 sps:$4 sm:$0xff] (!%p163_p2)   ;;  %v2565_v7 = vld [vmem:[%s3816_s1 + $0x28] ss:$16 sps:$4 sm:$0xff] (!%p163_p2)  }
   0x8   : > { %1141 = vmatprep.subr.bf16.mxu0 (!%p163_p2), %v2560_v4  ;;  %1223 = vmatprep.subr.bf16.mxu1 (!%p163_p2), %v2562_v5  ;;  %v2566_v8 = vld [vmem:[%s3816_s1 + $0x44] ss:$16 sps:$4 sm:$0xff] (!%p163_p2)   ;;  %v2568_v9 = vld [vmem:[%s3816_s1 + $0x4c] ss:$16 sps:$4 sm:$0xff] (!%p163_p2)   ;;  %v2570_v10 = vld [vmem:[%s3816_s1 + $0x40] ss:$16 sps:$4 sm:$0xff] (!%p163_p2)  }
   0x9   : > { %v2571_v11 = vld [vmem:[%s3816_s1 + $0x48] ss:$16 sps:$4 sm:$0xff] (!%p163_p2)   ;;  %v2572_v12 = vld [vmem:[%s3816_s1 + $0x64] ss:$16 sps:$4 sm:$0xff] (!%p163_p2)   ;;  %v2574_v13 = vld [vmem:[%s3816_s1 + $0x6c] ss:$16 sps:$4 sm:$0xff] (!%p163_p2)  }
   0xa   : > { %v2576_v14 = vld [vmem:[%s3816_s1 + $0x60] ss:$16 sps:$4 sm:$0xff] (!%p163_p2)   ;;  %v2577_v15 = vld [vmem:[%s3816_s1 + $0x68] ss:$16 sps:$4 sm:$0xff] (!%p163_p2)   ;;  %v2578_v16 = vld [vmem:[%s3816_s1 + $0x84] ss:$16 sps:$4 sm:$0xff] (!%p163_p2)  }
   0xb   : > { %1142 = vmatpush1.bf16.msra.mxu0 (!%p163_p2), %v2564_v6  ;;  %1224 = vmatpush1.bf16.msra.mxu1 (!%p163_p2), %v2565_v7  ;;  %v2580_v17 = vld [vmem:[%s3816_s1 + $0x8c] ss:$16 sps:$4 sm:$0xff] (!%p163_p2)   ;;  %v2582_v18 = vld [vmem:[%s3816_s1 + $0x80] ss:$16 sps:$4 sm:$0xff] (!%p163_p2)   ;;  %v2583_v19 = vld [vmem:[%s3816_s1 + $0x88] ss:$16 sps:$4 sm:$0xff] (!%p163_p2)  }
   0xc   : > { %1143 = vmatprep.subr.bf16.mxu0 (!%p163_p2), %v2566_v8  ;;  %1225 = vmatprep.subr.bf16.mxu1 (!%p163_p2), %v2568_v9  ;;  %v2584_v20 = vld [vmem:[%s3816_s1 + $0xa4] ss:$16 sps:$4 sm:$0xff] (!%p163_p2)   ;;  %v2586_v21 = vld [vmem:[%s3816_s1 + $0xac] ss:$16 sps:$4 sm:$0xff] (!%p163_p2)   ;;  %v2588_v22 = vld [vmem:[%s3816_s1 + $0xa0] ss:$16 sps:$4 sm:$0xff] (!%p163_p2)  }
   0xd   : > { %v2589_v23 = vld [vmem:[%s3816_s1 + $0xa8] ss:$16 sps:$4 sm:$0xff]   ;;  %v2590_v24 = vld [vmem:[%s3816_s1 + $0xc4] ss:$16 sps:$4 sm:$0xff]   ;;  %v2592_v25 = vld [vmem:[%s3816_s1 + $0xcc] ss:$16 sps:$4 sm:$0xff]  }
   0xe   : > { %v2594_v26 = vld [vmem:[%s3816_s1 + $0xc0] ss:$16 sps:$4 sm:$0xff]   ;;  %v2595_v27 = vld [vmem:[%s3816_s1 + $0xc8] ss:$16 sps:$4 sm:$0xff]   ;;  %v2596_v28 = vld [vmem:[%s3816_s1 + $0xe4] ss:$16 sps:$4 sm:$0xff]  }
   0xf   : > { %1144 = vmatpush1.bf16.msra.mxu0 %v2570_v10  ;;  %1226 = vmatpush1.bf16.msra.mxu1 %v2571_v11  ;;  %v2598_v29 = vld [vmem:[%s3816_s1 + $0xec] ss:$16 sps:$4 sm:$0xff]   ;;  %v2600_v30 = vld [vmem:[%s3816_s1 + $0xe0] ss:$16 sps:$4 sm:$0xff]   ;;  %v2601_v31 = vld [vmem:[%s3816_s1 + $0xe8] ss:$16 sps:$4 sm:$0xff]  }
  0x10   : > { %1145 = vmatprep.subr.bf16.mxu0 %v2572_v12  ;;  %1227 = vmatprep.subr.bf16.mxu1 %v2574_v13  ;;  %v2602_v32 = vld [vmem:[%s3816_s1 + $0x104] ss:$16 sps:$4 sm:$0xff]   ;;  %v2604_v33 = vld [vmem:[%s3816_s1 + $0x10c] ss:$16 sps:$4 sm:$0xff]   ;;  %v2606_v34 = vld [vmem:[%s3816_s1 + $0x100] ss:$16 sps:$4 sm:$0xff]  }
  0x11   : > { %v2607_v35 = vld [vmem:[%s3816_s1 + $0x108] ss:$16 sps:$4 sm:$0xff]   ;;  %v2947_v37 = vmov 1983009808   ;;  %v2608_v39 = vld [vmem:[%s3816_s1 + $0x124] ss:$16 sps:$4 sm:$0xff]  }
  0x12   : > { %v480_v38 = vunpack.c.l.s4 %v2947_v37  ;;  %s3821_s16 = smov (!%p188_p3, %s2247_s16), 7  ;;  %v2610_v40 = vld [vmem:[%s3816_s1 + $0x12c] ss:$16 sps:$4 sm:$0xff]   ;;  %v2612_v41 = vld [vmem:[%s3816_s1 + $0x120] ss:$16 sps:$4 sm:$0xff]   ;;  %v3104_v42 = vshrl.u32 %v457_v36, 7 }
  0x13   : > { %1146 = vmatpush1.bf16.msra.mxu0 %v2576_v14  ;;  %1228 = vmatpush1.bf16.msra.mxu1 %v2577_v15  ;;  %v2613_v44 = vld [vmem:[%s3816_s1 + $0x128] ss:$16 sps:$4 sm:$0xff]   ;;  %v2614_v45 = vld [vmem:[%s3816_s1 + $0x144] ss:$16 sps:$4 sm:$0xff]   ;;  %s2519_s27 = sshll.u32 %s3821_s16, 3  ;;  %s2520_s5 = sshll.u32 %s3821_s16, 4 }
  0x14   : > { %1147 = vmatprep.subr.bf16.mxu0 %v2578_v16  ;;  %1229 = vmatprep.subr.bf16.mxu1 %v2580_v17  ;;  %v481_v43 = vunpack.c.0.s8 %v480_v38  ;;  %v2616_v46 = vld [vmem:[%s3816_s1 + $0x14c] ss:$16 sps:$4 sm:$0xff]   ;;  %v2618_v47 = vld [vmem:[%s3816_s1 + $0x140] ss:$16 sps:$4 sm:$0xff]   ;;  %v2619_v48 = vld [vmem:[%s3816_s1 + $0x148] ss:$16 sps:$4 sm:$0xff]   ;;  %s192_s10 = scalar_lea.vmem %s3815_s0, %s2519_s27  ;;  %s197_s8 = scalar_lea.vmem %s3819_s4, %s2520_s5 }
  0x15   : > { %v2620_v50 = vld [vmem:[%s3816_s1 + $0x164] ss:$16 sps:$4 sm:$0xff]   ;;  %v2622_v51 = vld [vmem:[%s3816_s1 + $0x16c] ss:$16 sps:$4 sm:$0xff]   ;;  %v2624_v53 = vld [vmem:[%s3816_s1 + $0x160] ss:$16 sps:$4 sm:$0xff]  }
  0x16   : > { %v3126_v49 = vsub.s32 %v481_v43, %v3104_v42  ;;  %v198_v52 = vld [vmem:[%s192_s10] sm:$0xff]  ;;  %v2625_v55 = vld [vmem:[%s3816_s1 + $0x168] ss:$16 sps:$4 sm:$0xff]   ;;  %v2628_v57 = vld [vmem:[%s3816_s1 + $0x18c] ss:$16 sps:$4 sm:$0xff]  }
  0x17   : > { %1148 = vmatpush1.bf16.msra.mxu0 %v2582_v18  ;;  %1230 = vmatpush1.bf16.msra.mxu1 %v2583_v19  ;;  %v2626_v56 = vld [vmem:[%s3816_s1 + $0x184] ss:$16 sps:$4 sm:$0xff]   ;;  %v2630_v59 = vld [vmem:[%s3816_s1 + $0x180] ss:$16 sps:$4 sm:$0xff]   ;;  %v2631_v60 = vld [vmem:[%s3816_s1 + $0x188] ss:$16 sps:$4 sm:$0xff]   ;;  %v478_v7 = vcombine.high %v198_v52, %v198_v52 }
  0x18   : > { %1149 = vmatprep.subr.bf16.mxu0 %v2584_v20  ;;  %1231 = vmatprep.subr.bf16.mxu1 %v2586_v21  ;;  %v3138_v54 = vrot.slane %v198_v52, %v3126_v49  ;;  %v2632_v61 = vld [vmem:[%s3816_s1 + $0x1a4] ss:$16 sps:$4 sm:$0xff]   ;;  %v2634_v62 = vld [vmem:[%s3816_s1 + $0x1ac] ss:$16 sps:$4 sm:$0xff]   ;;  %v2636_v63 = vld [vmem:[%s3816_s1 + $0x1a0] ss:$16 sps:$4 sm:$0xff]  }
  0x19   : > { %v2637_v0 = vld [vmem:[%s3816_s1 + $0x1a8] ss:$16 sps:$4 sm:$0xff]   ;;  %v2638_v1 = vld [vmem:[%s3816_s1 + $0x1c4] ss:$16 sps:$4 sm:$0xff]   ;;  %v2640_v2 = vld [vmem:[%s3816_s1 + $0x1cc] ss:$16 sps:$4 sm:$0xff]   ;;  %v3204_v12 = vrot.slane %v478_v7, %v3126_v49 }
  0x1a   : > { %v3151_v58 = vcombine.high %v3138_v54, %v3138_v54  ;;  %v2642_v3 = vld [vmem:[%s3816_s1 + $0x1c0] ss:$16 sps:$4 sm:$0xff]   ;;  %v2643_v4 = vld [vmem:[%s3816_s1 + $0x1c8] ss:$16 sps:$4 sm:$0xff]   ;;  %v2644_v5 = vld [vmem:[%s3816_s1 + $0x1e4] ss:$16 sps:$4 sm:$0xff]  }
  0x1b   : > { %1150 = vmatpush1.bf16.msra.mxu0 %v2588_v22  ;;  %1232 = vmatpush1.bf16.msra.mxu1 %v2589_v23  ;;  %v2646_v6 = vld [vmem:[%s3816_s1 + $0x1ec] ss:$16 sps:$4 sm:$0xff]   ;;  %v2648_v8 = vld [vmem:[%s3816_s1 + $0x1e0] ss:$16 sps:$4 sm:$0xff]   ;;  %v2649_v9 = vld [vmem:[%s3816_s1 + $0x1e8] ss:$16 sps:$4 sm:$0xff]   ;;  %v3220_v17 = vcombine.high %v3204_v12, %v3204_v12 }
  0x1c   : > { %1151 = vmatprep.subr.bf16.mxu0 %v2590_v24  ;;  %1233 = vmatprep.subr.bf16.mxu1 %v2592_v25  ;;  %v2652_v10 = vld [vmem:[%s3816_s1 + $0x204] ss:$16 sps:$4 sm:$0xff]   ;;  %v2655_v11 = vld [vmem:[%s3816_s1 + $0x20c] ss:$16 sps:$4 sm:$0xff]   ;;  %v2650_v13 = vld [vmem:[%s3816_s1 + $0x200] ss:$16 sps:$4 sm:$0xff]  }
  0x1d   : > { %1171 = vmatprep.mubr.bf16.mxu0 %v3151_v58  ;;  %1253 = vmatprep.mubr.bf16.mxu1 %v3151_v58  ;;  %v2653_v14 = vld [vmem:[%s3816_s1 + $0x208] ss:$16 sps:$4 sm:$0xff]   ;;  %v2658_v15 = vld [vmem:[%s3816_s1 + $0x224] ss:$16 sps:$4 sm:$0xff]   ;;  %v2661_v16 = vld [vmem:[%s3816_s1 + $0x22c] ss:$16 sps:$4 sm:$0xff]  }
  0x1e   : > { %v2656_v18 = vld [vmem:[%s3816_s1 + $0x220] ss:$16 sps:$4 sm:$0xff]   ;;  %v2659_v19 = vld [vmem:[%s3816_s1 + $0x228] ss:$16 sps:$4 sm:$0xff]   ;;  %v2664_v20 = vld [vmem:[%s3816_s1 + $0x244] ss:$16 sps:$4 sm:$0xff]  }
  0x1f   : > { %1152 = vmatpush1.bf16.msra.mxu0 %v2594_v26  ;;  %1234 = vmatpush1.bf16.msra.mxu1 %v2595_v27  ;;  %v2667_v21 = vld [vmem:[%s3816_s1 + $0x24c] ss:$16 sps:$4 sm:$0xff]   ;;  %v2662_v22 = vld [vmem:[%s3816_s1 + $0x240] ss:$16 sps:$4 sm:$0xff]   ;;  %v2665_v23 = vld [vmem:[%s3816_s1 + $0x248] ss:$16 sps:$4 sm:$0xff]  }
  0x20   : > { %1153 = vmatprep.subr.bf16.mxu0 %v2596_v28  ;;  %1235 = vmatprep.subr.bf16.mxu1 %v2598_v29  ;;  %v2670_v24 = vld [vmem:[%s3816_s1 + $0x264] ss:$16 sps:$4 sm:$0xff]   ;;  %v2673_v25 = vld [vmem:[%s3816_s1 + $0x26c] ss:$16 sps:$4 sm:$0xff]   ;;  %v2668_v26 = vld [vmem:[%s3816_s1 + $0x260] ss:$16 sps:$4 sm:$0xff]  }
  0x21   : > { %v2671_v27 = vld [vmem:[%s3816_s1 + $0x268] ss:$16 sps:$4 sm:$0xff]   ;;  %v2676_v28 = vld [vmem:[%s3816_s1 + $0x284] ss:$16 sps:$4 sm:$0xff]   ;;  %v2679_v29 = vld [vmem:[%s3816_s1 + $0x28c] ss:$16 sps:$4 sm:$0xff]  }
  0x22   : > { %v2688_v36 = vld [vmem:[%s3816_s1 + $0x2c4] ss:$16 sps:$4 sm:$0xff]   ;;  %v2691_v37 = vld [vmem:[%s3816_s1 + $0x2cc] ss:$16 sps:$4 sm:$0xff]   ;;  %v2686_v38 = vld [vmem:[%s3816_s1 + $0x2c0] ss:$16 sps:$4 sm:$0xff]  }
  0x23   : > { %1154 = vmatpush1.bf16.msra.mxu0 %v2600_v30  ;;  %1236 = vmatpush1.bf16.msra.mxu1 %v2601_v31  ;;  %v2674_v30 = vld [vmem:[%s3816_s1 + $0x280] ss:$16 sps:$4 sm:$0xff]   ;;  %v2677_v31 = vld [vmem:[%s3816_s1 + $0x288] ss:$16 sps:$4 sm:$0xff]  }
  0x24   : > { %1155 = vmatprep.subr.bf16.mxu0 %v2602_v32  ;;  %1237 = vmatprep.subr.bf16.mxu1 %v2604_v33  ;;  %v2682_v32 = vld [vmem:[%s3816_s1 + $0x2a4] ss:$16 sps:$4 sm:$0xff]   ;;  %v2685_v33 = vld [vmem:[%s3816_s1 + $0x2ac] ss:$16 sps:$4 sm:$0xff]   ;;  %v2692_v43 = vld [vmem:[%s3816_s1 + $0x2e0] ss:$16 sps:$4 sm:$0xff]  }
  0x25   : > { %v2704_v52 = vld [vmem:[%s3816_s1 + $0x320] ss:$16 sps:$4 sm:$0xff]   ;;  %v2731_v7 = vld [vmem:[%s3816_s1 + $0x3a8] ss:$16 sps:$4 sm:$0xff]  }
  0x27   : > { %1156 = vmatpush1.bf16.msra.mxu0 %v2606_v34  ;;  %1238 = vmatpush1.bf16.msra.mxu1 %v2607_v35  ;;  %v2680_v34 = vld [vmem:[%s3816_s1 + $0x2a0] ss:$16 sps:$4 sm:$0xff]   ;;  %v2683_v35 = vld [vmem:[%s3816_s1 + $0x2a8] ss:$16 sps:$4 sm:$0xff]  }
  0x28   : > { %1157 = vmatprep.subr.bf16.mxu0 %v2608_v39  ;;  %1239 = vmatprep.subr.bf16.mxu1 %v2610_v40  ;;  %v2689_v39 = vld [vmem:[%s3816_s1 + $0x2c8] ss:$16 sps:$4 sm:$0xff]   ;;  %v2694_v40 = vld [vmem:[%s3816_s1 + $0x2e4] ss:$16 sps:$4 sm:$0xff]  }
  0x2b   : > { %1158 = vmatpush1.bf16.msra.mxu0 %v2612_v41  ;;  %1240 = vmatpush1.bf16.msra.mxu1 %v2613_v44  ;;  %v2697_v41 = vld [vmem:[%s3816_s1 + $0x2ec] ss:$16 sps:$4 sm:$0xff]   ;;  %v2695_v44 = vld [vmem:[%s3816_s1 + $0x2e8] ss:$16 sps:$4 sm:$0xff]  }
  0x2c   : > { %1159 = vmatprep.subr.bf16.mxu0 %v2614_v45  ;;  %1241 = vmatprep.subr.bf16.mxu1 %v2616_v46  ;;  %v2700_v45 = vld [vmem:[%s3816_s1 + $0x304] ss:$16 sps:$4 sm:$0xff]   ;;  %v2703_v46 = vld [vmem:[%s3816_s1 + $0x30c] ss:$16 sps:$4 sm:$0xff]  }
  0x2f   : > { %1160 = vmatpush1.bf16.msra.mxu0 %v2618_v47  ;;  %1242 = vmatpush1.bf16.msra.mxu1 %v2619_v48  ;;  %v2698_v47 = vld [vmem:[%s3816_s1 + $0x300] ss:$16 sps:$4 sm:$0xff]   ;;  %v2701_v48 = vld [vmem:[%s3816_s1 + $0x308] ss:$16 sps:$4 sm:$0xff]  }
  0x30   : > { %1161 = vmatprep.subr.bf16.mxu0 %v2620_v50  ;;  %1243 = vmatprep.subr.bf16.mxu1 %v2622_v51  ;;  %v2706_v50 = vld [vmem:[%s3816_s1 + $0x324] ss:$16 sps:$4 sm:$0xff]   ;;  %v2709_v51 = vld [vmem:[%s3816_s1 + $0x32c] ss:$16 sps:$4 sm:$0xff]  }
  0x33   : > { %1162 = vmatpush1.bf16.msra.mxu0 %v2624_v53  ;;  %1244 = vmatpush1.bf16.msra.mxu1 %v2625_v55  ;;  %v2707_v53 = vld [vmem:[%s3816_s1 + $0x328] ss:$16 sps:$4 sm:$0xff]   ;;  %v2712_v55 = vld [vmem:[%s3816_s1 + $0x344] ss:$16 sps:$4 sm:$0xff]  }
  0x34   : > { %1163 = vmatprep.subr.bf16.mxu0 %v2626_v56  ;;  %1245 = vmatprep.subr.bf16.mxu1 %v2628_v57  ;;  %v2715_v56 = vld [vmem:[%s3816_s1 + $0x34c] ss:$16 sps:$4 sm:$0xff]   ;;  %v2710_v57 = vld [vmem:[%s3816_s1 + $0x340] ss:$16 sps:$4 sm:$0xff]  }
  0x37   : > { %1164 = vmatpush1.bf16.msra.mxu0 %v2630_v59  ;;  %1246 = vmatpush1.bf16.msra.mxu1 %v2631_v60  ;;  %v2713_v59 = vld [vmem:[%s3816_s1 + $0x348] ss:$16 sps:$4 sm:$0xff]   ;;  %v2718_v60 = vld [vmem:[%s3816_s1 + $0x364] ss:$16 sps:$4 sm:$0xff]  }
  0x38   : > { %1165 = vmatprep.subr.bf16.mxu0 %v2632_v61  ;;  %1247 = vmatprep.subr.bf16.mxu1 %v2634_v62  ;;  %v2721_v61 = vld [vmem:[%s3816_s1 + $0x36c] ss:$16 sps:$4 sm:$0xff]   ;;  %v2716_v62 = vld [vmem:[%s3816_s1 + $0x360] ss:$16 sps:$4 sm:$0xff]  }
  0x3b   : > { %1166 = vmatpush1.bf16.msra.mxu0 %v2636_v63  ;;  %1248 = vmatpush1.bf16.msra.mxu1 %v2637_v0  ;;  %v2719_v63 = vld [vmem:[%s3816_s1 + $0x368] ss:$16 sps:$4 sm:$0xff]   ;;  %v2724_v0 = vld [vmem:[%s3816_s1 + $0x384] ss:$16 sps:$4 sm:$0xff]  }
  0x3c   : > { %1167 = vmatprep.subr.bf16.mxu0 %v2638_v1  ;;  %1249 = vmatprep.subr.bf16.mxu1 %v2640_v2  ;;  %v2727_v1 = vld [vmem:[%s3816_s1 + $0x38c] ss:$16 sps:$4 sm:$0xff]   ;;  %v2722_v2 = vld [vmem:[%s3816_s1 + $0x380] ss:$16 sps:$4 sm:$0xff]  }
  0x3f   : > { %1168 = vmatpush1.bf16.msra.mxu0 %v2642_v3  ;;  %1250 = vmatpush1.bf16.msra.mxu1 %v2643_v4  ;;  %v2725_v3 = vld [vmem:[%s3816_s1 + $0x388] ss:$16 sps:$4 sm:$0xff]   ;;  %v2730_v4 = vld [vmem:[%s3816_s1 + $0x3a4] ss:$16 sps:$4 sm:$0xff]  }
  0x40   : > { %1169 = vmatprep.subr.bf16.mxu0 %v2644_v5  ;;  %1251 = vmatprep.subr.bf16.mxu1 %v2646_v6  ;;  %v2733_v5 = vld [vmem:[%s3816_s1 + $0x3ac] ss:$16 sps:$4 sm:$0xff]   ;;  %v2728_v6 = vld [vmem:[%s3816_s1 + $0x3a0] ss:$16 sps:$4 sm:$0xff]  }
  0x43   : > { %1170 = vmatpush1.bf16.msra.mxu0 %v2648_v8  ;;  %1252 = vmatpush1.bf16.msra.mxu1 %v2649_v9  ;;  %v2736_v8 = vld [vmem:[%s3816_s1 + $0x3c4] ss:$16 sps:$4 sm:$0xff]   ;;  %v2739_v9 = vld [vmem:[%s3816_s1 + $0x3cc] ss:$16 sps:$4 sm:$0xff]  }
  0x44   : > { %1180 = vmatprep.subr.bf16.mxu0 %v2652_v10  ;;  %1262 = vmatprep.subr.bf16.mxu1 %v2655_v11  ;;  %v2734_v10 = vld [vmem:[%s3816_s1 + $0x3c0] ss:$16 sps:$4 sm:$0xff]   ;;  %v2737_v11 = vld [vmem:[%s3816_s1 + $0x3c8] ss:$16 sps:$4 sm:$0xff]  }
  0x46   : > { %1172 = vmatmul.mubr.bf16.vlgmr.msra.gmra.mrb[0].mxu0 %v3138_v54  ;;  %1254 = vmatmul.mubr.bf16.vlgmr.msra.gmra.mrb[0].mxu1 %v3138_v54 }
  0x47   : > { %1181 = vmatpush1.bf16.msra.mxu0 %v2650_v13  ;;  %1263 = vmatpush1.bf16.msra.mxu1 %v2653_v14  ;;  %v2742_v13 = vld [vmem:[%s3816_s1 + $0x3e4] ss:$16 sps:$4 sm:$0xff]   ;;  %v2745_v14 = vld [vmem:[%s3816_s1 + $0x3ec] ss:$16 sps:$4 sm:$0xff]  }
  0x48   : > { %1182 = vmatprep.subr.bf16.mxu0 %v2658_v15  ;;  %1264 = vmatprep.subr.bf16.mxu1 %v2661_v16  ;;  %v2740_v15 = vld [vmem:[%s3816_s1 + $0x3e0] ss:$16 sps:$4 sm:$0xff]   ;;  %v2743_v16 = vld [vmem:[%s3816_s1 + $0x3e8] ss:$16 sps:$4 sm:$0xff]  }
  0x49   : > { %1212 = vmatprep.mubr.bf16.mxu0 %v3220_v17  ;;  %1294 = vmatprep.mubr.bf16.mxu1 %v3220_v17 }
  0x4b   : > { %1183 = vmatpush1.bf16.msra.mxu0 %v2656_v18  ;;  %1265 = vmatpush1.bf16.msra.mxu1 %v2659_v19  ;;  %v2749_v18 = vld [vmem:[%s3817_s2 + $0x4] ss:$16 sps:$4 sm:$0xff]   ;;  %v2752_v19 = vld [vmem:[%s3817_s2 + $0xc] ss:$16 sps:$4 sm:$0xff]  }
  0x4c   : > { %1184 = vmatprep.subr.bf16.mxu0 %v2664_v20  ;;  %1266 = vmatprep.subr.bf16.mxu1 %v2667_v21  ;;  %v2747_v20 = vld [vmem:[%s3817_s2] ss:$16 sps:$4 sm:$0xff]   ;;  %v2750_v21 = vld [vmem:[%s3817_s2 + $0x8] ss:$16 sps:$4 sm:$0xff]  }
  0x4f   : > { %1185 = vmatpush1.bf16.msra.mxu0 %v2662_v22  ;;  %1267 = vmatpush1.bf16.msra.mxu1 %v2665_v23  ;;  %v2755_v22 = vld [vmem:[%s3817_s2 + $0x24] ss:$16 sps:$4 sm:$0xff]   ;;  %v2758_v23 = vld [vmem:[%s3817_s2 + $0x2c] ss:$16 sps:$4 sm:$0xff]  }
  0x50   : > { %1186 = vmatprep.subr.bf16.mxu0 %v2670_v24  ;;  %1268 = vmatprep.subr.bf16.mxu1 %v2673_v25  ;;  %v2753_v24 = vld [vmem:[%s3817_s2 + $0x20] ss:$16 sps:$4 sm:$0xff]   ;;  %v2756_v25 = vld [vmem:[%s3817_s2 + $0x28] ss:$16 sps:$4 sm:$0xff]  }
  0x53   : > { %1187 = vmatpush1.bf16.msra.mxu0 %v2668_v26  ;;  %1269 = vmatpush1.bf16.msra.mxu1 %v2671_v27  ;;  %v2761_v26 = vld [vmem:[%s3817_s2 + $0x44] ss:$16 sps:$4 sm:$0xff]   ;;  %v2764_v27 = vld [vmem:[%s3817_s2 + $0x4c] ss:$16 sps:$4 sm:$0xff]  }
  0x54   : > { %1188 = vmatprep.subr.bf16.mxu0 %v2676_v28  ;;  %1270 = vmatprep.subr.bf16.mxu1 %v2679_v29  ;;  %v2759_v28 = vld [vmem:[%s3817_s2 + $0x40] ss:$16 sps:$4 sm:$0xff]   ;;  %v2762_v29 = vld [vmem:[%s3817_s2 + $0x48] ss:$16 sps:$4 sm:$0xff]  }
  0x57   : > { %1189 = vmatpush1.bf16.msra.mxu0 %v2674_v30  ;;  %1271 = vmatpush1.bf16.msra.mxu1 %v2677_v31  ;;  %v2767_v30 = vld [vmem:[%s3817_s2 + $0x64] ss:$16 sps:$4 sm:$0xff]   ;;  %v2765_v31 = vld [vmem:[%s3817_s2 + $0x60] ss:$16 sps:$4 sm:$0xff]  }
  0x58   : > { %1190 = vmatprep.subr.bf16.mxu0 %v2682_v32  ;;  %1272 = vmatprep.subr.bf16.mxu1 %v2685_v33  ;;  %v2768_v32 = vld [vmem:[%s3817_s2 + $0x68] ss:$16 sps:$4 sm:$0xff]   ;;  %v2773_v33 = vld [vmem:[%s3817_s2 + $0x84] ss:$16 sps:$4 sm:$0xff]  }
  0x5b   : > { %1191 = vmatpush1.bf16.msra.mxu0 %v2680_v34  ;;  %1273 = vmatpush1.bf16.msra.mxu1 %v2683_v35  ;;  %v2776_v34 = vld [vmem:[%s3817_s2 + $0x8c] ss:$16 sps:$4 sm:$0xff]   ;;  %v2771_v35 = vld [vmem:[%s3817_s2 + $0x80] ss:$16 sps:$4 sm:$0xff]  }
  0x5c   : > { %1192 = vmatprep.subr.bf16.mxu0 %v2688_v36  ;;  %1274 = vmatprep.subr.bf16.mxu1 %v2691_v37  ;;  %v2774_v36 = vld [vmem:[%s3817_s2 + $0x88] ss:$16 sps:$4 sm:$0xff]   ;;  %v2779_v37 = vld [vmem:[%s3817_s2 + $0xa4] ss:$16 sps:$4 sm:$0xff]  }
  0x5f   : > { %1193 = vmatpush1.bf16.msra.mxu0 %v2686_v38  ;;  %1275 = vmatpush1.bf16.msra.mxu1 %v2689_v39  ;;  %v2782_v38 = vld [vmem:[%s3817_s2 + $0xac] ss:$16 sps:$4 sm:$0xff]   ;;  %v2777_v39 = vld [vmem:[%s3817_s2 + $0xa0] ss:$16 sps:$4 sm:$0xff]  }
  0x60   : > { %1194 = vmatprep.subr.bf16.mxu0 %v2694_v40  ;;  %1276 = vmatprep.subr.bf16.mxu1 %v2697_v41  ;;  %v2780_v40 = vld [vmem:[%s3817_s2 + $0xa8] ss:$16 sps:$4 sm:$0xff]   ;;  %v2785_v41 = vld [vmem:[%s3817_s2 + $0xc4] ss:$16 sps:$4 sm:$0xff]  }
  0x63   : > { %1195 = vmatpush1.bf16.msra.mxu0 %v2692_v43  ;;  %1277 = vmatpush1.bf16.msra.mxu1 %v2695_v44  ;;  %v2788_v43 = vld [vmem:[%s3817_s2 + $0xcc] ss:$16 sps:$4 sm:$0xff]   ;;  %v2783_v44 = vld [vmem:[%s3817_s2 + $0xc0] ss:$16 sps:$4 sm:$0xff]  }
  0x64   : > { %1196 = vmatprep.subr.bf16.mxu0 %v2700_v45  ;;  %1278 = vmatprep.subr.bf16.mxu1 %v2703_v46  ;;  %v2786_v45 = vld [vmem:[%s3817_s2 + $0xc8] ss:$16 sps:$4 sm:$0xff]   ;;  %v2791_v46 = vld [vmem:[%s3817_s2 + $0xe4] ss:$16 sps:$4 sm:$0xff]  }
  0x67   : > { %1197 = vmatpush1.bf16.msra.mxu0 %v2698_v47  ;;  %1279 = vmatpush1.bf16.msra.mxu1 %v2701_v48  ;;  %v2794_v47 = vld [vmem:[%s3817_s2 + $0xec] ss:$16 sps:$4 sm:$0xff]   ;;  %v2789_v48 = vld [vmem:[%s3817_s2 + $0xe0] ss:$16 sps:$4 sm:$0xff]  }
  0x68   : > { %1198 = vmatprep.subr.bf16.mxu0 %v2706_v50  ;;  %1280 = vmatprep.subr.bf16.mxu1 %v2709_v51  ;;  %v2792_v50 = vld [vmem:[%s3817_s2 + $0xe8] ss:$16 sps:$4 sm:$0xff]   ;;  %v2797_v51 = vld [vmem:[%s3817_s2 + $0x104] ss:$16 sps:$4 sm:$0xff]  }
  0x6b   : > { %1199 = vmatpush1.bf16.msra.mxu0 %v2704_v52  ;;  %1281 = vmatpush1.bf16.msra.mxu1 %v2707_v53  ;;  %v2800_v52 = vld [vmem:[%s3817_s2 + $0x10c] ss:$16 sps:$4 sm:$0xff]   ;;  %v2795_v53 = vld [vmem:[%s3817_s2 + $0x100] ss:$16 sps:$4 sm:$0xff]  }
  0x6c   : > { %1200 = vmatprep.subr.bf16.mxu0 %v2712_v55  ;;  %1282 = vmatprep.subr.bf16.mxu1 %v2715_v56  ;;  %v2798_v55 = vld [vmem:[%s3817_s2 + $0x108] ss:$16 sps:$4 sm:$0xff]   ;;  %v2803_v56 = vld [vmem:[%s3817_s2 + $0x124] ss:$16 sps:$4 sm:$0xff]  }
  0x6f   : > { %1201 = vmatpush1.bf16.msra.mxu0 %v2710_v57  ;;  %1283 = vmatpush1.bf16.msra.mxu1 %v2713_v59  ;;  %v2806_v57 = vld [vmem:[%s3817_s2 + $0x12c] ss:$16 sps:$4 sm:$0xff]   ;;  %v2801_v59 = vld [vmem:[%s3817_s2 + $0x120] ss:$16 sps:$4 sm:$0xff]  }
  0x70   : > { %1202 = vmatprep.subr.bf16.mxu0 %v2718_v60  ;;  %1284 = vmatprep.subr.bf16.mxu1 %v2721_v61  ;;  %v2804_v60 = vld [vmem:[%s3817_s2 + $0x128] ss:$16 sps:$4 sm:$0xff]   ;;  %v2809_v61 = vld [vmem:[%s3817_s2 + $0x144] ss:$16 sps:$4 sm:$0xff]  }
  0x73   : > { %1203 = vmatpush1.bf16.msra.mxu0 %v2716_v62  ;;  %1285 = vmatpush1.bf16.msra.mxu1 %v2719_v63  ;;  %v2812_v62 = vld [vmem:[%s3817_s2 + $0x14c] ss:$16 sps:$4 sm:$0xff]   ;;  %v2807_v63 = vld [vmem:[%s3817_s2 + $0x140] ss:$16 sps:$4 sm:$0xff]  }
  0x74   : > { %1204 = vmatprep.subr.bf16.mxu0 %v2724_v0  ;;  %1286 = vmatprep.subr.bf16.mxu1 %v2727_v1  ;;  %v2810_v0 = vld [vmem:[%s3817_s2 + $0x148] ss:$16 sps:$4 sm:$0xff]   ;;  %v2815_v1 = vld [vmem:[%s3817_s2 + $0x164] ss:$16 sps:$4 sm:$0xff]  }
  0x77   : > { %1205 = vmatpush1.bf16.msra.mxu0 %v2722_v2  ;;  %1287 = vmatpush1.bf16.msra.mxu1 %v2725_v3  ;;  %v2818_v2 = vld [vmem:[%s3817_s2 + $0x16c] ss:$16 sps:$4 sm:$0xff]   ;;  %v2813_v3 = vld [vmem:[%s3817_s2 + $0x160] ss:$16 sps:$4 sm:$0xff]  }
  0x78   : > { %1206 = vmatprep.subr.bf16.mxu0 %v2730_v4  ;;  %1288 = vmatprep.subr.bf16.mxu1 %v2733_v5  ;;  %v2816_v4 = vld [vmem:[%s3817_s2 + $0x168] ss:$16 sps:$4 sm:$0xff]   ;;  %v2821_v5 = vld [vmem:[%s3817_s2 + $0x184] ss:$16 sps:$4 sm:$0xff]  }
  0x7b   : > { %1207 = vmatpush1.bf16.msra.mxu0 %v2728_v6  ;;  %1289 = vmatpush1.bf16.msra.mxu1 %v2731_v7  ;;  %v2824_v6 = vld [vmem:[%s3817_s2 + $0x18c] ss:$16 sps:$4 sm:$0xff]   ;;  %v2819_v7 = vld [vmem:[%s3817_s2 + $0x180] ss:$16 sps:$4 sm:$0xff]  }
  0x7c   : > { %1208 = vmatprep.subr.bf16.mxu0 %v2736_v8  ;;  %1290 = vmatprep.subr.bf16.mxu1 %v2739_v9  ;;  %v2822_v8 = vld [vmem:[%s3817_s2 + $0x188] ss:$16 sps:$4 sm:$0xff]   ;;  %v2827_v9 = vld [vmem:[%s3817_s2 + $0x1a4] ss:$16 sps:$4 sm:$0xff]  }
  0x7f   : > { %1209 = vmatpush1.bf16.msra.mxu0 %v2734_v10  ;;  %1291 = vmatpush1.bf16.msra.mxu1 %v2737_v11  ;;  %v2830_v10 = vld [vmem:[%s3817_s2 + $0x1ac] ss:$16 sps:$4 sm:$0xff]   ;;  %v2825_v11 = vld [vmem:[%s3817_s2 + $0x1a0] ss:$16 sps:$4 sm:$0xff]  }
  0x80   : > { %1210 = vmatprep.subr.bf16.mxu0 %v2742_v13  ;;  %1292 = vmatprep.subr.bf16.mxu1 %v2745_v14  ;;  %v2828_v13 = vld [vmem:[%s3817_s2 + $0x1a8] ss:$16 sps:$4 sm:$0xff]   ;;  %v2833_v14 = vld [vmem:[%s3817_s2 + $0x1c4] ss:$16 sps:$4 sm:$0xff]  }
  0x83   : > { %1211 = vmatpush1.bf16.msra.mxu0 %v2740_v15  ;;  %1293 = vmatpush1.bf16.msra.mxu1 %v2743_v16  ;;  %v2836_v15 = vld [vmem:[%s3817_s2 + $0x1cc] ss:$16 sps:$4 sm:$0xff]   ;;  %v2831_v16 = vld [vmem:[%s3817_s2 + $0x1c0] ss:$16 sps:$4 sm:$0xff]  }
  0x84   : > { %1996 = vmatprep.subr.bf16.mxu0 %v2749_v18  ;;  %2078 = vmatprep.subr.bf16.mxu1 %v2752_v19  ;;  %v2834_v18 = vld [vmem:[%s3817_s2 + $0x1c8] ss:$16 sps:$4 sm:$0xff]   ;;  %v2839_v19 = vld [vmem:[%s3817_s2 + $0x1e4] ss:$16 sps:$4 sm:$0xff]  }
  0x86   : > { %1213 = vmatmul.mubr.bf16.vlgmr.msra.gmra.mrb[0].mxu0 %v3204_v12  ;;  %1295 = vmatmul.mubr.bf16.vlgmr.msra.gmra.mrb[0].mxu1 %v3204_v12 }
  0x87   : > { %1997 = vmatpush1.bf16.msra.mxu0 %v2747_v20  ;;  %2079 = vmatpush1.bf16.msra.mxu1 %v2750_v21  ;;  %v2842_v20 = vld [vmem:[%s3817_s2 + $0x1ec] ss:$16 sps:$4 sm:$0xff]   ;;  %v2837_v21 = vld [vmem:[%s3817_s2 + $0x1e0] ss:$16 sps:$4 sm:$0xff]  }
  0x88   : > { %1998 = vmatprep.subr.bf16.mxu0 %v2755_v22  ;;  %2080 = vmatprep.subr.bf16.mxu1 %v2758_v23  ;;  %v2840_v22 = vld [vmem:[%s3817_s2 + $0x1e8] ss:$16 sps:$4 sm:$0xff]   ;;  %v2845_v23 = vld [vmem:[%s3817_s2 + $0x204] ss:$16 sps:$4 sm:$0xff]  }
  0x89   : > { %2028 = vmatprep.mubr.bf16.mxu0 %v3151_v58  ;;  %2110 = vmatprep.mubr.bf16.mxu1 %v3151_v58  ;;  %v2770_v58 = vld [vmem:[%s3817_s2 + $0x6c] ss:$16 sps:$4 sm:$0xff]  }
  0x8b   : > { %1999 = vmatpush1.bf16.msra.mxu0 %v2753_v24  ;;  %2081 = vmatpush1.bf16.msra.mxu1 %v2756_v25  ;;  %v2848_v24 = vld [vmem:[%s3817_s2 + $0x20c] ss:$16 sps:$4 sm:$0xff]   ;;  %v2843_v25 = vld [vmem:[%s3817_s2 + $0x200] ss:$16 sps:$4 sm:$0xff]  }
  0x8c   : > { %2000 = vmatprep.subr.bf16.mxu0 %v2761_v26  ;;  %2082 = vmatprep.subr.bf16.mxu1 %v2764_v27  ;;  %v2846_v26 = vld [vmem:[%s3817_s2 + $0x208] ss:$16 sps:$4 sm:$0xff]   ;;  %v2851_v27 = vld [vmem:[%s3817_s2 + $0x224] ss:$16 sps:$4 sm:$0xff]  }
  0x8f   : > { %2001 = vmatpush1.bf16.msra.mxu0 %v2759_v28  ;;  %2083 = vmatpush1.bf16.msra.mxu1 %v2762_v29  ;;  %v2854_v28 = vld [vmem:[%s3817_s2 + $0x22c] ss:$16 sps:$4 sm:$0xff]   ;;  %v2849_v29 = vld [vmem:[%s3817_s2 + $0x220] ss:$16 sps:$4 sm:$0xff]  }
  0x90   : > { %2002 = vmatprep.subr.bf16.mxu0 %v2767_v30  ;;  %2084 = vmatprep.subr.bf16.mxu1 %v2770_v58  ;;  %v2852_v30 = vld [vmem:[%s3817_s2 + $0x228] ss:$16 sps:$4 sm:$0xff]   ;;  %v2857_v58 = vld [vmem:[%s3817_s2 + $0x244] ss:$16 sps:$4 sm:$0xff]  }
  0x93   : > { %2003 = vmatpush1.bf16.msra.mxu0 %v2765_v31  ;;  %2085 = vmatpush1.bf16.msra.mxu1 %v2768_v32  ;;  %v2855_v31 = vld [vmem:[%s3817_s2 + $0x240] ss:$16 sps:$4 sm:$0xff]   ;;  %v2858_v32 = vld [vmem:[%s3817_s2 + $0x248] ss:$16 sps:$4 sm:$0xff]  }
  0x94   : > { %2004 = vmatprep.subr.bf16.mxu0 %v2773_v33  ;;  %2086 = vmatprep.subr.bf16.mxu1 %v2776_v34  ;;  %v2863_v33 = vld [vmem:[%s3817_s2 + $0x264] ss:$16 sps:$4 sm:$0xff]   ;;  %v2861_v34 = vld [vmem:[%s3817_s2 + $0x260] ss:$16 sps:$4 sm:$0xff]  }
  0x97   : > { %2005 = vmatpush1.bf16.msra.mxu0 %v2771_v35  ;;  %2087 = vmatpush1.bf16.msra.mxu1 %v2774_v36  ;;  %v2864_v35 = vld [vmem:[%s3817_s2 + $0x268] ss:$16 sps:$4 sm:$0xff]   ;;  %v2869_v36 = vld [vmem:[%s3817_s2 + $0x284] ss:$16 sps:$4 sm:$0xff]  }
  0x98   : > { %2006 = vmatprep.subr.bf16.mxu0 %v2779_v37  ;;  %2088 = vmatprep.subr.bf16.mxu1 %v2782_v38  ;;  %v2872_v37 = vld [vmem:[%s3817_s2 + $0x28c] ss:$16 sps:$4 sm:$0xff]   ;;  %v2867_v38 = vld [vmem:[%s3817_s2 + $0x280] ss:$16 sps:$4 sm:$0xff]  }
  0x9b   : > { %2007 = vmatpush1.bf16.msra.mxu0 %v2777_v39  ;;  %2089 = vmatpush1.bf16.msra.mxu1 %v2780_v40  ;;  %v2870_v39 = vld [vmem:[%s3817_s2 + $0x288] ss:$16 sps:$4 sm:$0xff]   ;;  %v2875_v40 = vld [vmem:[%s3817_s2 + $0x2a4] ss:$16 sps:$4 sm:$0xff]  }
  0x9c   : > { %2008 = vmatprep.subr.bf16.mxu0 %v2785_v41  ;;  %2090 = vmatprep.subr.bf16.mxu1 %v2788_v43  ;;  %v2878_v41 = vld [vmem:[%s3817_s2 + $0x2ac] ss:$16 sps:$4 sm:$0xff]   ;;  %v2873_v43 = vld [vmem:[%s3817_s2 + $0x2a0] ss:$16 sps:$4 sm:$0xff]  }
  0x9f   : > { %2009 = vmatpush1.bf16.msra.mxu0 %v2783_v44  ;;  %2091 = vmatpush1.bf16.msra.mxu1 %v2786_v45  ;;  %v2876_v44 = vld [vmem:[%s3817_s2 + $0x2a8] ss:$16 sps:$4 sm:$0xff]   ;;  %v2881_v45 = vld [vmem:[%s3817_s2 + $0x2c4] ss:$16 sps:$4 sm:$0xff]  }
  0xa0   : > { %2010 = vmatprep.subr.bf16.mxu0 %v2791_v46  ;;  %2092 = vmatprep.subr.bf16.mxu1 %v2794_v47  ;;  %v2884_v46 = vld [vmem:[%s3817_s2 + $0x2cc] ss:$16 sps:$4 sm:$0xff]   ;;  %v2879_v47 = vld [vmem:[%s3817_s2 + $0x2c0] ss:$16 sps:$4 sm:$0xff]  }
  0xa3   : > { %2011 = vmatpush1.bf16.msra.mxu0 %v2789_v48  ;;  %2093 = vmatpush1.bf16.msra.mxu1 %v2792_v50  ;;  %v2882_v48 = vld [vmem:[%s3817_s2 + $0x2c8] ss:$16 sps:$4 sm:$0xff]   ;;  %v2887_v50 = vld [vmem:[%s3817_s2 + $0x2e4] ss:$16 sps:$4 sm:$0xff]  }
  0xa4   : > { %2012 = vmatprep.subr.bf16.mxu0 %v2797_v51  ;;  %2094 = vmatprep.subr.bf16.mxu1 %v2800_v52  ;;  %v2890_v51 = vld [vmem:[%s3817_s2 + $0x2ec] ss:$16 sps:$4 sm:$0xff]   ;;  %v2885_v52 = vld [vmem:[%s3817_s2 + $0x2e0] ss:$16 sps:$4 sm:$0xff]  }
  0xa7   : > { %2013 = vmatpush1.bf16.msra.mxu0 %v2795_v53  ;;  %2095 = vmatpush1.bf16.msra.mxu1 %v2798_v55  ;;  %v2888_v53 = vld [vmem:[%s3817_s2 + $0x2e8] ss:$16 sps:$4 sm:$0xff]   ;;  %v2893_v55 = vld [vmem:[%s3817_s2 + $0x304] ss:$16 sps:$4 sm:$0xff]  }
  0xa8   : > { %2014 = vmatprep.subr.bf16.mxu0 %v2803_v56  ;;  %2096 = vmatprep.subr.bf16.mxu1 %v2806_v57  ;;  %v2896_v56 = vld [vmem:[%s3817_s2 + $0x30c] ss:$16 sps:$4 sm:$0xff]   ;;  %v2891_v57 = vld [vmem:[%s3817_s2 + $0x300] ss:$16 sps:$4 sm:$0xff]  }
  0xab   : > { %2015 = vmatpush1.bf16.msra.mxu0 %v2801_v59  ;;  %2097 = vmatpush1.bf16.msra.mxu1 %v2804_v60  ;;  %v2894_v59 = vld [vmem:[%s3817_s2 + $0x308] ss:$16 sps:$4 sm:$0xff]   ;;  %v2899_v60 = vld [vmem:[%s3817_s2 + $0x324] ss:$16 sps:$4 sm:$0xff]  }
  0xac   : > { %2016 = vmatprep.subr.bf16.mxu0 %v2809_v61  ;;  %2098 = vmatprep.subr.bf16.mxu1 %v2812_v62  ;;  %v2902_v61 = vld [vmem:[%s3817_s2 + $0x32c] ss:$16 sps:$4 sm:$0xff]   ;;  %v2897_v62 = vld [vmem:[%s3817_s2 + $0x320] ss:$16 sps:$4 sm:$0xff]  }
  0xaf   : > { %2017 = vmatpush1.bf16.msra.mxu0 %v2807_v63  ;;  %2099 = vmatpush1.bf16.msra.mxu1 %v2810_v0  ;;  %v2900_v63 = vld [vmem:[%s3817_s2 + $0x328] ss:$16 sps:$4 sm:$0xff]   ;;  %v2905_v0 = vld [vmem:[%s3817_s2 + $0x344] ss:$16 sps:$4 sm:$0xff]  }
  0xb0   : > { %2018 = vmatprep.subr.bf16.mxu0 %v2815_v1  ;;  %2100 = vmatprep.subr.bf16.mxu1 %v2818_v2  ;;  %v2908_v1 = vld [vmem:[%s3817_s2 + $0x34c] ss:$16 sps:$4 sm:$0xff]   ;;  %v2903_v2 = vld [vmem:[%s3817_s2 + $0x340] ss:$16 sps:$4 sm:$0xff]  }
  0xb3   : > { %2019 = vmatpush1.bf16.msra.mxu0 %v2813_v3  ;;  %2101 = vmatpush1.bf16.msra.mxu1 %v2816_v4  ;;  %v2906_v3 = vld [vmem:[%s3817_s2 + $0x348] ss:$16 sps:$4 sm:$0xff]   ;;  %v2911_v4 = vld [vmem:[%s3817_s2 + $0x364] ss:$16 sps:$4 sm:$0xff]  }
  0xb4   : > { %2020 = vmatprep.subr.bf16.mxu0 %v2821_v5  ;;  %2102 = vmatprep.subr.bf16.mxu1 %v2824_v6  ;;  %v2914_v5 = vld [vmem:[%s3817_s2 + $0x36c] ss:$16 sps:$4 sm:$0xff]   ;;  %v2909_v6 = vld [vmem:[%s3817_s2 + $0x360] ss:$16 sps:$4 sm:$0xff]  }
  0xb7   : > { %2021 = vmatpush1.bf16.msra.mxu0 %v2819_v7  ;;  %2103 = vmatpush1.bf16.msra.mxu1 %v2822_v8  ;;  %v2912_v7 = vld [vmem:[%s3817_s2 + $0x368] ss:$16 sps:$4 sm:$0xff]   ;;  %v2917_v8 = vld [vmem:[%s3817_s2 + $0x384] ss:$16 sps:$4 sm:$0xff]  }
  0xb8   : > { %2022 = vmatprep.subr.bf16.mxu0 %v2827_v9  ;;  %2104 = vmatprep.subr.bf16.mxu1 %v2830_v10  ;;  %v2920_v9 = vld [vmem:[%s3817_s2 + $0x38c] ss:$16 sps:$4 sm:$0xff]   ;;  %v2915_v10 = vld [vmem:[%s3817_s2 + $0x380] ss:$16 sps:$4 sm:$0xff]  }
  0xbb   : > { %2023 = vmatpush1.bf16.msra.mxu0 %v2825_v11  ;;  %2105 = vmatpush1.bf16.msra.mxu1 %v2828_v13  ;;  %v2918_v11 = vld [vmem:[%s3817_s2 + $0x388] ss:$16 sps:$4 sm:$0xff]   ;;  %v2923_v13 = vld [vmem:[%s3817_s2 + $0x3a4] ss:$16 sps:$4 sm:$0xff]  }
  0xbc   : > { %2024 = vmatprep.subr.bf16.mxu0 %v2833_v14  ;;  %2106 = vmatprep.subr.bf16.mxu1 %v2836_v15  ;;  %v2926_v14 = vld [vmem:[%s3817_s2 + $0x3ac] ss:$16 sps:$4 sm:$0xff]   ;;  %v2921_v15 = vld [vmem:[%s3817_s2 + $0x3a0] ss:$16 sps:$4 sm:$0xff]  }
  0xbf   : > { %2025 = vmatpush1.bf16.msra.mxu0 %v2831_v16  ;;  %2107 = vmatpush1.bf16.msra.mxu1 %v2834_v18  ;;  %v2924_v16 = vld [vmem:[%s3817_s2 + $0x3a8] ss:$16 sps:$4 sm:$0xff]   ;;  %v2929_v18 = vld [vmem:[%s3817_s2 + $0x3c4] ss:$16 sps:$4 sm:$0xff]  }
  0xc0   : > { %2026 = vmatprep.subr.bf16.mxu0 %v2839_v19  ;;  %2108 = vmatprep.subr.bf16.mxu1 %v2842_v20  ;;  %v2932_v19 = vld [vmem:[%s3817_s2 + $0x3cc] ss:$16 sps:$4 sm:$0xff]   ;;  %v2927_v20 = vld [vmem:[%s3817_s2 + $0x3c0] ss:$16 sps:$4 sm:$0xff]  }
  0xc3   : > { %2027 = vmatpush1.bf16.msra.mxu0 %v2837_v21  ;;  %2109 = vmatpush1.bf16.msra.mxu1 %v2840_v22  ;;  %v2930_v21 = vld [vmem:[%s3817_s2 + $0x3c8] ss:$16 sps:$4 sm:$0xff]   ;;  %v2935_v22 = vld [vmem:[%s3817_s2 + $0x3e4] ss:$16 sps:$4 sm:$0xff]  }
  0xc4   : > { %2037 = vmatprep.subr.bf16.mxu0 %v2845_v23  ;;  %2119 = vmatprep.subr.bf16.mxu1 %v2848_v24  ;;  %v2938_v23 = vld [vmem:[%s3817_s2 + $0x3ec] ss:$16 sps:$4 sm:$0xff]   ;;  %v2933_v24 = vld [vmem:[%s3817_s2 + $0x3e0] ss:$16 sps:$4 sm:$0xff]  }
  0xc6   : > { %2029 = vmatmul.mubr.bf16.vlgmr.msra.gmra.mrb[4].mxu0 %v3138_v54  ;;  %2111 = vmatmul.mubr.bf16.vlgmr.msra.gmra.mrb[4].mxu1 %v3138_v54  ;;  %v2860_v54 = vld [vmem:[%s3817_s2 + $0x24c] ss:$16 sps:$4 sm:$0xff]  }
  0xc7   : > { %2038 = vmatpush1.bf16.msra.mxu0 %v2843_v25  ;;  %2120 = vmatpush1.bf16.msra.mxu1 %v2846_v26  ;;  %v2936_v25 = vld [vmem:[%s3817_s2 + $0x3e8] ss:$16 sps:$4 sm:$0xff]   ;;  %v459_v26 = vsub.s32 0, %v3104_v42 }
  0xc8   : > { %2039 = vmatprep.subr.bf16.mxu0 %v2851_v27  ;;  %2121 = vmatprep.subr.bf16.mxu1 %v2854_v28  ;;  %v467_v27 = vsub.s32 2, %v3104_v42  ;;  %v455_v28 = vld [vmem:[%s3818_s3] sm:$0xf] }
  0xc9   : > { %2069 = vmatprep.mubr.bf16.mxu0 %v3220_v17  ;;  %2151 = vmatprep.mubr.bf16.mxu1 %v3220_v17  ;;  %v2866_v17 = vld [vmem:[%s3817_s2 + $0x26c] ss:$16 sps:$4 sm:$0xff]  }
  0xcb   : > { %2040 = vmatpush1.bf16.msra.mxu0 %v2849_v29  ;;  %2122 = vmatpush1.bf16.msra.mxu1 %v2852_v30  ;;  %v463_v29 = vsub.s32 1, %v3104_v42  ;;  %v471_v30 = vsub.s32 3, %v3104_v42 }
  0xcc   : > { %2041 = vmatprep.subr.bf16.mxu0 %v2857_v58  ;;  %2123 = vmatprep.subr.bf16.mxu1 %v2860_v54  ;;  %v460_v58 = vrot.slane %v455_v28, %v459_v26  ;;  %v468_v54 = vrot.slane %v455_v28, %v467_v27 }
  0xcf   : > { %2042 = vmatpush1.bf16.msra.mxu0 %v2855_v31  ;;  %2124 = vmatpush1.bf16.msra.mxu1 %v2858_v32  ;;  %v464_v31 = vrot.slane %v455_v28, %v463_v29  ;;  %v472_v32 = vrot.slane %v455_v28, %v471_v30 }
  0xd0   : > { %2043 = vmatprep.subr.bf16.mxu0 %v2863_v33  ;;  %2125 = vmatprep.subr.bf16.mxu1 %v2866_v17 }
  0xd3   : > { %2044 = vmatpush1.bf16.msra.mxu0 %v2861_v34  ;;  %2126 = vmatpush1.bf16.msra.mxu1 %v2864_v35 }
  0xd4   : > { %2045 = vmatprep.subr.bf16.mxu0 %v2869_v36  ;;  %2127 = vmatprep.subr.bf16.mxu1 %v2872_v37 }
  0xd7   : > { %2046 = vmatpush1.bf16.msra.mxu0 %v2867_v38  ;;  %2128 = vmatpush1.bf16.msra.mxu1 %v2870_v39 }
  0xd8   : > { %2047 = vmatprep.subr.bf16.mxu0 %v2875_v40  ;;  %2129 = vmatprep.subr.bf16.mxu1 %v2878_v41 }
  0xdb   : > { %2048 = vmatpush1.bf16.msra.mxu0 %v2873_v43  ;;  %2130 = vmatpush1.bf16.msra.mxu1 %v2876_v44 }
  0xdc   : > { %2049 = vmatprep.subr.bf16.mxu0 %v2881_v45  ;;  %2131 = vmatprep.subr.bf16.mxu1 %v2884_v46 }
  0xdf   : > { %2050 = vmatpush1.bf16.msra.mxu0 %v2879_v47  ;;  %2132 = vmatpush1.bf16.msra.mxu1 %v2882_v48 }
  0xe0   : > { %2051 = vmatprep.subr.bf16.mxu0 %v2887_v50  ;;  %2133 = vmatprep.subr.bf16.mxu1 %v2890_v51 }
  0xe3   : > { %2052 = vmatpush1.bf16.msra.mxu0 %v2885_v52  ;;  %2134 = vmatpush1.bf16.msra.mxu1 %v2888_v53  ;;  %v1334_v53 = vld [vmem:[%s3818_s3] sm:$0xf] }
  0xe4   : > { %2053 = vmatprep.subr.bf16.mxu0 %v2893_v55  ;;  %2135 = vmatprep.subr.bf16.mxu1 %v2896_v56  ;;  %v1339_v55 = vrot.slane %v1334_v53, %v459_v26  ;;  %v1347_v56 = vrot.slane %v1334_v53, %v467_v27 }
  0xe7   : > { %2054 = vmatpush1.bf16.msra.mxu0 %v2891_v57  ;;  %2136 = vmatpush1.bf16.msra.mxu1 %v2894_v59  ;;  %v1343_v57 = vrot.slane %v1334_v53, %v463_v29  ;;  %v1351_v59 = vrot.slane %v1334_v53, %v471_v30 }
  0xe8   : > { %2055 = vmatprep.subr.bf16.mxu0 %v2899_v60  ;;  %2137 = vmatprep.subr.bf16.mxu1 %v2902_v61 }
  0xeb   : > { %2056 = vmatpush1.bf16.msra.mxu0 %v2897_v62  ;;  %2138 = vmatpush1.bf16.msra.mxu1 %v2900_v63 }
  0xec   : > { %2057 = vmatprep.subr.bf16.mxu0 %v2905_v0  ;;  %2139 = vmatprep.subr.bf16.mxu1 %v2908_v1 }
  0xef   : > { %2058 = vmatpush1.bf16.msra.mxu0 %v2903_v2  ;;  %2140 = vmatpush1.bf16.msra.mxu1 %v2906_v3 }
  0xf0   : > { %2059 = vmatprep.subr.bf16.mxu0 %v2911_v4  ;;  %2141 = vmatprep.subr.bf16.mxu1 %v2914_v5 }
  0xf3   : > { %2060 = vmatpush1.bf16.msra.mxu0 %v2909_v6  ;;  %2142 = vmatpush1.bf16.msra.mxu1 %v2912_v7 }
  0xf4   : > { %2061 = vmatprep.subr.bf16.mxu0 %v2917_v8  ;;  %2143 = vmatprep.subr.bf16.mxu1 %v2920_v9 }
  0xf7   : > { %2062 = vmatpush1.bf16.msra.mxu0 %v2915_v10  ;;  %2144 = vmatpush1.bf16.msra.mxu1 %v2918_v11 }
  0xf8   : > { %2063 = vmatprep.subr.bf16.mxu0 %v2923_v13  ;;  %2145 = vmatprep.subr.bf16.mxu1 %v2926_v14 }
  0xfb   : > { %2064 = vmatpush1.bf16.msra.mxu0 %v2921_v15  ;;  %2146 = vmatpush1.bf16.msra.mxu1 %v2924_v16 }
  0xfc   : > { %2065 = vmatprep.subr.bf16.mxu0 %v2929_v18  ;;  %2147 = vmatprep.subr.bf16.mxu1 %v2932_v19 }
  0xff   : > { %2066 = vmatpush1.bf16.msra.mxu0 %v2927_v20  ;;  %2148 = vmatpush1.bf16.msra.mxu1 %v2930_v21 }
 0x100   : > { %2067 = vmatprep.subr.bf16.mxu0 %v2935_v22  ;;  %2149 = vmatprep.subr.bf16.mxu1 %v2938_v23 }
 0x103   : > { %2068 = vmatpush1.bf16.msra.mxu0 %v2933_v24  ;;  %2150 = vmatpush1.bf16.msra.mxu1 %v2936_v25 }
 0x106   : > { %2070 = vmatmul.mubr.bf16.vlgmr.msra.gmra.mrb[4].mxu0 %v3204_v12  ;;  %2152 = vmatmul.mubr.bf16.vlgmr.msra.gmra.mrb[4].mxu1 %v3204_v12 }
 0x159   : > { %v1214_v33 = vpop.f32.mrb[0].mxu0  ;;  %v1296_v17 = vpop.f32.mrb[0].mxu1 }
 0x15a   : > { %v2521_v12 = vadd.f32 %v1214_v33, %v460_v58  ;;  %v2523_v34 = vadd.f32 %v1296_v17, %v468_v54  ;;  %v1216_v35 = vpop.f32.mrb[1].mxu0  ;;  %v1298_v36 = vpop.f32.mrb[1].mxu1 }
 0x15b   : > { %v2522_v37 = vadd.f32 %v1216_v35, %v464_v31  ;;  %v2524_v38 = vadd.f32 %v1298_v36, %v472_v32  ;;  %v1218_v39 = vpop.f32.mrb[2].mxu0  ;;  %v1300_v40 = vpop.f32.mrb[2].mxu1 }
 0x15c   : > { %v1303_v41 = vmax.f32 %v2521_v12, 0.0  ;;  %v1305_v43 = vmax.f32 %v2523_v34, 0.0  ;;  %v1219_v44 = vpop.f32.mrb[3].mxu0  ;;  %v1301_v45 = vpop.f32.mrb[3].mxu1 }
 0x15d   : > { %v1304_v42 = vmax.f32 %v2522_v37, 0.0  ;;  %v1306_v46 = vmax.f32 %v2524_v38, 0.0 }
 0x15f   : > { %v2384_v47 = vpack.c.bf16 %v1304_v42, %v1303_v41  ;;  %v2385_v48 = vpack.c.bf16 %v1306_v46, %v1305_v43 }
 0x161   : > { %v1323_v50 = vrot.slane %v2384_v47, %v3126_v49  ;;  %v1330_v51 = vrot.slane %v2385_v48, %v3126_v49 }
 0x163   : > { %v1331_v52 = vcombine.low %v1323_v50, %v1330_v51 }
 0x165   : > { %1333 = vst [vmem:[%s197_s8] sm:$0xff] %v1331_v52 }
 0x1d9   : > { %v2071_v60 = vpop.f32.mrb[4].mxu0  ;;  %v2153_v61 = vpop.f32.mrb[4].mxu1 }
 0x1da   : > { %v2525_v62 = vadd.f32 %v2071_v60, %v1339_v55  ;;  %v2527_v63 = vadd.f32 %v2153_v61, %v1347_v56  ;;  %v2073_v0 = vpop.f32.mrb[5].mxu0  ;;  %v2155_v1 = vpop.f32.mrb[5].mxu1 }
 0x1db   : > { %v2526_v2 = vadd.f32 %v2073_v0, %v1343_v57  ;;  %v2528_v3 = vadd.f32 %v2155_v1, %v1351_v59  ;;  %v2075_v4 = vpop.f32.mrb[6].mxu0  ;;  %v2157_v5 = vpop.f32.mrb[6].mxu1 }
 0x1dc   : > { %v2160_v6 = vmax.f32 %v2525_v62, 0.0  ;;  %v2162_v7 = vmax.f32 %v2527_v63, 0.0  ;;  %v2076_v8 = vpop.f32.mrb[7].mxu0  ;;  %v2158_v9 = vpop.f32.mrb[7].mxu1 }
 0x1dd   : > { %v2161_v10 = vmax.f32 %v2526_v2, 0.0  ;;  %v2163_v11 = vmax.f32 %v2528_v3, 0.0 }
 0x1df   : > { %v2514_v13 = vpack.c.bf16 %v2161_v10, %v2160_v6  ;;  %v2515_v14 = vpack.c.bf16 %v2163_v11, %v2162_v7 }
 0x1e1   : > { %v2180_v15 = vrot.slane %v2514_v13, %v3126_v49  ;;  %v2187_v16 = vrot.slane %v2515_v14, %v3126_v49 }
 0x1e3   : > { %v2188_v18 = vcombine.low %v2180_v15, %v2187_v16 }
 0x1e5   : > { %2516 = vst [vmem:[%s197_s8 + $0x8] sm:$0xff] %v2188_v18 }
 0x1e6 PF: > { %s14_s15 = sadd.s32 1, %s2945_s15  }
 0x1e7   : > { %p11_p4 = scmp.ge.s32.totalorder %s14_s15, 10  }
 0x1e9   :  { %13 = sbr.rel (!%p11_p4) target bundleno = 1 (0x1), region = 67 }

// kernel: _forward.17
= control target key start
LH: loop header
LB: loop body
LE: loop exit
PB: predicated region body
PF: predicated region fallthrough
CT: control target
= control target key end

     0   :  { %s2875_s18 = smov 0   ;;  %s3405_s0 = inlined_call_operand.vmem [shape: bf16[2,32,2048], index: 0, kind: input, shape index: {}]   ;;  %s3406_s1 = inlined_call_operand.vmem [shape: bf16[2048,96], index: 1, kind: input, shape index: {}]   ;;  %s3407_s2 = inlined_call_operand.vmem [shape: f32[1,96], index: 2, kind: input, shape index: {}]   ;;  %s3408_s3 = inlined_call_operand.vmem [shape: f32[36,32], index: 3, kind: input, shape index: {}]   ;;  %s3409_s4 = inlined_call_operand.vmem [shape: f32[96,108], index: 4, kind: input, shape index: {}]   ;;  %s3410_s5 = inlined_call_operand.vmem [shape: f32[2,36,108], index: 5, kind: output, shape index: {}]  }
   0x1 LB: > { %s2156_s19 = sadd.s32 4294967295, %s2840_s18   ;;  %p2160_p0 = scmp.ge.s32.totalorder %s2840_s18, 1  ;;  %s2840_s18 = sphi %s2875_s18, %s15_s18  }
   0x2   : > { %p187_p1 = scmp.lt.s32.totalorder %s2840_s18, 3 }
   0x4   : > { %p188_p2 = pnand %p2160_p0, %p187_p1 }
   0x5   : > { %v2690_v0 = vld [vmem:[%s3406_s1 + $0x40] sm:$0xff] (!%p188_p2)   ;;  %v2694_v4 = vld [vmem:[%s3406_s1 + $0x48] sm:$0xff] (!%p188_p2)   ;;  %v2698_v8 = vld [vmem:[%s3406_s1 + $0x50] sm:$0xff] (!%p188_p2)   ;;  %p215_p3 = scmp.lt.s32.totalorder (!%p188_p2), %s2156_s19, 1  ;;  %vm2843_vm0 = vmmov (!%p188_p2), 0   ;;  %vm1870_vm1 = vcmask (!%p188_p2), 261120  }
   0x6   : > { %191 = sbr.rel (%p188_p2) target bundleno = 836 (0x344), region = 40  ;;  %v2691_v1 = vld [vmem:[%s3406_s1 + $0xc0] sm:$0xff] (!%p188_p2)   ;;  %2342 = vmatprep.subr.bf16.mxu0 (!%p188_p2), %v2690_v0  ;;  %v2695_v5 = vld [vmem:[%s3406_s1 + $0xc8] sm:$0xff] (!%p188_p2)   ;;  %v2699_v9 = vld [vmem:[%s3406_s1 + $0xd0] sm:$0xff] (!%p188_p2)   ;;  %vm1988_vm2 = vcmask (!%p188_p2), 785408   ;;  %vm2094_vm3 = vcmask (!%p188_p2), 883712  }
   0x7   : > { %v2692_v2 = vld [vmem:[%s3406_s1] sm:$0xff] (!%p188_p2)   ;;  %2370 = vmatprep.subr.bf16.mxu1 (!%p188_p2), %v2691_v1  ;;  %v2696_v6 = vld [vmem:[%s3406_s1 + $0x8] sm:$0xff] (!%p188_p2)   ;;  %v2700_v10 = vld [vmem:[%s3406_s1 + $0x10] sm:$0xff] (!%p188_p2)   ;;  %vm2099_vm4 = vcmask (!%p188_p2), 879616  }
   0x8   : > { %v2693_v3 = vld [vmem:[%s3406_s1 + $0x80] sm:$0xff] (!%p188_p2)   ;;  %2343 = vmatpush3.bf16.msra.mxu0 (!%p188_p2), %v2692_v2  ;;  %v2697_v7 = vld [vmem:[%s3406_s1 + $0x88] sm:$0xff] (!%p188_p2)   ;;  %v2701_v11 = vld [vmem:[%s3406_s1 + $0x90] sm:$0xff] (!%p188_p2)  }
   0x9   : > { %2371 = vmatpush3.bf16.msra.mxu1 (!%p188_p2), %v2693_v3  ;;  %2344 = vmatprep.subr.bf16.mxu0 (!%p188_p2), %v2694_v4  ;;  %v2702_v12 = vld [vmem:[%s3406_s1 + $0x58] sm:$0xff] (!%p188_p2)   ;;  %v2706_v16 = vld [vmem:[%s3406_s1 + $0x60] sm:$0xff] (!%p188_p2)   ;;  %v2710_v20 = vld [vmem:[%s3406_s1 + $0x68] sm:$0xff] (!%p188_p2)  }
   0xa   : > { %2372 = vmatprep.subr.bf16.mxu1 (!%p188_p2), %v2695_v5  ;;  %v2703_v13 = vld [vmem:[%s3406_s1 + $0xd8] sm:$0xff] (!%p188_p2)   ;;  %v2707_v17 = vld [vmem:[%s3406_s1 + $0xe0] sm:$0xff] (!%p188_p2)   ;;  %v2711_v21 = vld [vmem:[%s3406_s1 + $0xe8] sm:$0xff] (!%p188_p2)  }
   0xb   : > { %v2704_v14 = vld [vmem:[%s3406_s1 + $0x18] sm:$0xff] (!%p188_p2)   ;;  %v2708_v18 = vld [vmem:[%s3406_s1 + $0x20] sm:$0xff] (!%p188_p2)   ;;  %v2712_v22 = vld [vmem:[%s3406_s1 + $0x28] sm:$0xff] (!%p188_p2)  }
   0xc   : > { %2345 = vmatpush3.bf16.msra.mxu0 (!%p188_p2), %v2696_v6  ;;  %v2705_v15 = vld [vmem:[%s3406_s1 + $0x98] sm:$0xff] (!%p188_p2)   ;;  %v2709_v19 = vld [vmem:[%s3406_s1 + $0xa0] sm:$0xff] (!%p188_p2)   ;;  %v2713_v23 = vld [vmem:[%s3406_s1 + $0xa8] sm:$0xff] (!%p188_p2)  }
   0xd   : > { %2373 = vmatpush3.bf16.msra.mxu1 %v2697_v7  ;;  %2346 = vmatprep.subr.bf16.mxu0 %v2698_v8  ;;  %s3412_s19 = smov (!%p215_p3, %s2156_s19), 1  ;;  %v2714_v24 = vld [vmem:[%s3406_s1 + $0x70] sm:$0xff]   ;;  %v2718_v28 = vld [vmem:[%s3406_s1 + $0x78] sm:$0xff]   ;;  %v2722_v40 = vld [vmem:[%s3406_s1 + $0x140] sm:$0xff]  }
   0xe   : > { %2374 = vmatprep.subr.bf16.mxu1 %v2699_v9  ;;  %v2715_v25 = vld [vmem:[%s3406_s1 + $0xf0] sm:$0xff]   ;;  %s2341_s28 = sshll.u32 %s3412_s19, 8  ;;  %v2719_v29 = vld [vmem:[%s3406_s1 + $0xf8] sm:$0xff]   ;;  %v2723_v41 = vld [vmem:[%s3406_s1 + $0x1c0] sm:$0xff]   ;;  %s2678_s25 = smul.u32 40, %s3412_s19 }
   0xf   : > { %v2716_v26 = vld [vmem:[%s3406_s1 + $0x30] sm:$0xff]   ;;  %s2983_s12 = scalar_lea.vmem %s3405_s0, %s2341_s28  ;;  %v2720_v30 = vld [vmem:[%s3406_s1 + $0x38] sm:$0xff]   ;;  %v2724_v42 = vld [vmem:[%s3406_s1 + $0x100] sm:$0xff]  }
  0x10   : > { %2347 = vmatpush3.bf16.msra.mxu0 %v2700_v10  ;;  %v2717_v27 = vld [vmem:[%s3406_s1 + $0xb0] sm:$0xff]   ;;  %v2721_v31 = vld [vmem:[%s3406_s1 + $0xb8] sm:$0xff]   ;;  %v226_v32 = vld [vmem:[%s2983_s12] sm:$0xff]  ;;  %s224_s28 = scalar_lea.vmem %s3410_s5, %s2678_s25 }
  0x11   : > { %2375 = vmatpush3.bf16.msra.mxu1 %v2701_v11  ;;  %2348 = vmatprep.subr.bf16.mxu0 %v2702_v12  ;;  %v234_v33 = vld [vmem:[%s2983_s12 + $0x40] sm:$0xff]  ;;  %v227_v34 = vld [vmem:[%s2983_s12 + $0x8] sm:$0xff]  ;;  %v2730_v48 = vld [vmem:[%s3406_s1 + $0x150] sm:$0xff]  }
  0x12   : > { %2376 = vmatprep.subr.bf16.mxu1 %v2703_v13  ;;  %v2165_v35 = vcombine.low %v226_v32, %v234_v33  ;;  %v2166_v36 = vcombine.high %v226_v32, %v234_v33  ;;  %v235_v37 = vld [vmem:[%s2983_s12 + $0x48] sm:$0xff]  ;;  %v2725_v43 = vld [vmem:[%s3406_s1 + $0x180] sm:$0xff]   ;;  %v2731_v49 = vld [vmem:[%s3406_s1 + $0x1d0] sm:$0xff]  }
  0x13   : > { %v2167_v38 = vcombine.low %v227_v34, %v235_v37  ;;  %v2168_v39 = vcombine.high %v227_v34, %v235_v37  ;;  %v2726_v44 = vld [vmem:[%s3406_s1 + $0x148] sm:$0xff]   ;;  %v2732_v50 = vld [vmem:[%s3406_s1 + $0x110] sm:$0xff]   ;;  %v2734_v52 = vld [vmem:[%s3406_s1 + $0x158] sm:$0xff]  }
  0x14   : > { %2349 = vmatpush3.bf16.msra.mxu0 %v2704_v14  ;;  %1481 = vmatprep.mubr.bf16.mxu0 %v2166_v36  ;;  %v2727_v45 = vld [vmem:[%s3406_s1 + $0x1c8] sm:$0xff]   ;;  %v2733_v51 = vld [vmem:[%s3406_s1 + $0x190] sm:$0xff]   ;;  %v2735_v53 = vld [vmem:[%s3406_s1 + $0x1d8] sm:$0xff]  }
  0x15   : > { %2377 = vmatpush3.bf16.msra.mxu1 %v2705_v15  ;;  %2350 = vmatprep.subr.bf16.mxu0 %v2706_v16  ;;  %v2728_v46 = vld [vmem:[%s3406_s1 + $0x108] sm:$0xff]   ;;  %v2736_v54 = vld [vmem:[%s3406_s1 + $0x118] sm:$0xff]   ;;  %v2738_v56 = vld [vmem:[%s3406_s1 + $0x160] sm:$0xff]  }
  0x16   : > { %2378 = vmatprep.subr.bf16.mxu1 %v2707_v17  ;;  %1530 = vmatprep.mubr.bf16.mxu1 %v2168_v39  ;;  %v2729_v47 = vld [vmem:[%s3406_s1 + $0x188] sm:$0xff]   ;;  %v2737_v55 = vld [vmem:[%s3406_s1 + $0x198] sm:$0xff]   ;;  %v2739_v57 = vld [vmem:[%s3406_s1 + $0x1e0] sm:$0xff]  }
  0x17   : > { %v2740_v58 = vld [vmem:[%s3406_s1 + $0x120] sm:$0xff]   ;;  %v2742_v60 = vld [vmem:[%s3406_s1 + $0x168] sm:$0xff]   ;;  %v2746_v8 = vld [vmem:[%s3406_s1 + $0x170] sm:$0xff]  }
  0x18   : > { %2351 = vmatpush3.bf16.msra.mxu0 %v2708_v18  ;;  %v2741_v59 = vld [vmem:[%s3406_s1 + $0x1a0] sm:$0xff]   ;;  %v2743_v61 = vld [vmem:[%s3406_s1 + $0x1e8] sm:$0xff]   ;;  %v2747_v9 = vld [vmem:[%s3406_s1 + $0x1f0] sm:$0xff]  }
  0x19   : > { %2379 = vmatpush3.bf16.msra.mxu1 %v2709_v19  ;;  %2352 = vmatprep.subr.bf16.mxu0 %v2710_v20  ;;  %v242_v62 = vld [vmem:[%s2983_s12 + $0x80] sm:$0xff]  ;;  %v2744_v1 = vld [vmem:[%s3406_s1 + $0x128] sm:$0xff]   ;;  %v2748_v10 = vld [vmem:[%s3406_s1 + $0x130] sm:$0xff]  }
  0x1a   : > { %2380 = vmatprep.subr.bf16.mxu1 %v2711_v21  ;;  %v250_v63 = vld [vmem:[%s2983_s12 + $0xc0] sm:$0xff]  ;;  %v2745_v3 = vld [vmem:[%s3406_s1 + $0x1a8] sm:$0xff]   ;;  %v2749_v11 = vld [vmem:[%s3406_s1 + $0x1b0] sm:$0xff]  }
  0x1b   : > { %v2182_v0 = vcombine.high %v242_v62, %v250_v63  ;;  %v2181_v2 = vcombine.low %v242_v62, %v250_v63  ;;  %v243_v4 = vld [vmem:[%s2983_s12 + $0x88] sm:$0xff]  ;;  %v2750_v12 = vld [vmem:[%s3406_s1 + $0x178] sm:$0xff]   ;;  %v228_v16 = vld [vmem:[%s2983_s12 + $0x10] sm:$0xff] }
  0x1c   : > { %2353 = vmatpush3.bf16.msra.mxu0 %v2712_v22  ;;  %v251_v5 = vld [vmem:[%s2983_s12 + $0xc8] sm:$0xff]  ;;  %v2751_v13 = vld [vmem:[%s3406_s1 + $0x1f8] sm:$0xff]   ;;  %v236_v17 = vld [vmem:[%s2983_s12 + $0x50] sm:$0xff] }
  0x1d   : > { %2381 = vmatpush3.bf16.msra.mxu1 %v2713_v23  ;;  %2354 = vmatprep.subr.bf16.mxu0 %v2714_v24  ;;  %v2184_v6 = vcombine.high %v243_v4, %v251_v5  ;;  %v2183_v7 = vcombine.low %v243_v4, %v251_v5  ;;  %v2752_v14 = vld [vmem:[%s3406_s1 + $0x138] sm:$0xff]   ;;  %v2169_v20 = vcombine.low %v228_v16, %v236_v17  ;;  %v2754_v24 = vld [vmem:[%s3406_s1 + $0x240] sm:$0xff]   ;;  %v244_v32 = vld [vmem:[%s2983_s12 + $0x90] sm:$0xff] }
  0x1e   : > { %2382 = vmatprep.subr.bf16.mxu1 %v2715_v25  ;;  %v2753_v15 = vld [vmem:[%s3406_s1 + $0x1b8] sm:$0xff]   ;;  %v2170_v21 = vcombine.high %v228_v16, %v236_v17  ;;  %v2755_v25 = vld [vmem:[%s3406_s1 + $0x2c0] sm:$0xff]   ;;  %v252_v33 = vld [vmem:[%s2983_s12 + $0xd0] sm:$0xff] }
  0x1f   : > { %v229_v18 = vld [vmem:[%s2983_s12 + $0x18] sm:$0xff]  ;;  %v2186_v34 = vcombine.high %v244_v32, %v252_v33  ;;  %v2762_v36 = vld [vmem:[%s3406_s1 + $0x250] sm:$0xff]   ;;  %v231_v4 = vld [vmem:[%s2983_s12 + $0x28] sm:$0xff] }
  0x20   : > { %2355 = vmatpush3.bf16.msra.mxu0 %v2716_v26  ;;  %v237_v19 = vld [vmem:[%s2983_s12 + $0x58] sm:$0xff]  ;;  %v2756_v26 = vld [vmem:[%s3406_s1 + $0x200] sm:$0xff]   ;;  %v2763_v37 = vld [vmem:[%s3406_s1 + $0x2d0] sm:$0xff]  }
  0x21   : > { %2383 = vmatpush3.bf16.msra.mxu1 %v2717_v27  ;;  %2356 = vmatprep.subr.bf16.mxu0 %v2718_v28  ;;  %v2171_v22 = vcombine.low %v229_v18, %v237_v19  ;;  %v2172_v23 = vcombine.high %v229_v18, %v237_v19  ;;  %v2757_v27 = vld [vmem:[%s3406_s1 + $0x280] sm:$0xff]   ;;  %v2758_v28 = vld [vmem:[%s3406_s1 + $0x248] sm:$0xff]   ;;  %v253_v39 = vld [vmem:[%s2983_s12 + $0xd8] sm:$0xff] }
  0x22   : > { %2384 = vmatprep.subr.bf16.mxu1 %v2719_v29  ;;  %v2759_v29 = vld [vmem:[%s3406_s1 + $0x2c8] sm:$0xff]   ;;  %v2784_v62 = vld [vmem:[%s3406_s1 + $0x238] sm:$0xff]   ;;  %v246_v16 = vld [vmem:[%s2983_s12 + $0xa0] sm:$0xff] }
  0x23   : > { %v2785_v63 = vld [vmem:[%s3406_s1 + $0x2b8] sm:$0xff]   ;;  %v239_v5 = vld [vmem:[%s2983_s12 + $0x68] sm:$0xff]  ;;  %v254_v17 = vld [vmem:[%s2983_s12 + $0xe0] sm:$0xff] }
  0x24   : > { %2357 = vmatpush3.bf16.msra.mxu0 %v2720_v30  ;;  %v2760_v30 = vld [vmem:[%s3406_s1 + $0x208] sm:$0xff]   ;;  %v2190_v18 = vcombine.high %v246_v16, %v254_v17  ;;  %v2189_v19 = vcombine.low %v246_v16, %v254_v17  ;;  %v2842_v17 = vmov 0.0|0.0  }
  0x25   : > { %2385 = vmatpush3.bf16.msra.mxu1 %v2721_v31  ;;  %2398 = vmatprep.subr.bf16.mxu0 %v2722_v40  ;;  %v2761_v31 = vld [vmem:[%s3406_s1 + $0x288] sm:$0xff]  }
  0x26   : > { %2426 = vmatprep.subr.bf16.mxu1 %v2723_v41  ;;  %v2764_v41 = vld [vmem:[%s3406_s1 + $0x210] sm:$0xff]  }
  0x27   : > { %1482 = vmatmul.mubr.bf16.vlgmr.msra.gmra.mrb[0].mxu0 %v2165_v35  ;;  %v2185_v35 = vcombine.low %v244_v32, %v252_v33  ;;  %v2802_v32 = vld [vmem:[%s3406_s1 + $0x360] sm:$0xff]  }
  0x28   : > { %1531 = vmatmul.mubr.bf16.vlgmr.msra.gmra.mrb[0].mxu1 %v2167_v38  ;;  %2399 = vmatpush3.bf16.msra.mxu0 %v2724_v42  ;;  %v245_v38 = vld [vmem:[%s2983_s12 + $0x98] sm:$0xff]  ;;  %v2803_v33 = vld [vmem:[%s3406_s1 + $0x3e0] sm:$0xff]  }
  0x29   : > { %2427 = vmatpush3.bf16.msra.mxu1 %v2725_v43  ;;  %2400 = vmatprep.subr.bf16.mxu0 %v2726_v44  ;;  %v2188_v40 = vcombine.high %v245_v38, %v253_v39  ;;  %v2187_v42 = vcombine.low %v245_v38, %v253_v39  ;;  %v2765_v43 = vld [vmem:[%s3406_s1 + $0x290] sm:$0xff]   ;;  %v2766_v44 = vld [vmem:[%s3406_s1 + $0x258] sm:$0xff]   ;;  %v2808_v38 = vld [vmem:[%s3406_s1 + $0x328] sm:$0xff]  }
  0x2a   : > { %2428 = vmatprep.subr.bf16.mxu1 %v2727_v45  ;;  %1489 = vmatprep.mubr.bf16.mxu0 %v2182_v0  ;;  %v2767_v45 = vld [vmem:[%s3406_s1 + $0x2d8] sm:$0xff]   ;;  %v230_v0 = vld [vmem:[%s2983_s12 + $0x20] sm:$0xff]  ;;  %v2809_v39 = vld [vmem:[%s3406_s1 + $0x3a8] sm:$0xff]  }
  0x2b   : > { %1538 = vmatprep.mubr.bf16.mxu1 %v2184_v6  ;;  %v2175_v6 = vcombine.low %v231_v4, %v239_v5 }
  0x2c   : > { %2401 = vmatpush3.bf16.msra.mxu0 %v2728_v46  ;;  %v2768_v46 = vld [vmem:[%s3406_s1 + $0x218] sm:$0xff]  }
  0x2d   : > { %2429 = vmatpush3.bf16.msra.mxu1 %v2729_v47  ;;  %2402 = vmatprep.subr.bf16.mxu0 %v2730_v48  ;;  %v2769_v47 = vld [vmem:[%s3406_s1 + $0x298] sm:$0xff]   ;;  %v2770_v48 = vld [vmem:[%s3406_s1 + $0x260] sm:$0xff]  }
  0x2e   : > { %2430 = vmatprep.subr.bf16.mxu1 %v2731_v49  ;;  %v2771_v49 = vld [vmem:[%s3406_s1 + $0x2e0] sm:$0xff]  }
  0x2f   : > { %1490 = vmatmul.mubr.bf16.gmra.mrb[4].mxu0 %v2181_v2 }
  0x30   : > { %2403 = vmatpush3.bf16.msra.mxu0 %v2732_v50  ;;  %1539 = vmatmul.mubr.bf16.gmra.mrb[4].mxu1 %v2183_v7  ;;  %v2772_v50 = vld [vmem:[%s3406_s1 + $0x220] sm:$0xff]   ;;  %v2176_v7 = vcombine.high %v231_v4, %v239_v5 }
  0x31   : > { %2431 = vmatpush3.bf16.msra.mxu1 %v2733_v51  ;;  %2404 = vmatprep.subr.bf16.mxu0 %v2734_v52  ;;  %v2773_v51 = vld [vmem:[%s3406_s1 + $0x2a0] sm:$0xff]   ;;  %v2774_v52 = vld [vmem:[%s3406_s1 + $0x268] sm:$0xff]  }
  0x32   : > { %2432 = vmatprep.subr.bf16.mxu1 %v2735_v53  ;;  %1579 = vmatprep.mubr.bf16.mxu0 %v2170_v21  ;;  %v2775_v53 = vld [vmem:[%s3406_s1 + $0x2e8] sm:$0xff]   ;;  %v2795_v21 = vld [vmem:[%s3406_s1 + $0x3d0] sm:$0xff]  }
  0x33   : > { %1628 = vmatprep.mubr.bf16.mxu1 %v2172_v23  ;;  %v255_v23 = vld [vmem:[%s2983_s12 + $0xe8] sm:$0xff] }
  0x34   : > { %2405 = vmatpush3.bf16.msra.mxu0 %v2736_v54  ;;  %v2776_v54 = vld [vmem:[%s3406_s1 + $0x228] sm:$0xff]  }
  0x35   : > { %2433 = vmatpush3.bf16.msra.mxu1 %v2737_v55  ;;  %2406 = vmatprep.subr.bf16.mxu0 %v2738_v56  ;;  %v2777_v55 = vld [vmem:[%s3406_s1 + $0x2a8] sm:$0xff]   ;;  %v2778_v56 = vld [vmem:[%s3406_s1 + $0x270] sm:$0xff]  }
  0x36   : > { %2434 = vmatprep.subr.bf16.mxu1 %v2739_v57  ;;  %v2779_v57 = vld [vmem:[%s3406_s1 + $0x2f0] sm:$0xff]  }
  0x38   : > { %2407 = vmatpush3.bf16.msra.mxu0 %v2740_v58  ;;  %v2780_v58 = vld [vmem:[%s3406_s1 + $0x230] sm:$0xff]  }
  0x39   : > { %2435 = vmatpush3.bf16.msra.mxu1 %v2741_v59  ;;  %2408 = vmatprep.subr.bf16.mxu0 %v2742_v60  ;;  %v2781_v59 = vld [vmem:[%s3406_s1 + $0x2b0] sm:$0xff]   ;;  %v2782_v60 = vld [vmem:[%s3406_s1 + $0x278] sm:$0xff]  }
  0x3a   : > { %2436 = vmatprep.subr.bf16.mxu1 %v2743_v61  ;;  %v2783_v61 = vld [vmem:[%s3406_s1 + $0x2f8] sm:$0xff]  }
  0x3c   : > { %2409 = vmatpush3.bf16.msra.mxu0 %v2744_v1  ;;  %v238_v1 = vld [vmem:[%s2983_s12 + $0x60] sm:$0xff] }
  0x3d   : > { %2437 = vmatpush3.bf16.msra.mxu1 %v2745_v3  ;;  %2410 = vmatprep.subr.bf16.mxu0 %v2746_v8  ;;  %v2173_v2 = vcombine.low %v230_v0, %v238_v1  ;;  %v2174_v3 = vcombine.high %v230_v0, %v238_v1  ;;  %v2786_v8 = vld [vmem:[%s3406_s1 + $0x340] sm:$0xff]  }
  0x3e   : > { %2438 = vmatprep.subr.bf16.mxu1 %v2747_v9  ;;  %v2787_v9 = vld [vmem:[%s3406_s1 + $0x3c0] sm:$0xff]  }
  0x40   : > { %2411 = vmatpush3.bf16.msra.mxu0 %v2748_v10  ;;  %v2788_v10 = vld [vmem:[%s3406_s1 + $0x300] sm:$0xff]  }
  0x41   : > { %2439 = vmatpush3.bf16.msra.mxu1 %v2749_v11  ;;  %2412 = vmatprep.subr.bf16.mxu0 %v2750_v12  ;;  %v2789_v11 = vld [vmem:[%s3406_s1 + $0x380] sm:$0xff]   ;;  %v2790_v12 = vld [vmem:[%s3406_s1 + $0x348] sm:$0xff]  }
  0x42   : > { %2440 = vmatprep.subr.bf16.mxu1 %v2751_v13  ;;  %v2791_v13 = vld [vmem:[%s3406_s1 + $0x3c8] sm:$0xff]  }
  0x44   : > { %2413 = vmatpush3.bf16.msra.mxu0 %v2752_v14  ;;  %v2792_v14 = vld [vmem:[%s3406_s1 + $0x308] sm:$0xff]  }
  0x45   : > { %2441 = vmatpush3.bf16.msra.mxu1 %v2753_v15  ;;  %2454 = vmatprep.subr.bf16.mxu0 %v2754_v24  ;;  %v2793_v15 = vld [vmem:[%s3406_s1 + $0x388] sm:$0xff]  }
  0x46   : > { %2482 = vmatprep.subr.bf16.mxu1 %v2755_v25  ;;  %v2796_v25 = vld [vmem:[%s3406_s1 + $0x310] sm:$0xff]  }
  0x47   : > { %1580 = vmatmul.mubr.bf16.vlgmr.msra.gmra.mrb[8].mxu0 %v2169_v20  ;;  %v2794_v20 = vld [vmem:[%s3406_s1 + $0x350] sm:$0xff]  }
  0x48   : > { %1629 = vmatmul.mubr.bf16.vlgmr.msra.gmra.mrb[8].mxu1 %v2171_v22  ;;  %2455 = vmatpush3.bf16.msra.mxu0 %v2756_v26  ;;  %v247_v22 = vld [vmem:[%s2983_s12 + $0xa8] sm:$0xff] }
  0x49   : > { %2483 = vmatpush3.bf16.msra.mxu1 %v2757_v27  ;;  %2456 = vmatprep.subr.bf16.mxu0 %v2758_v28  ;;  %v2192_v24 = vcombine.high %v247_v22, %v255_v23  ;;  %v2191_v26 = vcombine.low %v247_v22, %v255_v23  ;;  %v2797_v27 = vld [vmem:[%s3406_s1 + $0x390] sm:$0xff]   ;;  %v2798_v28 = vld [vmem:[%s3406_s1 + $0x358] sm:$0xff]  }
  0x4a   : > { %2484 = vmatprep.subr.bf16.mxu1 %v2759_v29  ;;  %1587 = vmatprep.mubr.bf16.mxu0 %v2186_v34  ;;  %v2799_v29 = vld [vmem:[%s3406_s1 + $0x3d8] sm:$0xff]   ;;  %v2804_v34 = vld [vmem:[%s3406_s1 + $0x320] sm:$0xff]  }
  0x4b   : > { %1636 = vmatprep.mubr.bf16.mxu1 %v2188_v40  ;;  %v2810_v40 = vld [vmem:[%s3406_s1 + $0x370] sm:$0xff]  }
  0x4c   : > { %2457 = vmatpush3.bf16.msra.mxu0 %v2760_v30  ;;  %v2800_v30 = vld [vmem:[%s3406_s1 + $0x318] sm:$0xff]  }
  0x4d   : > { %2485 = vmatpush3.bf16.msra.mxu1 %v2761_v31  ;;  %2458 = vmatprep.subr.bf16.mxu0 %v2762_v36  ;;  %v2801_v31 = vld [vmem:[%s3406_s1 + $0x398] sm:$0xff]   ;;  %v2806_v36 = vld [vmem:[%s3406_s1 + $0x368] sm:$0xff]  }
  0x4e   : > { %2486 = vmatprep.subr.bf16.mxu1 %v2763_v37  ;;  %v2807_v37 = vld [vmem:[%s3406_s1 + $0x3e8] sm:$0xff]  }
  0x4f   : > { %1588 = vmatmul.mubr.bf16.gmra.mrb[12].mxu0 %v2185_v35  ;;  %v2805_v35 = vld [vmem:[%s3406_s1 + $0x3a0] sm:$0xff]  }
  0x50   : > { %2459 = vmatpush3.bf16.msra.mxu0 %v2764_v41  ;;  %1637 = vmatmul.mubr.bf16.gmra.mrb[12].mxu1 %v2187_v42  ;;  %v2811_v41 = vld [vmem:[%s3406_s1 + $0x3f0] sm:$0xff]  }
  0x51   : > { %2487 = vmatpush3.bf16.msra.mxu1 %v2765_v43  ;;  %2460 = vmatprep.subr.bf16.mxu0 %v2766_v44  ;;  %v2812_v42 = vld [vmem:[%s3406_s1 + $0x330] sm:$0xff]   ;;  %v2814_v44 = vld [vmem:[%s3406_s1 + $0x378] sm:$0xff]  }
  0x52   : > { %2488 = vmatprep.subr.bf16.mxu1 %v2767_v45  ;;  %1677 = vmatprep.mubr.bf16.mxu0 %v2174_v3  ;;  %v2813_v43 = vld [vmem:[%s3406_s1 + $0x3b0] sm:$0xff]   ;;  %v2815_v45 = vld [vmem:[%s3406_s1 + $0x3f8] sm:$0xff]  }
  0x53   : > { %1726 = vmatprep.mubr.bf16.mxu1 %v2176_v7 }
  0x54   : > { %2461 = vmatpush3.bf16.msra.mxu0 %v2768_v46  ;;  %v2816_v46 = vld [vmem:[%s3406_s1 + $0x338] sm:$0xff]  }
  0x55   : > { %2489 = vmatpush3.bf16.msra.mxu1 %v2769_v47  ;;  %2462 = vmatprep.subr.bf16.mxu0 %v2770_v48  ;;  %v2817_v47 = vld [vmem:[%s3406_s1 + $0x3b8] sm:$0xff]   ;;  %v232_v48 = vld [vmem:[%s2983_s12 + $0x30] sm:$0xff] }
  0x56   : > { %2490 = vmatprep.subr.bf16.mxu1 %v2771_v49  ;;  %v240_v49 = vld [vmem:[%s2983_s12 + $0x70] sm:$0xff] }
  0x58   : > { %2463 = vmatpush3.bf16.msra.mxu0 %v2772_v50  ;;  %v233_v50 = vld [vmem:[%s2983_s12 + $0x38] sm:$0xff] }
  0x59   : > { %2491 = vmatpush3.bf16.msra.mxu1 %v2773_v51  ;;  %2464 = vmatprep.subr.bf16.mxu0 %v2774_v52  ;;  %v2177_v51 = vcombine.low %v232_v48, %v240_v49  ;;  %v2178_v52 = vcombine.high %v232_v48, %v240_v49 }
  0x5a   : > { %2492 = vmatprep.subr.bf16.mxu1 %v2775_v53  ;;  %v241_v53 = vld [vmem:[%s2983_s12 + $0x78] sm:$0xff] }
  0x5c   : > { %2465 = vmatpush3.bf16.msra.mxu0 %v2776_v54  ;;  %v248_v54 = vld [vmem:[%s2983_s12 + $0xb0] sm:$0xff] }
  0x5d   : > { %2493 = vmatpush3.bf16.msra.mxu1 %v2777_v55  ;;  %2466 = vmatprep.subr.bf16.mxu0 %v2778_v56  ;;  %v256_v55 = vld [vmem:[%s2983_s12 + $0xf0] sm:$0xff]  ;;  %v2179_v56 = vcombine.low %v233_v50, %v241_v53 }
  0x5e   : > { %2494 = vmatprep.subr.bf16.mxu1 %v2779_v57  ;;  %v2180_v57 = vcombine.high %v233_v50, %v241_v53  ;;  %v1976_v50 = vld [vmem:[%s3409_s4] sm:$0xff] }
  0x60   : > { %2467 = vmatpush3.bf16.msra.mxu0 %v2780_v58  ;;  %v2194_v58 = vcombine.high %v248_v54, %v256_v55 }
  0x61   : > { %2495 = vmatpush3.bf16.msra.mxu1 %v2781_v59  ;;  %2468 = vmatprep.subr.bf16.mxu0 %v2782_v60  ;;  %v249_v59 = vld [vmem:[%s2983_s12 + $0xb8] sm:$0xff] }
  0x62   : > { %2496 = vmatprep.subr.bf16.mxu1 %v2783_v61  ;;  %v257_v60 = vld [vmem:[%s2983_s12 + $0xf8] sm:$0xff] }
  0x63   : > { %v2196_v61 = vcombine.high %v249_v59, %v257_v60 }
  0x64   : > { %2469 = vmatpush3.bf16.msra.mxu0 %v2784_v62  ;;  %v2193_v62 = vcombine.low %v248_v54, %v256_v55  ;;  %v1979_v54 = vld [vmem:[%s3409_s4 + $0x18] sm:$0xff] }
  0x65   : > { %2497 = vmatpush3.bf16.msra.mxu1 %v2785_v63  ;;  %2510 = vmatprep.subr.bf16.mxu0 %v2786_v8  ;;  %v2195_v63 = vcombine.low %v249_v59, %v257_v60  ;;  %v1980_v59 = vld [vmem:[%s3409_s4 + $0x20] sm:$0xff]  ;;  %v1981_v60 = vld [vmem:[%s3409_s4 + $0x28] sm:$0xff] }
  0x66   : > { %2538 = vmatprep.subr.bf16.mxu1 %v2787_v9 }
  0x67   : > { %1678 = vmatmul.mubr.bf16.vlgmr.msra.gmra.mrb[16].mxu0 %v2173_v2  ;;  %v2164_v2 = vld [vmem:[%s3407_s2] ss:$0 sm:$0xff] }
  0x68   : > { %1727 = vmatmul.mubr.bf16.vlgmr.msra.gmra.mrb[16].mxu1 %v2175_v6  ;;  %2511 = vmatpush3.bf16.msra.mxu0 %v2788_v10 }
  0x69   : > { %2539 = vmatpush3.bf16.msra.mxu1 %v2789_v11  ;;  %2512 = vmatprep.subr.bf16.mxu0 %v2790_v12 }
  0x6a   : > { %2540 = vmatprep.subr.bf16.mxu1 %v2791_v13  ;;  %1685 = vmatprep.mubr.bf16.mxu0 %v2190_v18 }
  0x6b   : > { %1734 = vmatprep.mubr.bf16.mxu1 %v2192_v24 }
  0x6c   : > { %2513 = vmatpush3.bf16.msra.mxu0 %v2792_v14 }
  0x6d   : > { %2541 = vmatpush3.bf16.msra.mxu1 %v2793_v15  ;;  %2514 = vmatprep.subr.bf16.mxu0 %v2794_v20 }
  0x6e   : > { %2542 = vmatprep.subr.bf16.mxu1 %v2795_v21 }
  0x6f   : > { %1686 = vmatmul.mubr.bf16.gmra.mrb[20].mxu0 %v2189_v19  ;;  %v2844_v19 = vmov 0.0  }
  0x70   : > { %2515 = vmatpush3.bf16.msra.mxu0 %v2796_v25  ;;  %1735 = vmatmul.mubr.bf16.gmra.mrb[20].mxu1 %v2191_v26 }
  0x71   : > { %2543 = vmatpush3.bf16.msra.mxu1 %v2797_v27  ;;  %2516 = vmatprep.subr.bf16.mxu0 %v2798_v28 }
  0x72   : > { %2544 = vmatprep.subr.bf16.mxu1 %v2799_v29  ;;  %1775 = vmatprep.mubr.bf16.mxu0 %v2178_v52  ;;  %v1978_v52 = vld [vmem:[%s3409_s4 + $0x10] sm:$0xff] }
  0x73   : > { %1824 = vmatprep.mubr.bf16.mxu1 %v2180_v57  ;;  %v2664_v57 = vpack.c.bf16 %v1979_v54, %v1978_v52 }
  0x74   : > { %2517 = vmatpush3.bf16.msra.mxu0 %v2800_v30 }
  0x75   : > { %2545 = vmatpush3.bf16.msra.mxu1 %v2801_v31  ;;  %2518 = vmatprep.subr.bf16.mxu0 %v2802_v32 }
  0x76   : > { %2546 = vmatprep.subr.bf16.mxu1 %v2803_v33 }
  0x78   : > { %2519 = vmatpush3.bf16.msra.mxu0 %v2804_v34 }
  0x79   : > { %2547 = vmatpush3.bf16.msra.mxu1 %v2805_v35  ;;  %2520 = vmatprep.subr.bf16.mxu0 %v2806_v36 }
  0x7a   : > { %2548 = vmatprep.subr.bf16.mxu1 %v2807_v37 }
  0x7c   : > { %2521 = vmatpush3.bf16.msra.mxu0 %v2808_v38 }
  0x7d   : > { %2549 = vmatpush3.bf16.msra.mxu1 %v2809_v39  ;;  %2522 = vmatprep.subr.bf16.mxu0 %v2810_v40 }
  0x7e   : > { %2550 = vmatprep.subr.bf16.mxu1 %v2811_v41 }
  0x80   : > { %2523 = vmatpush3.bf16.msra.mxu0 %v2812_v42 }
  0x81   : > { %2551 = vmatpush3.bf16.msra.mxu1 %v2813_v43  ;;  %2524 = vmatprep.subr.bf16.mxu0 %v2814_v44 }
  0x82   : > { %2552 = vmatprep.subr.bf16.mxu1 %v2815_v45 }
  0x84   : > { %2525 = vmatpush3.bf16.msra.mxu0 %v2816_v46 }
  0x85   : > { %2553 = vmatpush3.bf16.msra.mxu1 %v2817_v47  ;;  %2654 = vmatprep.subr.bf16.mxu0 %v2842_v17 }
  0x86   : > { %2660 = vmatprep.subr.bf16.mxu1 %v2842_v17 }
  0x87   : > { %1776 = vmatmul.mubr.bf16.vlgmr.msra.gmra.mrb[24].mxu0 %v2177_v51  ;;  %v1977_v51 = vld [vmem:[%s3409_s4 + $0x8] sm:$0xff] }
  0x88   : > { %1825 = vmatmul.mubr.bf16.vlgmr.msra.gmra.mrb[24].mxu1 %v2179_v56  ;;  %1783 = vmatprep.mubr.bf16.mxu0 %v2194_v58  ;;  %v2661_v53 = vpack.c.bf16 %v1977_v51, %v1976_v50 }
  0x89   : > { %1832 = vmatprep.mubr.bf16.mxu1 %v2196_v61 }
  0x8a   : > { %2662 = vmatpush3.bf16.msra.mxu1 %v2661_v53 }
  0x8b   : > { %2663 = vmatprep.subr.bf16.mxu1 %v2842_v17 }
  0x8e   : > { %2665 = vmatpush3.bf16.msra.mxu1 %v2664_v57 }
  0x8f   : > { %1784 = vmatmul.mubr.bf16.gmra.mrb[28].mxu0 %v2193_v62  ;;  %2666 = vmatprep.subr.bf16.mxu1 %v2842_v17 }
  0x90   : > { %1833 = vmatmul.mubr.bf16.gmra.mrb[28].mxu1 %v2195_v63  ;;  %2600 = vmatprep.mubr.msk.f32.mxu0 %vm2843_vm0, %v2844_v19 }
  0x91   : > { %2639 = vmatprep.mubr.msk.f32.mxu1 %vm2843_vm0, %v2844_v19 }
  0xfa   : > { %v2358_v0 = vpop.f32.mrb[0].mxu0 }
  0xfb   : > { %v2386_v1 = vpop.f32.mrb[0].mxu1  ;;  %v2359_v3 = vpop.f32.mrb[1].mxu0 }
  0xfc   : > { %v2360_v4 = vadd.f32 %v2359_v3, %v2358_v0  ;;  %v2387_v5 = vpop.f32.mrb[1].mxu1  ;;  %v2361_v6 = vpop.f32.mrb[2].mxu0  ;;  %v2667_v3 = vpack.c.bf16 %v1981_v60, %v1980_v59 }
  0xfd   : > { %v2388_v7 = vadd.f32 %v2387_v5, %v2386_v1  ;;  %v2389_v8 = vpop.f32.mrb[2].mxu1  ;;  %v2362_v9 = vpop.f32.mrb[3].mxu0  ;;  %v1982_v5 = vld [vmem:[%s3409_s4 + $0x30] sm:$0xff] }
  0xfe   : > { %v1484_v10 = vadd.f32 %v2360_v4, %v2164_v2  ;;  %v2363_v11 = vadd.f32 %v2362_v9, %v2361_v6  ;;  %v2390_v12 = vpop.f32.mrb[3].mxu1  ;;  %v1983_v6 = vld [vmem:[%s3409_s4 + $0x38] sm:$0xff]  ;;  %2668 = vmatpush3.bf16.msra.mxu1 %v2667_v3 }
  0xff   : > { %v2391_v13 = vadd.f32 %v2390_v12, %v2389_v8  ;;  %2669 = vmatprep.subr.bf16.mxu1 %v2842_v17 }
 0x100   : > { %v1533_v14 = vadd.f32 %v2388_v7, %v1484_v10  ;;  %v1487_v15 = vadd.f32 %v2363_v11, %v2164_v2 }
 0x102   : > { %v1536_v16 = vadd.f32 %v2391_v13, %v1487_v15  ;;  %v2364_v18 = vpop.f32.mrb[4].mxu0  ;;  %v2670_v13 = vpack.c.bf16 %v1983_v6, %v1982_v5  ;;  %v1985_v15 = vld [vmem:[%s3409_s4 + $0x48] sm:$0xff] }
 0x103   : > { %v2365_v20 = vpop.f32.mrb[5].mxu0  ;;  %v2392_v23 = vpop.f32.mrb[4].mxu1 }
 0x104   : > { %v2366_v21 = vadd.f32 %v2365_v20, %v2364_v18  ;;  %v2367_v22 = vpop.f32.mrb[6].mxu0  ;;  %v2393_v27 = vpop.f32.mrb[5].mxu1  ;;  %2671 = vmatpush3.bf16.msra.mxu1 %v2670_v13  ;;  %v1986_v20 = vld [vmem:[%s3409_s4 + $0x50] sm:$0xff] }
 0x105   : > { %v2368_v24 = vpop.f32.mrb[7].mxu0  ;;  %v2394_v28 = vadd.f32 %v2393_v27, %v2392_v23  ;;  %v2395_v29 = vpop.f32.mrb[6].mxu1  ;;  %2672 = vmatprep.subr.bf16.mxu1 %v2842_v17 }
 0x106   : > { %v1492_v25 = vadd.f32 %v2366_v21, %v2164_v2  ;;  %v2369_v26 = vadd.f32 %v2368_v24, %v2367_v22  ;;  %v2396_v31 = vpop.f32.mrb[7].mxu1  ;;  %v1987_v21 = vld [vmem:[%s3409_s4 + $0x58] sm:$0xff] }
 0x107   : > { %v2397_v33 = vadd.f32 %v2396_v31, %v2395_v29  ;;  %v2676_v22 = vpack.c.bf16 %v1987_v21, %v1986_v20 }
 0x108   : > { %v1495_v30 = vadd.f32 %v2369_v26, %v2164_v2  ;;  %v1541_v32 = vadd.f32 %v2394_v28, %v1492_v25 }
 0x10a   : > { %v1544_v34 = vadd.f32 %v2397_v33, %v1495_v30 }
 0x11a   : > { %v2414_v35 = vpop.f32.mrb[8].mxu0 }
 0x11b   : > { %v2442_v36 = vpop.f32.mrb[8].mxu1  ;;  %v2415_v37 = vpop.f32.mrb[9].mxu0 }
 0x11c   : > { %v2443_v38 = vpop.f32.mrb[9].mxu1  ;;  %v2416_v39 = vadd.f32 %v2415_v37, %v2414_v35  ;;  %v2417_v41 = vpop.f32.mrb[10].mxu0 }
 0x11d   : > { %v2444_v40 = vadd.f32 %v2443_v38, %v2442_v36  ;;  %v2445_v42 = vpop.f32.mrb[10].mxu1  ;;  %v2418_v43 = vpop.f32.mrb[11].mxu0 }
 0x11e   : > { %v2446_v44 = vpop.f32.mrb[11].mxu1  ;;  %v1582_v45 = vadd.f32 %v2416_v39, %v1533_v14  ;;  %v2419_v46 = vadd.f32 %v2418_v43, %v2417_v41  ;;  %v1984_v14 = vld [vmem:[%s3409_s4 + $0x40] sm:$0xff] }
 0x11f   : > { %v2447_v47 = vadd.f32 %v2446_v44, %v2445_v42  ;;  %v2673_v18 = vpack.c.bf16 %v1985_v15, %v1984_v14 }
 0x120   : > { %v1631_v48 = vadd.f32 %v2444_v40, %v1582_v45  ;;  %v1585_v49 = vadd.f32 %v2419_v46, %v1536_v16 }
 0x121   : > { %2674 = vmatpush3.bf16.msra.mxu1 %v2673_v18 }
 0x122   : > { %v1634_v55 = vadd.f32 %v2447_v47, %v1585_v49  ;;  %v2420_v56 = vpop.f32.mrb[12].mxu0  ;;  %2675 = vmatprep.subr.bf16.mxu1 %v2842_v17 }
 0x123   : > { %v2421_v58 = vpop.f32.mrb[13].mxu0  ;;  %v2448_v1 = vpop.f32.mrb[12].mxu1 }
 0x124   : > { %v2422_v61 = vadd.f32 %v2421_v58, %v2420_v56  ;;  %v2423_v62 = vpop.f32.mrb[14].mxu0  ;;  %v2449_v4 = vpop.f32.mrb[13].mxu1 }
 0x125   : > { %v2424_v63 = vpop.f32.mrb[15].mxu0  ;;  %v2450_v8 = vadd.f32 %v2449_v4, %v2448_v1  ;;  %v2451_v9 = vpop.f32.mrb[14].mxu1  ;;  %2677 = vmatpush3.bf16.msra.mxu1 %v2676_v22 }
 0x126   : > { %v1590_v0 = vadd.f32 %v2422_v61, %v1541_v32  ;;  %v2425_v2 = vadd.f32 %v2424_v63, %v2423_v62  ;;  %v2452_v10 = vpop.f32.mrb[15].mxu1 }
 0x127   : > { %v2453_v12 = vadd.f32 %v2452_v10, %v2451_v9 }
 0x128   : > { %v1593_v7 = vadd.f32 %v2425_v2, %v1544_v34  ;;  %v1639_v11 = vadd.f32 %v2450_v8, %v1590_v0 }
 0x12a   : > { %v1642_v16 = vadd.f32 %v2453_v12, %v1593_v7 }
 0x13a   : > { %v2470_v23 = vpop.f32.mrb[16].mxu0 }
 0x13b   : > { %v2498_v24 = vpop.f32.mrb[16].mxu1  ;;  %v2471_v25 = vpop.f32.mrb[17].mxu0 }
 0x13c   : > { %v2472_v26 = vadd.f32 %v2471_v25, %v2470_v23  ;;  %v2499_v27 = vpop.f32.mrb[17].mxu1  ;;  %v2473_v28 = vpop.f32.mrb[18].mxu0 }
 0x13d   : > { %v2500_v29 = vadd.f32 %v2499_v27, %v2498_v24  ;;  %v2501_v30 = vpop.f32.mrb[18].mxu1  ;;  %v2474_v31 = vpop.f32.mrb[19].mxu0 }
 0x13e   : > { %v1680_v32 = vadd.f32 %v2472_v26, %v1631_v48  ;;  %v2475_v33 = vadd.f32 %v2474_v31, %v2473_v28  ;;  %v2502_v34 = vpop.f32.mrb[19].mxu1 }
 0x13f   : > { %v2503_v35 = vadd.f32 %v2502_v34, %v2501_v30 }
 0x140   : > { %v1729_v36 = vadd.f32 %v2500_v29, %v1680_v32  ;;  %v1683_v37 = vadd.f32 %v2475_v33, %v1634_v55 }
 0x142   : > { %v1732_v38 = vadd.f32 %v2503_v35, %v1683_v37  ;;  %v2476_v39 = vpop.f32.mrb[20].mxu0 }
 0x143   : > { %v2477_v40 = vpop.f32.mrb[21].mxu0  ;;  %v2504_v43 = vpop.f32.mrb[20].mxu1 }
 0x144   : > { %v2478_v41 = vadd.f32 %v2477_v40, %v2476_v39  ;;  %v2479_v42 = vpop.f32.mrb[22].mxu0  ;;  %v2505_v47 = vpop.f32.mrb[21].mxu1 }
 0x145   : > { %v2480_v44 = vpop.f32.mrb[23].mxu0  ;;  %v2506_v49 = vadd.f32 %v2505_v47, %v2504_v43  ;;  %v2507_v50 = vpop.f32.mrb[22].mxu1  ;;  %v1865_v43 = vld [vmem:[%s3408_s3] sm:$0xff] }
 0x146   : > { %v1688_v45 = vadd.f32 %v2478_v41, %v1639_v11  ;;  %v2481_v46 = vadd.f32 %v2480_v44, %v2479_v42  ;;  %v2508_v52 = vpop.f32.mrb[23].mxu1  ;;  %v1866_v44 = vld [vmem:[%s3408_s3 + $0x8] sm:$0xff] }
 0x147   : > { %v2509_v53 = vadd.f32 %v2508_v52, %v2507_v50 }
 0x148   : > { %v1691_v51 = vadd.f32 %v2481_v46, %v1642_v16  ;;  %v1737_v48 = vadd.f32 %v2506_v49, %v1688_v45  ;;  %v1868_v45 = vld [vmem:[%s3408_s3 + $0x18] sm:$0xff]  ;;  %v1869_v46 = vld [vmem:[%s3408_s3 + $0x20] sm:$0xf] }
 0x14a   : > { %v1740_v54 = vadd.f32 %v2509_v53, %v1691_v51 }
 0x15a   : > { %v2526_v56 = vpop.f32.mrb[24].mxu0 }
 0x15b   : > { %v2554_v57 = vpop.f32.mrb[24].mxu1  ;;  %v2527_v55 = vpop.f32.mrb[25].mxu0 }
 0x15c   : > { %v2528_v58 = vadd.f32 %v2527_v55, %v2526_v56  ;;  %v2555_v59 = vpop.f32.mrb[25].mxu1  ;;  %v2529_v60 = vpop.f32.mrb[26].mxu0 }
 0x15d   : > { %v2556_v61 = vadd.f32 %v2555_v59, %v2554_v57  ;;  %v2557_v62 = vpop.f32.mrb[26].mxu1  ;;  %v2530_v63 = vpop.f32.mrb[27].mxu0 }
 0x15e   : > { %v1778_v0 = vadd.f32 %v2528_v58, %v1729_v36  ;;  %v2531_v1 = vadd.f32 %v2530_v63, %v2529_v60  ;;  %v2558_v2 = vpop.f32.mrb[27].mxu1 }
 0x15f   : > { %v2559_v3 = vadd.f32 %v2558_v2, %v2557_v62 }
 0x160   : > { %v1827_v4 = vadd.f32 %v2556_v61, %v1778_v0  ;;  %v1781_v5 = vadd.f32 %v2531_v1, %v1732_v38 }
 0x162   : > { %v2325_v6 = vmul.f32 -1.442695, %v1827_v4  ;;  %v1830_v7 = vadd.f32 %v2559_v3, %v1781_v5  ;;  %v2532_v8 = vpop.f32.mrb[28].mxu0 }
 0x163   : > { %v2560_v9 = vpop.f32.mrb[28].mxu1  ;;  %v2533_v10 = vpop.f32.mrb[29].mxu0 }
 0x164   : > { %2818 = vpow2.f32 %v2325_v6  ;;  %v2326_v11 = vmul.f32 -1.442695, %v1830_v7  ;;  %v2534_v12 = vadd.f32 %v2533_v10, %v2532_v8  ;;  %v2561_v13 = vpop.f32.mrb[29].mxu1  ;;  %v2535_v14 = vpop.f32.mrb[30].mxu0 }
 0x165   : > { %v2562_v15 = vadd.f32 %v2561_v13, %v2560_v9  ;;  %v2563_v16 = vpop.f32.mrb[30].mxu1  ;;  %v2536_v18 = vpop.f32.mrb[31].mxu0 }
 0x166   : > { %2820 = vpow2.f32 %v2326_v11  ;;  %v1786_v20 = vadd.f32 %v2534_v12, %v1737_v48  ;;  %v2537_v21 = vadd.f32 %v2536_v18, %v2535_v14  ;;  %v2564_v22 = vpop.f32.mrb[31].mxu1 }
 0x167   : > { %v2565_v23 = vadd.f32 %v2564_v22, %v2563_v16 }
 0x168   : > { %v1835_v24 = vadd.f32 %v2562_v15, %v1786_v20  ;;  %v1789_v25 = vadd.f32 %v2537_v21, %v1740_v54 }
 0x16a   : > { %v2327_v26 = vmul.f32 -1.442695, %v1835_v24  ;;  %v1838_v27 = vadd.f32 %v2565_v23, %v1789_v25 }
 0x16c   : > { %2822 = vpow2.f32 %v2327_v26  ;;  %v2328_v28 = vmul.f32 -1.442695, %v1838_v27 }
 0x16e   : > { %v2819_v29 = vpop.eup %2818  ;;  %2824 = vpow2.f32 %v2328_v28 }
 0x16f   : > { %v1853_v30 = vadd.f32 1.0, %v2819_v29 }
 0x170   : > { %v2821_v31 = vpop.eup %2820 }
 0x171   : > { %v1854_v32 = vadd.f32 1.0, %v2821_v31  ;;  %2826 = vrcp.f32 %v1853_v30 }
 0x173   : > { %2828 = vrcp.f32 %v1854_v32 }
 0x176   : > { %v2823_v33 = vpop.eup %2822 }
 0x177   : > { %v1855_v34 = vadd.f32 1.0, %v2823_v33 }
 0x178   : > { %v2825_v35 = vpop.eup %2824 }
 0x179   : > { %v1856_v36 = vadd.f32 1.0, %v2825_v35  ;;  %2830 = vrcp.f32 %v1855_v34 }
 0x17b   : > { %2832 = vrcp.f32 %v1856_v36  ;;  %v2827_v37 = vpop.eup %2826 }
 0x17d   : > { %v2829_v38 = vpop.eup %2828 }
 0x17e   : > { %v2655_v39 = vpack.c.bf16 %v2829_v38, %v2827_v37 }
 0x180   : > { %2656 = vmatpush3.bf16.msra.mxu0 %v2655_v39 }
 0x181   : > { %2657 = vmatprep.subr.bf16.mxu0 %v2842_v17  ;;  %v1867_v17 = vld [vmem:[%s3408_s3 + $0x10] sm:$0xff] }
 0x183   : > { %v2831_v40 = vpop.eup %2830 }
 0x185   : > { %v2833_v41 = vpop.eup %2832 }
 0x186   : > { %v2658_v42 = vpack.c.bf16 %v2833_v41, %v2831_v40 }
 0x188   : > { %2659 = vmatpush3.bf16.msra.mxu0 %v2658_v42 }
 0x18b   : > { %2601 = vmatmul.mubr.msk.f32.vlgmr.msra.gmra.mrb[32].mxu0 %vm1870_vm1, %v1865_v43 }
 0x18c   : > { %2603 = vmatprep.mubr.msk.f32.mxu0 %vm2843_vm0, %v2844_v19 }
 0x18f   : > { %2604 = vmatmul.mubr.msk.f32.gmra.mrb[34].mxu0 %vm1870_vm1, %v1866_v44 }
 0x190   : > { %2606 = vmatprep.mubr.msk.f32.mxu0 %vm2843_vm0, %v2844_v19 }
 0x193   : > { %2607 = vmatmul.mubr.msk.f32.gmra.mrb[36].mxu0 %vm1870_vm1, %v1867_v17 }
 0x194   : > { %2609 = vmatprep.mubr.msk.f32.mxu0 %vm2843_vm0, %v2844_v19 }
 0x197   : > { %2610 = vmatmul.mubr.msk.f32.gmra.mrb[38].mxu0 %vm1870_vm1, %v1868_v45 }
 0x198   : > { %2612 = vmatprep.mubr.msk.f32.mxu0 %vm2843_vm0, %v2844_v19 }
 0x19b   : > { %2613 = vmatmul.mubr.msk.f32.gmra.mrb[40].mxu0 %vm1870_vm1, %v1869_v46 }
 0x25e   : > { %v1952_v47 = vpop.f32.mrb[32].mxu0 }
 0x25f   : > { %v2602_v49 = vpop.f32.mrb[33].mxu0  ;;  %2640 = vmatmul.mubr.msk.f32.vlgmr.msra.gmra.mrb[32].mxu1 %vm1988_vm2, %v1952_v47 }
 0x260   : > { %2642 = vmatprep.mubr.msk.f32.mxu1 %vm2843_vm0, %v2844_v19 }
 0x262   : > { %v1957_v50 = vpop.f32.mrb[34].mxu0 }
 0x263   : > { %v2605_v51 = vpop.f32.mrb[35].mxu0  ;;  %2643 = vmatmul.mubr.msk.f32.gmra.mrb[34].mxu1 %vm1988_vm2, %v1957_v50 }
 0x264   : > { %2645 = vmatprep.mubr.msk.f32.mxu1 %vm2843_vm0, %v2844_v19 }
 0x266   : > { %v1962_v52 = vpop.f32.mrb[36].mxu0 }
 0x267   : > { %v2608_v48 = vpop.f32.mrb[37].mxu0  ;;  %2646 = vmatmul.mubr.msk.f32.gmra.mrb[36].mxu1 %vm1988_vm2, %v1962_v52 }
 0x268   : > { %2648 = vmatprep.mubr.msk.f32.mxu1 %vm2843_vm0, %v2844_v19 }
 0x26a   : > { %v1967_v53 = vpop.f32.mrb[38].mxu0 }
 0x26b   : > { %v2611_v54 = vpop.f32.mrb[39].mxu0  ;;  %2649 = vmatmul.mubr.msk.f32.gmra.mrb[38].mxu1 %vm1988_vm2, %v1967_v53 }
 0x26c   : > { %2651 = vmatprep.mubr.msk.f32.mxu1 %vm2843_vm0, %v2844_v19 }
 0x26e   : > { %v1972_v56 = vpop.f32.mrb[40].mxu0 }
 0x26f   : > { %v2614_v57 = vpop.f32.mrb[41].mxu0  ;;  %2652 = vmatmul.mubr.msk.f32.gmra.mrb[40].mxu1 %vm1988_vm2, %v1972_v56 }
 0x332   : > { %v2070_v55 = vpop.f32.mrb[32].mxu1 }
 0x333   : > { %2095 = vst.msk [vmem:[%s224_s28] sm:$0xff] %vm2094_vm3, %v2070_v55  ;;  %v2641_v58 = vpop.f32.mrb[33].mxu1 }
 0x336   : > { %v2075_v59 = vpop.f32.mrb[34].mxu1 }
 0x337   : > { %2096 = vst.msk [vmem:[%s224_s28 + $0x8] sm:$0xff] %vm2094_vm3, %v2075_v59  ;;  %v2644_v60 = vpop.f32.mrb[35].mxu1 }
 0x33a   : > { %v2080_v61 = vpop.f32.mrb[36].mxu1 }
 0x33b   : > { %2097 = vst.msk [vmem:[%s224_s28 + $0x10] sm:$0xff] %vm2094_vm3, %v2080_v61  ;;  %v2647_v62 = vpop.f32.mrb[37].mxu1 }
 0x33e   : > { %v2085_v19 = vpop.f32.mrb[38].mxu1 }
 0x33f   : > { %2098 = vst.msk [vmem:[%s224_s28 + $0x18] sm:$0xff] %vm2094_vm3, %v2085_v19  ;;  %v2650_v63 = vpop.f32.mrb[39].mxu1 }
 0x342   : > { %v2090_v0 = vpop.f32.mrb[40].mxu1 }
 0x343   : > { %2100 = vst.msk [vmem:[%s224_s28 + $0x20] sm:$0xf] %vm2099_vm4, %v2090_v0  ;;  %v2653_v1 = vpop.f32.mrb[41].mxu1 }
 0x344 PF: > { %s15_s18 = sadd.s32 1, %s2840_s18  }
 0x345   : > { %p12_p4 = scmp.ge.s32.totalorder %s15_s18, 4  }
 0x347   :  { %14 = sbr.rel (!%p12_p4) target bundleno = 1 (0x1), region = 70 }

</bundles_post_ra>
